<compile_context>
chip_gen: v5e
topology: v5e:2x2
jax: 0.10.0
libtpu: 0.0.40
codegen_flags: <defaults>
</compile_context>

<pallas_src>
import math

import jax
import jax.numpy as jnp
from jax.experimental import pallas as pl
from jax.experimental.pallas import tpu as pltpu


# ------------------------------ fused kernel --------------------------------

def _make_vgg_kernel(n_conv):
    """Whole-network kernel: n_conv x (conv3x3+ReLU+pool2) then fc1/fc2/fc3."""

    def kernel(*refs):
        x_ref = refs[0]
        conv_refs = refs[1:1 + 2 * n_conv]                       # (w, b) pairs
        fw1, fb1, fw2, fb2, fw3, fb3 = refs[1 + 2 * n_conv:7 + 2 * n_conv]
        o_ref = refs[7 + 2 * n_conv]
        pads = refs[8 + 2 * n_conv:]                             # VMEM scratch

        # ---- seed the first padded activation buffer (zero border) ----
        H, W = x_ref.shape[1], x_ref.shape[2]
        pads[0][...] = jnp.zeros(pads[0].shape, pads[0].dtype)
        pads[0][1:1 + H, 1:1 + W, :] = x_ref[0].astype(pads[0].dtype)

        feat = None
        # ---- feature stack: conv3x3(pad=1) + bias + ReLU + maxpool2x2 ----
        for li in range(n_conv):
            w_ref = conv_refs[2 * li]          # (3, 3, Cin, Cout) bf16
            b_ref = conv_refs[2 * li + 1]      # (1, Cout) f32
            pad_ref = pads[li]                 # (Hc+2, Wc+2, Cin) bf16
            Hc = pad_ref.shape[0] - 2
            Wc = pad_ref.shape[1] - 2
            Cin = pad_ref.shape[2]
            Cout = w_ref.shape[3]

            xp = pad_ref[...]                  # padded activation (bf16)
            acc = jnp.zeros((Hc * Wc, Cout), jnp.float32)
            for kh in range(3):
                for kw in range(3):
                    patch = xp[kh:kh + Hc, kw:kw + Wc, :].reshape(Hc * Wc, Cin)
                    acc = acc + jnp.dot(patch, w_ref[kh, kw],
                                        preferred_element_type=jnp.float32)
            acc = jnp.maximum(acc + b_ref[...], 0.0)             # bias + ReLU

            # fused 2x2 max pool
            Hp, Wp = Hc // 2, Wc // 2
            acc = acc.reshape(Hp, 2, Wp, 2, Cout)
            acc = jnp.maximum(acc[:, 0], acc[:, 1])
            acc = jnp.maximum(acc[:, :, 0], acc[:, :, 1])        # (Hp, Wp, Cout)

            if li + 1 < n_conv:
                nxt = pads[li + 1]                               # next padded buf
                nxt[...] = jnp.zeros(nxt.shape, nxt.dtype)
                nxt[1:1 + Hp, 1:1 + Wp, :] = acc.astype(nxt.dtype)
            else:
                # final spatial size is 1x1, so NHWC flatten == PyTorch NCHW view
                feat = acc.reshape(1, Hp * Wp * Cout)

        # ---- classifier: Dropout(id) -> FC+ReLU -> Dropout(id) -> FC+ReLU -> FC
        h = feat.astype(jnp.bfloat16)
        h = jnp.dot(h, fw1[...], preferred_element_type=jnp.float32) + fb1[...]
        h = jnp.maximum(h, 0.0).astype(jnp.bfloat16)
        h = jnp.dot(h, fw2[...], preferred_element_type=jnp.float32) + fb2[...]
        h = jnp.maximum(h, 0.0).astype(jnp.bfloat16)
        h = jnp.dot(h, fw3[...], preferred_element_type=jnp.float32) + fb3[...]
        o_ref[0] = h.astype(o_ref.dtype)

    return kernel


# ----------------------------- parameter setup ------------------------------

def xavier_uniform(key, shape, fan_in, fan_out):
    bound = math.sqrt(6.0 / (fan_in + fan_out))
    return jax.random.uniform(key, shape, jnp.float32, -bound, bound)


def init_vgg_params(key, num_class=10):
    # conv channel plan: local 3->32 ; cloud 32->64, 64->128, 128->512
    conv_plan = [(3, 32), (32, 64), (64, 128), (128, 512)]
    keys = jax.random.split(key, len(conv_plan) + 3)
    convs = []
    for i, (cin, cout) in enumerate(conv_plan):
        w = xavier_uniform(keys[i], (3, 3, cin, cout),
                           fan_in=cin * 9, fan_out=cout * 9)
        convs.append((w.astype(jnp.bfloat16), jnp.zeros((cout,), jnp.float32)))

    def fc(k, din, dout):
        return (xavier_uniform(k, (din, dout), din, dout).astype(jnp.bfloat16),
                jnp.zeros((dout,), jnp.float32))

    return {
        "local_convs": convs[:1],
        "cloud_convs": convs[1:],
        "fc1": fc(keys[-3], 512, 512),
        "fc2": fc(keys[-2], 512, 512),
        "fc3": fc(keys[-1], 512, num_class),
    }


# ------------------------------- forward pass --------------------------------

def vgg_forward(params, x_nchw):
    # NCHW (PyTorch) -> NHWC (kernel layout)
    x = jnp.transpose(x_nchw, (0, 2, 3, 1)).astype(jnp.float32)
    N, H, W, Cin = x.shape

    convs = list(params["local_convs"]) + list(params["cloud_convs"])
    fcs = [params["fc1"], params["fc2"], params["fc3"]]
    num_class = fcs[-1][0].shape[1]

    # inputs: activation tile (per grid step) + all weights (resident in VMEM,
    # constant index_map so they are fetched once for the whole grid).
    args = [x]
    in_specs = [pl.BlockSpec((1, H, W, Cin), lambda n: (n, 0, 0, 0))]
    for w, b in convs:
        in_specs.append(pl.BlockSpec(w.shape, lambda n: (0, 0, 0, 0)))
        args.append(w)
        in_specs.append(pl.BlockSpec((1, w.shape[3]), lambda n: (0, 0)))
        args.append(b.reshape(1, -1))
    for w, b in fcs:
        in_specs.append(pl.BlockSpec(w.shape, lambda n: (0, 0)))
        args.append(w)
        in_specs.append(pl.BlockSpec((1, w.shape[1]), lambda n: (0, 0)))
        args.append(b.reshape(1, -1))

    # per-layer padded activation scratch (bf16) — inter-layer activations
    # never leave VMEM, and conv padding is realized in-kernel.
    scratch = []
    h, wd, c = H, W, Cin
    for cw, _ in convs:
        scratch.append(pltpu.VMEM((h + 2, wd + 2, c), jnp.bfloat16))
        c = cw.shape[3]
        h, wd = h // 2, wd // 2
    # classifier expects the flattened feature to be exactly the channel dim
    assert h == 1 and wd == 1 and c == fcs[0][0].shape[0], (h, wd, c)

    out = pl.pallas_call(
        _make_vgg_kernel(len(convs)),
        out_shape=jax.ShapeDtypeStruct((N, 1, num_class), jnp.float32),
        grid=(N,),
        in_specs=in_specs,
        out_specs=pl.BlockSpec((1, 1, num_class), lambda n: (n, 0, 0)),
        scratch_shapes=scratch,
        compiler_params=pltpu.CompilerParams(
            dimension_semantics=("parallel",),      # v7x: one batch elem per TC
            vmem_limit_bytes=32 * 1024 * 1024),
    )(*args)
    return out.reshape(N, num_class)


# ----------------------------------- main ------------------------------------

if __name__ == "__main__":
    key = jax.random.PRNGKey(0)
    pkey, xkey = jax.random.split(key)

    params = init_vgg_params(pkey, num_class=10)

    # small synthetic input: batch=2, 3 channels, 16x16 (NCHW, PyTorch layout)
    x = jax.random.normal(xkey, (2, 3, 16, 16), dtype=jnp.float32)

    out = jax.jit(vgg_forward)(params, x)
    out = jax.block_until_ready(out)

    assert out.shape == (2, 10), out.shape
    assert jnp.all(jnp.isfinite(out))
    print("KERNEL_OK")
</pallas_src>

<mosaic_0001>
module attributes {stable_mosaic.version = 11 : i64} {
  func.func @kernel(%arg0: i32, %arg1: memref<1x16x16x3xf32, #tpu.memory_space<vmem>>, %arg2: memref<3x3x3x32xbf16, #tpu.memory_space<vmem>>, %arg3: memref<1x32xf32, #tpu.memory_space<vmem>>, %arg4: memref<3x3x32x64xbf16, #tpu.memory_space<vmem>>, %arg5: memref<1x64xf32, #tpu.memory_space<vmem>>, %arg6: memref<3x3x64x128xbf16, #tpu.memory_space<vmem>>, %arg7: memref<1x128xf32, #tpu.memory_space<vmem>>, %arg8: memref<3x3x128x512xbf16, #tpu.memory_space<vmem>>, %arg9: memref<1x512xf32, #tpu.memory_space<vmem>>, %arg10: memref<512x512xbf16, #tpu.memory_space<vmem>>, %arg11: memref<1x512xf32, #tpu.memory_space<vmem>>, %arg12: memref<512x512xbf16, #tpu.memory_space<vmem>>, %arg13: memref<1x512xf32, #tpu.memory_space<vmem>>, %arg14: memref<512x10xbf16, #tpu.memory_space<vmem>>, %arg15: memref<1x10xf32, #tpu.memory_space<vmem>>, %arg16: memref<1x1x10xf32, #tpu.memory_space<vmem>>, %arg17: memref<18x18x3xbf16, #tpu.memory_space<vmem>>, %arg18: memref<10x10x32xbf16, #tpu.memory_space<vmem>>, %arg19: memref<6x6x64xbf16, #tpu.memory_space<vmem>>, %arg20: memref<4x4x128xbf16, #tpu.memory_space<vmem>>) attributes {dimension_semantics = [#tpu.dimension_semantics<parallel>], iteration_bounds = array<i64: 2>, scalar_prefetch = 0 : i64, scratch_operands = 4 : i64, tpu.core_type = #tpu.core_type<tc>, window_params = [{transform_indices = @transform_0, window_bounds = array<i64: 1, 16, 16, 3>}, {pipeline_mode = #tpu.pipeline_mode<synchronous>, transform_indices = @transform_1, window_bounds = array<i64: 3, 3, 3, 32>}, {pipeline_mode = #tpu.pipeline_mode<synchronous>, transform_indices = @transform_2, window_bounds = array<i64: 1, 32>}, {pipeline_mode = #tpu.pipeline_mode<synchronous>, transform_indices = @transform_3, window_bounds = array<i64: 3, 3, 32, 64>}, {pipeline_mode = #tpu.pipeline_mode<synchronous>, transform_indices = @transform_4, window_bounds = array<i64: 1, 64>}, {pipeline_mode = #tpu.pipeline_mode<synchronous>, transform_indices = @transform_5, window_bounds = array<i64: 3, 3, 64, 128>}, {pipeline_mode = #tpu.pipeline_mode<synchronous>, transform_indices = @transform_6, window_bounds = array<i64: 1, 128>}, {pipeline_mode = #tpu.pipeline_mode<synchronous>, transform_indices = @transform_7, window_bounds = array<i64: 3, 3, 128, 512>}, {pipeline_mode = #tpu.pipeline_mode<synchronous>, transform_indices = @transform_8, window_bounds = array<i64: 1, 512>}, {pipeline_mode = #tpu.pipeline_mode<synchronous>, transform_indices = @transform_9, window_bounds = array<i64: 512, 512>}, {pipeline_mode = #tpu.pipeline_mode<synchronous>, transform_indices = @transform_10, window_bounds = array<i64: 1, 512>}, {pipeline_mode = #tpu.pipeline_mode<synchronous>, transform_indices = @transform_11, window_bounds = array<i64: 512, 512>}, {pipeline_mode = #tpu.pipeline_mode<synchronous>, transform_indices = @transform_12, window_bounds = array<i64: 1, 512>}, {pipeline_mode = #tpu.pipeline_mode<synchronous>, transform_indices = @transform_13, window_bounds = array<i64: 512, 10>}, {pipeline_mode = #tpu.pipeline_mode<synchronous>, transform_indices = @transform_14, window_bounds = array<i64: 1, 10>}, {transform_indices = @transform_15, window_bounds = array<i64: 1, 1, 10>}]} {
    %cst = arith.constant 0.000000e+00 : bf16
    %0 = vector.broadcast %cst : bf16 to vector<18x18x3xbf16>
    %c0 = arith.constant 0 : index
    %c0_0 = arith.constant 0 : index
    %c0_1 = arith.constant 0 : index
    %1 = vector.load %arg17[%c0, %c0_0, %c0_1] : memref<18x18x3xbf16, #tpu.memory_space<vmem>>, vector<18x18x3xbf16>
    tpu.vector_store %arg17[%c0, %c0_0, %c0_1], %0 {strides = array<i32>} : memref<18x18x3xbf16, #tpu.memory_space<vmem>>, vector<18x18x3xbf16>,
    %c0_2 = arith.constant 0 : index
    %c0_3 = arith.constant 0 : index
    %c0_4 = arith.constant 0 : index
    %c0_5 = arith.constant 0 : index
    %2 = vector.load %arg1[%c0_2, %c0_3, %c0_4, %c0_5] : memref<1x16x16x3xf32, #tpu.memory_space<vmem>>, vector<1x16x16x3xf32>
    %3 = vector.shape_cast %2 : vector<1x16x16x3xf32> to vector<16x16x3xf32>
    %4 = arith.truncf %3 : vector<16x16x3xf32> to vector<16x16x3xbf16>
    %c1 = arith.constant 1 : index
    %c1_6 = arith.constant 1 : index
    %c0_7 = arith.constant 0 : index
    %5 = vector.load %arg17[%c1, %c1_6, %c0_7] : memref<18x18x3xbf16, #tpu.memory_space<vmem>>, vector<16x16x3xbf16>
    tpu.vector_store %arg17[%c1, %c1_6, %c0_7], %4 {strides = array<i32>} : memref<18x18x3xbf16, #tpu.memory_space<vmem>>, vector<16x16x3xbf16>,
    %c0_8 = arith.constant 0 : index
    %c0_9 = arith.constant 0 : index
    %c0_10 = arith.constant 0 : index
    %6 = vector.load %arg17[%c0_8, %c0_9, %c0_10] : memref<18x18x3xbf16, #tpu.memory_space<vmem>>, vector<18x18x3xbf16>
    %cst_11 = arith.constant 0.000000e+00 : f32
    %7 = vector.broadcast %cst_11 : f32 to vector<256x32xf32>
    %8 = vector.extract_strided_slice %6 {offsets = [0, 0, 0], sizes = [16, 16, 3], strides = [1, 1, 1]} : vector<18x18x3xbf16> to vector<16x16x3xbf16>
    %9 = vector.shape_cast %8 : vector<16x16x3xbf16> to vector<256x3xbf16>
    %c0_12 = arith.constant 0 : index
    %c0_13 = arith.constant 0 : index
    %c0_14 = arith.constant 0 : index
    %c0_15 = arith.constant 0 : index
    %10 = vector.load %arg2[%c0_12, %c0_13, %c0_14, %c0_15] : memref<3x3x3x32xbf16, #tpu.memory_space<vmem>>, vector<1x1x3x32xbf16>
    %11 = vector.shape_cast %10 : vector<1x1x3x32xbf16> to vector<3x32xbf16>
    %cst_16 = arith.constant dense<0.000000e+00> : vector<256x32xf32>
    %12 = tpu.matmul %9, %11, %cst_16 {dimension_numbers = #tpu.dot_dimension_numbers<[1], [0], [0], [1], [0, 0, 1, 1], [], []>} : vector<256x3xbf16>, vector<3x32xbf16>, vector<256x32xf32> -> vector<256x32xf32>
    %13 = arith.addf %7, %12 : vector<256x32xf32>
    %14 = vector.extract_strided_slice %6 {offsets = [0, 1, 0], sizes = [16, 16, 3], strides = [1, 1, 1]} : vector<18x18x3xbf16> to vector<16x16x3xbf16>
    %15 = vector.shape_cast %14 : vector<16x16x3xbf16> to vector<256x3xbf16>
    %c0_17 = arith.constant 0 : index
    %c1_18 = arith.constant 1 : index
    %c0_19 = arith.constant 0 : index
    %c0_20 = arith.constant 0 : index
    %16 = vector.load %arg2[%c0_17, %c1_18, %c0_19, %c0_20] : memref<3x3x3x32xbf16, #tpu.memory_space<vmem>>, vector<1x1x3x32xbf16>
    %17 = vector.shape_cast %16 : vector<1x1x3x32xbf16> to vector<3x32xbf16>
    %cst_21 = arith.constant dense<0.000000e+00> : vector<256x32xf32>
    %18 = tpu.matmul %15, %17, %cst_21 {dimension_numbers = #tpu.dot_dimension_numbers<[1], [0], [0], [1], [0, 0, 1, 1], [], []>} : vector<256x3xbf16>, vector<3x32xbf16>, vector<256x32xf32> -> vector<256x32xf32>
    %19 = arith.addf %13, %18 : vector<256x32xf32>
    %20 = vector.extract_strided_slice %6 {offsets = [0, 2, 0], sizes = [16, 16, 3], strides = [1, 1, 1]} : vector<18x18x3xbf16> to vector<16x16x3xbf16>
    %21 = vector.shape_cast %20 : vector<16x16x3xbf16> to vector<256x3xbf16>
    %c0_22 = arith.constant 0 : index
    %c2 = arith.constant 2 : index
    %c0_23 = arith.constant 0 : index
    %c0_24 = arith.constant 0 : index
    %22 = vector.load %arg2[%c0_22, %c2, %c0_23, %c0_24] : memref<3x3x3x32xbf16, #tpu.memory_space<vmem>>, vector<1x1x3x32xbf16>
    %23 = vector.shape_cast %22 : vector<1x1x3x32xbf16> to vector<3x32xbf16>
    %cst_25 = arith.constant dense<0.000000e+00> : vector<256x32xf32>
    %24 = tpu.matmul %21, %23, %cst_25 {dimension_numbers = #tpu.dot_dimension_numbers<[1], [0], [0], [1], [0, 0, 1, 1], [], []>} : vector<256x3xbf16>, vector<3x32xbf16>, vector<256x32xf32> -> vector<256x32xf32>
    %25 = arith.addf %19, %24 : vector<256x32xf32>
    %26 = vector.extract_strided_slice %6 {offsets = [1, 0, 0], sizes = [16, 16, 3], strides = [1, 1, 1]} : vector<18x18x3xbf16> to vector<16x16x3xbf16>
    %27 = vector.shape_cast %26 : vector<16x16x3xbf16> to vector<256x3xbf16>
    %c1_26 = arith.constant 1 : index
    %c0_27 = arith.constant 0 : index
    %c0_28 = arith.constant 0 : index
    %c0_29 = arith.constant 0 : index
    %28 = vector.load %arg2[%c1_26, %c0_27, %c0_28, %c0_29] : memref<3x3x3x32xbf16, #tpu.memory_space<vmem>>, vector<1x1x3x32xbf16>
    %29 = vector.shape_cast %28 : vector<1x1x3x32xbf16> to vector<3x32xbf16>
    %cst_30 = arith.constant dense<0.000000e+00> : vector<256x32xf32>
    %30 = tpu.matmul %27, %29, %cst_30 {dimension_numbers = #tpu.dot_dimension_numbers<[1], [0], [0], [1], [0, 0, 1, 1], [], []>} : vector<256x3xbf16>, vector<3x32xbf16>, vector<256x32xf32> -> vector<256x32xf32>
    %31 = arith.addf %25, %30 : vector<256x32xf32>
    %32 = vector.extract_strided_slice %6 {offsets = [1, 1, 0], sizes = [16, 16, 3], strides = [1, 1, 1]} : vector<18x18x3xbf16> to vector<16x16x3xbf16>
    %33 = vector.shape_cast %32 : vector<16x16x3xbf16> to vector<256x3xbf16>
    %c1_31 = arith.constant 1 : index
    %c1_32 = arith.constant 1 : index
    %c0_33 = arith.constant 0 : index
    %c0_34 = arith.constant 0 : index
    %34 = vector.load %arg2[%c1_31, %c1_32, %c0_33, %c0_34] : memref<3x3x3x32xbf16, #tpu.memory_space<vmem>>, vector<1x1x3x32xbf16>
    %35 = vector.shape_cast %34 : vector<1x1x3x32xbf16> to vector<3x32xbf16>
    %cst_35 = arith.constant dense<0.000000e+00> : vector<256x32xf32>
    %36 = tpu.matmul %33, %35, %cst_35 {dimension_numbers = #tpu.dot_dimension_numbers<[1], [0], [0], [1], [0, 0, 1, 1], [], []>} : vector<256x3xbf16>, vector<3x32xbf16>, vector<256x32xf32> -> vector<256x32xf32>
    %37 = arith.addf %31, %36 : vector<256x32xf32>
    %38 = vector.extract_strided_slice %6 {offsets = [1, 2, 0], sizes = [16, 16, 3], strides = [1, 1, 1]} : vector<18x18x3xbf16> to vector<16x16x3xbf16>
    %39 = vector.shape_cast %38 : vector<16x16x3xbf16> to vector<256x3xbf16>
    %c1_36 = arith.constant 1 : index
    %c2_37 = arith.constant 2 : index
    %c0_38 = arith.constant 0 : index
    %c0_39 = arith.constant 0 : index
    %40 = vector.load %arg2[%c1_36, %c2_37, %c0_38, %c0_39] : memref<3x3x3x32xbf16, #tpu.memory_space<vmem>>, vector<1x1x3x32xbf16>
    %41 = vector.shape_cast %40 : vector<1x1x3x32xbf16> to vector<3x32xbf16>
    %cst_40 = arith.constant dense<0.000000e+00> : vector<256x32xf32>
    %42 = tpu.matmul %39, %41, %cst_40 {dimension_numbers = #tpu.dot_dimension_numbers<[1], [0], [0], [1], [0, 0, 1, 1], [], []>} : vector<256x3xbf16>, vector<3x32xbf16>, vector<256x32xf32> -> vector<256x32xf32>
    %43 = arith.addf %37, %42 : vector<256x32xf32>
    %44 = vector.extract_strided_slice %6 {offsets = [2, 0, 0], sizes = [16, 16, 3], strides = [1, 1, 1]} : vector<18x18x3xbf16> to vector<16x16x3xbf16>
    %45 = vector.shape_cast %44 : vector<16x16x3xbf16> to vector<256x3xbf16>
    %c2_41 = arith.constant 2 : index
    %c0_42 = arith.constant 0 : index
    %c0_43 = arith.constant 0 : index
    %c0_44 = arith.constant 0 : index
    %46 = vector.load %arg2[%c2_41, %c0_42, %c0_43, %c0_44] : memref<3x3x3x32xbf16, #tpu.memory_space<vmem>>, vector<1x1x3x32xbf16>
    %47 = vector.shape_cast %46 : vector<1x1x3x32xbf16> to vector<3x32xbf16>
    %cst_45 = arith.constant dense<0.000000e+00> : vector<256x32xf32>
    %48 = tpu.matmul %45, %47, %cst_45 {dimension_numbers = #tpu.dot_dimension_numbers<[1], [0], [0], [1], [0, 0, 1, 1], [], []>} : vector<256x3xbf16>, vector<3x32xbf16>, vector<256x32xf32> -> vector<256x32xf32>
    %49 = arith.addf %43, %48 : vector<256x32xf32>
    %50 = vector.extract_strided_slice %6 {offsets = [2, 1, 0], sizes = [16, 16, 3], strides = [1, 1, 1]} : vector<18x18x3xbf16> to vector<16x16x3xbf16>
    %51 = vector.shape_cast %50 : vector<16x16x3xbf16> to vector<256x3xbf16>
    %c2_46 = arith.constant 2 : index
    %c1_47 = arith.constant 1 : index
    %c0_48 = arith.constant 0 : index
    %c0_49 = arith.constant 0 : index
    %52 = vector.load %arg2[%c2_46, %c1_47, %c0_48, %c0_49] : memref<3x3x3x32xbf16, #tpu.memory_space<vmem>>, vector<1x1x3x32xbf16>
    %53 = vector.shape_cast %52 : vector<1x1x3x32xbf16> to vector<3x32xbf16>
    %cst_50 = arith.constant dense<0.000000e+00> : vector<256x32xf32>
    %54 = tpu.matmul %51, %53, %cst_50 {dimension_numbers = #tpu.dot_dimension_numbers<[1], [0], [0], [1], [0, 0, 1, 1], [], []>} : vector<256x3xbf16>, vector<3x32xbf16>, vector<256x32xf32> -> vector<256x32xf32>
    %55 = arith.addf %49, %54 : vector<256x32xf32>
    %56 = vector.extract_strided_slice %6 {offsets = [2, 2, 0], sizes = [16, 16, 3], strides = [1, 1, 1]} : vector<18x18x3xbf16> to vector<16x16x3xbf16>
    %57 = vector.shape_cast %56 : vector<16x16x3xbf16> to vector<256x3xbf16>
    %c2_51 = arith.constant 2 : index
    %c2_52 = arith.constant 2 : index
    %c0_53 = arith.constant 0 : index
    %c0_54 = arith.constant 0 : index
    %58 = vector.load %arg2[%c2_51, %c2_52, %c0_53, %c0_54] : memref<3x3x3x32xbf16, #tpu.memory_space<vmem>>, vector<1x1x3x32xbf16>
    %59 = vector.shape_cast %58 : vector<1x1x3x32xbf16> to vector<3x32xbf16>
    %cst_55 = arith.constant dense<0.000000e+00> : vector<256x32xf32>
    %60 = tpu.matmul %57, %59, %cst_55 {dimension_numbers = #tpu.dot_dimension_numbers<[1], [0], [0], [1], [0, 0, 1, 1], [], []>} : vector<256x3xbf16>, vector<3x32xbf16>, vector<256x32xf32> -> vector<256x32xf32>
    %61 = arith.addf %55, %60 : vector<256x32xf32>
    %c0_56 = arith.constant 0 : index
    %c0_57 = arith.constant 0 : index
    %62 = vector.load %arg3[%c0_56, %c0_57] : memref<1x32xf32, #tpu.memory_space<vmem>>, vector<1x32xf32>
    %63 = vector.broadcast %62 : vector<1x32xf32> to vector<256x32xf32>
    %64 = arith.addf %61, %63 : vector<256x32xf32>
    %cst_58 = arith.constant 0.000000e+00 : f32
    %65 = vector.broadcast %cst_58 : f32 to vector<256x32xf32>
    %66 = arith.maximumf %64, %65 : vector<256x32xf32>
    %67 = vector.shape_cast %66 : vector<256x32xf32> to vector<8x2x8x2x32xf32>
    %68 = vector.extract_strided_slice %67 {offsets = [0, 0, 0, 0, 0], sizes = [8, 1, 8, 2, 32], strides = [1, 1, 1, 1, 1]} : vector<8x2x8x2x32xf32> to vector<8x1x8x2x32xf32>
    %69 = vector.shape_cast %68 : vector<8x1x8x2x32xf32> to vector<8x8x2x32xf32>
    %70 = vector.extract_strided_slice %67 {offsets = [0, 1, 0, 0, 0], sizes = [8, 1, 8, 2, 32], strides = [1, 1, 1, 1, 1]} : vector<8x2x8x2x32xf32> to vector<8x1x8x2x32xf32>
    %71 = vector.shape_cast %70 : vector<8x1x8x2x32xf32> to vector<8x8x2x32xf32>
    %72 = arith.maximumf %69, %71 : vector<8x8x2x32xf32>
    %73 = vector.extract_strided_slice %72 {offsets = [0, 0, 0, 0], sizes = [8, 8, 1, 32], strides = [1, 1, 1, 1]} : vector<8x8x2x32xf32> to vector<8x8x1x32xf32>
    %74 = vector.shape_cast %73 : vector<8x8x1x32xf32> to vector<8x8x32xf32>
    %75 = vector.extract_strided_slice %72 {offsets = [0, 0, 1, 0], sizes = [8, 8, 1, 32], strides = [1, 1, 1, 1]} : vector<8x8x2x32xf32> to vector<8x8x1x32xf32>
    %76 = vector.shape_cast %75 : vector<8x8x1x32xf32> to vector<8x8x32xf32>
    %77 = arith.maximumf %74, %76 : vector<8x8x32xf32>
    %cst_59 = arith.constant 0.000000e+00 : bf16
    %78 = vector.broadcast %cst_59 : bf16 to vector<10x10x32xbf16>
    %c0_60 = arith.constant 0 : index
    %c0_61 = arith.constant 0 : index
    %c0_62 = arith.constant 0 : index
    %79 = vector.load %arg18[%c0_60, %c0_61, %c0_62] : memref<10x10x32xbf16, #tpu.memory_space<vmem>>, vector<10x10x32xbf16>
    tpu.vector_store %arg18[%c0_60, %c0_61, %c0_62], %78 {strides = array<i32>} : memref<10x10x32xbf16, #tpu.memory_space<vmem>>, vector<10x10x32xbf16>,
    %80 = arith.truncf %77 : vector<8x8x32xf32> to vector<8x8x32xbf16>
    %c1_63 = arith.constant 1 : index
    %c1_64 = arith.constant 1 : index
    %c0_65 = arith.constant 0 : index
    %81 = vector.load %arg18[%c1_63, %c1_64, %c0_65] : memref<10x10x32xbf16, #tpu.memory_space<vmem>>, vector<8x8x32xbf16>
    tpu.vector_store %arg18[%c1_63, %c1_64, %c0_65], %80 {strides = array<i32>} : memref<10x10x32xbf16, #tpu.memory_space<vmem>>, vector<8x8x32xbf16>,
    %c0_66 = arith.constant 0 : index
    %c0_67 = arith.constant 0 : index
    %c0_68 = arith.constant 0 : index
    %82 = vector.load %arg18[%c0_66, %c0_67, %c0_68] : memref<10x10x32xbf16, #tpu.memory_space<vmem>>, vector<10x10x32xbf16>
    %cst_69 = arith.constant 0.000000e+00 : f32
    %83 = vector.broadcast %cst_69 : f32 to vector<64x64xf32>
    %84 = vector.extract_strided_slice %82 {offsets = [0, 0, 0], sizes = [8, 8, 32], strides = [1, 1, 1]} : vector<10x10x32xbf16> to vector<8x8x32xbf16>
    %85 = vector.shape_cast %84 : vector<8x8x32xbf16> to vector<64x32xbf16>
    %c0_70 = arith.constant 0 : index
    %c0_71 = arith.constant 0 : index
    %c0_72 = arith.constant 0 : index
    %c0_73 = arith.constant 0 : index
    %86 = vector.load %arg4[%c0_70, %c0_71, %c0_72, %c0_73] : memref<3x3x32x64xbf16, #tpu.memory_space<vmem>>, vector<1x1x32x64xbf16>
    %87 = vector.shape_cast %86 : vector<1x1x32x64xbf16> to vector<32x64xbf16>
    %cst_74 = arith.constant dense<0.000000e+00> : vector<64x64xf32>
    %88 = tpu.matmul %85, %87, %cst_74 {dimension_numbers = #tpu.dot_dimension_numbers<[1], [0], [0], [1], [0, 0, 1, 1], [], []>} : vector<64x32xbf16>, vector<32x64xbf16>, vector<64x64xf32> -> vector<64x64xf32>
    %89 = arith.addf %83, %88 : vector<64x64xf32>
    %90 = vector.extract_strided_slice %82 {offsets = [0, 1, 0], sizes = [8, 8, 32], strides = [1, 1, 1]} : vector<10x10x32xbf16> to vector<8x8x32xbf16>
    %91 = vector.shape_cast %90 : vector<8x8x32xbf16> to vector<64x32xbf16>
    %c0_75 = arith.constant 0 : index
    %c1_76 = arith.constant 1 : index
    %c0_77 = arith.constant 0 : index
    %c0_78 = arith.constant 0 : index
    %92 = vector.load %arg4[%c0_75, %c1_76, %c0_77, %c0_78] : memref<3x3x32x64xbf16, #tpu.memory_space<vmem>>, vector<1x1x32x64xbf16>
    %93 = vector.shape_cast %92 : vector<1x1x32x64xbf16> to vector<32x64xbf16>
    %cst_79 = arith.constant dense<0.000000e+00> : vector<64x64xf32>
    %94 = tpu.matmul %91, %93, %cst_79 {dimension_numbers = #tpu.dot_dimension_numbers<[1], [0], [0], [1], [0, 0, 1, 1], [], []>} : vector<64x32xbf16>, vector<32x64xbf16>, vector<64x64xf32> -> vector<64x64xf32>
    %95 = arith.addf %89, %94 : vector<64x64xf32>
    %96 = vector.extract_strided_slice %82 {offsets = [0, 2, 0], sizes = [8, 8, 32], strides = [1, 1, 1]} : vector<10x10x32xbf16> to vector<8x8x32xbf16>
    %97 = vector.shape_cast %96 : vector<8x8x32xbf16> to vector<64x32xbf16>
    %c0_80 = arith.constant 0 : index
    %c2_81 = arith.constant 2 : index
    %c0_82 = arith.constant 0 : index
    %c0_83 = arith.constant 0 : index
    %98 = vector.load %arg4[%c0_80, %c2_81, %c0_82, %c0_83] : memref<3x3x32x64xbf16, #tpu.memory_space<vmem>>, vector<1x1x32x64xbf16>
    %99 = vector.shape_cast %98 : vector<1x1x32x64xbf16> to vector<32x64xbf16>
    %cst_84 = arith.constant dense<0.000000e+00> : vector<64x64xf32>
    %100 = tpu.matmul %97, %99, %cst_84 {dimension_numbers = #tpu.dot_dimension_numbers<[1], [0], [0], [1], [0, 0, 1, 1], [], []>} : vector<64x32xbf16>, vector<32x64xbf16>, vector<64x64xf32> -> vector<64x64xf32>
    %101 = arith.addf %95, %100 : vector<64x64xf32>
    %102 = vector.extract_strided_slice %82 {offsets = [1, 0, 0], sizes = [8, 8, 32], strides = [1, 1, 1]} : vector<10x10x32xbf16> to vector<8x8x32xbf16>
    %103 = vector.shape_cast %102 : vector<8x8x32xbf16> to vector<64x32xbf16>
    %c1_85 = arith.constant 1 : index
    %c0_86 = arith.constant 0 : index
    %c0_87 = arith.constant 0 : index
    %c0_88 = arith.constant 0 : index
    %104 = vector.load %arg4[%c1_85, %c0_86, %c0_87, %c0_88] : memref<3x3x32x64xbf16, #tpu.memory_space<vmem>>, vector<1x1x32x64xbf16>
    %105 = vector.shape_cast %104 : vector<1x1x32x64xbf16> to vector<32x64xbf16>
    %cst_89 = arith.constant dense<0.000000e+00> : vector<64x64xf32>
    %106 = tpu.matmul %103, %105, %cst_89 {dimension_numbers = #tpu.dot_dimension_numbers<[1], [0], [0], [1], [0, 0, 1, 1], [], []>} : vector<64x32xbf16>, vector<32x64xbf16>, vector<64x64xf32> -> vector<64x64xf32>
    %107 = arith.addf %101, %106 : vector<64x64xf32>
    %108 = vector.extract_strided_slice %82 {offsets = [1, 1, 0], sizes = [8, 8, 32], strides = [1, 1, 1]} : vector<10x10x32xbf16> to vector<8x8x32xbf16>
    %109 = vector.shape_cast %108 : vector<8x8x32xbf16> to vector<64x32xbf16>
    %c1_90 = arith.constant 1 : index
    %c1_91 = arith.constant 1 : index
    %c0_92 = arith.constant 0 : index
    %c0_93 = arith.constant 0 : index
    %110 = vector.load %arg4[%c1_90, %c1_91, %c0_92, %c0_93] : memref<3x3x32x64xbf16, #tpu.memory_space<vmem>>, vector<1x1x32x64xbf16>
    %111 = vector.shape_cast %110 : vector<1x1x32x64xbf16> to vector<32x64xbf16>
    %cst_94 = arith.constant dense<0.000000e+00> : vector<64x64xf32>
    %112 = tpu.matmul %109, %111, %cst_94 {dimension_numbers = #tpu.dot_dimension_numbers<[1], [0], [0], [1], [0, 0, 1, 1], [], []>} : vector<64x32xbf16>, vector<32x64xbf16>, vector<64x64xf32> -> vector<64x64xf32>
    %113 = arith.addf %107, %112 : vector<64x64xf32>
    %114 = vector.extract_strided_slice %82 {offsets = [1, 2, 0], sizes = [8, 8, 32], strides = [1, 1, 1]} : vector<10x10x32xbf16> to vector<8x8x32xbf16>
    %115 = vector.shape_cast %114 : vector<8x8x32xbf16> to vector<64x32xbf16>
    %c1_95 = arith.constant 1 : index
    %c2_96 = arith.constant 2 : index
    %c0_97 = arith.constant 0 : index
    %c0_98 = arith.constant 0 : index
    %116 = vector.load %arg4[%c1_95, %c2_96, %c0_97, %c0_98] : memref<3x3x32x64xbf16, #tpu.memory_space<vmem>>, vector<1x1x32x64xbf16>
    %117 = vector.shape_cast %116 : vector<1x1x32x64xbf16> to vector<32x64xbf16>
    %cst_99 = arith.constant dense<0.000000e+00> : vector<64x64xf32>
    %118 = tpu.matmul %115, %117, %cst_99 {dimension_numbers = #tpu.dot_dimension_numbers<[1], [0], [0], [1], [0, 0, 1, 1], [], []>} : vector<64x32xbf16>, vector<32x64xbf16>, vector<64x64xf32> -> vector<64x64xf32>
    %119 = arith.addf %113, %118 : vector<64x64xf32>
    %120 = vector.extract_strided_slice %82 {offsets = [2, 0, 0], sizes = [8, 8, 32], strides = [1, 1, 1]} : vector<10x10x32xbf16> to vector<8x8x32xbf16>
    %121 = vector.shape_cast %120 : vector<8x8x32xbf16> to vector<64x32xbf16>
    %c2_100 = arith.constant 2 : index
    %c0_101 = arith.constant 0 : index
    %c0_102 = arith.constant 0 : index
    %c0_103 = arith.constant 0 : index
    %122 = vector.load %arg4[%c2_100, %c0_101, %c0_102, %c0_103] : memref<3x3x32x64xbf16, #tpu.memory_space<vmem>>, vector<1x1x32x64xbf16>
    %123 = vector.shape_cast %122 : vector<1x1x32x64xbf16> to vector<32x64xbf16>
    %cst_104 = arith.constant dense<0.000000e+00> : vector<64x64xf32>
    %124 = tpu.matmul %121, %123, %cst_104 {dimension_numbers = #tpu.dot_dimension_numbers<[1], [0], [0], [1], [0, 0, 1, 1], [], []>} : vector<64x32xbf16>, vector<32x64xbf16>, vector<64x64xf32> -> vector<64x64xf32>
    %125 = arith.addf %119, %124 : vector<64x64xf32>
    %126 = vector.extract_strided_slice %82 {offsets = [2, 1, 0], sizes = [8, 8, 32], strides = [1, 1, 1]} : vector<10x10x32xbf16> to vector<8x8x32xbf16>
    %127 = vector.shape_cast %126 : vector<8x8x32xbf16> to vector<64x32xbf16>
    %c2_105 = arith.constant 2 : index
    %c1_106 = arith.constant 1 : index
    %c0_107 = arith.constant 0 : index
    %c0_108 = arith.constant 0 : index
    %128 = vector.load %arg4[%c2_105, %c1_106, %c0_107, %c0_108] : memref<3x3x32x64xbf16, #tpu.memory_space<vmem>>, vector<1x1x32x64xbf16>
    %129 = vector.shape_cast %128 : vector<1x1x32x64xbf16> to vector<32x64xbf16>
    %cst_109 = arith.constant dense<0.000000e+00> : vector<64x64xf32>
    %130 = tpu.matmul %127, %129, %cst_109 {dimension_numbers = #tpu.dot_dimension_numbers<[1], [0], [0], [1], [0, 0, 1, 1], [], []>} : vector<64x32xbf16>, vector<32x64xbf16>, vector<64x64xf32> -> vector<64x64xf32>
    %131 = arith.addf %125, %130 : vector<64x64xf32>
    %132 = vector.extract_strided_slice %82 {offsets = [2, 2, 0], sizes = [8, 8, 32], strides = [1, 1, 1]} : vector<10x10x32xbf16> to vector<8x8x32xbf16>
    %133 = vector.shape_cast %132 : vector<8x8x32xbf16> to vector<64x32xbf16>
    %c2_110 = arith.constant 2 : index
    %c2_111 = arith.constant 2 : index
    %c0_112 = arith.constant 0 : index
    %c0_113 = arith.constant 0 : index
    %134 = vector.load %arg4[%c2_110, %c2_111, %c0_112, %c0_113] : memref<3x3x32x64xbf16, #tpu.memory_space<vmem>>, vector<1x1x32x64xbf16>
    %135 = vector.shape_cast %134 : vector<1x1x32x64xbf16> to vector<32x64xbf16>
    %cst_114 = arith.constant dense<0.000000e+00> : vector<64x64xf32>
    %136 = tpu.matmul %133, %135, %cst_114 {dimension_numbers = #tpu.dot_dimension_numbers<[1], [0], [0], [1], [0, 0, 1, 1], [], []>} : vector<64x32xbf16>, vector<32x64xbf16>, vector<64x64xf32> -> vector<64x64xf32>
    %137 = arith.addf %131, %136 : vector<64x64xf32>
    %c0_115 = arith.constant 0 : index
    %c0_116 = arith.constant 0 : index
    %138 = vector.load %arg5[%c0_115, %c0_116] : memref<1x64xf32, #tpu.memory_space<vmem>>, vector<1x64xf32>
    %139 = vector.broadcast %138 : vector<1x64xf32> to vector<64x64xf32>
    %140 = arith.addf %137, %139 : vector<64x64xf32>
    %cst_117 = arith.constant 0.000000e+00 : f32
    %141 = vector.broadcast %cst_117 : f32 to vector<64x64xf32>
    %142 = arith.maximumf %140, %141 : vector<64x64xf32>
    %143 = vector.shape_cast %142 : vector<64x64xf32> to vector<4x2x4x2x64xf32>
    %144 = vector.extract_strided_slice %143 {offsets = [0, 0, 0, 0, 0], sizes = [4, 1, 4, 2, 64], strides = [1, 1, 1, 1, 1]} : vector<4x2x4x2x64xf32> to vector<4x1x4x2x64xf32>
    %145 = vector.shape_cast %144 : vector<4x1x4x2x64xf32> to vector<4x4x2x64xf32>
    %146 = vector.extract_strided_slice %143 {offsets = [0, 1, 0, 0, 0], sizes = [4, 1, 4, 2, 64], strides = [1, 1, 1, 1, 1]} : vector<4x2x4x2x64xf32> to vector<4x1x4x2x64xf32>
    %147 = vector.shape_cast %146 : vector<4x1x4x2x64xf32> to vector<4x4x2x64xf32>
    %148 = arith.maximumf %145, %147 : vector<4x4x2x64xf32>
    %149 = vector.extract_strided_slice %148 {offsets = [0, 0, 0, 0], sizes = [4, 4, 1, 64], strides = [1, 1, 1, 1]} : vector<4x4x2x64xf32> to vector<4x4x1x64xf32>
    %150 = vector.shape_cast %149 : vector<4x4x1x64xf32> to vector<4x4x64xf32>
    %151 = vector.extract_strided_slice %148 {offsets = [0, 0, 1, 0], sizes = [4, 4, 1, 64], strides = [1, 1, 1, 1]} : vector<4x4x2x64xf32> to vector<4x4x1x64xf32>
    %152 = vector.shape_cast %151 : vector<4x4x1x64xf32> to vector<4x4x64xf32>
    %153 = arith.maximumf %150, %152 : vector<4x4x64xf32>
    %cst_118 = arith.constant 0.000000e+00 : bf16
    %154 = vector.broadcast %cst_118 : bf16 to vector<6x6x64xbf16>
    %c0_119 = arith.constant 0 : index
    %c0_120 = arith.constant 0 : index
    %c0_121 = arith.constant 0 : index
    %155 = vector.load %arg19[%c0_119, %c0_120, %c0_121] : memref<6x6x64xbf16, #tpu.memory_space<vmem>>, vector<6x6x64xbf16>
    tpu.vector_store %arg19[%c0_119, %c0_120, %c0_121], %154 {strides = array<i32>} : memref<6x6x64xbf16, #tpu.memory_space<vmem>>, vector<6x6x64xbf16>,
    %156 = arith.truncf %153 : vector<4x4x64xf32> to vector<4x4x64xbf16>
    %c1_122 = arith.constant 1 : index
    %c1_123 = arith.constant 1 : index
    %c0_124 = arith.constant 0 : index
    %157 = vector.load %arg19[%c1_122, %c1_123, %c0_124] : memref<6x6x64xbf16, #tpu.memory_space<vmem>>, vector<4x4x64xbf16>
    tpu.vector_store %arg19[%c1_122, %c1_123, %c0_124], %156 {strides = array<i32>} : memref<6x6x64xbf16, #tpu.memory_space<vmem>>, vector<4x4x64xbf16>,
    %c0_125 = arith.constant 0 : index
    %c0_126 = arith.constant 0 : index
    %c0_127 = arith.constant 0 : index
    %158 = vector.load %arg19[%c0_125, %c0_126, %c0_127] : memref<6x6x64xbf16, #tpu.memory_space<vmem>>, vector<6x6x64xbf16>
    %cst_128 = arith.constant 0.000000e+00 : f32
    %159 = vector.broadcast %cst_128 : f32 to vector<16x128xf32>
    %160 = vector.extract_strided_slice %158 {offsets = [0, 0, 0], sizes = [4, 4, 64], strides = [1, 1, 1]} : vector<6x6x64xbf16> to vector<4x4x64xbf16>
    %161 = vector.shape_cast %160 : vector<4x4x64xbf16> to vector<16x64xbf16>
    %c0_129 = arith.constant 0 : index
    %c0_130 = arith.constant 0 : index
    %c0_131 = arith.constant 0 : index
    %c0_132 = arith.constant 0 : index
    %162 = vector.load %arg6[%c0_129, %c0_130, %c0_131, %c0_132] : memref<3x3x64x128xbf16, #tpu.memory_space<vmem>>, vector<1x1x64x128xbf16>
    %163 = vector.shape_cast %162 : vector<1x1x64x128xbf16> to vector<64x128xbf16>
    %cst_133 = arith.constant dense<0.000000e+00> : vector<16x128xf32>
    %164 = tpu.matmul %161, %163, %cst_133 {dimension_numbers = #tpu.dot_dimension_numbers<[1], [0], [0], [1], [0, 0, 1, 1], [], []>} : vector<16x64xbf16>, vector<64x128xbf16>, vector<16x128xf32> -> vector<16x128xf32>
    %165 = arith.addf %159, %164 : vector<16x128xf32>
    %166 = vector.extract_strided_slice %158 {offsets = [0, 1, 0], sizes = [4, 4, 64], strides = [1, 1, 1]} : vector<6x6x64xbf16> to vector<4x4x64xbf16>
    %167 = vector.shape_cast %166 : vector<4x4x64xbf16> to vector<16x64xbf16>
    %c0_134 = arith.constant 0 : index
    %c1_135 = arith.constant 1 : index
    %c0_136 = arith.constant 0 : index
    %c0_137 = arith.constant 0 : index
    %168 = vector.load %arg6[%c0_134, %c1_135, %c0_136, %c0_137] : memref<3x3x64x128xbf16, #tpu.memory_space<vmem>>, vector<1x1x64x128xbf16>
    %169 = vector.shape_cast %168 : vector<1x1x64x128xbf16> to vector<64x128xbf16>
    %cst_138 = arith.constant dense<0.000000e+00> : vector<16x128xf32>
    %170 = tpu.matmul %167, %169, %cst_138 {dimension_numbers = #tpu.dot_dimension_numbers<[1], [0], [0], [1], [0, 0, 1, 1], [], []>} : vector<16x64xbf16>, vector<64x128xbf16>, vector<16x128xf32> -> vector<16x128xf32>
    %171 = arith.addf %165, %170 : vector<16x128xf32>
    %172 = vector.extract_strided_slice %158 {offsets = [0, 2, 0], sizes = [4, 4, 64], strides = [1, 1, 1]} : vector<6x6x64xbf16> to vector<4x4x64xbf16>
    %173 = vector.shape_cast %172 : vector<4x4x64xbf16> to vector<16x64xbf16>
    %c0_139 = arith.constant 0 : index
    %c2_140 = arith.constant 2 : index
    %c0_141 = arith.constant 0 : index
    %c0_142 = arith.constant 0 : index
    %174 = vector.load %arg6[%c0_139, %c2_140, %c0_141, %c0_142] : memref<3x3x64x128xbf16, #tpu.memory_space<vmem>>, vector<1x1x64x128xbf16>
    %175 = vector.shape_cast %174 : vector<1x1x64x128xbf16> to vector<64x128xbf16>
    %cst_143 = arith.constant dense<0.000000e+00> : vector<16x128xf32>
    %176 = tpu.matmul %173, %175, %cst_143 {dimension_numbers = #tpu.dot_dimension_numbers<[1], [0], [0], [1], [0, 0, 1, 1], [], []>} : vector<16x64xbf16>, vector<64x128xbf16>, vector<16x128xf32> -> vector<16x128xf32>
    %177 = arith.addf %171, %176 : vector<16x128xf32>
    %178 = vector.extract_strided_slice %158 {offsets = [1, 0, 0], sizes = [4, 4, 64], strides = [1, 1, 1]} : vector<6x6x64xbf16> to vector<4x4x64xbf16>
    %179 = vector.shape_cast %178 : vector<4x4x64xbf16> to vector<16x64xbf16>
    %c1_144 = arith.constant 1 : index
    %c0_145 = arith.constant 0 : index
    %c0_146 = arith.constant 0 : index
    %c0_147 = arith.constant 0 : index
    %180 = vector.load %arg6[%c1_144, %c0_145, %c0_146, %c0_147] : memref<3x3x64x128xbf16, #tpu.memory_space<vmem>>, vector<1x1x64x128xbf16>
    %181 = vector.shape_cast %180 : vector<1x1x64x128xbf16> to vector<64x128xbf16>
    %cst_148 = arith.constant dense<0.000000e+00> : vector<16x128xf32>
    %182 = tpu.matmul %179, %181, %cst_148 {dimension_numbers = #tpu.dot_dimension_numbers<[1], [0], [0], [1], [0, 0, 1, 1], [], []>} : vector<16x64xbf16>, vector<64x128xbf16>, vector<16x128xf32> -> vector<16x128xf32>
    %183 = arith.addf %177, %182 : vector<16x128xf32>
    %184 = vector.extract_strided_slice %158 {offsets = [1, 1, 0], sizes = [4, 4, 64], strides = [1, 1, 1]} : vector<6x6x64xbf16> to vector<4x4x64xbf16>
    %185 = vector.shape_cast %184 : vector<4x4x64xbf16> to vector<16x64xbf16>
    %c1_149 = arith.constant 1 : index
    %c1_150 = arith.constant 1 : index
    %c0_151 = arith.constant 0 : index
    %c0_152 = arith.constant 0 : index
    %186 = vector.load %arg6[%c1_149, %c1_150, %c0_151, %c0_152] : memref<3x3x64x128xbf16, #tpu.memory_space<vmem>>, vector<1x1x64x128xbf16>
    %187 = vector.shape_cast %186 : vector<1x1x64x128xbf16> to vector<64x128xbf16>
    %cst_153 = arith.constant dense<0.000000e+00> : vector<16x128xf32>
    %188 = tpu.matmul %185, %187, %cst_153 {dimension_numbers = #tpu.dot_dimension_numbers<[1], [0], [0], [1], [0, 0, 1, 1], [], []>} : vector<16x64xbf16>, vector<64x128xbf16>, vector<16x128xf32> -> vector<16x128xf32>
    %189 = arith.addf %183, %188 : vector<16x128xf32>
    %190 = vector.extract_strided_slice %158 {offsets = [1, 2, 0], sizes = [4, 4, 64], strides = [1, 1, 1]} : vector<6x6x64xbf16> to vector<4x4x64xbf16>
    %191 = vector.shape_cast %190 : vector<4x4x64xbf16> to vector<16x64xbf16>
    %c1_154 = arith.constant 1 : index
    %c2_155 = arith.constant 2 : index
    %c0_156 = arith.constant 0 : index
    %c0_157 = arith.constant 0 : index
    %192 = vector.load %arg6[%c1_154, %c2_155, %c0_156, %c0_157] : memref<3x3x64x128xbf16, #tpu.memory_space<vmem>>, vector<1x1x64x128xbf16>
    %193 = vector.shape_cast %192 : vector<1x1x64x128xbf16> to vector<64x128xbf16>
    %cst_158 = arith.constant dense<0.000000e+00> : vector<16x128xf32>
    %194 = tpu.matmul %191, %193, %cst_158 {dimension_numbers = #tpu.dot_dimension_numbers<[1], [0], [0], [1], [0, 0, 1, 1], [], []>} : vector<16x64xbf16>, vector<64x128xbf16>, vector<16x128xf32> -> vector<16x128xf32>
    %195 = arith.addf %189, %194 : vector<16x128xf32>
    %196 = vector.extract_strided_slice %158 {offsets = [2, 0, 0], sizes = [4, 4, 64], strides = [1, 1, 1]} : vector<6x6x64xbf16> to vector<4x4x64xbf16>
    %197 = vector.shape_cast %196 : vector<4x4x64xbf16> to vector<16x64xbf16>
    %c2_159 = arith.constant 2 : index
    %c0_160 = arith.constant 0 : index
    %c0_161 = arith.constant 0 : index
    %c0_162 = arith.constant 0 : index
    %198 = vector.load %arg6[%c2_159, %c0_160, %c0_161, %c0_162] : memref<3x3x64x128xbf16, #tpu.memory_space<vmem>>, vector<1x1x64x128xbf16>
    %199 = vector.shape_cast %198 : vector<1x1x64x128xbf16> to vector<64x128xbf16>
    %cst_163 = arith.constant dense<0.000000e+00> : vector<16x128xf32>
    %200 = tpu.matmul %197, %199, %cst_163 {dimension_numbers = #tpu.dot_dimension_numbers<[1], [0], [0], [1], [0, 0, 1, 1], [], []>} : vector<16x64xbf16>, vector<64x128xbf16>, vector<16x128xf32> -> vector<16x128xf32>
    %201 = arith.addf %195, %200 : vector<16x128xf32>
    %202 = vector.extract_strided_slice %158 {offsets = [2, 1, 0], sizes = [4, 4, 64], strides = [1, 1, 1]} : vector<6x6x64xbf16> to vector<4x4x64xbf16>
    %203 = vector.shape_cast %202 : vector<4x4x64xbf16> to vector<16x64xbf16>
    %c2_164 = arith.constant 2 : index
    %c1_165 = arith.constant 1 : index
    %c0_166 = arith.constant 0 : index
    %c0_167 = arith.constant 0 : index
    %204 = vector.load %arg6[%c2_164, %c1_165, %c0_166, %c0_167] : memref<3x3x64x128xbf16, #tpu.memory_space<vmem>>, vector<1x1x64x128xbf16>
    %205 = vector.shape_cast %204 : vector<1x1x64x128xbf16> to vector<64x128xbf16>
    %cst_168 = arith.constant dense<0.000000e+00> : vector<16x128xf32>
    %206 = tpu.matmul %203, %205, %cst_168 {dimension_numbers = #tpu.dot_dimension_numbers<[1], [0], [0], [1], [0, 0, 1, 1], [], []>} : vector<16x64xbf16>, vector<64x128xbf16>, vector<16x128xf32> -> vector<16x128xf32>
    %207 = arith.addf %201, %206 : vector<16x128xf32>
    %208 = vector.extract_strided_slice %158 {offsets = [2, 2, 0], sizes = [4, 4, 64], strides = [1, 1, 1]} : vector<6x6x64xbf16> to vector<4x4x64xbf16>
    %209 = vector.shape_cast %208 : vector<4x4x64xbf16> to vector<16x64xbf16>
    %c2_169 = arith.constant 2 : index
    %c2_170 = arith.constant 2 : index
    %c0_171 = arith.constant 0 : index
    %c0_172 = arith.constant 0 : index
    %210 = vector.load %arg6[%c2_169, %c2_170, %c0_171, %c0_172] : memref<3x3x64x128xbf16, #tpu.memory_space<vmem>>, vector<1x1x64x128xbf16>
    %211 = vector.shape_cast %210 : vector<1x1x64x128xbf16> to vector<64x128xbf16>
    %cst_173 = arith.constant dense<0.000000e+00> : vector<16x128xf32>
    %212 = tpu.matmul %209, %211, %cst_173 {dimension_numbers = #tpu.dot_dimension_numbers<[1], [0], [0], [1], [0, 0, 1, 1], [], []>} : vector<16x64xbf16>, vector<64x128xbf16>, vector<16x128xf32> -> vector<16x128xf32>
    %213 = arith.addf %207, %212 : vector<16x128xf32>
    %c0_174 = arith.constant 0 : index
    %c0_175 = arith.constant 0 : index
    %214 = vector.load %arg7[%c0_174, %c0_175] : memref<1x128xf32, #tpu.memory_space<vmem>>, vector<1x128xf32>
    %215 = vector.broadcast %214 : vector<1x128xf32> to vector<16x128xf32>
    %216 = arith.addf %213, %215 : vector<16x128xf32>
    %cst_176 = arith.constant 0.000000e+00 : f32
    %217 = vector.broadcast %cst_176 : f32 to vector<16x128xf32>
    %218 = arith.maximumf %216, %217 : vector<16x128xf32>
    %219 = vector.shape_cast %218 : vector<16x128xf32> to vector<2x2x2x2x128xf32>
    %220 = vector.extract_strided_slice %219 {offsets = [0, 0, 0, 0, 0], sizes = [2, 1, 2, 2, 128], strides = [1, 1, 1, 1, 1]} : vector<2x2x2x2x128xf32> to vector<2x1x2x2x128xf32>
    %221 = vector.shape_cast %220 : vector<2x1x2x2x128xf32> to vector<2x2x2x128xf32>
    %222 = vector.extract_strided_slice %219 {offsets = [0, 1, 0, 0, 0], sizes = [2, 1, 2, 2, 128], strides = [1, 1, 1, 1, 1]} : vector<2x2x2x2x128xf32> to vector<2x1x2x2x128xf32>
    %223 = vector.shape_cast %222 : vector<2x1x2x2x128xf32> to vector<2x2x2x128xf32>
    %224 = arith.maximumf %221, %223 : vector<2x2x2x128xf32>
    %225 = vector.extract_strided_slice %224 {offsets = [0, 0, 0, 0], sizes = [2, 2, 1, 128], strides = [1, 1, 1, 1]} : vector<2x2x2x128xf32> to vector<2x2x1x128xf32>
    %226 = vector.shape_cast %225 : vector<2x2x1x128xf32> to vector<2x2x128xf32>
    %227 = vector.extract_strided_slice %224 {offsets = [0, 0, 1, 0], sizes = [2, 2, 1, 128], strides = [1, 1, 1, 1]} : vector<2x2x2x128xf32> to vector<2x2x1x128xf32>
    %228 = vector.shape_cast %227 : vector<2x2x1x128xf32> to vector<2x2x128xf32>
    %229 = arith.maximumf %226, %228 : vector<2x2x128xf32>
    %cst_177 = arith.constant 0.000000e+00 : bf16
    %230 = vector.broadcast %cst_177 : bf16 to vector<4x4x128xbf16>
    %c0_178 = arith.constant 0 : index
    %c0_179 = arith.constant 0 : index
    %c0_180 = arith.constant 0 : index
    %231 = vector.load %arg20[%c0_178, %c0_179, %c0_180] : memref<4x4x128xbf16, #tpu.memory_space<vmem>>, vector<4x4x128xbf16>
    tpu.vector_store %arg20[%c0_178, %c0_179, %c0_180], %230 {strides = array<i32>} : memref<4x4x128xbf16, #tpu.memory_space<vmem>>, vector<4x4x128xbf16>,
    %232 = arith.truncf %229 : vector<2x2x128xf32> to vector<2x2x128xbf16>
    %c1_181 = arith.constant 1 : index
    %c1_182 = arith.constant 1 : index
    %c0_183 = arith.constant 0 : index
    %233 = vector.load %arg20[%c1_181, %c1_182, %c0_183] : memref<4x4x128xbf16, #tpu.memory_space<vmem>>, vector<2x2x128xbf16>
    tpu.vector_store %arg20[%c1_181, %c1_182, %c0_183], %232 {strides = array<i32>} : memref<4x4x128xbf16, #tpu.memory_space<vmem>>, vector<2x2x128xbf16>,
    %c0_184 = arith.constant 0 : index
    %c0_185 = arith.constant 0 : index
    %c0_186 = arith.constant 0 : index
    %234 = vector.load %arg20[%c0_184, %c0_185, %c0_186] : memref<4x4x128xbf16, #tpu.memory_space<vmem>>, vector<4x4x128xbf16>
    %cst_187 = arith.constant 0.000000e+00 : f32
    %235 = vector.broadcast %cst_187 : f32 to vector<4x512xf32>
    %236 = vector.extract_strided_slice %234 {offsets = [0, 0, 0], sizes = [2, 2, 128], strides = [1, 1, 1]} : vector<4x4x128xbf16> to vector<2x2x128xbf16>
    %237 = vector.shape_cast %236 : vector<2x2x128xbf16> to vector<4x128xbf16>
    %c0_188 = arith.constant 0 : index
    %c0_189 = arith.constant 0 : index
    %c0_190 = arith.constant 0 : index
    %c0_191 = arith.constant 0 : index
    %238 = vector.load %arg8[%c0_188, %c0_189, %c0_190, %c0_191] : memref<3x3x128x512xbf16, #tpu.memory_space<vmem>>, vector<1x1x128x512xbf16>
    %239 = vector.shape_cast %238 : vector<1x1x128x512xbf16> to vector<128x512xbf16>
    %cst_192 = arith.constant dense<0.000000e+00> : vector<4x512xf32>
    %240 = tpu.matmul %237, %239, %cst_192 {dimension_numbers = #tpu.dot_dimension_numbers<[1], [0], [0], [1], [0, 0, 1, 1], [], []>} : vector<4x128xbf16>, vector<128x512xbf16>, vector<4x512xf32> -> vector<4x512xf32>
    %241 = arith.addf %235, %240 : vector<4x512xf32>
    %242 = vector.extract_strided_slice %234 {offsets = [0, 1, 0], sizes = [2, 2, 128], strides = [1, 1, 1]} : vector<4x4x128xbf16> to vector<2x2x128xbf16>
    %243 = vector.shape_cast %242 : vector<2x2x128xbf16> to vector<4x128xbf16>
    %c0_193 = arith.constant 0 : index
    %c1_194 = arith.constant 1 : index
    %c0_195 = arith.constant 0 : index
    %c0_196 = arith.constant 0 : index
    %244 = vector.load %arg8[%c0_193, %c1_194, %c0_195, %c0_196] : memref<3x3x128x512xbf16, #tpu.memory_space<vmem>>, vector<1x1x128x512xbf16>
    %245 = vector.shape_cast %244 : vector<1x1x128x512xbf16> to vector<128x512xbf16>
    %cst_197 = arith.constant dense<0.000000e+00> : vector<4x512xf32>
    %246 = tpu.matmul %243, %245, %cst_197 {dimension_numbers = #tpu.dot_dimension_numbers<[1], [0], [0], [1], [0, 0, 1, 1], [], []>} : vector<4x128xbf16>, vector<128x512xbf16>, vector<4x512xf32> -> vector<4x512xf32>
    %247 = arith.addf %241, %246 : vector<4x512xf32>
    %248 = vector.extract_strided_slice %234 {offsets = [0, 2, 0], sizes = [2, 2, 128], strides = [1, 1, 1]} : vector<4x4x128xbf16> to vector<2x2x128xbf16>
    %249 = vector.shape_cast %248 : vector<2x2x128xbf16> to vector<4x128xbf16>
    %c0_198 = arith.constant 0 : index
    %c2_199 = arith.constant 2 : index
    %c0_200 = arith.constant 0 : index
    %c0_201 = arith.constant 0 : index
    %250 = vector.load %arg8[%c0_198, %c2_199, %c0_200, %c0_201] : memref<3x3x128x512xbf16, #tpu.memory_space<vmem>>, vector<1x1x128x512xbf16>
    %251 = vector.shape_cast %250 : vector<1x1x128x512xbf16> to vector<128x512xbf16>
    %cst_202 = arith.constant dense<0.000000e+00> : vector<4x512xf32>
    %252 = tpu.matmul %249, %251, %cst_202 {dimension_numbers = #tpu.dot_dimension_numbers<[1], [0], [0], [1], [0, 0, 1, 1], [], []>} : vector<4x128xbf16>, vector<128x512xbf16>, vector<4x512xf32> -> vector<4x512xf32>
    %253 = arith.addf %247, %252 : vector<4x512xf32>
    %254 = vector.extract_strided_slice %234 {offsets = [1, 0, 0], sizes = [2, 2, 128], strides = [1, 1, 1]} : vector<4x4x128xbf16> to vector<2x2x128xbf16>
    %255 = vector.shape_cast %254 : vector<2x2x128xbf16> to vector<4x128xbf16>
    %c1_203 = arith.constant 1 : index
    %c0_204 = arith.constant 0 : index
    %c0_205 = arith.constant 0 : index
    %c0_206 = arith.constant 0 : index
    %256 = vector.load %arg8[%c1_203, %c0_204, %c0_205, %c0_206] : memref<3x3x128x512xbf16, #tpu.memory_space<vmem>>, vector<1x1x128x512xbf16>
    %257 = vector.shape_cast %256 : vector<1x1x128x512xbf16> to vector<128x512xbf16>
    %cst_207 = arith.constant dense<0.000000e+00> : vector<4x512xf32>
    %258 = tpu.matmul %255, %257, %cst_207 {dimension_numbers = #tpu.dot_dimension_numbers<[1], [0], [0], [1], [0, 0, 1, 1], [], []>} : vector<4x128xbf16>, vector<128x512xbf16>, vector<4x512xf32> -> vector<4x512xf32>
    %259 = arith.addf %253, %258 : vector<4x512xf32>
    %260 = vector.extract_strided_slice %234 {offsets = [1, 1, 0], sizes = [2, 2, 128], strides = [1, 1, 1]} : vector<4x4x128xbf16> to vector<2x2x128xbf16>
    %261 = vector.shape_cast %260 : vector<2x2x128xbf16> to vector<4x128xbf16>
    %c1_208 = arith.constant 1 : index
    %c1_209 = arith.constant 1 : index
    %c0_210 = arith.constant 0 : index
    %c0_211 = arith.constant 0 : index
    %262 = vector.load %arg8[%c1_208, %c1_209, %c0_210, %c0_211] : memref<3x3x128x512xbf16, #tpu.memory_space<vmem>>, vector<1x1x128x512xbf16>
    %263 = vector.shape_cast %262 : vector<1x1x128x512xbf16> to vector<128x512xbf16>
    %cst_212 = arith.constant dense<0.000000e+00> : vector<4x512xf32>
    %264 = tpu.matmul %261, %263, %cst_212 {dimension_numbers = #tpu.dot_dimension_numbers<[1], [0], [0], [1], [0, 0, 1, 1], [], []>} : vector<4x128xbf16>, vector<128x512xbf16>, vector<4x512xf32> -> vector<4x512xf32>
    %265 = arith.addf %259, %264 : vector<4x512xf32>
    %266 = vector.extract_strided_slice %234 {offsets = [1, 2, 0], sizes = [2, 2, 128], strides = [1, 1, 1]} : vector<4x4x128xbf16> to vector<2x2x128xbf16>
    %267 = vector.shape_cast %266 : vector<2x2x128xbf16> to vector<4x128xbf16>
    %c1_213 = arith.constant 1 : index
    %c2_214 = arith.constant 2 : index
    %c0_215 = arith.constant 0 : index
    %c0_216 = arith.constant 0 : index
    %268 = vector.load %arg8[%c1_213, %c2_214, %c0_215, %c0_216] : memref<3x3x128x512xbf16, #tpu.memory_space<vmem>>, vector<1x1x128x512xbf16>
    %269 = vector.shape_cast %268 : vector<1x1x128x512xbf16> to vector<128x512xbf16>
    %cst_217 = arith.constant dense<0.000000e+00> : vector<4x512xf32>
    %270 = tpu.matmul %267, %269, %cst_217 {dimension_numbers = #tpu.dot_dimension_numbers<[1], [0], [0], [1], [0, 0, 1, 1], [], []>} : vector<4x128xbf16>, vector<128x512xbf16>, vector<4x512xf32> -> vector<4x512xf32>
    %271 = arith.addf %265, %270 : vector<4x512xf32>
    %272 = vector.extract_strided_slice %234 {offsets = [2, 0, 0], sizes = [2, 2, 128], strides = [1, 1, 1]} : vector<4x4x128xbf16> to vector<2x2x128xbf16>
    %273 = vector.shape_cast %272 : vector<2x2x128xbf16> to vector<4x128xbf16>
    %c2_218 = arith.constant 2 : index
    %c0_219 = arith.constant 0 : index
    %c0_220 = arith.constant 0 : index
    %c0_221 = arith.constant 0 : index
    %274 = vector.load %arg8[%c2_218, %c0_219, %c0_220, %c0_221] : memref<3x3x128x512xbf16, #tpu.memory_space<vmem>>, vector<1x1x128x512xbf16>
    %275 = vector.shape_cast %274 : vector<1x1x128x512xbf16> to vector<128x512xbf16>
    %cst_222 = arith.constant dense<0.000000e+00> : vector<4x512xf32>
    %276 = tpu.matmul %273, %275, %cst_222 {dimension_numbers = #tpu.dot_dimension_numbers<[1], [0], [0], [1], [0, 0, 1, 1], [], []>} : vector<4x128xbf16>, vector<128x512xbf16>, vector<4x512xf32> -> vector<4x512xf32>
    %277 = arith.addf %271, %276 : vector<4x512xf32>
    %278 = vector.extract_strided_slice %234 {offsets = [2, 1, 0], sizes = [2, 2, 128], strides = [1, 1, 1]} : vector<4x4x128xbf16> to vector<2x2x128xbf16>
    %279 = vector.shape_cast %278 : vector<2x2x128xbf16> to vector<4x128xbf16>
    %c2_223 = arith.constant 2 : index
    %c1_224 = arith.constant 1 : index
    %c0_225 = arith.constant 0 : index
    %c0_226 = arith.constant 0 : index
    %280 = vector.load %arg8[%c2_223, %c1_224, %c0_225, %c0_226] : memref<3x3x128x512xbf16, #tpu.memory_space<vmem>>, vector<1x1x128x512xbf16>
    %281 = vector.shape_cast %280 : vector<1x1x128x512xbf16> to vector<128x512xbf16>
    %cst_227 = arith.constant dense<0.000000e+00> : vector<4x512xf32>
    %282 = tpu.matmul %279, %281, %cst_227 {dimension_numbers = #tpu.dot_dimension_numbers<[1], [0], [0], [1], [0, 0, 1, 1], [], []>} : vector<4x128xbf16>, vector<128x512xbf16>, vector<4x512xf32> -> vector<4x512xf32>
    %283 = arith.addf %277, %282 : vector<4x512xf32>
    %284 = vector.extract_strided_slice %234 {offsets = [2, 2, 0], sizes = [2, 2, 128], strides = [1, 1, 1]} : vector<4x4x128xbf16> to vector<2x2x128xbf16>
    %285 = vector.shape_cast %284 : vector<2x2x128xbf16> to vector<4x128xbf16>
    %c2_228 = arith.constant 2 : index
    %c2_229 = arith.constant 2 : index
    %c0_230 = arith.constant 0 : index
    %c0_231 = arith.constant 0 : index
    %286 = vector.load %arg8[%c2_228, %c2_229, %c0_230, %c0_231] : memref<3x3x128x512xbf16, #tpu.memory_space<vmem>>, vector<1x1x128x512xbf16>
    %287 = vector.shape_cast %286 : vector<1x1x128x512xbf16> to vector<128x512xbf16>
    %cst_232 = arith.constant dense<0.000000e+00> : vector<4x512xf32>
    %288 = tpu.matmul %285, %287, %cst_232 {dimension_numbers = #tpu.dot_dimension_numbers<[1], [0], [0], [1], [0, 0, 1, 1], [], []>} : vector<4x128xbf16>, vector<128x512xbf16>, vector<4x512xf32> -> vector<4x512xf32>
    %289 = arith.addf %283, %288 : vector<4x512xf32>
    %c0_233 = arith.constant 0 : index
    %c0_234 = arith.constant 0 : index
    %290 = vector.load %arg9[%c0_233, %c0_234] : memref<1x512xf32, #tpu.memory_space<vmem>>, vector<1x512xf32>
    %291 = vector.broadcast %290 : vector<1x512xf32> to vector<4x512xf32>
    %292 = arith.addf %289, %291 : vector<4x512xf32>
    %cst_235 = arith.constant 0.000000e+00 : f32
    %293 = vector.broadcast %cst_235 : f32 to vector<4x512xf32>
    %294 = arith.maximumf %292, %293 : vector<4x512xf32>
    %295 = vector.shape_cast %294 : vector<4x512xf32> to vector<1x2x1x2x512xf32>
    %296 = vector.extract_strided_slice %295 {offsets = [0, 0, 0, 0, 0], sizes = [1, 1, 1, 2, 512], strides = [1, 1, 1, 1, 1]} : vector<1x2x1x2x512xf32> to vector<1x1x1x2x512xf32>
    %297 = vector.shape_cast %296 : vector<1x1x1x2x512xf32> to vector<1x1x2x512xf32>
    %298 = vector.extract_strided_slice %295 {offsets = [0, 1, 0, 0, 0], sizes = [1, 1, 1, 2, 512], strides = [1, 1, 1, 1, 1]} : vector<1x2x1x2x512xf32> to vector<1x1x1x2x512xf32>
    %299 = vector.shape_cast %298 : vector<1x1x1x2x512xf32> to vector<1x1x2x512xf32>
    %300 = arith.maximumf %297, %299 : vector<1x1x2x512xf32>
    %301 = vector.extract_strided_slice %300 {offsets = [0, 0, 0, 0], sizes = [1, 1, 1, 512], strides = [1, 1, 1, 1]} : vector<1x1x2x512xf32> to vector<1x1x1x512xf32>
    %302 = vector.shape_cast %301 : vector<1x1x1x512xf32> to vector<1x1x512xf32>
    %303 = vector.extract_strided_slice %300 {offsets = [0, 0, 1, 0], sizes = [1, 1, 1, 512], strides = [1, 1, 1, 1]} : vector<1x1x2x512xf32> to vector<1x1x1x512xf32>
    %304 = vector.shape_cast %303 : vector<1x1x1x512xf32> to vector<1x1x512xf32>
    %305 = arith.maximumf %302, %304 : vector<1x1x512xf32>
    %306 = vector.shape_cast %305 : vector<1x1x512xf32> to vector<1x512xf32>
    %307 = arith.truncf %306 : vector<1x512xf32> to vector<1x512xbf16>
    %c0_236 = arith.constant 0 : index
    %c0_237 = arith.constant 0 : index
    %308 = vector.load %arg10[%c0_236, %c0_237] : memref<512x512xbf16, #tpu.memory_space<vmem>>, vector<512x512xbf16>
    %cst_238 = arith.constant dense<0.000000e+00> : vector<1x512xf32>
    %309 = tpu.matmul %307, %308, %cst_238 {dimension_numbers = #tpu.dot_dimension_numbers<[1], [0], [0], [1], [0, 0, 1, 1], [], []>} : vector<1x512xbf16>, vector<512x512xbf16>, vector<1x512xf32> -> vector<1x512xf32>
    %c0_239 = arith.constant 0 : index
    %c0_240 = arith.constant 0 : index
    %310 = vector.load %arg11[%c0_239, %c0_240] : memref<1x512xf32, #tpu.memory_space<vmem>>, vector<1x512xf32>
    %311 = arith.addf %309, %310 : vector<1x512xf32>
    %cst_241 = arith.constant 0.000000e+00 : f32
    %312 = vector.broadcast %cst_241 : f32 to vector<1x512xf32>
    %313 = arith.maximumf %311, %312 : vector<1x512xf32>
    %314 = arith.truncf %313 : vector<1x512xf32> to vector<1x512xbf16>
    %c0_242 = arith.constant 0 : index
    %c0_243 = arith.constant 0 : index
    %315 = vector.load %arg12[%c0_242, %c0_243] : memref<512x512xbf16, #tpu.memory_space<vmem>>, vector<512x512xbf16>
    %cst_244 = arith.constant dense<0.000000e+00> : vector<1x512xf32>
    %316 = tpu.matmul %314, %315, %cst_244 {dimension_numbers = #tpu.dot_dimension_numbers<[1], [0], [0], [1], [0, 0, 1, 1], [], []>} : vector<1x512xbf16>, vector<512x512xbf16>, vector<1x512xf32> -> vector<1x512xf32>
    %c0_245 = arith.constant 0 : index
    %c0_246 = arith.constant 0 : index
    %317 = vector.load %arg13[%c0_245, %c0_246] : memref<1x512xf32, #tpu.memory_space<vmem>>, vector<1x512xf32>
    %318 = arith.addf %316, %317 : vector<1x512xf32>
    %cst_247 = arith.constant 0.000000e+00 : f32
    %319 = vector.broadcast %cst_247 : f32 to vector<1x512xf32>
    %320 = arith.maximumf %318, %319 : vector<1x512xf32>
    %321 = arith.truncf %320 : vector<1x512xf32> to vector<1x512xbf16>
    %c0_248 = arith.constant 0 : index
    %c0_249 = arith.constant 0 : index
    %322 = vector.load %arg14[%c0_248, %c0_249] : memref<512x10xbf16, #tpu.memory_space<vmem>>, vector<512x10xbf16>
    %cst_250 = arith.constant dense<0.000000e+00> : vector<1x10xf32>
    %323 = tpu.matmul %321, %322, %cst_250 {dimension_numbers = #tpu.dot_dimension_numbers<[1], [0], [0], [1], [0, 0, 1, 1], [], []>} : vector<1x512xbf16>, vector<512x10xbf16>, vector<1x10xf32> -> vector<1x10xf32>
    %c0_251 = arith.constant 0 : index
    %c0_252 = arith.constant 0 : index
    %324 = vector.load %arg15[%c0_251, %c0_252] : memref<1x10xf32, #tpu.memory_space<vmem>>, vector<1x10xf32>
    %325 = arith.addf %323, %324 : vector<1x10xf32>
    %c0_253 = arith.constant 0 : index
    %c0_254 = arith.constant 0 : index
    %c0_255 = arith.constant 0 : index
    %326 = vector.load %arg16[%c0_253, %c0_254, %c0_255] : memref<1x1x10xf32, #tpu.memory_space<vmem>>, vector<1x1x10xf32>
    %327 = vector.shape_cast %326 : vector<1x1x10xf32> to vector<1x10xf32>
    %328 = vector.shape_cast %325 : vector<1x10xf32> to vector<1x1x10xf32>
    tpu.vector_store %arg16[%c0_253, %c0_254, %c0_255], %328 {strides = array<i32>} : memref<1x1x10xf32, #tpu.memory_space<vmem>>, vector<1x1x10xf32>,
    return
  }
  func.func @transform_0(%arg0: i32) -> (i32, i32, i32, i32) {
    %c0_i32 = arith.constant 0 : i32
    %c0_i32_0 = arith.constant 0 : i32
    %c0_i32_1 = arith.constant 0 : i32
    %c0_i32_2 = arith.constant 0 : i32
    return %arg0, %c0_i32, %c0_i32_0, %c0_i32_1 : i32, i32, i32, i32
  }
  func.func @transform_1(%arg0: i32) -> (i32, i32, i32, i32) {
    %c0_i32 = arith.constant 0 : i32
    %c0_i32_0 = arith.constant 0 : i32
    %c0_i32_1 = arith.constant 0 : i32
    %c0_i32_2 = arith.constant 0 : i32
    %c0_i32_3 = arith.constant 0 : i32
    return %c0_i32, %c0_i32_0, %c0_i32_1, %c0_i32_2 : i32, i32, i32, i32
  }
  func.func @transform_2(%arg0: i32) -> (i32, i32) {
    %c0_i32 = arith.constant 0 : i32
    %c0_i32_0 = arith.constant 0 : i32
    %c0_i32_1 = arith.constant 0 : i32
    return %c0_i32, %c0_i32_0 : i32, i32
  }
  func.func @transform_3(%arg0: i32) -> (i32, i32, i32, i32) {
    %c0_i32 = arith.constant 0 : i32
    %c0_i32_0 = arith.constant 0 : i32
    %c0_i32_1 = arith.constant 0 : i32
    %c0_i32_2 = arith.constant 0 : i32
    %c0_i32_3 = arith.constant 0 : i32
    return %c0_i32, %c0_i32_0, %c0_i32_1, %c0_i32_2 : i32, i32, i32, i32
  }
  func.func @transform_4(%arg0: i32) -> (i32, i32) {
    %c0_i32 = arith.constant 0 : i32
    %c0_i32_0 = arith.constant 0 : i32
    %c0_i32_1 = arith.constant 0 : i32
    return %c0_i32, %c0_i32_0 : i32, i32
  }
  func.func @transform_5(%arg0: i32) -> (i32, i32, i32, i32) {
    %c0_i32 = arith.constant 0 : i32
    %c0_i32_0 = arith.constant 0 : i32
    %c0_i32_1 = arith.constant 0 : i32
    %c0_i32_2 = arith.constant 0 : i32
    %c0_i32_3 = arith.constant 0 : i32
    return %c0_i32, %c0_i32_0, %c0_i32_1, %c0_i32_2 : i32, i32, i32, i32
  }
  func.func @transform_6(%arg0: i32) -> (i32, i32) {
    %c0_i32 = arith.constant 0 : i32
    %c0_i32_0 = arith.constant 0 : i32
    %c0_i32_1 = arith.constant 0 : i32
    return %c0_i32, %c0_i32_0 : i32, i32
  }
  func.func @transform_7(%arg0: i32) -> (i32, i32, i32, i32) {
    %c0_i32 = arith.constant 0 : i32
    %c0_i32_0 = arith.constant 0 : i32
    %c0_i32_1 = arith.constant 0 : i32
    %c0_i32_2 = arith.constant 0 : i32
    %c0_i32_3 = arith.constant 0 : i32
    return %c0_i32, %c0_i32_0, %c0_i32_1, %c0_i32_2 : i32, i32, i32, i32
  }
  func.func @transform_8(%arg0: i32) -> (i32, i32) {
    %c0_i32 = arith.constant 0 : i32
    %c0_i32_0 = arith.constant 0 : i32
    %c0_i32_1 = arith.constant 0 : i32
    return %c0_i32, %c0_i32_0 : i32, i32
  }
  func.func @transform_9(%arg0: i32) -> (i32, i32) {
    %c0_i32 = arith.constant 0 : i32
    %c0_i32_0 = arith.constant 0 : i32
    %c0_i32_1 = arith.constant 0 : i32
    return %c0_i32, %c0_i32_0 : i32, i32
  }
  func.func @transform_10(%arg0: i32) -> (i32, i32) {
    %c0_i32 = arith.constant 0 : i32
    %c0_i32_0 = arith.constant 0 : i32
    %c0_i32_1 = arith.constant 0 : i32
    return %c0_i32, %c0_i32_0 : i32, i32
  }
  func.func @transform_11(%arg0: i32) -> (i32, i32) {
    %c0_i32 = arith.constant 0 : i32
    %c0_i32_0 = arith.constant 0 : i32
    %c0_i32_1 = arith.constant 0 : i32
    return %c0_i32, %c0_i32_0 : i32, i32
  }
  func.func @transform_12(%arg0: i32) -> (i32, i32) {
    %c0_i32 = arith.constant 0 : i32
    %c0_i32_0 = arith.constant 0 : i32
    %c0_i32_1 = arith.constant 0 : i32
    return %c0_i32, %c0_i32_0 : i32, i32
  }
  func.func @transform_13(%arg0: i32) -> (i32, i32) {
    %c0_i32 = arith.constant 0 : i32
    %c0_i32_0 = arith.constant 0 : i32
    %c0_i32_1 = arith.constant 0 : i32
    return %c0_i32, %c0_i32_0 : i32, i32
  }
  func.func @transform_14(%arg0: i32) -> (i32, i32) {
    %c0_i32 = arith.constant 0 : i32
    %c0_i32_0 = arith.constant 0 : i32
    %c0_i32_1 = arith.constant 0 : i32
    return %c0_i32, %c0_i32_0 : i32, i32
  }
  func.func @transform_15(%arg0: i32) -> (i32, i32, i32) {
    %c0_i32 = arith.constant 0 : i32
    %c0_i32_0 = arith.constant 0 : i32
    %c0_i32_1 = arith.constant 0 : i32
    return %arg0, %c0_i32, %c0_i32_0 : i32, i32, i32
  }
}

</mosaic_0001>

<bundles_post_ra>
// kernel: vgg_forward.1
= control target key start
LH: loop header
LB: loop body
LE: loop exit
PB: predicated region body
PF: predicated region fallthrough
CT: control target
= control target key end

     0   :  { %s18457_s0 = inlined_call_operand.vmem [shape: f32[2,16,16,3], index: 0, kind: input, shape index: {}]   ;;  %s18458_s1 = inlined_call_operand.hbm [shape: bf16[3,3,3,32], index: 1, kind: input, shape index: {}]   ;;  %s18459_s2 = inlined_call_operand.hbm [shape: f32[1,32], index: 2, kind: input, shape index: {}]   ;;  %s18460_s3 = inlined_call_operand.hbm [shape: bf16[3,3,32,64], index: 3, kind: input, shape index: {}]   ;;  %s18461_s4 = inlined_call_operand.hbm [shape: f32[1,64], index: 4, kind: input, shape index: {}]   ;;  %s18462_s5 = inlined_call_operand.hbm [shape: bf16[3,3,64,128], index: 5, kind: input, shape index: {}]   ;;  %s18463_s6 = inlined_call_operand.hbm [shape: f32[1,128], index: 6, kind: input, shape index: {}]   ;;  %s18464_s7 = inlined_call_operand.hbm [shape: bf16[3,3,128,512], index: 7, kind: input, shape index: {}]   ;;  %s18465_s8 = inlined_call_operand.hbm [shape: f32[1,512], index: 8, kind: input, shape index: {}]   ;;  %s18466_s9 = inlined_call_operand.hbm [shape: bf16[512,512], index: 9, kind: input, shape index: {}]   ;;  %s18467_s10 = inlined_call_operand.hbm [shape: f32[1,512], index: 10, kind: input, shape index: {}]   ;;  %s18468_s11 = inlined_call_operand.hbm [shape: bf16[512,512], index: 11, kind: input, shape index: {}]   ;;  %s18469_s12 = inlined_call_operand.hbm [shape: f32[1,512], index: 12, kind: input, shape index: {}]   ;;  %s18470_s13 = inlined_call_operand.vmem [shape: bf16[512,10], index: 13, kind: input, shape index: {}]   ;;  %s18471_s14 = inlined_call_operand.hbm [shape: f32[1,10], index: 14, kind: input, shape index: {}]   ;;  %s18472_s15 = inlined_call_operand.hbm [shape: f32[2,1,10], index: 15, kind: output, shape index: {}]  }
   0x1   :  { %18514 = sst [smem:[#allocation76_spill]] %s18458_s1 }
   0x2   :  { %18515 = sst [smem:[#allocation77_spill]] %s18459_s2 }
   0x3   :  { %18516 = sst [smem:[#allocation78_spill]] %s18460_s3 }
   0x4   :  { %18517 = sst [smem:[#allocation79_spill]] %s18461_s4 }
   0x5   :  { %18518 = sst [smem:[#allocation80_spill]] %s18463_s6 }
   0x6   :  { %20 = vsyncpa [#allocation7], 0 }
   0x7   :  { %21 = vsyncpa [#allocation10], 0 }
   0x8   :  { %22 = vsyncpa [#allocation13], 0 }
   0x9   :  { %23 = vsyncpa [#allocation16], 0 }
   0xa   :  { %24 = vsyncpa [#allocation19], 0 }
   0xb   :  { %25 = vsyncpa [#allocation22], 0 }
   0xc   :  { %26 = vsyncpa [#allocation25], 0 }
   0xd   :  { %27 = vsyncpa [#allocation8], 0 }
   0xe   :  { %29 = vsyncpa [#allocation8 + $0x1], 0  ;;  %s15679_s18 = smov 0   ;;  %s15681_s19 = smov 0  }
   0xf   :  { %s15683_s20 = smov 0   ;;  %s15685_s21 = smov 0  }
  0x10 LB: > { %18519 = sst [smem:[#allocation36_spill]] %s15564_s18  ;;  %s15700_s22 = sadd.s32 4294967295, %s15576_s21   ;;  %s15576_s21 = sphi %s15685_s21, %s18712_s21   ;;  %s15572_s20 = sphi %s15683_s20, %s18717_s20   ;;  %s15568_s19 = sphi %s15681_s19, %s18716_s19   ;;  %s15564_s18 = sphi %s15679_s18, %s18715_s18  }
  0x11   : > { %18520 = sst [smem:[#allocation37_spill]] %s15572_s20  ;;  %s11318_s23 = sadd.s32 4294967294, %s15576_s21  }
  0x12   : > { %18521 = sst [smem:[#allocation38_spill]] %s15576_s21  ;;  %s15704_s24 = sadd.s32 1, %s15576_s21  }
  0x13   : > { %18522 = sst [smem:[#allocation39_spill]] %s15704_s24  ;;  %s362_s25 = sadd.s32 1, %s15572_s20 }
  0x14   : > { %s359_s26 = ssub.s32 %s15576_s21, %s15704_s24  ;;  %p372_p0 = scmp.ne.s32.totalorder %s15572_s20, %s15568_s19 }
  0x15   : > { %p360_p1 = scmp.eq.s32.totalorder %s359_s26, 0  ;;  %p373_p2 = scmp.eq.s32.totalorder %s15700_s22, 1 }
  0x16   : > { %p378_p3 = scmp.ne.s32.totalorder %s15568_s19, %s15564_s18  ;;  %p379_p4 = scmp.eq.s32.totalorder %s11318_s23, 1 }
  0x17   : > { %s15715_s27 = scalar_select %p360_p1, %s15572_s20, %s362_s25  }
  0x18   : > { %p15717_p5 = por %p373_p2, %p372_p0  ;;  %p15721_p6 = por %p379_p4, %p378_p3 }
  0x19   : > { %18523 = sst [smem:[#allocation40_spill]] %s15715_s27  ;;  %p11319_p7 = scmp.ge.s32.totalorder %s15576_s21, 1 }
  0x1a   : > { %s18524_s28 = scalar_select %p15717_p5, 1, 0 }
  0x1b   : > { %s18526_s29 = scalar_select %p15721_p6, 1, 0 }
  0x1c   : > { %18525 = sst [smem:[#allocation41_spill]] %s18524_s28  ;;  %p386_p8 = scmp.lt.s32.totalorder %s15576_s21, 3 }
  0x1d   : > { %18527 = sst [smem:[#allocation42_spill]] %s18526_s29  ;;  %p15003_p9 = scmp.eq.s32.totalorder %s15700_s22, 0 }
  0x1e   : > { %p15728_p10 = pnand %p11319_p7, %p386_p8  ;;  %s18529_s2 = sld [smem:[#allocation77_spill]] }
  0x1f   : > { %s15578_s25 = smov [#allocation9]   ;;  %s18530_s4 = sld [smem:[#allocation79_spill]] }
  0x20   : > { %p14959_p11 = pneg %p15728_p10  ;;  %s414_s26 = sshll.u32 %s15578_s25, 4  ;;  %s415_s26 = int_to_ptr.vmem [resolvable:$true] %s414_s26 }
  0x21   : > { %s18532_s6 = sld [smem:[#allocation80_spill]]  ;;  %s15579_s18 = smov [#allocation12]  }
  0x22   : > { %p15742_p12 = pnand %p15003_p9, %p14959_p11  ;;  %s440_s25 = sshll.u32 %s15579_s18, 4  ;;  %s441_s25 = int_to_ptr.vmem [resolvable:$true] %s440_s25 }
  0x23   : > { %s15580_s21 = smov [#allocation15]   ;;  %s15581_s16 = smov [#allocation18]  }
  0x24   : > { %s412_s23 = sshll.u32 %s18529_s2, 4  ;;  %s466_s28 = sshll.u32 %s15580_s21, 4  ;;  %s413_s23 = int_to_ptr.hbm [resolvable:$true] %s412_s23  ;;  %s467_s28 = int_to_ptr.vmem [resolvable:$true] %s466_s28 }
  0x25   : > { %s438_s24 = sshll.u32 %s18530_s4, 4  ;;  %s490_s4 = sshll.u32 %s18465_s8, 4  ;;  %s439_s24 = int_to_ptr.hbm [resolvable:$true] %s438_s24  ;;  %s491_s4 = int_to_ptr.hbm [resolvable:$true] %s490_s4 }
  0x26   : > { %14965 = dma.hbm_to_vmem [thread:$0]  (!%p15742_p12), %s413_s23, 16, %s415_s26, [#allocation10]  }
  0x27   : > { %s464_s2 = sshll.u32 %s18532_s6, 4  ;;  %s492_s18 = sshll.u32 %s15581_s16, 4  ;;  %s465_s2 = int_to_ptr.hbm [resolvable:$true] %s464_s2  ;;  %s493_s18 = int_to_ptr.vmem [resolvable:$true] %s492_s18 }
  0x28   : > { %14971 = dma.hbm_to_vmem [thread:$0]  (!%p15742_p12), %s439_s24, 16, %s441_s25, [#allocation13]  }
  0x29   : > { %14977 = dma.hbm_to_vmem [thread:$0]  (!%p15742_p12), %s465_s2, 16, %s467_s28, [#allocation16]  }
  0x2a   : > { %s516_s23 = sshll.u32 %s18467_s10, 4  ;;  %s542_s25 = sshll.u32 %s18469_s12, 4  ;;  %s517_s23 = int_to_ptr.hbm [resolvable:$true] %s516_s23  ;;  %s543_s25 = int_to_ptr.hbm [resolvable:$true] %s542_s25 }
  0x2b   : > { %14983 = dma.hbm_to_vmem [thread:$0]  (!%p15742_p12), %s491_s4, 64, %s493_s18, [#allocation19]  }
  0x2c   : > { %s15582_s21 = smov [#allocation21]   ;;  %s15583_s2 = smov [#allocation24]  }
  0x2d   : > { %s518_s20 = sshll.u32 %s15582_s21, 4  ;;  %s544_s28 = sshll.u32 %s15583_s2, 4  ;;  %s519_s20 = int_to_ptr.vmem [resolvable:$true] %s518_s20  ;;  %s545_s28 = int_to_ptr.vmem [resolvable:$true] %s544_s28 }
  0x2e   : > { %14989 = dma.hbm_to_vmem [thread:$0]  (!%p15742_p12), %s517_s23, 64, %s519_s20, [#allocation22]  }
  0x2f   : > { %s18533_s1 = sld [smem:[#allocation76_spill]]  ;;  %s15584_s4 = smov [#allocation6]  }
  0x30   : > { %14995 = dma.hbm_to_vmem [thread:$0]  (!%p15742_p12), %s543_s25, 64, %s545_s28, [#allocation25]  }
  0x31   : > { %s399_s18 = sshll.u32 %s15584_s4, 4  ;;  %s18534_s3 = sld [smem:[#allocation78_spill]]  ;;  %s400_s18 = int_to_ptr.vmem [resolvable:$true] %s399_s18 }
  0x32   : > { %s15585_s21 = smov 32   ;;  %s15586_s23 = smov 2  }
  0x33   : > { %s15587_s20 = smov [#allocation11]   ;;  %s15588_s6 = smov 64  }
  0x34   : > { %s425_s2 = sshll.u32 %s15587_s20, 4  ;;  %s15589_s27 = smov 4   ;;  %s426_s2 = int_to_ptr.vmem [resolvable:$true] %s425_s2 }
  0x35   : > { %s397_s16 = sshll.u32 %s18533_s1, 4  ;;  %s449_s4 = sshll.u32 %s18462_s5, 4  ;;  %s398_s16 = int_to_ptr.hbm [resolvable:$true] %s397_s16  ;;  %s450_s4 = int_to_ptr.hbm [resolvable:$true] %s449_s4 }
  0x36   : > { %14962 = dma.hbm_to_vmem [thread:$0]  (!%p15742_p12), %s398_s16, 288, %s400_s18, [#allocation7], %s15585_s21, %s15585_s21, %s15586_s23  }
  0x37   : > { %s423_s26 = sshll.u32 %s18534_s3, 4  ;;  %s15590_s17 = smov [#allocation14]   ;;  %s424_s26 = int_to_ptr.hbm [resolvable:$true] %s423_s26 }
  0x38   : > { %14968 = dma.hbm_to_vmem [thread:$0]  (!%p15742_p12), %s424_s26, 2304, %s426_s2, [#allocation10], %s15588_s6, %s15588_s6, %s15589_s27  }
  0x39   : > { %s451_s24 = sshll.u32 %s15590_s17, 4  ;;  %s475_s16 = sshll.u32 %s18464_s7, 4  ;;  %s452_s24 = int_to_ptr.vmem [resolvable:$true] %s451_s24  ;;  %s476_s16 = int_to_ptr.hbm [resolvable:$true] %s475_s16 }
  0x3a   : > { %14974 = dma.hbm_to_vmem [thread:$0]  (!%p15742_p12), %s450_s4, 4608, %s452_s24, [#allocation13], %s15588_s6, %s15588_s6, %s15589_s27  }
  0x3b   : > { %s15591_s18 = smov [#allocation17]   ;;  %s15592_s26 = smov 256  }
  0x3c   : > { %s477_s21 = sshll.u32 %s15591_s18, 4  ;;  %s15593_s23 = smov 16   ;;  %s478_s21 = int_to_ptr.vmem [resolvable:$true] %s477_s21 }
  0x3d   : > { %14980 = dma.hbm_to_vmem [thread:$0]  (!%p15742_p12), %s476_s16, 36864, %s478_s21, [#allocation16], %s15592_s26, %s15592_s26, %s15593_s23  }
  0x3e   : > { %s501_s25 = sshll.u32 %s18466_s9, 4  ;;  %s15594_s1 = smov [#allocation20]   ;;  %s502_s25 = int_to_ptr.hbm [resolvable:$true] %s501_s25 }
  0x3f   : > { %s503_s3 = sshll.u32 %s15594_s1, 4  ;;  %s527_s27 = sshll.u32 %s18468_s11, 4  ;;  %s504_s3 = int_to_ptr.vmem [resolvable:$true] %s503_s3  ;;  %s528_s27 = int_to_ptr.hbm [resolvable:$true] %s527_s27 }
  0x40   : > { %14986 = dma.hbm_to_vmem [thread:$0]  (!%p15742_p12), %s502_s25, 16384, %s504_s3, [#allocation19], %s15592_s26, %s15592_s26, %s15593_s23  }
  0x41   : > { %s15595_s4 = smov [#allocation23]   ;;  %s557_s18 = sshll.u32 %s18471_s14, 4  ;;  %s558_s18 = int_to_ptr.hbm [resolvable:$true] %s557_s18 }
  0x42   : > { %s529_s17 = sshll.u32 %s15595_s4, 4  ;;  %s15596_s21 = smov [#allocation26]   ;;  %s530_s17 = int_to_ptr.vmem [resolvable:$true] %s529_s17 }
  0x43   : > { %14992 = dma.hbm_to_vmem [thread:$0]  (!%p15742_p12), %s528_s27, 16384, %s530_s17, [#allocation22], %s15592_s26, %s15592_s26, %s15593_s23  }
  0x44   : > { %s559_s20 = sshll.u32 %s15596_s21, 4  ;;  %580 = sbr.rel (%p15728_p10) target bundleno = 2581 (0xa15), region = 80  ;;  %s560_s20 = int_to_ptr.vmem [resolvable:$true] %s559_s20 }
  0x45   : > { %14998 = dma.hbm_to_vmem [thread:$0]  (!%p15742_p12), %s558_s18, 16, %s560_s20, [#allocation25]  }
  0x49   : > { %15531 = dma.done.wait (%p15003_p9), [#allocation7], 288  }
  0x4a   : > { %15533 = vsyncadd (%p15003_p9), [#allocation7], 4294967008 }
  0x4b   : > { %15535 = dma.done.wait (%p15003_p9), [#allocation10], 2320  }
  0x4c   : > { %15537 = vsyncadd (%p15003_p9), [#allocation10], 4294964976 }
  0x4d   : > { %15539 = dma.done.wait (%p15003_p9), [#allocation13], 4624  }
  0x4e   : > { %15541 = vsyncadd (%p15003_p9), [#allocation13], 4294962672 }
  0x4f   : > { %15543 = dma.done.wait (%p15003_p9), [#allocation16], 36880  }
  0x50   : > { %15545 = vsyncadd (%p15003_p9), [#allocation16], 4294930416 }
  0x51   : > { %15547 = dma.done.wait (%p15003_p9), [#allocation19], 16448  }
  0x52   : > { %15549 = vsyncadd (%p15003_p9), [#allocation19], 4294950848 }
  0x53   : > { %15551 = dma.done.wait (%p15003_p9), [#allocation22], 16448  }
  0x54   : > { %15553 = vsyncadd (%p15003_p9), [#allocation22], 4294950848 }
  0x55   : > { %15555 = dma.done.wait (%p15003_p9), [#allocation25], 80  }
  0x56   : > { %15557 = vsyncadd (%p15003_p9), [#allocation25], 4294967216  ;;  %vm1796_vm0 = vcmask 1040384   ;;  %vm1797_vm1 = vcmask 1041408   ;;  %v15597_v0 = vmov 65535   ;;  %v18481_v2 = vmov 0  }
  0x57   : > { %v1798_v1 = vsel %vm1796_vm0, 4294967295, %v15597_v0  ;;  %6279 = vst [vmem:[#allocation5] sm:$0x3] %v18481_v2  ;;  %vm697_vm2 = vcmask 16384   ;;  %v2244_v4 = vld [vmem:[#allocation6 + $0x4] sm:$0x3] }
  0x58   : > { %6282 = vst [vmem:[#allocation5 + $0x6] sm:$0x3] %v18481_v2  ;;  %v15839_v3 = vsel %vm1797_vm1, %v1798_v1, 0  ;;  %v1698_v6 = vld [vmem:[#allocation6 + $0x2] sm:$0x3]  ;;  %vm694_vm3 = vcmask 19456  }
  0x59   : > { %698 = vst.msk [vmem:[#allocation2 + $0x8] sm:$0x1] %vm697_vm2, %v18481_v2  ;;  %v2342_v5 = vand.u32 %v2244_v4, %v15839_v3  ;;  %v1309_v7 = vld [vmem:[#allocation6] sm:$0x3]  ;;  %v1801_v8 = vand.u32 %v15839_v3, %v1698_v6  ;;  %v2466_v10 = vld [vmem:[#allocation6 + $0x6] sm:$0x3] }
  0x5a   : > { %701 = vst.msk [vmem:[#allocation2 + $0x14] sm:$0x1] %vm697_vm2, %v18481_v2  ;;  %v2021_v9 = vand.u32 %v15839_v3, %v1309_v7  ;;  %v2476_v11 = vand.u32 %v2466_v10, %v15839_v3  ;;  %p688_p13 = scmp.lt.s32.totalorder %s15700_s22, 1  ;;  %vm2128_vm4 = vcmask 1042432   ;;  %vm2129_vm5 = vcmask 1046532   ;;  %s686_s18 = sand.u32 1, %s15568_s19  }
  0x5b   : > { %704 = vst.msk [vmem:[#allocation2 + $0x20] sm:$0x1] %vm697_vm2, %v18481_v2  ;;  %2351 = vmatpush.bf16.msra.mxu2 %v2342_v5  ;;  %1810 = vmatpush.bf16.msra.mxu0 %v1801_v8  ;;  %vm1310_vm6 = vsmask.f32 3328  ;;  %vm1311_vm7 = vsmask.f32 7440  ;;  %vm15904_vm8 = vmor %vm2128_vm4, %vm2129_vm5 }
  0x5c   : > { %707 = vst.msk [vmem:[#allocation2 + $0x2c] sm:$0x1] %vm697_vm2, %v18481_v2  ;;  %2030 = vmatpush.bf16.msra.mxu1 %v2021_v9  ;;  %2485 = vmatpush.bf16.msra.mxu3 %v2476_v11  ;;  %s15891_s29 = scalar_select %p688_p13, %s15700_s22, 1  ;;  %vm1747_vm9 = vcmask 23552   ;;  %vm15934_vm10 = vmor %vm1310_vm6, %vm1311_vm7  ;;  %vm1139_vm11 = vsmask.f32 7938 }
  0x5d   : > { %710 = vst.msk [vmem:[#allocation2 + $0x38] sm:$0x1] %vm697_vm2, %v18481_v2  ;;  %vm814_vm12 = vsmask.f32 256  ;;  %vm18503_vm13 = vsmask.f32 4368  ;;  %vm15984_vm14 = vmand %vm694_vm3, %vm1139_vm11 }
  0x5e   : > { %713 = vst.msk [vmem:[#allocation2 + $0x44] sm:$0x1] %vm697_vm2, %v18481_v2  ;;  %s14256_s30 = sshll.u32 %s15891_s29, 8  ;;  %vm15990_vm15 = vmor %vm814_vm12, %vm18503_vm13  ;;  %vm4217_vm5 = vcmask 1042434   ;;  %vm4220_vm6 = vcmask 1043459   ;;  %vm4223_vm7 = vcmask 1044484   ;;  %s11133_s29 = scalar_lea.hbm %s18472_s15, %s15700_s22 }
  0x5f   : > { %716 = vst.msk [vmem:[#allocation2 + $0x50] sm:$0x1] %vm697_vm2, %v18481_v2  ;;  %s15921_s2 = scalar_lea.vmem %s18457_s0, %s14256_s30  ;;  %vm15998_vm4 = vmand %vm697_vm2, %vm814_vm12  ;;  %vm4232_vm13 = vcmask 1047559   ;;  %s687_s26 = scalar_lea.vmem [#allocation27], %s686_s18 }
  0x60   : > { %719 = vst.msk [vmem:[#allocation2 + $0x5c] sm:$0x1] %vm697_vm2, %v18481_v2  ;;  %v1257_v12 = vld [vmem:[#allocation2 + $0x8] sm:$0x1]  ;;  %v750_v38 = vld [vmem:[%s15921_s2] sm:$0xff]  ;;  %v751_v40 = vld [vmem:[%s15921_s2 + $0x8] sm:$0xff] }
  0x61   : > { %722 = vst.msk [vmem:[#allocation2 + $0x68] sm:$0x1] %vm697_vm2, %v18481_v2  ;;  %v2136_v13 = vrot.slane %v1257_v12, 5  ;;  %v1333_v24 = vshll.u32 %v1257_v12, 16  ;;  %v752_v43 = vld [vmem:[%s15921_s2 + $0x10] sm:$0xff]  ;;  %v782_v45 = vpack.c.bf16 %v750_v38, %v750_v38  ;;  %v783_v48 = vpack.c.bf16 %v751_v40, %v751_v40  ;;  %v753_v49 = vld [vmem:[%s15921_s2 + $0x18] sm:$0xff] }
  0x62   : > { %725 = vst.msk [vmem:[#allocation2 + $0x74] sm:$0x1] %vm697_vm2, %v18481_v2  ;;  %v784_v51 = vpack.c.bf16 %v752_v43, %v752_v43  ;;  %v785_v54 = vpack.c.bf16 %v753_v49, %v753_v49  ;;  %v754_v0 = vld [vmem:[%s15921_s2 + $0x20] sm:$0xff]  ;;  %v755_v1 = vld [vmem:[%s15921_s2 + $0x28] sm:$0xff]  ;;  %s11135_s23 = sshll.u32 %s687_s26, 4  ;;  %s11125_s25 = scalar_lea.sflag [#allocation8], %s686_s18  ;;  %s11136_s23 = int_to_ptr.vmem [resolvable:$true] %s11135_s23 }
  0x63   : > { %728 = vst.msk [vmem:[#allocation2 + $0x80] sm:$0x1] %vm697_vm2, %v18481_v2  ;;  %v1335_v37 = vrot.slane %v1333_v24, 5  ;;  %v818_v53 = vshrl.u32 %v782_v45, 16  ;;  %v826_v55 = vshrl.u32 %v783_v48, 16  ;;  %v821_v58 = vshll.u32 %v782_v45, 16 }
  0x64   : > { %731 = vst.msk [vmem:[#allocation2 + $0x8c] sm:$0x1] %vm697_vm2, %v18481_v2  ;;  %v835_v56 = vshrl.u32 %v784_v51, 16  ;;  %v843_v59 = vshrl.u32 %v785_v54, 16  ;;  %v829_v61 = vshll.u32 %v783_v48, 16  ;;  %v838_v63 = vshll.u32 %v784_v51, 16 }
  0x65   : > { %734 = vst.msk [vmem:[#allocation2 + $0x98] sm:$0x1] %vm697_vm2, %v18481_v2  ;;  %v820_v57 = vrot.slane %v818_v53, 7  ;;  %v828_v60 = vrot.slane %v826_v55, 7  ;;  %v786_v4 = vpack.c.bf16 %v754_v0, %v754_v0  ;;  %v787_v5 = vpack.c.bf16 %v755_v1, %v755_v1  ;;  %s15506_s6 = scalar_lea.hbm %s18472_s15, 2 }
  0x66   : > { %737 = vst.msk [vmem:[#allocation2 + $0xa4] sm:$0x1] %vm697_vm2, %v18481_v2  ;;  %v837_v62 = vrot.slane %v835_v56, 7  ;;  %v845_v8 = vrot.slane %v843_v59, 7  ;;  %v846_v9 = vshll.u32 %v785_v54, 16 }
  0x67   : > { %740 = vst.msk [vmem:[#allocation2 + $0xb0] sm:$0x1] %vm697_vm2, %v18481_v2  ;;  %v823_v6 = vor.u32 %v821_v58, %v820_v57  ;;  %v824_v7 = vrot.slane %v820_v57, 4  ;;  %v831_v10 = vor.u32 %v829_v61, %v828_v60  ;;  %v863_v24 = vshll.u32 %v787_v5, 16 }
  0x68   : > { %743 = vst.msk [vmem:[#allocation2 + $0xbc] sm:$0x1] %vm697_vm2, %v18481_v2 }
  0x69   : > { %746 = vst.msk [vmem:[#allocation2 + $0xc8] sm:$0x1] %vm697_vm2, %v18481_v2 }
  0x6a   : > { %749 = vst.msk [vmem:[#allocation2 + $0xd4] sm:$0x1] %vm697_vm2, %v18481_v2  ;;  %vm4003_vm2 = vcmask 253952  }
  0x6b   : > { %6280 = vst [vmem:[#allocation5 + $0x2] sm:$0x3] %v18481_v2 }
  0x6c   : > { %6281 = vst [vmem:[#allocation5 + $0x4] sm:$0x3] %v18481_v2 }
  0x6d   : > { %695 = vst.msk [vmem:[#allocation2] sm:$0xf] %vm694_vm3, %v18481_v2 }
  0x6e   : > { %696 = vst.msk [vmem:[#allocation2 + $0x4] sm:$0xf] %vm694_vm3, %v18481_v2 }
  0x6f   : > { %699 = vst.msk [vmem:[#allocation2 + $0xc] sm:$0xf] %vm694_vm3, %v18481_v2 }
  0x70   : > { %700 = vst.msk [vmem:[#allocation2 + $0x10] sm:$0xf] %vm694_vm3, %v18481_v2 }
  0x71   : > { %702 = vst.msk [vmem:[#allocation2 + $0x18] sm:$0xf] %vm694_vm3, %v18481_v2 }
  0x72   : > { %703 = vst.msk [vmem:[#allocation2 + $0x1c] sm:$0xf] %vm694_vm3, %v18481_v2 }
  0x73   : > { %705 = vst.msk [vmem:[#allocation2 + $0x24] sm:$0xf] %vm694_vm3, %v18481_v2 }
  0x74   : > { %v1255_v14 = vld [vmem:[#allocation2] sm:$0xf]  ;;  %706 = vst.msk [vmem:[#allocation2 + $0x28] sm:$0xf] %vm694_vm3, %v18481_v2 }
  0x75   : > { %v1256_v15 = vld [vmem:[#allocation2 + $0x4] sm:$0xf]  ;;  %v11446_v17 = vrot.slane %v1255_v14, 9  ;;  %708 = vst.msk [vmem:[#allocation2 + $0x30] sm:$0xf] %vm694_vm3, %v18481_v2  ;;  %v1314_v18 = vshrl.u32 %v1255_v14, 16 }
  0x76   : > { %v2133_v19 = vrot.slane %v1256_v15, 5  ;;  %709 = vst.msk [vmem:[#allocation2 + $0x34] sm:$0xf] %vm694_vm3, %v18481_v2  ;;  %v1317_v20 = vshll.u32 %v1255_v14, 16  ;;  %v1323_v21 = vshll.u32 %v1256_v15, 16  ;;  %v1327_v22 = vshrl.u32 %v1256_v15, 16 }
  0x77   : > { %711 = vst.msk [vmem:[#allocation2 + $0x3c] sm:$0xf] %vm694_vm3, %v18481_v2  ;;  %v1316_v23 = vrot.slane %v1314_v18, 4  ;;  %v14257_v25 = vld [vmem:[#allocation2] sm:$0xff]  ;;  %v1141_v12 = vld [vmem:[#allocation2 + $0xc] sm:$0xf] }
  0x78   : > { %v2134_v26 = vsel %vm15904_vm8, %v11446_v17, %v2133_v19  ;;  %v2135_v27 = vrot.slane %v2133_v19, 4  ;;  %712 = vst.msk [vmem:[#allocation2 + $0x40] sm:$0xf] %vm694_vm3, %v18481_v2  ;;  %v1319_v28 = vrot.slane %v1317_v20, 5  ;;  %v1325_v29 = vrot.slane %v1323_v21, 5  ;;  %11430 = vmatmul.msk.bf16.vlgmr.msra.gmra.mxu1 %vm1747_vm9, %v14257_v25 }
  0x79   : > { %v2245_v30 = vunpack.c.l.b16 %v2134_v26  ;;  %714 = vst.msk [vmem:[#allocation2 + $0x48] sm:$0xf] %vm694_vm3, %v18481_v2  ;;  %v1329_v31 = vrot.slane %v1327_v22, 4  ;;  %v860_v14 = vshrl.u32 %v787_v5, 16  ;;  %v833_v17 = vrot.slane %v828_v60, 4 }
  0x7a   : > { %v2137_v32 = vsel %vm15904_vm8, %v2135_v27, %v2136_v13  ;;  %715 = vst.msk [vmem:[#allocation2 + $0x4c] sm:$0xf] %vm694_vm3, %v18481_v2  ;;  %v1320_v33 = vor.u32 %v1319_v28, %v1316_v23  ;;  %v852_v13 = vshrl.u32 %v786_v4, 16  ;;  %v1147_v18 = vld [vmem:[#allocation2 + $0x14] sm:$0x1]  ;;  %v840_v19 = vor.u32 %v838_v63, %v837_v62 }
  0x7b   : > { %v2246_v34 = vunpack.c.l.b16 %v2137_v32  ;;  %717 = vst.msk [vmem:[#allocation2 + $0x54] sm:$0xf] %vm694_vm3, %v18481_v2  ;;  %v1330_v36 = vor.u32 %v1329_v31, %v1325_v29  ;;  %v18543_v20 = vmov 0  ;;  %v855_v22 = vshll.u32 %v786_v4, 16  ;;  %v1150_v28 = vld [vmem:[#allocation2 + $0x18] sm:$0xf] }
  0x7c   : > { %718 = vst.msk [vmem:[#allocation2 + $0x58] sm:$0xf] %vm694_vm3, %v18481_v2  ;;  %v1321_v39 = vrot.slane %v1320_v33, 4  ;;  %v18544_v20 = vsel %vm15998_vm4, 4294967295, %v18543_v20  ;;  %v854_v21 = vrot.slane %v852_v13, 7  ;;  %v862_v23 = vrot.slane %v860_v14, 7 }
  0x7d   : > { %v2277_v41 = vpack.c.b16 %v2246_v34, %v2245_v30  ;;  %720 = vst.msk [vmem:[#allocation2 + $0x60] sm:$0xf] %vm694_vm3, %v18481_v2  ;;  %v1331_v42 = vrot.slane %v1330_v36, 4  ;;  %v1142_v25 = vsel %vm15984_vm14, %v823_v6, %v1141_v12  ;;  %v841_v26 = vrot.slane %v837_v62, 4  ;;  %v1154_v32 = vld [vmem:[#allocation2 + $0x20] sm:$0x1] }
  0x7e   : > { %721 = vst.msk [vmem:[#allocation2 + $0x64] sm:$0xf] %vm694_vm3, %v18481_v2  ;;  %v1326_v44 = vsel %vm15934_vm10, %v1321_v39, %v1325_v29  ;;  %v848_v27 = vor.u32 %v846_v9, %v845_v8  ;;  %v832_v29 = vsel %vm15990_vm15, %v824_v7, %v831_v10  ;;  %v850_v30 = vrot.slane %v845_v8, 4  ;;  %v1157_v38 = vld [vmem:[#allocation2 + $0x24] sm:$0xf] }
  0x7f   : > { %11462 = vmatmul.msk.bf16.vlgmr.msra.gmra.mxu2 %vm1747_vm9, %v2277_v41  ;;  %723 = vst.msk [vmem:[#allocation2 + $0x6c] sm:$0xf] %vm694_vm3, %v18481_v2  ;;  %v1336_v46 = vsel %vm15934_vm10, %v1331_v42, %v1335_v37  ;;  %v1699_v47 = vunpack.c.l.b16 %v1326_v44  ;;  %v1148_v31 = vsel %vm15998_vm4, %v833_v17, %v1147_v18  ;;  %v857_v33 = vor.u32 %v855_v22, %v854_v21  ;;  %v1161_v44 = vld [vmem:[#allocation2 + $0x2c] sm:$0x1] }
  0x80   : > { %724 = vst.msk [vmem:[#allocation2 + $0x70] sm:$0xf] %vm694_vm3, %v18481_v2  ;;  %v1700_v50 = vunpack.c.l.b16 %v1336_v46  ;;  %v1151_v34 = vsel %vm15984_vm14, %v840_v19, %v1150_v28  ;;  %v858_v36 = vrot.slane %v854_v21, 4  ;;  %v865_v37 = vor.u32 %v863_v24, %v862_v23 }
  0x81   : > { %726 = vst.msk [vmem:[#allocation2 + $0x78] sm:$0xf] %vm694_vm3, %v18481_v2  ;;  %v849_v39 = vsel %vm15990_vm15, %v841_v26, %v848_v27  ;;  %v1155_v40 = vsel %vm15998_vm4, %v850_v30, %v1154_v32  ;;  %v1158_v41 = vsel %vm15984_vm14, %v857_v33, %v1157_v38  ;;  %v867_v43 = vrot.slane %v862_v23, 4  ;;  %v756_v38 = vld [vmem:[%s15921_s2 + $0x30] sm:$0xff] }
  0x82   : > { %727 = vst.msk [vmem:[#allocation2 + $0x7c] sm:$0xf] %vm694_vm3, %v18481_v2  ;;  %v1731_v52 = vpack.c.b16 %v1700_v50, %v1699_v47  ;;  %v866_v42 = vsel %vm15990_vm15, %v858_v36, %v865_v37 }
  0x83   : > { %729 = vst.msk [vmem:[#allocation2 + $0x84] sm:$0xf] %vm694_vm3, %v18481_v2  ;;  %v1162_v55 = vsel %vm15998_vm4, %v867_v43, %v1161_v44 }
  0x84   : > { %730 = vst.msk [vmem:[#allocation2 + $0x88] sm:$0xf] %vm694_vm3, %v18481_v2  ;;  %11350 = vmatmul.msk.bf16.vlgmr.msra.gmra.mxu0 %vm1747_vm9, %v1731_v52 }
  0x85   : > { %732 = vst.msk [vmem:[#allocation2 + $0x90] sm:$0xf] %vm694_vm3, %v18481_v2 }
  0x86   : > { %733 = vst.msk [vmem:[#allocation2 + $0x94] sm:$0xf] %vm694_vm3, %v18481_v2 }
  0x87   : > { %735 = vst.msk [vmem:[#allocation2 + $0x9c] sm:$0xf] %vm694_vm3, %v18481_v2 }
  0x88   : > { %736 = vst.msk [vmem:[#allocation2 + $0xa0] sm:$0xf] %vm694_vm3, %v18481_v2 }
  0x89   : > { %738 = vst.msk [vmem:[#allocation2 + $0xa8] sm:$0xf] %vm694_vm3, %v18481_v2 }
  0x8a   : > { %739 = vst.msk [vmem:[#allocation2 + $0xac] sm:$0xf] %vm694_vm3, %v18481_v2 }
  0x8b   : > { %741 = vst.msk [vmem:[#allocation2 + $0xb4] sm:$0xf] %vm694_vm3, %v18481_v2 }
  0x8c   : > { %742 = vst.msk [vmem:[#allocation2 + $0xb8] sm:$0xf] %vm694_vm3, %v18481_v2 }
  0x8d   : > { %18545 = vst [vmem:[#allocation43_spill] sm:$0xff] %v18544_v20 }
  0x8e   : > { %744 = vst.msk [vmem:[#allocation2 + $0xc0] sm:$0xf] %vm694_vm3, %v18481_v2 }
  0x8f   : > { %745 = vst.msk [vmem:[#allocation2 + $0xc4] sm:$0xf] %vm694_vm3, %v18481_v2 }
  0x90   : > { %747 = vst.msk [vmem:[#allocation2 + $0xcc] sm:$0xf] %vm694_vm3, %v18481_v2 }
  0x91   : > { %748 = vst.msk [vmem:[#allocation2 + $0xd0] sm:$0xf] %vm694_vm3, %v18481_v2  ;;  %v1227_v2 = vld [vmem:[#allocation2 + $0x9c] sm:$0xf] }
  0x92   : > { %1143 = vst [vmem:[#allocation2 + $0xc] sm:$0xf] %v1142_v25 }
  0x93   : > { %1144 = vst.msk [vmem:[#allocation2 + $0x10] sm:$0xf] %vm694_vm3, %v832_v29 }
  0x94   : > { %1149 = vst [vmem:[#allocation2 + $0x14] sm:$0x1] %v1148_v31 }
  0x95   : > { %1152 = vst [vmem:[#allocation2 + $0x18] sm:$0xf] %v1151_v34 }
  0x96   : > { %1153 = vst.msk [vmem:[#allocation2 + $0x1c] sm:$0xf] %vm694_vm3, %v849_v39 }
  0x97   : > { %1156 = vst [vmem:[#allocation2 + $0x20] sm:$0x1] %v1155_v40 }
  0x98   : > { %1159 = vst [vmem:[#allocation2 + $0x24] sm:$0xf] %v1158_v41 }
  0x99   : > { %v1258_v45 = vld [vmem:[#allocation2 + $0xc] sm:$0xf]  ;;  %1160 = vst.msk [vmem:[#allocation2 + $0x28] sm:$0xf] %vm694_vm3, %v866_v42 }
  0x9a   : > { %v14258_v46 = vld [vmem:[#allocation2 + $0xc] sm:$0xff]  ;;  %v11447_v48 = vrot.slane %v1258_v45, 9  ;;  %v1338_v49 = vshrl.u32 %v1258_v45, 16  ;;  %v1341_v50 = vshll.u32 %v1258_v45, 16  ;;  %1163 = vst [vmem:[#allocation2 + $0x2c] sm:$0x1] %v1162_v55 }
  0x9b   : > { %v1259_v47 = vld [vmem:[#allocation2 + $0x10] sm:$0xf]  ;;  %v1260_v51 = vld [vmem:[#allocation2 + $0x14] sm:$0x1]  ;;  %11482 = vmatmul.msk.bf16.vlgmr.msra.gmra.mxu3 %vm1747_vm9, %v14258_v46  ;;  %11431 = vmatmul.msk.bf16.gmra.mxu1 %vm1747_vm9, %v14258_v46 }
  0x9c   : > { %v2140_v52 = vrot.slane %v1259_v47, 5  ;;  %v1347_v53 = vshll.u32 %v1259_v47, 16  ;;  %v1351_v54 = vshrl.u32 %v1259_v47, 16  ;;  %v2143_v56 = vrot.slane %v1260_v51, 5  ;;  %v1261_v60 = vld [vmem:[#allocation2 + $0x18] sm:$0xf] }
  0x9d   : > { %v1340_v57 = vrot.slane %v1338_v49, 4  ;;  %v1343_v58 = vrot.slane %v1341_v50, 5  ;;  %v1357_v59 = vshll.u32 %v1260_v51, 16  ;;  %v1262_v1 = vld [vmem:[#allocation2 + $0x1c] sm:$0xf]  ;;  %v11448_v8 = vrot.slane %v1261_v60, 9 }
  0x9e   : > { %v2141_v61 = vsel %vm15904_vm8, %v11447_v48, %v2140_v52  ;;  %v2142_v62 = vrot.slane %v2140_v52, 4  ;;  %v1349_v63 = vrot.slane %v1347_v53, 5  ;;  %v1353_v0 = vrot.slane %v1351_v54, 4  ;;  %v1263_v7 = vld [vmem:[#allocation2 + $0x20] sm:$0x1]  ;;  %v757_v45 = vld [vmem:[%s15921_s2 + $0x38] sm:$0xff] }
  0x9f   : > { %v2247_v4 = vunpack.c.l.b16 %v2141_v61  ;;  %v1344_v5 = vor.u32 %v1343_v58, %v1340_v57  ;;  %v1359_v6 = vrot.slane %v1357_v59, 5  ;;  %v2147_v12 = vrot.slane %v1262_v1, 5  ;;  %v16052_v41 = vld [vmem:[#allocation2 + $0x24] sm:$0xf]  ;;  %v14259_v46 = vld [vmem:[#allocation2 + $0x18] sm:$0xff] }
  0xa0   : > { %v2144_v9 = vsel %vm15904_vm8, %v2142_v62, %v2143_v56  ;;  %v1354_v10 = vor.u32 %v1353_v0, %v1349_v63  ;;  %v2150_v13 = vrot.slane %v1263_v7, 5  ;;  %v1362_v18 = vshrl.u32 %v1261_v60, 16  ;;  %v16054_v42 = vld [vmem:[#allocation2 + $0x28] sm:$0xf] }
  0xa1   : > { %v2248_v14 = vunpack.c.l.b16 %v2144_v9  ;;  %v1345_v17 = vrot.slane %v1344_v5, 4  ;;  %v1365_v19 = vshll.u32 %v1261_v60, 16  ;;  %v2149_v22 = vrot.slane %v2147_v12, 4  ;;  %v758_v60 = vld [vmem:[%s15921_s2 + $0x40] sm:$0xff] }
  0xa2   : > { %v1355_v21 = vrot.slane %v1354_v10, 4  ;;  %v1371_v23 = vshll.u32 %v1262_v1, 16  ;;  %v1364_v26 = vrot.slane %v1362_v18, 4  ;;  %v2148_v29 = vsel %vm15904_vm8, %v11448_v8, %v2147_v12 }
  0xa3   : > { %v16037_v24 = vpack.c.b16 %v2248_v14, %v2247_v4  ;;  %v1350_v25 = vsel %vm15934_vm10, %v1345_v17, %v1349_v63  ;;  %v1367_v30 = vrot.slane %v1365_v19, 5  ;;  %v2151_v32 = vsel %vm15904_vm8, %v2149_v22, %v2150_v13  ;;  %v1266_v63 = vld [vmem:[#allocation2 + $0x2c] sm:$0x1]  ;;  %v759_v4 = vld [vmem:[%s15921_s2 + $0x48] sm:$0xff] }
  0xa4   : > { %v1360_v27 = vsel %vm15934_vm10, %v1355_v21, %v1359_v6  ;;  %v1701_v28 = vunpack.c.l.b16 %v1350_v25  ;;  %v1373_v33 = vrot.slane %v1371_v23, 5  ;;  %v1375_v34 = vshrl.u32 %v1262_v1, 16  ;;  %v1164_v25 = vld [vmem:[#allocation2 + $0x30] sm:$0xf] }
  0xa5   : > { %11463 = vmatmul.msk.bf16.gmra.mxu2 %vm1747_vm9, %v16037_v24  ;;  %v1702_v31 = vunpack.c.l.b16 %v1360_v27  ;;  %v1368_v36 = vor.u32 %v1367_v30, %v1364_v26  ;;  %v1381_v37 = vshll.u32 %v1263_v7, 16  ;;  %v2249_v43 = vunpack.c.l.b16 %v2148_v29  ;;  %v1168_v29 = vld [vmem:[#allocation2 + $0x38] sm:$0x1] }
  0xa6   : > { %v1377_v40 = vrot.slane %v1375_v34, 4  ;;  %v2250_v44 = vunpack.c.l.b16 %v2151_v32  ;;  %v788_v50 = vpack.c.bf16 %v756_v38, %v756_v38  ;;  %v1386_v51 = vshrl.u32 %v16052_v41, 16 }
  0xa7   : > { %v16050_v39 = vpack.c.b16 %v1702_v31, %v1701_v28  ;;  %v1369_v47 = vrot.slane %v1368_v36, 4  ;;  %v1383_v49 = vrot.slane %v1381_v37, 5  ;;  %v1389_v52 = vshll.u32 %v16052_v41, 16 }
  0xa8   : > { %v1378_v48 = vor.u32 %v1377_v40, %v1373_v33  ;;  %v1395_v53 = vshll.u32 %v16054_v42, 16  ;;  %v1399_v54 = vshrl.u32 %v16054_v42, 16  ;;  %v789_v56 = vpack.c.bf16 %v757_v45, %v757_v45  ;;  %v1171_v45 = vld [vmem:[#allocation2 + $0x3c] sm:$0xf] }
  0xa9   : > { %11351 = vmatmul.msk.bf16.gmra.mxu0 %vm1747_vm9, %v16050_v39  ;;  %v16063_v57 = vpack.c.b16 %v2250_v44, %v2249_v43  ;;  %v11449_v58 = vrot.slane %v16052_v41, 9  ;;  %v2154_v59 = vrot.slane %v16054_v42, 5  ;;  %v1374_v61 = vsel %vm15934_vm10, %v1369_v47, %v1373_v33 }
  0xaa   : > { %v1379_v55 = vrot.slane %v1378_v48, 4  ;;  %v869_v0 = vshrl.u32 %v788_v50, 16  ;;  %v872_v1 = vshll.u32 %v788_v50, 16  ;;  %v1388_v5 = vrot.slane %v1386_v51, 4 }
  0xab   : > { %11483 = vmatmul.msk.bf16.gmra.mxu3 %vm1747_vm9, %v14259_v46  ;;  %11432 = vmatmul.msk.bf16.gmra.mxu1 %vm1747_vm9, %v14259_v46  ;;  %v1391_v6 = vrot.slane %v1389_v52, 5  ;;  %v16075_v7 = vrot.slane %v1395_v53, 5  ;;  %v1401_v8 = vrot.slane %v1399_v54, 4  ;;  %v877_v10 = vshrl.u32 %v789_v56, 16  ;;  %v1175_v46 = vld [vmem:[#allocation2 + $0x44] sm:$0x1] }
  0xac   : > { %v1384_v62 = vsel %vm15934_vm10, %v1379_v55, %v1383_v49  ;;  %v871_v9 = vrot.slane %v869_v0, 7  ;;  %v880_v12 = vshll.u32 %v789_v56, 16  ;;  %v790_v13 = vpack.c.bf16 %v758_v60, %v758_v60  ;;  %v14260_v55 = vld [vmem:[#allocation2 + $0x24] sm:$0xff] }
  0xad   : > { %v1703_v14 = vunpack.c.l.b16 %v1374_v61  ;;  %v1704_v17 = vunpack.c.l.b16 %v1384_v62  ;;  %v2157_v18 = vrot.slane %v1266_v63, 5  ;;  %v791_v19 = vpack.c.bf16 %v759_v4, %v759_v4 }
  0xae   : > { %v874_v21 = vor.u32 %v872_v1, %v871_v9  ;;  %v875_v22 = vrot.slane %v871_v9, 4  ;;  %v879_v23 = vrot.slane %v877_v10, 7  ;;  %v886_v26 = vshrl.u32 %v790_v13, 16 }
  0xaf   : > { %v2156_v27 = vrot.slane %v2154_v59, 4  ;;  %v1405_v28 = vshll.u32 %v1266_v63, 16  ;;  %v889_v30 = vshll.u32 %v790_v13, 16  ;;  %v894_v31 = vshrl.u32 %v791_v19, 16 }
  0xb0   : > { %v1392_v32 = vor.u32 %v1391_v6, %v1388_v5  ;;  %v1402_v33 = vor.u32 %v1401_v8, %v16075_v7  ;;  %v882_v34 = vor.u32 %v880_v12, %v879_v23  ;;  %v884_v36 = vrot.slane %v879_v23, 4  ;;  %v760_v8 = vld [vmem:[%s15921_s2 + $0x50] sm:$0xff] }
  0xb1   : > { %v1165_v37 = vsel %vm15984_vm14, %v874_v21, %v1164_v25  ;;  %v888_v38 = vrot.slane %v886_v26, 7  ;;  %v896_v40 = vrot.slane %v894_v31, 7  ;;  %v897_v41 = vshll.u32 %v791_v19, 16 }
  0xb2   : > { %v16082_v42 = vpack.c.b16 %v1704_v17, %v1703_v14  ;;  %v883_v43 = vsel %vm15990_vm15, %v875_v22, %v882_v34  ;;  %1166 = vst [vmem:[#allocation2 + $0x30] sm:$0xf] %v1165_v37  ;;  %v1169_v44 = vsel %vm15998_vm4, %v884_v36, %v1168_v29  ;;  %v2155_v51 = vsel %vm15904_vm8, %v11449_v58, %v2154_v59 }
  0xb3   : > { %1167 = vst.msk [vmem:[#allocation2 + $0x34] sm:$0xf] %vm694_vm3, %v883_v43  ;;  %v891_v47 = vor.u32 %v889_v30, %v888_v38  ;;  %v892_v48 = vrot.slane %v888_v38, 4  ;;  %v899_v49 = vor.u32 %v897_v41, %v896_v40  ;;  %v901_v50 = vrot.slane %v896_v40, 4 }
  0xb4   : > { %1170 = vst [vmem:[#allocation2 + $0x38] sm:$0x1] %v1169_v44  ;;  %v2158_v56 = vsel %vm15904_vm8, %v2156_v27, %v2157_v18  ;;  %v1393_v60 = vrot.slane %v1392_v32, 4  ;;  %v1403_v61 = vrot.slane %v1402_v33, 4  ;;  %v1407_v58 = vrot.slane %v1405_v28, 5  ;;  %v761_v28 = vld [vmem:[%s15921_s2 + $0x58] sm:$0xff] }
  0xb5   : > { %11464 = vmatmul.msk.bf16.gmra.mxu2 %vm1747_vm9, %v16063_v57  ;;  %v900_v52 = vsel %vm15990_vm15, %v892_v48, %v899_v49  ;;  %v1172_v53 = vsel %vm15984_vm14, %v891_v47, %v1171_v45  ;;  %v1176_v54 = vsel %vm15998_vm4, %v901_v50, %v1175_v46  ;;  %v2251_v59 = vunpack.c.l.b16 %v2155_v51  ;;  %v1178_v50 = vld [vmem:[#allocation2 + $0x48] sm:$0xf] }
  0xb6   : > { %1173 = vst [vmem:[#allocation2 + $0x3c] sm:$0xf] %v1172_v53  ;;  %v2252_v62 = vunpack.c.l.b16 %v2158_v56  ;;  %v1398_v0 = vsel %vm15934_vm10, %v1393_v60, %v16075_v7  ;;  %v1408_v1 = vsel %vm15934_vm10, %v1403_v61, %v1407_v58  ;;  %v792_v19 = vpack.c.bf16 %v760_v8, %v760_v8  ;;  %v763_v56 = vld [vmem:[%s15921_s2 + $0x68] sm:$0xff]  ;;  %v1182_v8 = vld [vmem:[#allocation2 + $0x50] sm:$0x1] }
  0xb7   : > { %1174 = vst.msk [vmem:[#allocation2 + $0x40] sm:$0xf] %vm694_vm3, %v900_v52  ;;  %v1705_v14 = vunpack.c.l.b16 %v1398_v0  ;;  %v1706_v17 = vunpack.c.l.b16 %v1408_v1  ;;  %v793_v37 = vpack.c.bf16 %v761_v28, %v761_v28  ;;  %v795_v1 = vpack.c.bf16 %v763_v56, %v763_v56 }
  0xb8   : > { %1177 = vst [vmem:[#allocation2 + $0x44] sm:$0x1] %v1176_v54  ;;  %v16110_v13 = vpack.c.b16 %v2252_v62, %v2251_v59  ;;  %v903_v30 = vshrl.u32 %v792_v19, 16  ;;  %v906_v44 = vshll.u32 %v792_v19, 16 }
  0xb9   : > { %11352 = vmatmul.msk.bf16.gmra.mxu0 %vm1747_vm9, %v16082_v42  ;;  %v1267_v63 = vld [vmem:[#allocation2 + $0x30] sm:$0xf]  ;;  %v16117_v31 = vpack.c.b16 %v1706_v17, %v1705_v14  ;;  %v911_v54 = vshrl.u32 %v793_v37, 16  ;;  %v914_v58 = vshll.u32 %v793_v37, 16  ;;  %v928_v17 = vshrl.u32 %v795_v1, 16 }
  0xba   : > { %v1268_v4 = vld [vmem:[#allocation2 + $0x34] sm:$0xf]  ;;  %v1410_v5 = vshrl.u32 %v1267_v63, 16  ;;  %v1413_v6 = vshll.u32 %v1267_v63, 16  ;;  %v11450_v25 = vrot.slane %v1267_v63, 9  ;;  %v905_v43 = vrot.slane %v903_v30, 7 }
  0xbb   : > { %11484 = vmatmul.msk.bf16.gmra.mxu3 %vm1747_vm9, %v14260_v55  ;;  %11433 = vmatmul.msk.bf16.gmra.mxu1 %vm1747_vm9, %v14260_v55  ;;  %v1419_v9 = vshll.u32 %v1268_v4, 16  ;;  %v1423_v10 = vshrl.u32 %v1268_v4, 16  ;;  %v2161_v12 = vrot.slane %v1268_v4, 5  ;;  %v1269_v18 = vld [vmem:[#allocation2 + $0x38] sm:$0x1]  ;;  %v14261_v45 = vld [vmem:[#allocation2 + $0x30] sm:$0xff] }
  0xbc   : > { %v1412_v7 = vrot.slane %v1410_v5, 4  ;;  %v1415_v21 = vrot.slane %v1413_v6, 5  ;;  %v2164_v27 = vrot.slane %v1269_v18, 5  ;;  %v1429_v34 = vshll.u32 %v1269_v18, 16  ;;  %v762_v55 = vld [vmem:[%s15921_s2 + $0x60] sm:$0xff] }
  0xbd   : > { %v1421_v22 = vrot.slane %v1419_v9, 5  ;;  %v1425_v23 = vrot.slane %v1423_v10, 4  ;;  %v2163_v26 = vrot.slane %v2161_v12, 4  ;;  %v16113_v29 = vld [vmem:[#allocation2 + $0x3c] sm:$0xf]  ;;  %v2162_v36 = vsel %vm15904_vm8, %v11450_v25, %v2161_v12 }
  0xbe   : > { %v1416_v32 = vor.u32 %v1415_v21, %v1412_v7  ;;  %v16123_v40 = vld [vmem:[#allocation2 + $0x40] sm:$0xf]  ;;  %v1434_v41 = vshrl.u32 %v16113_v29, 16  ;;  %v2253_v46 = vunpack.c.l.b16 %v2162_v36  ;;  %v1431_v49 = vrot.slane %v1429_v34, 5 }
  0xbf   : > { %v1426_v33 = vor.u32 %v1425_v23, %v1421_v22  ;;  %v2165_v38 = vsel %vm15904_vm8, %v2163_v26, %v2164_v27  ;;  %v2168_v52 = vrot.slane %v16123_v40, 5  ;;  %v908_v53 = vor.u32 %v906_v44, %v905_v43  ;;  %v1272_v30 = vld [vmem:[#allocation2 + $0x44] sm:$0x1] }
  0xc0   : > { %v1417_v47 = vrot.slane %v1416_v32, 4  ;;  %v2254_v51 = vunpack.c.l.b16 %v2165_v38  ;;  %v1436_v60 = vrot.slane %v1434_v41, 4  ;;  %v1437_v61 = vshll.u32 %v16113_v29, 16  ;;  %v1185_v38 = vld [vmem:[#allocation2 + $0x54] sm:$0xf] }
  0xc1   : > { %v1427_v48 = vrot.slane %v1426_v33, 4  ;;  %v794_v59 = vpack.c.bf16 %v762_v55, %v762_v55  ;;  %v909_v62 = vrot.slane %v905_v43, 4  ;;  %v913_v63 = vrot.slane %v911_v54, 7  ;;  %v14262_v55 = vld [vmem:[#allocation2 + $0x3c] sm:$0xff] }
  0xc2   : > { %v1179_v0 = vsel %vm15984_vm14, %v908_v53, %v1178_v50  ;;  %v1422_v4 = vsel %vm15934_vm10, %v1417_v47, %v1421_v22  ;;  %v1443_v6 = vshll.u32 %v16123_v40, 16  ;;  %v1447_v10 = vshrl.u32 %v16123_v40, 16 }
  0xc3   : > { %v1432_v5 = vsel %vm15934_vm10, %v1427_v48, %v1431_v49  ;;  %1180 = vst [vmem:[#allocation2 + $0x48] sm:$0xf] %v1179_v0  ;;  %v920_v9 = vshrl.u32 %v794_v59, 16  ;;  %v916_v12 = vor.u32 %v914_v58, %v913_v63  ;;  %v918_v14 = vrot.slane %v913_v63, 4 }
  0xc4   : > { %v16142_v18 = vpack.c.b16 %v2254_v51, %v2253_v46  ;;  %v923_v7 = vshll.u32 %v794_v59, 16  ;;  %v931_v21 = vshll.u32 %v795_v1, 16  ;;  %v1439_v22 = vrot.slane %v1437_v61, 5  ;;  %v1189_v46 = vld [vmem:[#allocation2 + $0x5c] sm:$0x1] }
  0xc5   : > { %11465 = vmatmul.msk.bf16.gmra.mxu2 %vm1747_vm9, %v16110_v13  ;;  %v922_v19 = vrot.slane %v920_v9, 7  ;;  %v917_v23 = vsel %vm15990_vm15, %v909_v62, %v916_v12  ;;  %v1183_v25 = vsel %vm15998_vm4, %v918_v14, %v1182_v8  ;;  %v930_v26 = vrot.slane %v928_v17, 7  ;;  %v764_v14 = vld [vmem:[%s15921_s2 + $0x70] sm:$0xff] }
  0xc6   : > { %v1707_v27 = vunpack.c.l.b16 %v1422_v4  ;;  %v1708_v28 = vunpack.c.l.b16 %v1432_v5  ;;  %1181 = vst.msk [vmem:[#allocation2 + $0x4c] sm:$0xf] %vm694_vm3, %v917_v23  ;;  %v1445_v34 = vrot.slane %v1443_v6, 5  ;;  %v1449_v36 = vrot.slane %v1447_v10, 4 }
  0xc7   : > { %v925_v32 = vor.u32 %v923_v7, %v922_v19  ;;  %v926_v33 = vrot.slane %v922_v19, 4  ;;  %1184 = vst [vmem:[#allocation2 + $0x50] sm:$0x1] %v1183_v25  ;;  %v933_v37 = vor.u32 %v931_v21, %v930_v26  ;;  %v935_v41 = vrot.slane %v930_v26, 4  ;;  %v765_v26 = vld [vmem:[%s15921_s2 + $0x78] sm:$0xff] }
  0xc8   : > { %v11451_v44 = vrot.slane %v16113_v29, 9  ;;  %v16156_v47 = vpack.c.b16 %v1708_v28, %v1707_v27  ;;  %v2170_v48 = vrot.slane %v2168_v52, 4  ;;  %v2171_v49 = vrot.slane %v1272_v30, 5 }
  0xc9   : > { %11353 = vmatmul.msk.bf16.gmra.mxu0 %vm1747_vm9, %v16117_v31  ;;  %v1186_v43 = vsel %vm15984_vm14, %v925_v32, %v1185_v38  ;;  %v1190_v50 = vsel %vm15998_vm4, %v935_v41, %v1189_v46  ;;  %v1440_v29 = vor.u32 %v1439_v22, %v1436_v60  ;;  %v1450_v51 = vor.u32 %v1449_v36, %v1445_v34 }
  0xca   : > { %1187 = vst [vmem:[#allocation2 + $0x54] sm:$0xf] %v1186_v43  ;;  %v1453_v53 = vshll.u32 %v1272_v30, 16  ;;  %v1273_v54 = vld [vmem:[#allocation2 + $0x48] sm:$0xf]  ;;  %v2169_v56 = vsel %vm15904_vm8, %v11451_v44, %v2168_v52  ;;  %v2172_v61 = vsel %vm15904_vm8, %v2170_v48, %v2171_v49  ;;  %v796_v28 = vpack.c.bf16 %v764_v14, %v764_v14 }
  0xcb   : > { %11485 = vmatmul.msk.bf16.gmra.mxu3 %vm1747_vm9, %v14261_v45  ;;  %11434 = vmatmul.msk.bf16.gmra.mxu1 %vm1747_vm9, %v14261_v45  ;;  %v934_v45 = vsel %vm15990_vm15, %v926_v33, %v933_v37  ;;  %1191 = vst [vmem:[#allocation2 + $0x5c] sm:$0x1] %v1190_v50  ;;  %v1441_v58 = vrot.slane %v1440_v29, 4  ;;  %v1451_v59 = vrot.slane %v1450_v51, 4  ;;  %v1458_v63 = vshrl.u32 %v1273_v54, 16 }
  0xcc   : > { %1188 = vst.msk [vmem:[#allocation2 + $0x58] sm:$0xf] %vm694_vm3, %v934_v45  ;;  %v1455_v62 = vrot.slane %v1453_v53, 5  ;;  %v1461_v0 = vshll.u32 %v1273_v54, 16  ;;  %v2255_v1 = vunpack.c.l.b16 %v2169_v56  ;;  %v2256_v4 = vunpack.c.l.b16 %v2172_v61  ;;  %v2624_v52 = vld [vmem:[#allocation6 + $0x8] sm:$0x3] }
  0xcd   : > { %v1274_v60 = vld [vmem:[#allocation2 + $0x4c] sm:$0xf]  ;;  %v1446_v6 = vsel %vm15934_vm10, %v1441_v58, %v1445_v34  ;;  %v2632_v9 = vand.u32 %v2624_v52, %v15839_v3  ;;  %v1460_v10 = vrot.slane %v1458_v63, 4  ;;  %v11452_v27 = vrot.slane %v1273_v54, 9  ;;  %v1192_v29 = vld [vmem:[#allocation2 + $0x60] sm:$0xf] }
  0xce   : > { %v1467_v40 = vshll.u32 %v1274_v60, 16  ;;  %v1471_v5 = vshrl.u32 %v1274_v60, 16  ;;  %v1456_v8 = vsel %vm15934_vm10, %v1451_v59, %v1455_v62  ;;  %v1463_v12 = vrot.slane %v1461_v0, 5  ;;  %v1275_v22 = vld [vmem:[#allocation2 + $0x50] sm:$0x1]  ;;  %v14263_v51 = vld [vmem:[#allocation2 + $0x48] sm:$0xff] }
  0xcf   : > { %v16179_v17 = vpack.c.b16 %v2256_v4, %v2255_v1  ;;  %v2175_v19 = vrot.slane %v1274_v60, 5  ;;  %2641 = vmatpush.bf16.msrb.mxu0 %v2632_v9  ;;  %v1709_v7 = vunpack.c.l.b16 %v1446_v6  ;;  %v1710_v21 = vunpack.c.l.b16 %v1456_v8  ;;  %v1196_v60 = vld [vmem:[#allocation2 + $0x68] sm:$0x1] }
  0xd0   : > { %v1469_v23 = vrot.slane %v1467_v40, 5  ;;  %v1473_v25 = vrot.slane %v1471_v5, 4  ;;  %v1464_v30 = vor.u32 %v1463_v12, %v1460_v10  ;;  %v2178_v33 = vrot.slane %v1275_v22, 5  ;;  %v766_v40 = vld [vmem:[%s15921_s2 + $0x80] sm:$0xff]  ;;  %v767_v5 = vld [vmem:[%s15921_s2 + $0x88] sm:$0xff] }
  0xd1   : > { %v2177_v32 = vrot.slane %v2175_v19, 4  ;;  %v797_v34 = vpack.c.bf16 %v765_v26, %v765_v26  ;;  %v937_v36 = vshrl.u32 %v796_v28, 16  ;;  %v16184_v37 = vpack.c.b16 %v1710_v21, %v1709_v7  ;;  %v16188_v50 = vld [vmem:[#allocation2 + $0x54] sm:$0xf] }
  0xd2   : > { %v1474_v38 = vor.u32 %v1473_v25, %v1469_v23  ;;  %v1477_v41 = vshll.u32 %v1275_v22, 16  ;;  %v940_v43 = vshll.u32 %v796_v28, 16  ;;  %v2176_v44 = vsel %vm15904_vm8, %v11452_v27, %v2175_v19 }
  0xd3   : > { %v939_v45 = vrot.slane %v937_v36, 7  ;;  %v945_v46 = vshrl.u32 %v797_v34, 16  ;;  %v948_v48 = vshll.u32 %v797_v34, 16  ;;  %v1465_v49 = vrot.slane %v1464_v30, 4  ;;  %v16194_v62 = vld [vmem:[#allocation2 + $0x58] sm:$0xf] }
  0xd4   : > { %v2179_v53 = vsel %vm15904_vm8, %v2177_v32, %v2178_v33  ;;  %v2257_v61 = vunpack.c.l.b16 %v2176_v44  ;;  %v1475_v58 = vrot.slane %v1474_v38, 4  ;;  %v1479_v59 = vrot.slane %v1477_v41, 5 }
  0xd5   : > { %11466 = vmatmul.msk.bf16.gmra.mxu2 %vm1747_vm9, %v16142_v18  ;;  %v942_v54 = vor.u32 %v940_v43, %v939_v45  ;;  %v947_v56 = vrot.slane %v945_v46, 7  ;;  %v1482_v63 = vshrl.u32 %v16188_v50, 16  ;;  %v2258_v52 = vunpack.c.l.b16 %v2179_v53 }
  0xd6   : > { %v1470_v6 = vsel %vm15934_vm10, %v1465_v49, %v1469_v23  ;;  %v798_v8 = vpack.c.bf16 %v766_v40, %v766_v40  ;;  %v799_v9 = vpack.c.bf16 %v767_v5, %v767_v5  ;;  %v1485_v10 = vshll.u32 %v16188_v50, 16  ;;  %v1199_v49 = vld [vmem:[#allocation2 + $0x6c] sm:$0xf] }
  0xd7   : > { %v950_v0 = vor.u32 %v948_v48, %v947_v56  ;;  %v952_v1 = vrot.slane %v947_v56, 4  ;;  %v1193_v4 = vsel %vm15984_vm14, %v942_v54, %v1192_v29  ;;  %v1491_v12 = vshll.u32 %v16194_v62, 16  ;;  %v1278_v48 = vld [vmem:[#allocation2 + $0x5c] sm:$0x1] }
  0xd8   : > { %1194 = vst [vmem:[#allocation2 + $0x60] sm:$0xf] %v1193_v4  ;;  %v1480_v7 = vsel %vm15934_vm10, %v1475_v58, %v1479_v59  ;;  %v1495_v21 = vshrl.u32 %v16194_v62, 16  ;;  %v954_v22 = vshrl.u32 %v798_v8, 16  ;;  %v962_v23 = vshrl.u32 %v799_v9, 16 }
  0xd9   : > { %11354 = vmatmul.msk.bf16.gmra.mxu0 %vm1747_vm9, %v16156_v47  ;;  %v1197_v19 = vsel %vm15998_vm4, %v952_v1, %v1196_v60  ;;  %v1711_v25 = vunpack.c.l.b16 %v1470_v6  ;;  %v2182_v26 = vrot.slane %v16194_v62, 5  ;;  %v1484_v27 = vrot.slane %v1482_v63, 4  ;;  %v1203_v62 = vld [vmem:[#allocation2 + $0x74] sm:$0x1] }
  0xda   : > { %1198 = vst [vmem:[#allocation2 + $0x68] sm:$0x1] %v1197_v19  ;;  %v956_v28 = vrot.slane %v954_v22, 7  ;;  %v957_v30 = vshll.u32 %v798_v8, 16  ;;  %v964_v32 = vrot.slane %v962_v23, 7  ;;  %v965_v33 = vshll.u32 %v799_v9, 16 }
  0xdb   : > { %11486 = vmatmul.msk.bf16.gmra.mxu3 %vm1747_vm9, %v14262_v55  ;;  %11435 = vmatmul.msk.bf16.gmra.mxu1 %vm1747_vm9, %v14262_v55  ;;  %v943_v55 = vrot.slane %v939_v45, 4  ;;  %v16216_v34 = vpack.c.b16 %v2258_v52, %v2257_v61  ;;  %v1712_v36 = vunpack.c.l.b16 %v1480_v7  ;;  %v1487_v38 = vrot.slane %v1485_v10, 5  ;;  %v14264_v1 = vld [vmem:[#allocation2 + $0x54] sm:$0xff]  ;;  %v768_v8 = vld [vmem:[%s15921_s2 + $0x90] sm:$0xff] }
  0xdc   : > { %v1493_v41 = vrot.slane %v1491_v12, 5  ;;  %v1497_v43 = vrot.slane %v1495_v21, 4  ;;  %v959_v44 = vor.u32 %v957_v30, %v956_v28  ;;  %v960_v45 = vrot.slane %v956_v28, 4  ;;  %v769_v21 = vld [vmem:[%s15921_s2 + $0x98] sm:$0xff] }
  0xdd   : > { %v951_v14 = vsel %vm15990_vm15, %v943_v55, %v950_v0  ;;  %18546 = vst [vmem:[#allocation44_spill] sm:$0xff] %v16216_v34  ;;  %v967_v46 = vor.u32 %v965_v33, %v964_v32  ;;  %v11453_v29 = vrot.slane %v16188_v50, 9  ;;  %v2184_v53 = vrot.slane %v2182_v26, 4 }
  0xde   : > { %1195 = vst.msk [vmem:[#allocation2 + $0x64] sm:$0xf] %vm694_vm3, %v951_v14  ;;  %v1488_v54 = vor.u32 %v1487_v38, %v1484_v27  ;;  %v969_v55 = vrot.slane %v964_v32, 4  ;;  %v1200_v56 = vsel %vm15984_vm14, %v959_v44, %v1199_v49  ;;  %v16226_v61 = vpack.c.b16 %v1712_v36, %v1711_v25 }
  0xdf   : > { %v2185_v58 = vrot.slane %v1278_v48, 5  ;;  %v1498_v59 = vor.u32 %v1497_v43, %v1493_v41  ;;  %v1501_v50 = vshll.u32 %v1278_v48, 16  ;;  %1201 = vst [vmem:[#allocation2 + $0x6c] sm:$0xf] %v1200_v56  ;;  %v1279_v63 = vld [vmem:[#allocation2 + $0x60] sm:$0xf]  ;;  %v2183_v4 = vsel %vm15904_vm8, %v11453_v29, %v2182_v26 }
  0xe0   : > { %v1489_v60 = vrot.slane %v1488_v54, 4  ;;  %v1204_v0 = vsel %vm15998_vm4, %v969_v55, %v1203_v62  ;;  %v1506_v9 = vshrl.u32 %v1279_v63, 16  ;;  %v1509_v10 = vshll.u32 %v1279_v63, 16 }
  0xe1   : > { %v2186_v40 = vsel %vm15904_vm8, %v2184_v53, %v2185_v58  ;;  %v1499_v5 = vrot.slane %v1498_v59, 4  ;;  %v1503_v52 = vrot.slane %v1501_v50, 5  ;;  %1205 = vst [vmem:[#allocation2 + $0x74] sm:$0x1] %v1204_v0  ;;  %v800_v12 = vpack.c.bf16 %v768_v8, %v768_v8  ;;  %v1281_v27 = vld [vmem:[#allocation2 + $0x68] sm:$0x1] }
  0xe2   : > { %v2259_v14 = vunpack.c.l.b16 %v2183_v4  ;;  %v2260_v19 = vunpack.c.l.b16 %v2186_v40  ;;  %v1494_v7 = vsel %vm15934_vm10, %v1489_v60, %v1493_v41  ;;  %v1508_v30 = vrot.slane %v1506_v9, 4  ;;  %v1206_v53 = vld [vmem:[#allocation2 + $0x78] sm:$0xf] }
  0xe3   : > { %v1504_v22 = vsel %vm15934_vm10, %v1499_v5, %v1503_v52  ;;  %v971_v26 = vshrl.u32 %v800_v12, 16  ;;  %v1511_v32 = vrot.slane %v1509_v10, 5  ;;  %v801_v33 = vpack.c.bf16 %v769_v21, %v769_v21 }
  0xe4   : > { %v1713_v36 = vunpack.c.l.b16 %v1494_v7  ;;  %v1714_v38 = vunpack.c.l.b16 %v1504_v22  ;;  %v974_v41 = vshll.u32 %v800_v12, 16  ;;  %v16244_v44 = vpack.c.b16 %v2260_v19, %v2259_v14 }
  0xe5   : > { %11467 = vmatmul.msk.bf16.gmra.mxu2 %vm1747_vm9, %v16179_v17  ;;  %v1280_v6 = vld [vmem:[#allocation2 + $0x64] sm:$0xf]  ;;  %v973_v43 = vrot.slane %v971_v26, 7  ;;  %v11454_v49 = vrot.slane %v1279_v63, 9  ;;  %v2192_v29 = vrot.slane %v1281_v27, 5  ;;  %v1512_v56 = vor.u32 %v1511_v32, %v1508_v30 }
  0xe6   : > { %v1515_v23 = vshll.u32 %v1280_v6, 16  ;;  %v1519_v25 = vshrl.u32 %v1280_v6, 16  ;;  %v2189_v28 = vrot.slane %v1280_v6, 5  ;;  %v979_v58 = vshrl.u32 %v801_v33, 16  ;;  %v1210_v6 = vld [vmem:[#allocation2 + $0x80] sm:$0x1] }
  0xe7   : > { %v982_v59 = vshll.u32 %v801_v33, 16  ;;  %v16246_v50 = vpack.c.b16 %v1714_v38, %v1713_v36  ;;  %v1525_v0 = vshll.u32 %v1281_v27, 16  ;;  %v977_v4 = vrot.slane %v973_v43, 4  ;;  %v14265_v14 = vld [vmem:[#allocation2 + $0x60] sm:$0xff]  ;;  %v16260_v21 = vld [vmem:[#allocation2 + $0x6c] sm:$0xf] }
  0xe8   : > { %v1521_v48 = vrot.slane %v1519_v25, 4  ;;  %v2191_v54 = vrot.slane %v2189_v28, 4  ;;  %v981_v40 = vrot.slane %v979_v58, 7  ;;  %v2190_v5 = vsel %vm15904_vm8, %v11454_v49, %v2189_v28  ;;  %v770_v28 = vld [vmem:[%s15921_s2 + $0xa0] sm:$0xff]  ;;  %v771_v30 = vld [vmem:[%s15921_s2 + $0xa8] sm:$0xff] }
  0xe9   : > { %11355 = vmatmul.msk.bf16.gmra.mxu0 %vm1747_vm9, %v16184_v37  ;;  %v1513_v9 = vrot.slane %v1512_v56, 4  ;;  %v1527_v7 = vrot.slane %v1525_v0, 5  ;;  %v2261_v26 = vunpack.c.l.b16 %v2190_v5  ;;  %v802_v33 = vpack.c.bf16 %v770_v28, %v770_v28 }
  0xea   : > { %v2193_v8 = vsel %vm15904_vm8, %v2191_v54, %v2192_v29  ;;  %v984_v10 = vor.u32 %v982_v59, %v981_v40  ;;  %v986_v12 = vrot.slane %v981_v40, 4  ;;  %v803_v36 = vpack.c.bf16 %v771_v30, %v771_v30 }
  0xeb   : > { %11487 = vmatmul.msk.bf16.gmra.mxu3 %vm1747_vm9, %v14263_v51  ;;  %11436 = vmatmul.msk.bf16.gmra.mxu1 %vm1747_vm9, %v14263_v51  ;;  %v968_v51 = vsel %vm15990_vm15, %v960_v45, %v967_v46  ;;  %v1517_v46 = vrot.slane %v1515_v23, 5  ;;  %v2262_v27 = vunpack.c.l.b16 %v2193_v8  ;;  %v1530_v38 = vshrl.u32 %v16260_v21, 16 }
  0xec   : > { %1202 = vst.msk [vmem:[#allocation2 + $0x70] sm:$0xf] %vm694_vm3, %v968_v51  ;;  %v976_v51 = vor.u32 %v974_v41, %v973_v43  ;;  %v985_v23 = vsel %vm15990_vm15, %v977_v4, %v984_v10  ;;  %v1211_v25 = vsel %vm15998_vm4, %v986_v12, %v1210_v6  ;;  %v988_v49 = vshrl.u32 %v802_v33, 16  ;;  %v1284_v6 = vld [vmem:[#allocation2 + $0x74] sm:$0x1] }
  0xed   : > { %1209 = vst.msk [vmem:[#allocation2 + $0x7c] sm:$0xf] %vm694_vm3, %v985_v23  ;;  %v1518_v32 = vsel %vm15934_vm10, %v1513_v9, %v1517_v46  ;;  %v996_v29 = vshrl.u32 %v803_v36, 16  ;;  %v999_v58 = vshll.u32 %v803_v36, 16  ;;  %v1213_v10 = vld [vmem:[#allocation2 + $0x84] sm:$0xf] }
  0xee   : > { %v1207_v63 = vsel %vm15984_vm14, %v976_v51, %v1206_v53  ;;  %1212 = vst [vmem:[#allocation2 + $0x80] sm:$0x1] %v1211_v25  ;;  %v16277_v51 = vpack.c.b16 %v2262_v27, %v2261_v26  ;;  %v990_v54 = vrot.slane %v988_v49, 7  ;;  %v11455_v12 = vrot.slane %v16260_v21, 9  ;;  %v1217_v27 = vld [vmem:[#allocation2 + $0x8c] sm:$0x1] }
  0xef   : > { %1208 = vst [vmem:[#allocation2 + $0x78] sm:$0xf] %v1207_v63  ;;  %v998_v56 = vrot.slane %v996_v29, 7  ;;  %v2199_v23 = vrot.slane %v1284_v6, 5  ;;  %v772_v29 = vld [vmem:[%s15921_s2 + $0xb0] sm:$0xff] }
  0xf0   : > { %v994_v63 = vrot.slane %v990_v54, 4 }
  0xf1   : > { %v1001_v5 = vor.u32 %v999_v58, %v998_v56  ;;  %v1003_v9 = vrot.slane %v998_v56, 4 }
  0xf3   : > { %v1283_v22 = vld [vmem:[#allocation2 + $0x70] sm:$0xf]  ;;  %v1002_v8 = vsel %vm15990_vm15, %v994_v63, %v1001_v5 }
  0xf4   : > { %v1539_v43 = vshll.u32 %v1283_v22, 16  ;;  %v1543_v41 = vshrl.u32 %v1283_v22, 16  ;;  %v2196_v53 = vrot.slane %v1283_v22, 5  ;;  %1216 = vst.msk [vmem:[#allocation2 + $0x88] sm:$0xf] %vm694_vm3, %v1002_v8 }
  0xf5   : > { %11468 = vmatmul.msk.bf16.gmra.mxu2 %vm1747_vm9, %v16216_v34  ;;  %v2032_v45 = vpop.f32.mrf.mxu1 }
  0xf6   : > { %v1541_v0 = vrot.slane %v1539_v43, 5  ;;  %v16293_v28 = vld [vmem:[#allocation2 + $0x78] sm:$0xf]  ;;  %v2197_v36 = vsel %vm15904_vm8, %v11455_v12, %v2196_v53 }
  0xf7   : > { %v1557_v49 = vshll.u32 %v16293_v28, 16  ;;  %v2263_v58 = vunpack.c.l.b16 %v2197_v36 }
  0xf9   : > { %11356 = vmatmul.msk.bf16.gmra.mxu0 %vm1747_vm9, %v16226_v61 }
  0xfb   : > { %11488 = vmatmul.msk.bf16.gmra.mxu3 %vm1747_vm9, %v14264_v1  ;;  %11437 = vmatmul.msk.bf16.gmra.mxu1 %vm1747_vm9, %v14264_v1  ;;  %v1522_v1 = vor.u32 %v1521_v48, %v1517_v46  ;;  %v1533_v48 = vshll.u32 %v16260_v21, 16  ;;  %v1715_v46 = vunpack.c.l.b16 %v1518_v32  ;;  %v1218_v21 = vsel %vm15998_vm4, %v1003_v9, %v1217_v27 }
  0xfc   : > { %1219 = vst [vmem:[#allocation2 + $0x8c] sm:$0x1] %v1218_v21 }
  0xfd   : > { %v1523_v19 = vrot.slane %v1522_v1, 4  ;;  %v1545_v1 = vrot.slane %v1543_v41, 4  ;;  %v1535_v4 = vrot.slane %v1533_v48, 5  ;;  %v1554_v48 = vshrl.u32 %v16293_v28, 16 }
  0xff   : > { %v1556_v5 = vrot.slane %v1554_v48, 4 }
 0x101   : > { %v1812_v55 = vpop.f32.mrf.mxu0 }
 0x102   : > { %v2033_v62 = vadd.f32 %v2032_v45, %v1812_v55  ;;  %v2353_v60 = vpop.f32.mrf.mxu2  ;;  %v1528_v45 = vsel %vm15934_vm10, %v1523_v19, %v1527_v7  ;;  %v991_v55 = vshll.u32 %v802_v33, 16  ;;  %v1546_v19 = vor.u32 %v1545_v1, %v1541_v0  ;;  %v14266_v33 = vld [vmem:[#allocation2 + $0x6c] sm:$0xff] }
 0x103   : > { %v1716_v59 = vunpack.c.l.b16 %v1528_v45  ;;  %v1549_v7 = vshll.u32 %v1284_v6, 16  ;;  %v1286_v45 = vld [vmem:[#allocation2 + $0x7c] sm:$0xf]  ;;  %v1559_v6 = vrot.slane %v1557_v49, 5 }
 0x104   : > { %v16254_v52 = vadd.f32 %v2353_v60, %v2033_v62  ;;  %v16279_v62 = vpop.f32.mrf.mxu1  ;;  %v1532_v60 = vrot.slane %v1530_v38, 4  ;;  %v993_v40 = vor.u32 %v991_v55, %v990_v54  ;;  %v1547_v30 = vrot.slane %v1546_v19, 4 }
 0x105   : > { %11469 = vmatmul.msk.bf16.gmra.mxu2 %vm1747_vm9, %v16244_v44  ;;  %v16287_v22 = vpack.c.b16 %v1716_v59, %v1715_v46  ;;  %v1551_v32 = vrot.slane %v1549_v7, 5  ;;  %v773_v46 = vld [vmem:[%s15921_s2 + $0xb8] sm:$0xff]  ;;  %v804_v54 = vpack.c.bf16 %v772_v29, %v772_v29  ;;  %v1563_v1 = vshll.u32 %v1286_v45, 16 }
 0x106   : > { %v1536_v25 = vor.u32 %v1535_v4, %v1532_v60  ;;  %v1214_v26 = vsel %vm15984_vm14, %v993_v40, %v1213_v10  ;;  %v805_v55 = vpack.c.bf16 %v773_v46, %v773_v46  ;;  %v1567_v4 = vshrl.u32 %v1286_v45, 16 }
 0x107   : > { %1215 = vst [vmem:[#allocation2 + $0x84] sm:$0xf] %v1214_v26  ;;  %v1005_v40 = vshrl.u32 %v804_v54, 16  ;;  %v1560_v21 = vor.u32 %v1559_v6, %v1556_v5  ;;  %v14267_v6 = vld [vmem:[#allocation2 + $0x78] sm:$0xff] }
 0x108   : > { %v1537_v43 = vrot.slane %v1536_v25, 4  ;;  %v1013_v8 = vshrl.u32 %v805_v55, 16  ;;  %v1565_v25 = vrot.slane %v1563_v1, 5  ;;  %v1569_v26 = vrot.slane %v1567_v4, 4 }
 0x109   : > { %11357 = vmatmul.msk.bf16.gmra.mxu0 %vm1747_vm9, %v16246_v50  ;;  %v16305_v56 = vpop.f32.mrf.mxu0  ;;  %v1007_v19 = vrot.slane %v1005_v40, 7 }
 0x10a   : > { %v1542_v60 = vsel %vm15934_vm10, %v1537_v43, %v1541_v0  ;;  %v16313_v63 = vpop.f32.mrf.mxu2  ;;  %v1287_v0 = vld [vmem:[#allocation2 + $0x80] sm:$0x1]  ;;  %v1015_v36 = vrot.slane %v1013_v8, 7  ;;  %v1220_v43 = vld [vmem:[#allocation2 + $0x90] sm:$0xf]  ;;  %v1570_v29 = vor.u32 %v1569_v26, %v1565_v25 }
 0x10b   : > { %11489 = vmatmul.msk.bf16.gmra.mxu3 %vm1747_vm9, %v14265_v14  ;;  %11438 = vmatmul.msk.bf16.gmra.mxu1 %vm1747_vm9, %v14265_v14  ;;  %v2198_v14 = vrot.slane %v2196_v53, 4  ;;  %v1552_v53 = vsel %vm15934_vm10, %v1547_v30, %v1551_v32  ;;  %v1717_v10 = vunpack.c.l.b16 %v1542_v60  ;;  %v1008_v30 = vshll.u32 %v804_v54, 16 }
 0x10c   : > { %v1718_v12 = vunpack.c.l.b16 %v1552_v53  ;;  %v11456_v32 = vrot.slane %v16293_v28, 9  ;;  %v2206_v49 = vrot.slane %v1287_v0, 5  ;;  %v1573_v46 = vshll.u32 %v1287_v0, 16  ;;  %v1224_v53 = vld [vmem:[#allocation2 + $0x98] sm:$0x1] }
 0x10d   : > { %v2200_v38 = vsel %vm15904_vm8, %v2198_v14, %v2199_v23  ;;  %v2203_v14 = vrot.slane %v1286_v45, 5  ;;  %v1561_v60 = vrot.slane %v1560_v21, 4 }
 0x10e   : > { %v2264_v59 = vunpack.c.l.b16 %v2200_v38  ;;  %v1016_v38 = vshll.u32 %v805_v55, 16  ;;  %v16321_v48 = vpack.c.b16 %v1718_v12, %v1717_v10  ;;  %v1571_v12 = vrot.slane %v1570_v29, 4 }
 0x10f   : > { %v2205_v45 = vrot.slane %v2203_v14, 4  ;;  %v2204_v1 = vsel %vm15904_vm8, %v11456_v32, %v2203_v14  ;;  %v1575_v14 = vrot.slane %v1573_v46, 5  ;;  %v1566_v21 = vsel %vm15934_vm10, %v1561_v60, %v1565_v25  ;;  %v775_v32 = vld [vmem:[%s15921_s2 + $0xc8] sm:$0xff]  ;;  %v1290_v60 = vld [vmem:[#allocation2 + $0x8c] sm:$0x1] }
 0x110   : > { %v16318_v23 = vpack.c.b16 %v2264_v59, %v2263_v58  ;;  %v1018_v58 = vor.u32 %v1016_v38, %v1015_v36  ;;  %v1020_v59 = vrot.slane %v1015_v36, 4  ;;  %v2265_v0 = vunpack.c.l.b16 %v2204_v1 }
 0x111   : > { %v2207_v8 = vsel %vm15904_vm8, %v2205_v45, %v2206_v49  ;;  %v1576_v29 = vsel %vm15934_vm10, %v1571_v12, %v1575_v14 }
 0x112   : > { %18547 = vst [vmem:[#allocation45_spill] sm:$0xff] %v16318_v23 }
 0x115   : > { %11470 = vmatmul.msk.bf16.gmra.mxu2 %vm1747_vm9, %v16277_v51 }
 0x118   : > { %v2037_v41 = vpop.f32.mrf.mxu1 }
 0x119   : > { %11358 = vmatmul.msk.bf16.gmra.mxu0 %vm1747_vm9, %v16287_v22 }
 0x11b   : > { %11490 = vmatmul.msk.bf16.gmra.mxu3 %vm1747_vm9, %v14266_v33  ;;  %11439 = vmatmul.msk.bf16.gmra.mxu1 %vm1747_vm9, %v14266_v33  ;;  %v1011_v33 = vrot.slane %v1007_v19, 4 }
 0x11d   : > { %v1019_v4 = vsel %vm15990_vm15, %v1011_v33, %v1018_v58  ;;  %v2266_v33 = vunpack.c.l.b16 %v2207_v8 }
 0x11e   : > { %v2487_v9 = vpop.f32.mrf.mxu3  ;;  %1223 = vst.msk [vmem:[#allocation2 + $0x94] sm:$0xf] %vm694_vm3, %v1019_v4 }
 0x11f   : > { %v16316_v7 = vadd.f32 %v2487_v9, %v16254_v52  ;;  %v1010_v52 = vor.u32 %v1008_v30, %v1007_v19  ;;  %v1289_v9 = vld [vmem:[#allocation2 + $0x88] sm:$0xf]  ;;  %v1288_v19 = vld [vmem:[#allocation2 + $0x84] sm:$0xf]  ;;  %v774_v30 = vld [vmem:[%s15921_s2 + $0xc0] sm:$0xff] }
 0x120   : > { %v2039_v27 = vpop.f32.mrf.mxu1  ;;  %v1587_v36 = vshll.u32 %v1289_v9, 16  ;;  %v1591_v38 = vshrl.u32 %v1289_v9, 16  ;;  %v1578_v45 = vshrl.u32 %v1288_v19, 16  ;;  %v1581_v49 = vshll.u32 %v1288_v19, 16 }
 0x121   : > { %v1221_v28 = vsel %vm15984_vm14, %v1010_v52, %v1220_v43  ;;  %v806_v43 = vpack.c.bf16 %v774_v30, %v774_v30  ;;  %v807_v52 = vpack.c.bf16 %v775_v32, %v775_v32  ;;  %v2210_v25 = vrot.slane %v1289_v9, 5 }
 0x122   : > { %1222 = vst [vmem:[#allocation2 + $0x90] sm:$0xf] %v1221_v28  ;;  %v16350_v28 = vrot.slane %v1587_v36, 5  ;;  %v1580_v8 = vrot.slane %v1578_v45, 4 }
 0x123   : > { %v1022_v46 = vshrl.u32 %v806_v43, 16  ;;  %v1030_v30 = vshrl.u32 %v807_v52, 16  ;;  %v2212_v9 = vrot.slane %v2210_v25, 4  ;;  %v1025_v36 = vshll.u32 %v806_v43, 16 }
 0x125   : > { %11471 = vmatmul.msk.bf16.gmra.mxu2 %vm1747_vm9, %v16318_v23  ;;  %v1024_v32 = vrot.slane %v1022_v46, 7 }
 0x126   : > { %v1817_v54 = vpop.f32.mrf.mxu0  ;;  %v16331_v5 = vpop.f32.mrf.mxu3 }
 0x127   : > { %v2038_v55 = vadd.f32 %v2037_v41, %v1817_v54  ;;  %v1225_v41 = vsel %vm15998_vm4, %v1020_v59, %v1224_v53  ;;  %v1719_v59 = vunpack.c.l.b16 %v1566_v21  ;;  %v16348_v54 = vpack.c.b16 %v2266_v33, %v2265_v0 }
 0x128   : > { %v2358_v40 = vpop.f32.mrf.mxu2  ;;  %1226 = vst [vmem:[#allocation2 + $0x98] sm:$0x1] %v1225_v41  ;;  %v2042_v26 = vpop.f32.mrf.mxu1  ;;  %v1583_v41 = vrot.slane %v1581_v49, 5  ;;  %v1597_v33 = vshll.u32 %v1290_v60, 16  ;;  %v1231_v49 = vld [vmem:[#allocation2 + $0xa4] sm:$0x1] }
 0x129   : > { %v2435_v10 = vadd.f32 %v2358_v40, %v2038_v55  ;;  %11359 = vmatmul.msk.bf16.gmra.mxu0 %vm1747_vm9, %v16321_v48  ;;  %18548 = vst [vmem:[#allocation46_spill] sm:$0xff] %v16348_v54  ;;  %v1593_v55 = vrot.slane %v1591_v38, 4  ;;  %v1720_v40 = vunpack.c.l.b16 %v1576_v29  ;;  %v1032_v38 = vrot.slane %v1030_v30, 7 }
 0x12b   : > { %11491 = vmatmul.msk.bf16.gmra.mxu3 %vm1747_vm9, %v14267_v6  ;;  %11440 = vmatmul.msk.bf16.gmra.mxu1 %vm1747_vm9, %v14267_v6  ;;  %v11457_v6 = vrot.slane %v1288_v19, 9  ;;  %v1594_v0 = vor.u32 %v1593_v55, %v16350_v28  ;;  %v16357_v45 = vpack.c.b16 %v1720_v40, %v1719_v59  ;;  %v1027_v19 = vor.u32 %v1025_v36, %v1024_v32  ;;  %v776_v36 = vld [vmem:[%s15921_s2 + $0xd0] sm:$0xff] }
 0x12c   : > { %v1037_v43 = vrot.slane %v1032_v38, 4 }
 0x12d   : > { %18550 = vst [vmem:[#allocation48_spill] sm:$0xff] %v16357_v45 }
 0x12e   : > { %v1819_v58 = vpop.f32.mrf.mxu0  ;;  %v2492_v4 = vpop.f32.mrf.mxu3  ;;  %v1232_v30 = vsel %vm15998_vm4, %v1037_v43, %v1231_v49 }
 0x12f   : > { %v2040_v53 = vadd.f32 %v2039_v27, %v1819_v58  ;;  %v16352_v14 = vadd.f32 %v2492_v4, %v2435_v10  ;;  %v2213_v27 = vrot.slane %v1290_v60, 5  ;;  %v1584_v58 = vor.u32 %v1583_v41, %v1580_v8  ;;  %1233 = vst [vmem:[#allocation2 + $0xa4] sm:$0x1] %v1232_v30 }
 0x130   : > { %v2360_v1 = vpop.f32.mrf.mxu2  ;;  %v2044_v21 = vpop.f32.mrf.mxu1  ;;  %v2211_v10 = vsel %vm15904_vm8, %v11457_v6, %v2210_v25  ;;  %v1033_v60 = vshll.u32 %v807_v52, 16  ;;  %v1599_v4 = vrot.slane %v1597_v33, 5  ;;  %v1228_v8 = vsel %vm15984_vm14, %v1027_v19, %v1227_v2  ;;  %v16371_v52 = vld [vmem:[#allocation2 + $0x84] sm:$0xff] }
 0x131   : > { %v2436_v12 = vadd.f32 %v2360_v1, %v2040_v53  ;;  %18549 = vst [vmem:[#allocation47_spill] sm:$0xff] %v16352_v14  ;;  %v2214_v46 = vsel %vm15904_vm8, %v2212_v9, %v2213_v27  ;;  %v1028_v53 = vrot.slane %v1024_v32, 4  ;;  %v1595_v1 = vrot.slane %v1594_v0, 4  ;;  %v16373_v32 = vld [vmem:[#allocation2 + $0x90] sm:$0xf] }
 0x132   : > { %v1585_v41 = vrot.slane %v1584_v58, 4  ;;  %v1035_v25 = vor.u32 %v1033_v60, %v1032_v38  ;;  %1229 = vst [vmem:[#allocation2 + $0x9c] sm:$0xf] %v1228_v8  ;;  %v2267_v2 = vunpack.c.l.b16 %v2211_v10  ;;  %v2268_v9 = vunpack.c.l.b16 %v2214_v46  ;;  %v16375_v0 = vld [vmem:[#allocation2 + $0x94] sm:$0xf] }
 0x133   : > { %18552 = vst [vmem:[#allocation50_spill] sm:$0xff] %v16371_v52  ;;  %v777_v58 = vld [vmem:[%s15921_s2 + $0xd8] sm:$0xff]  ;;  %v1600_v38 = vsel %vm15934_vm10, %v1595_v1, %v1599_v4  ;;  %v1602_v49 = vshrl.u32 %v16373_v32, 16  ;;  %v1611_v46 = vshll.u32 %v16375_v0, 16 }
 0x134   : > { %v1036_v33 = vsel %vm15990_vm15, %v1028_v53, %v1035_v25  ;;  %v809_v19 = vpack.c.bf16 %v777_v58, %v777_v58  ;;  %v1590_v10 = vsel %vm15934_vm10, %v1585_v41, %v16350_v28  ;;  %v1615_v53 = vshrl.u32 %v16375_v0, 16 }
 0x135   : > { %11472 = vmatmul.msk.bf16.gmra.mxu2 %vm1747_vm9, %v16348_v54  ;;  %1230 = vst.msk [vmem:[#allocation2 + $0xa0] sm:$0xf] %vm694_vm3, %v1036_v33  ;;  %v16395_v1 = vpack.c.b16 %v2268_v9, %v2267_v2  ;;  %v1722_v28 = vunpack.c.l.b16 %v1600_v38  ;;  %v1721_v8 = vunpack.c.l.b16 %v1590_v10  ;;  %v1604_v30 = vrot.slane %v1602_v49, 4  ;;  %v1293_v38 = vld [vmem:[#allocation2 + $0x98] sm:$0x1] }
 0x136   : > { %v1822_v29 = vpop.f32.mrf.mxu0  ;;  %v2494_v40 = vpop.f32.mrf.mxu3  ;;  %v1047_v43 = vshrl.u32 %v809_v19, 16  ;;  %v1050_v58 = vshll.u32 %v809_v19, 16  ;;  %v1617_v54 = vrot.slane %v1615_v53, 4  ;;  %v2217_v2 = vrot.slane %v16375_v0, 5  ;;  %v1234_v10 = vld [vmem:[#allocation2 + $0xa8] sm:$0xf] }
 0x137   : > { %v2043_v55 = vadd.f32 %v2042_v26, %v1822_v29  ;;  %v16369_v26 = vadd.f32 %v2494_v40, %v2436_v12  ;;  %v808_v12 = vpack.c.bf16 %v776_v36, %v776_v36  ;;  %v1605_v29 = vshll.u32 %v16373_v32, 16  ;;  %18553 = vst [vmem:[#allocation51_spill] sm:$0xff] %v16395_v1  ;;  %v1238_v19 = vld [vmem:[#allocation2 + $0xb0] sm:$0x1] }
 0x138   : > { %v2363_v59 = vpop.f32.mrf.mxu2  ;;  %v2047_v27 = vpop.f32.mrf.mxu1  ;;  %v1049_v36 = vrot.slane %v1047_v43, 7  ;;  %v2219_v43 = vrot.slane %v2217_v2, 4 }
 0x139   : > { %v2437_v6 = vadd.f32 %v2363_v59, %v2043_v55  ;;  %11360 = vmatmul.msk.bf16.gmra.mxu0 %vm1747_vm9, %v16357_v45  ;;  %18551 = vst [vmem:[#allocation49_spill] sm:$0xff] %v16369_v26  ;;  %v1039_v60 = vshrl.u32 %v808_v12, 16  ;;  %v1042_v40 = vshll.u32 %v808_v12, 16  ;;  %v1607_v33 = vrot.slane %v1605_v29, 5 }
 0x13a   : > { %v1621_v12 = vshll.u32 %v1293_v38, 16  ;;  %v11458_v29 = vrot.slane %v16373_v32, 9 }
 0x13b   : > { %11492 = vmatmul.msk.bf16.gmra.mxu3 %vm1747_vm9, %v16371_v52  ;;  %11441 = vmatmul.msk.bf16.gmra.mxu1 %vm1747_vm9, %v16371_v52  ;;  %v1041_v59 = vrot.slane %v1039_v60, 7  ;;  %v16399_v52 = vrot.slane %v1611_v46, 5  ;;  %v1052_v60 = vor.u32 %v1050_v58, %v1049_v36  ;;  %v1608_v46 = vor.u32 %v1607_v33, %v1604_v30 }
 0x13d   : > { %v1044_v9 = vor.u32 %v1042_v40, %v1041_v59  ;;  %v1618_v0 = vor.u32 %v1617_v54, %v16399_v52  ;;  %v1623_v54 = vrot.slane %v1621_v12, 5 }
 0x13e   : > { %v1824_v55 = vpop.f32.mrf.mxu0  ;;  %v2497_v25 = vpop.f32.mrf.mxu3 }
 0x13f   : > { %v2045_v4 = vadd.f32 %v2044_v21, %v1824_v55  ;;  %v16397_v14 = vadd.f32 %v2497_v25, %v2437_v6  ;;  %v1045_v21 = vrot.slane %v1041_v59, 4  ;;  %v1054_v55 = vrot.slane %v1049_v36, 4  ;;  %v16414_v25 = vld [vmem:[#allocation2 + $0x9c] sm:$0xf]  ;;  %v16423_v36 = vld [vmem:[#allocation2 + $0x90] sm:$0xff] }
 0x140   : > { %v2365_v41 = vpop.f32.mrf.mxu2  ;;  %v2049_v45 = vpop.f32.mrf.mxu1  ;;  %v1235_v49 = vsel %vm15984_vm14, %v1044_v9, %v1234_v10  ;;  %v16406_v6 = vpack.c.b16 %v1722_v28, %v1721_v8  ;;  %v16417_v8 = vld [vmem:[#allocation2 + $0xa0] sm:$0xf]  ;;  %18557 = vst [vmem:[#allocation55_spill] sm:$0xff] %v16423_v36  ;;  %v1619_v58 = vrot.slane %v1618_v0, 4  ;;  %v2218_v9 = vsel %vm15904_vm8, %v11458_v29, %v2217_v2 }
 0x141   : > { %v2438_v26 = vadd.f32 %v2365_v41, %v2045_v4  ;;  %18554 = vst [vmem:[#allocation52_spill] sm:$0xff] %v16397_v14  ;;  %v2220_v4 = vrot.slane %v1293_v38, 5  ;;  %v1053_v59 = vsel %vm15990_vm15, %v1045_v21, %v1052_v60  ;;  %v1239_v40 = vsel %vm15998_vm4, %v1054_v55, %v1238_v19  ;;  %v778_v60 = vld [vmem:[%s15921_s2 + $0xe0] sm:$0xff]  ;;  %v779_v55 = vld [vmem:[%s15921_s2 + $0xe8] sm:$0xff] }
 0x142   : > { %18555 = vst [vmem:[#allocation53_spill] sm:$0xff] %v16406_v6  ;;  %v1626_v10 = vshrl.u32 %v16414_v25, 16  ;;  %v1629_v12 = vshll.u32 %v16414_v25, 16  ;;  %v810_v19 = vpack.c.bf16 %v778_v60, %v778_v60  ;;  %v2269_v2 = vunpack.c.l.b16 %v2218_v9 }
 0x143   : > { %1236 = vst [vmem:[#allocation2 + $0xa8] sm:$0xf] %v1235_v49  ;;  %v2221_v21 = vsel %vm15904_vm8, %v2219_v43, %v2220_v4  ;;  %v1639_v49 = vshrl.u32 %v16417_v8, 16  ;;  %v2224_v4 = vrot.slane %v16417_v8, 5 }
 0x144   : > { %1237 = vst.msk [vmem:[#allocation2 + $0xac] sm:$0xf] %vm694_vm3, %v1053_v59  ;;  %v2270_v29 = vunpack.c.l.b16 %v2221_v21  ;;  %v1628_v59 = vrot.slane %v1626_v10, 4  ;;  %v1056_v21 = vshrl.u32 %v810_v19, 16  ;;  %v11459_v10 = vrot.slane %v16414_v25, 9 }
 0x145   : > { %11473 = vmatmul.msk.bf16.gmra.mxu2 %vm1747_vm9, %v16395_v1  ;;  %1240 = vst [vmem:[#allocation2 + $0xb0] sm:$0x1] %v1239_v40  ;;  %v1631_v40 = vrot.slane %v1629_v12, 5  ;;  %v1641_v9 = vrot.slane %v1639_v49, 4  ;;  %v1059_v1 = vshll.u32 %v810_v19, 16 }
 0x146   : > { %v1827_v53 = vpop.f32.mrf.mxu0  ;;  %v2499_v32 = vpop.f32.mrf.mxu3  ;;  %v16449_v14 = vpack.c.b16 %v2270_v29, %v2269_v2 }
 0x147   : > { %v2048_v41 = vadd.f32 %v2047_v27, %v1827_v53  ;;  %v16421_v33 = vadd.f32 %v2499_v32, %v2438_v26  ;;  %v1609_v27 = vrot.slane %v1608_v46, 4  ;;  %v1635_v26 = vshll.u32 %v16417_v8, 16 }
 0x148   : > { %v2368_v28 = vpop.f32.mrf.mxu2  ;;  %v2052_v38 = vpop.f32.mrf.mxu1  ;;  %v811_v46 = vpack.c.bf16 %v779_v55, %v779_v55  ;;  %v1624_v53 = vsel %vm15934_vm10, %v1619_v58, %v1623_v54  ;;  %18559 = vst [vmem:[#allocation57_spill] sm:$0xff] %v16449_v14 }
 0x149   : > { %v2439_v30 = vadd.f32 %v2368_v28, %v2048_v41  ;;  %11361 = vmatmul.msk.bf16.gmra.mxu0 %vm1747_vm9, %v16406_v6  ;;  %18556 = vst [vmem:[#allocation54_spill] sm:$0xff] %v16421_v33  ;;  %v1614_v0 = vsel %vm15934_vm10, %v1609_v27, %v16399_v52  ;;  %v1296_v28 = vld [vmem:[#allocation2 + $0xa4] sm:$0x1]  ;;  %v16445_v32 = vrot.slane %v1635_v26, 5  ;;  %v1724_v27 = vunpack.c.l.b16 %v1624_v53  ;;  %v1241_v53 = vld [vmem:[#allocation2 + $0xb4] sm:$0xf] }
 0x14a   : > { %v1723_v52 = vunpack.c.l.b16 %v1614_v0  ;;  %v1064_v33 = vshrl.u32 %v811_v46, 16  ;;  %v2227_v12 = vrot.slane %v1296_v28, 5  ;;  %v1632_v26 = vor.u32 %v1631_v40, %v1628_v59 }
 0x14b   : > { %11493 = vmatmul.msk.bf16.gmra.mxu3 %vm1747_vm9, %v16423_v36  ;;  %11442 = vmatmul.msk.bf16.gmra.mxu1 %vm1747_vm9, %v16423_v36  ;;  %v1645_v36 = vshll.u32 %v1296_v28, 16  ;;  %v1642_v49 = vor.u32 %v1641_v9, %v16445_v32  ;;  %v2225_v59 = vsel %vm15904_vm8, %v11459_v10, %v2224_v4  ;;  %v1298_v10 = vld [vmem:[#allocation2 + $0xac] sm:$0xf] }
 0x14c   : > { %v16453_v6 = vpack.c.b16 %v1724_v27, %v1723_v52  ;;  %v1066_v0 = vrot.slane %v1064_v33, 7  ;;  %v1633_v19 = vrot.slane %v1632_v26, 4  ;;  %v16471_v27 = vld [vmem:[#allocation2 + $0xa8] sm:$0xf] }
 0x14d   : > { %v1643_v33 = vrot.slane %v1642_v49, 4 }
 0x14e   : > { %v1829_v43 = vpop.f32.mrf.mxu0  ;;  %v2502_v55 = vpop.f32.mrf.mxu3  ;;  %v1071_v28 = vrot.slane %v1066_v0, 4 }
 0x14f   : > { %v2050_v41 = vadd.f32 %v2049_v45, %v1829_v43  ;;  %v16447_v58 = vadd.f32 %v2502_v55, %v2439_v30  ;;  %v2226_v45 = vrot.slane %v2224_v4, 4  ;;  %v1058_v43 = vrot.slane %v1056_v21, 7 }
 0x150   : > { %v2370_v60 = vpop.f32.mrf.mxu2  ;;  %v2054_v8 = vpop.f32.mrf.mxu1  ;;  %v1647_v30 = vrot.slane %v1645_v36, 5 }
 0x151   : > { %v2440_v54 = vadd.f32 %v2370_v60, %v2050_v41  ;;  %18558 = vst [vmem:[#allocation56_spill] sm:$0xff] %v16447_v58  ;;  %v1061_v2 = vor.u32 %v1059_v1, %v1058_v43  ;;  %v1062_v29 = vrot.slane %v1058_v43, 4  ;;  %v1067_v41 = vshll.u32 %v811_v46, 16  ;;  %v1245_v60 = vld [vmem:[#allocation2 + $0xbc] sm:$0x1]  ;;  %v780_v43 = vld [vmem:[%s15921_s2 + $0xf0] sm:$0xff] }
 0x152   : > { %v2228_v40 = vsel %vm15904_vm8, %v2226_v45, %v2227_v12  ;;  %v16463_v46 = vld [vmem:[#allocation2 + $0x9c] sm:$0xff]  ;;  %v1246_v4 = vsel %vm15998_vm4, %v1071_v28, %v1245_v60  ;;  %v2271_v12 = vunpack.c.l.b16 %v2225_v59  ;;  %v1650_v60 = vshrl.u32 %v16471_v27, 16 }
 0x153   : > { %v1069_v21 = vor.u32 %v1067_v41, %v1066_v0  ;;  %v1242_v55 = vsel %vm15984_vm14, %v1061_v2, %v1241_v53  ;;  %18560 = vst [vmem:[#allocation58_spill] sm:$0xff] %v16463_v46  ;;  %v2272_v26 = vunpack.c.l.b16 %v2228_v40  ;;  %v781_v0 = vld [vmem:[%s15921_s2 + $0xf8] sm:$0xff]  ;;  %v1638_v53 = vsel %vm15934_vm10, %v1633_v19, %v16445_v32  ;;  %s11137_s2 = sshll.u32 %s11133_s29, 4  ;;  %s11138_s2 = int_to_ptr.hbm [resolvable:$true] %s11137_s2 }
 0x154   : > { %1243 = vst [vmem:[#allocation2 + $0xb4] sm:$0xf] %v1242_v55  ;;  %v812_v2 = vpack.c.bf16 %v780_v43, %v780_v43  ;;  %v813_v41 = vpack.c.bf16 %v781_v0, %v781_v0  ;;  %v1663_v59 = vshrl.u32 %v1298_v10, 16  ;;  %s15500_s1 = sshra.s32 %s11138_s2, 4  ;;  %s15501_s1 = int_to_ptr.hbm [resolvable:$true] %s15500_s1 }
 0x155   : > { %11474 = vmatmul.msk.bf16.gmra.mxu2 %vm1747_vm9, %v16449_v14  ;;  %v1070_v45 = vsel %vm15990_vm15, %v1062_v29, %v1069_v21  ;;  %1247 = vst [vmem:[#allocation2 + $0xbc] sm:$0x1] %v1246_v4  ;;  %v1653_v29 = vshll.u32 %v16471_v27, 16  ;;  %v16489_v19 = vpack.c.b16 %v2272_v26, %v2271_v12  ;;  %v2231_v21 = vrot.slane %v1298_v10, 5  ;;  %s15502_s3 = scalar_lea.hbm %s15501_s1, 1  ;;  %p15507_p3 = scmp.lt.s32.totalorder %s15501_s1, %s18472_s15 }
 0x156   : > { %v1832_v25 = vpop.f32.mrf.mxu0  ;;  %v2504_v1 = vpop.f32.mrf.mxu3  ;;  %1244 = vst.msk [vmem:[#allocation2 + $0xb8] sm:$0xf] %vm694_vm3, %v1070_v45  ;;  %v1073_v40 = vshrl.u32 %v812_v2, 16  ;;  %v1081_v28 = vshrl.u32 %v813_v41, 16  ;;  %v1652_v45 = vrot.slane %v1650_v60, 4  ;;  %v1084_v12 = vshll.u32 %v813_v41, 16  ;;  %p15503_p0 = scmp.ne.s32.totalorder %s15501_s1, %s15502_s3  ;;  %p15508_p4 = scmp.lt.s32.totalorder %s15506_s6, %s15502_s3 }
 0x157   : > { %v2053_v9 = vadd.f32 %v2052_v38, %v1832_v25  ;;  %v16469_v38 = vadd.f32 %v2504_v1, %v2440_v54  ;;  %v1648_v54 = vsel %vm15934_vm10, %v1643_v33, %v1647_v30  ;;  %v1659_v25 = vshll.u32 %v1298_v10, 16 }
 0x158   : > { %v2373_v36 = vpop.f32.mrf.mxu2  ;;  %v2057_v49 = vpop.f32.mrf.mxu1  ;;  %v1725_v30 = vunpack.c.l.b16 %v1638_v53  ;;  %v1075_v55 = vrot.slane %v1073_v40, 7  ;;  %v1655_v43 = vrot.slane %v1653_v29, 5  ;;  %v16493_v14 = vrot.slane %v1081_v28, 7  ;;  %v1248_v53 = vld [vmem:[#allocation2 + $0xc0] sm:$0xf]  ;;  %p15504_p1 = pnand %p15503_p0, %p15717_p5  ;;  %p15509_p7 = por %p15508_p4, %p15507_p3 }
 0x159   : > { %v2441_v52 = vadd.f32 %v2373_v36, %v2053_v9  ;;  %11362 = vmatmul.msk.bf16.gmra.mxu0 %vm1747_vm9, %v16453_v6  ;;  %18561 = vst [vmem:[#allocation59_spill] sm:$0xff] %v16469_v38  ;;  %v1726_v9 = vunpack.c.l.b16 %v1648_v54  ;;  %v1076_v36 = vshll.u32 %v812_v2, 16  ;;  %v1661_v0 = vrot.slane %v1659_v25, 5 }
 0x15a   : > { %v1665_v38 = vrot.slane %v1663_v59, 4  ;;  %v1079_v10 = vrot.slane %v1075_v55, 4  ;;  %v11460_v2 = vrot.slane %v16471_v27, 9  ;;  %v2233_v40 = vrot.slane %v2231_v21, 4  ;;  %p15505_p2 = pneg %p15504_p1 }
 0x15b   : > { %11494 = vmatmul.msk.bf16.gmra.mxu3 %vm1747_vm9, %v16463_v46  ;;  %11443 = vmatmul.msk.bf16.gmra.mxu1 %vm1747_vm9, %v16463_v46  ;;  %v1299_v46 = vld [vmem:[#allocation2 + $0xb0] sm:$0x1]  ;;  %v16495_v54 = vpack.c.b16 %v1726_v9, %v1725_v30  ;;  %v1086_v59 = vor.u32 %v1084_v12, %v16493_v14 }
 0x15c   : > { %v2234_v60 = vrot.slane %v1299_v46, 5  ;;  %v1669_v29 = vshll.u32 %v1299_v46, 16  ;;  %v1666_v25 = vor.u32 %v1665_v38, %v1661_v0  ;;  %v2232_v46 = vsel %vm15904_vm8, %v11460_v2, %v2231_v21  ;;  %p15510_p8 = pnand %p15509_p7, %p15505_p2 }
 0x15d   : > { %v1087_v30 = vsel %vm15990_vm15, %v1079_v10, %v1086_v59  ;;  %v2273_v21 = vunpack.c.l.b16 %v2232_v46  ;;  %v1302_v46 = vld [vmem:[#allocation2 + $0xbc] sm:$0x1]  ;;  %vm4229_vm15 = vcmask 1046534  }
 0x15e   : > { %v1834_v32 = vpop.f32.mrf.mxu0  ;;  %v2507_v4 = vpop.f32.mrf.mxu3  ;;  %v1671_v38 = vrot.slane %v1669_v29, 5  ;;  %1251 = vst.msk [vmem:[#allocation2 + $0xc4] sm:$0xf] %vm694_vm3, %v1087_v30  ;;  %vm4001_vm3 = vcmask 257024  }
 0x15f   : > { %v2055_v33 = vadd.f32 %v2054_v8, %v1834_v32  ;;  %v16491_v58 = vadd.f32 %v2507_v4, %v2441_v52  ;;  %v1078_v8 = vor.u32 %v1076_v36, %v1075_v55  ;;  %v1656_v52 = vor.u32 %v1655_v43, %v1652_v45  ;;  %v1300_v4 = vld [vmem:[#allocation2 + $0xb4] sm:$0xf]  ;;  %v1301_v45 = vld [vmem:[#allocation2 + $0xb8] sm:$0xf] }
 0x160   : > { %v2375_v1 = vpop.f32.mrf.mxu2  ;;  %v2059_v26 = vpop.f32.mrf.mxu1  ;;  %v1667_v36 = vrot.slane %v1666_v25, 4  ;;  %v1677_v10 = vshll.u32 %v1300_v4, 16  ;;  %v1683_v2 = vshll.u32 %v1301_v45, 16 }
 0x161   : > { %v2442_v20 = vadd.f32 %v2375_v1, %v2055_v33  ;;  %v1249_v41 = vsel %vm15984_vm14, %v1078_v8, %v1248_v53  ;;  %v2235_v33 = vsel %vm15904_vm8, %v2233_v40, %v2234_v60  ;;  %v1657_v15 = vrot.slane %v1656_v52, 4 }
 0x162   : > { %1250 = vst [vmem:[#allocation2 + $0xc0] sm:$0xf] %v1249_v41  ;;  %v2274_v43 = vunpack.c.l.b16 %v2235_v33  ;;  %v1672_v53 = vsel %vm15934_vm10, %v1667_v36, %v1671_v38  ;;  %v1687_v40 = vshrl.u32 %v1301_v45, 16  ;;  %v1679_v33 = vrot.slane %v1677_v10, 5 }
 0x163   : > { %v1662_v12 = vsel %vm15934_vm10, %v1657_v15, %v1661_v0  ;;  %v1728_v41 = vunpack.c.l.b16 %v1672_v53  ;;  %v1685_v38 = vrot.slane %v1683_v2, 5  ;;  %vm4226_vm14 = vcmask 1045509  }
 0x164   : > { %v16524_v25 = vpack.c.b16 %v2274_v43, %v2273_v21  ;;  %v1727_v59 = vunpack.c.l.b16 %v1662_v12  ;;  %v1689_v15 = vrot.slane %v1687_v40, 4  ;;  %v11461_v21 = vrot.slane %v1300_v4, 9  ;;  %v2764_v12 = vld [vmem:[#allocation6 + $0xa] sm:$0x3]  ;;  %v3054_v40 = vld [vmem:[#allocation6 + $0xe] sm:$0x3] }
 0x165   : > { %11475 = vmatmul.msk.bf16.gmra.mxu2 %vm1747_vm9, %v16489_v19  ;;  %v2772_v10 = vand.u32 %v2764_v12, %v15839_v3 }
 0x166   : > { %v1837_v28 = vpop.f32.mrf.mxu0  ;;  %v2509_v9 = vpop.f32.mrf.mxu3 }
 0x167   : > { %v2058_v32 = vadd.f32 %v2057_v49, %v1837_v28  ;;  %v16512_v11 = vadd.f32 %v2509_v9, %v2442_v20  ;;  %v16514_v49 = vld [vmem:[#allocation2 + $0xa8] sm:$0xff]  ;;  %v1674_v20 = vshrl.u32 %v1300_v4, 16  ;;  %2781 = vmatpush.bf16.msrb.mxu1 %v2772_v10 }
 0x168   : > { %v2378_v27 = vpop.f32.mrf.mxu2  ;;  %v2062_v1 = vpop.f32.mrf.mxu1 }
 0x169   : > { %v2443_v55 = vadd.f32 %v2378_v27, %v2058_v32  ;;  %11363 = vmatmul.msk.bf16.gmra.mxu0 %vm1747_vm9, %v16495_v54  ;;  %v2238_v32 = vrot.slane %v1301_v45, 5  ;;  %v1676_v30 = vrot.slane %v1674_v20, 4  ;;  %v2896_v27 = vld [vmem:[#allocation6 + $0xc] sm:$0x3]  ;;  %v1690_v20 = vor.u32 %v1689_v15, %v1685_v38 }
 0x16a   : > { %v2906_v36 = vand.u32 %v2896_v27, %v15839_v3 }
 0x16b   : > { %11495 = vmatmul.msk.bf16.gmra.mxu3 %vm1747_vm9, %v16514_v49  ;;  %11444 = vmatmul.msk.bf16.gmra.mxu1 %vm1747_vm9, %v16514_v49  ;;  %v2240_v43 = vrot.slane %v2238_v32, 4  ;;  %v1680_v53 = vor.u32 %v1679_v33, %v1676_v30  ;;  %v1691_v33 = vrot.slane %v1690_v20, 4 }
 0x16c   : > { %2915 = vmatpush.bf16.msrb.mxu2 %v2906_v36 }
 0x16e   : > { %v1839_v8 = vpop.f32.mrf.mxu0  ;;  %v2512_v52 = vpop.f32.mrf.mxu3 }
 0x16f   : > { %v2060_v60 = vadd.f32 %v2059_v26, %v1839_v8  ;;  %v16526_v0 = vadd.f32 %v2512_v52, %v2443_v55  ;;  %v16531_v26 = vpack.c.b16 %v1728_v41, %v1727_v59  ;;  %v2241_v55 = vrot.slane %v1302_v46, 5  ;;  %v16539_v59 = vld [vmem:[#allocation2 + $0xb4] sm:$0xff] }
 0x170   : > { %v2380_v29 = vpop.f32.mrf.mxu2  ;;  %v2064_v9 = vpop.f32.mrf.mxu1  ;;  %v1693_v8 = vshll.u32 %v1302_v46, 16  ;;  %v3062_v52 = vand.u32 %v3054_v40, %v15839_v3  ;;  %v2239_v41 = vsel %vm15904_vm8, %v11461_v21, %v2238_v32  ;;  %v1681_v46 = vrot.slane %v1680_v53, 4 }
 0x171   : > { %v2444_v28 = vadd.f32 %v2380_v29, %v2060_v60  ;;  %v2275_v36 = vunpack.c.l.b16 %v2239_v41 }
 0x172   : > { %v1695_v15 = vrot.slane %v1693_v8, 5  ;;  %3071 = vmatpush.bf16.msrb.mxu3 %v3062_v52  ;;  %v1686_v32 = vsel %vm15934_vm10, %v1681_v46, %v1685_v38 }
 0x173   : > { %v1729_v10 = vunpack.c.l.b16 %v1686_v32 }
 0x174   : > { %v1696_v21 = vsel %vm15934_vm10, %v1691_v33, %v1695_v15 }
 0x175   : > { %11476 = vmatmul.msk.bf16.gmra.mxu2 %vm1747_vm9, %v16524_v25 }
 0x176   : > { %v1842_v45 = vpop.f32.mrf.mxu0  ;;  %v2514_v29 = vpop.f32.mrf.mxu3 }
 0x177   : > { %v2063_v2 = vadd.f32 %v2062_v1, %v1842_v45  ;;  %v16537_v4 = vadd.f32 %v2514_v29, %v2444_v28  ;;  %v2242_v1 = vsel %vm15904_vm8, %v2240_v43, %v2241_v55 }
 0x178   : > { %v2383_v60 = vpop.f32.mrf.mxu2  ;;  %v2067_v30 = vpop.f32.mrf.mxu1  ;;  %v2276_v12 = vunpack.c.l.b16 %v2242_v1 }
 0x179   : > { %v2445_v27 = vadd.f32 %v2383_v60, %v2063_v2  ;;  %11364 = vmatmul.msk.bf16.gmra.mxu0 %vm1747_vm9, %v16531_v26  ;;  %v1730_v2 = vunpack.c.l.b16 %v1696_v21  ;;  %v15086_v21 = vld [vmem:[#allocation2 + $0x18] sm:$0xff] }
 0x17a   : > { %v16553_v53 = vpack.c.b16 %v2276_v12, %v2275_v36 }
 0x17b   : > { %11496 = vmatmul.msk.bf16.gmra.mxu3 %vm1747_vm9, %v16539_v59  ;;  %11445 = vmatmul.msk.bf16.gmra.mxu1 %vm1747_vm9, %v16539_v59  ;;  %v16559_v60 = vpack.c.b16 %v1730_v2, %v1729_v10 }
 0x17c   : > { %18562 = vst [vmem:[#allocation60_spill] sm:$0xff] %v16553_v53 }
 0x17e   : > { %v1844_v28 = vpop.f32.mrf.mxu0  ;;  %v2517_v45 = vpop.f32.mrf.mxu3 }
 0x17f   : > { %v2065_v43 = vadd.f32 %v2064_v9, %v1844_v28  ;;  %v16555_v8 = vadd.f32 %v2517_v45, %v2445_v27  ;;  %v16565_v27 = vld [vmem:[#allocation2 + $0xc0] sm:$0xff] }
 0x180   : > { %v2385_v55 = vpop.f32.mrf.mxu2  ;;  %v2069_v40 = vpop.f32.mrf.mxu1 }
 0x181   : > { %v2446_v20 = vadd.f32 %v2385_v55, %v2065_v43 }
 0x185   : > { %11477 = vmatmul.msk.bf16.gmra.mxu2 %vm1747_vm9, %v16553_v53 }
 0x186   : > { %v1847_v38 = vpop.f32.mrf.mxu0  ;;  %v2519_v41 = vpop.f32.mrf.mxu3 }
 0x187   : > { %v2068_v29 = vadd.f32 %v2067_v30, %v1847_v38  ;;  %v16563_v1 = vadd.f32 %v2519_v41, %v2446_v20 }
 0x188   : > { %v2388_v52 = vpop.f32.mrf.mxu2  ;;  %v2072_v46 = vpop.f32.mrf.mxu1 }
 0x189   : > { %v2447_v9 = vadd.f32 %v2388_v52, %v2068_v29  ;;  %11365 = vmatmul.msk.bf16.gmra.mxu0 %vm1747_vm9, %v16559_v60 }
 0x18b   : > { %11497 = vmatmul.msk.bf16.gmra.mxu3 %vm1747_vm9, %v16565_v27  ;;  %11515 = vmatmul.msk.bf16.vlgmr.msrb.gmra.mxu1 %vm1747_vm9, %v16037_v24 }
 0x18e   : > { %v1849_v33 = vpop.f32.mrf.mxu0  ;;  %v2522_v36 = vpop.f32.mrf.mxu3 }
 0x18f   : > { %v2070_v15 = vadd.f32 %v2069_v40, %v1849_v33  ;;  %v16571_v28 = vadd.f32 %v2522_v36, %v2447_v9  ;;  %v15087_v33 = vld [vmem:[#allocation2 + $0x24] sm:$0xff] }
 0x190   : > { %v2390_v30 = vpop.f32.mrf.mxu2  ;;  %v2074_v32 = vpop.f32.mrf.mxu1 }
 0x191   : > { %v2448_v12 = vadd.f32 %v2390_v30, %v2070_v15 }
 0x195   : > { %11535 = vmatmul.msk.bf16.vlgmr.msrb.gmra.mxu2 %vm1747_vm9, %v15086_v21 }
 0x196   : > { %v1852_v43 = vpop.f32.mrf.mxu0  ;;  %v2524_v20 = vpop.f32.mrf.mxu3 }
 0x197   : > { %v2073_v55 = vadd.f32 %v2072_v46, %v1852_v43  ;;  %v16574_v2 = vadd.f32 %v2524_v20, %v2448_v12 }
 0x198   : > { %v2393_v45 = vpop.f32.mrf.mxu2  ;;  %v2077_v24 = vpop.f32.mrf.mxu1 }
 0x199   : > { %v2449_v10 = vadd.f32 %v2393_v45, %v2073_v55  ;;  %11498 = vmatmul.msk.bf16.vlgmr.msrb.gmra.mxu0 %vm1747_vm9, %v16050_v39 }
 0x19b   : > { %11551 = vmatmul.msk.bf16.vlgmr.msrb.gmra.mxu3 %vm1747_vm9, %v16082_v42  ;;  %11516 = vmatmul.msk.bf16.gmra.mxu1 %vm1747_vm9, %v16063_v57 }
 0x19e   : > { %v1854_v40 = vpop.f32.mrf.mxu0  ;;  %v2527_v52 = vpop.f32.mrf.mxu3 }
 0x19f   : > { %v2075_v38 = vadd.f32 %v2074_v32, %v1854_v40  ;;  %v16582_v9 = vadd.f32 %v2527_v52, %v2449_v10 }
 0x1a0   : > { %v2395_v29 = vpop.f32.mrf.mxu2  ;;  %v2079_v46 = vpop.f32.mrf.mxu1 }
 0x1a1   : > { %v2450_v41 = vadd.f32 %v2395_v29, %v2075_v38  ;;  %v15088_v38 = vld [vmem:[#allocation2 + $0x30] sm:$0xff] }
 0x1a5   : > { %11536 = vmatmul.msk.bf16.gmra.mxu2 %vm1747_vm9, %v15087_v33 }
 0x1a6   : > { %v1857_v15 = vpop.f32.mrf.mxu0  ;;  %v2529_v36 = vpop.f32.mrf.mxu3 }
 0x1a7   : > { %v2078_v39 = vadd.f32 %v2077_v24, %v1857_v15  ;;  %v16585_v21 = vadd.f32 %v2529_v36, %v2450_v41 }
 0x1a8   : > { %v2398_v30 = vpop.f32.mrf.mxu2  ;;  %v2082_v32 = vpop.f32.mrf.mxu1 }
 0x1a9   : > { %v2451_v12 = vadd.f32 %v2398_v30, %v2078_v39  ;;  %11499 = vmatmul.msk.bf16.gmra.mxu0 %vm1747_vm9, %v16082_v42 }
 0x1ab   : > { %11552 = vmatmul.msk.bf16.gmra.mxu3 %vm1747_vm9, %v16117_v31  ;;  %11517 = vmatmul.msk.bf16.gmra.mxu1 %vm1747_vm9, %v16110_v13 }
 0x1ae   : > { %v1859_v43 = vpop.f32.mrf.mxu0  ;;  %v2532_v20 = vpop.f32.mrf.mxu3 }
 0x1af   : > { %v2080_v55 = vadd.f32 %v2079_v46, %v1859_v43  ;;  %v16593_v24 = vadd.f32 %v2532_v20, %v2451_v12 }
 0x1b0   : > { %v2400_v45 = vpop.f32.mrf.mxu2  ;;  %v2084_v40 = vpop.f32.mrf.mxu1 }
 0x1b1   : > { %v2452_v10 = vadd.f32 %v2400_v45, %v2080_v55  ;;  %v15089_v45 = vld [vmem:[#allocation2 + $0x3c] sm:$0xff] }
 0x1b5   : > { %11537 = vmatmul.msk.bf16.gmra.mxu2 %vm1747_vm9, %v15088_v38 }
 0x1b6   : > { %v1862_v29 = vpop.f32.mrf.mxu0  ;;  %v2534_v41 = vpop.f32.mrf.mxu3 }
 0x1b7   : > { %v2083_v42 = vadd.f32 %v2082_v32, %v1862_v29  ;;  %v16596_v15 = vadd.f32 %v2534_v41, %v2452_v10 }
 0x1b8   : > { %v2403_v52 = vpop.f32.mrf.mxu2  ;;  %v2087_v46 = vpop.f32.mrf.mxu1 }
 0x1b9   : > { %v2453_v33 = vadd.f32 %v2403_v52, %v2083_v42  ;;  %11500 = vmatmul.msk.bf16.gmra.mxu0 %vm1747_vm9, %v16117_v31 }
 0x1bb   : > { %11553 = vmatmul.msk.bf16.gmra.mxu3 %vm1747_vm9, %v16156_v47  ;;  %11518 = vmatmul.msk.bf16.gmra.mxu1 %vm1747_vm9, %v16142_v18 }
 0x1be   : > { %v1864_v39 = vpop.f32.mrf.mxu0  ;;  %v2537_v12 = vpop.f32.mrf.mxu3 }
 0x1bf   : > { %v2085_v30 = vadd.f32 %v2084_v40, %v1864_v39  ;;  %v16604_v43 = vadd.f32 %v2537_v12, %v2453_v33  ;;  %v15090_v12 = vld [vmem:[#allocation2 + $0x48] sm:$0xff] }
 0x1c0   : > { %v2405_v36 = vpop.f32.mrf.mxu2  ;;  %v2089_v55 = vpop.f32.mrf.mxu1 }
 0x1c1   : > { %v2454_v32 = vadd.f32 %v2405_v36, %v2085_v30 }
 0x1c5   : > { %11538 = vmatmul.msk.bf16.gmra.mxu2 %vm1747_vm9, %v15089_v45 }
 0x1c6   : > { %v1867_v20 = vpop.f32.mrf.mxu0  ;;  %v2539_v38 = vpop.f32.mrf.mxu3 }
 0x1c7   : > { %v2088_v31 = vadd.f32 %v2087_v46, %v1867_v20  ;;  %v16607_v42 = vadd.f32 %v2539_v38, %v2454_v32 }
 0x1c8   : > { %v2408_v10 = vpop.f32.mrf.mxu2  ;;  %v2092_v40 = vpop.f32.mrf.mxu1 }
 0x1c9   : > { %v2455_v29 = vadd.f32 %v2408_v10, %v2088_v31  ;;  %11501 = vmatmul.msk.bf16.gmra.mxu0 %vm1747_vm9, %v16156_v47 }
 0x1cb   : > { %11554 = vmatmul.msk.bf16.gmra.mxu3 %vm1747_vm9, %v16184_v37  ;;  %11519 = vmatmul.msk.bf16.gmra.mxu1 %vm1747_vm9, %v16179_v17 }
 0x1ce   : > { %v1869_v52 = vpop.f32.mrf.mxu0  ;;  %v2542_v39 = vpop.f32.mrf.mxu3 }
 0x1cf   : > { %v2090_v41 = vadd.f32 %v2089_v55, %v1869_v52  ;;  %v16615_v30 = vadd.f32 %v2542_v39, %v2455_v29  ;;  %v3194_v52 = vld [vmem:[#allocation6 + $0x10] sm:$0x3] }
 0x1d0   : > { %v2410_v33 = vpop.f32.mrf.mxu2  ;;  %v2094_v36 = vpop.f32.mrf.mxu1 }
 0x1d1   : > { %v2456_v46 = vadd.f32 %v2410_v33, %v2090_v41  ;;  %v3202_v33 = vand.u32 %v3194_v52, %v15839_v3 }
 0x1d3   : > { %3211 = vmatpush.bf16.msra.mxu0 %v3202_v33 }
 0x1d5   : > { %11539 = vmatmul.msk.bf16.gmra.mxu2 %vm1747_vm9, %v15090_v12 }
 0x1d6   : > { %v1872_v32 = vpop.f32.mrf.mxu0  ;;  %v2544_v20 = vpop.f32.mrf.mxu3 }
 0x1d7   : > { %v2093_v47 = vadd.f32 %v2092_v40, %v1872_v32  ;;  %v16618_v10 = vadd.f32 %v2544_v20, %v2456_v46 }
 0x1d8   : > { %v2413_v45 = vpop.f32.mrf.mxu2  ;;  %v2097_v55 = vpop.f32.mrf.mxu1 }
 0x1d9   : > { %v2457_v31 = vadd.f32 %v2413_v45, %v2093_v47  ;;  %18563 = vst [vmem:[#allocation61_spill] sm:$0xff] %v16618_v10  ;;  %11502 = vmatmul.msk.bf16.gmra.mxu0 %vm1747_vm9, %v16184_v37  ;;  %v15091_v37 = vld [vmem:[#allocation2 + $0x54] sm:$0xff] }
 0x1db   : > { %11555 = vmatmul.msk.bf16.gmra.mxu3 %vm1747_vm9, %v16226_v61  ;;  %11520 = vmatmul.msk.bf16.gmra.mxu1 %vm1747_vm9, %v16216_v34 }
 0x1de   : > { %v1874_v38 = vpop.f32.mrf.mxu0  ;;  %v2547_v40 = vpop.f32.mrf.mxu3 }
 0x1df   : > { %v2095_v29 = vadd.f32 %v2094_v36, %v1874_v38  ;;  %v16627_v46 = vadd.f32 %v2547_v40, %v2457_v31  ;;  %v15092_v40 = vld [vmem:[#allocation2 + $0x60] sm:$0xff] }
 0x1e0   : > { %v2415_v41 = vpop.f32.mrf.mxu2  ;;  %v2099_v12 = vpop.f32.mrf.mxu1 }
 0x1e1   : > { %v2458_v39 = vadd.f32 %v2415_v41, %v2095_v29 }
 0x1e5   : > { %11540 = vmatmul.msk.bf16.gmra.mxu2 %vm1747_vm9, %v15091_v37 }
 0x1e6   : > { %v1877_v32 = vpop.f32.mrf.mxu0  ;;  %v2549_v20 = vpop.f32.mrf.mxu3 }
 0x1e7   : > { %v2098_v47 = vadd.f32 %v2097_v55, %v1877_v32  ;;  %v16630_v10 = vadd.f32 %v2549_v20, %v2458_v39 }
 0x1e8   : > { %v2418_v45 = vpop.f32.mrf.mxu2  ;;  %v2102_v36 = vpop.f32.mrf.mxu1 }
 0x1e9   : > { %v2459_v34 = vadd.f32 %v2418_v45, %v2098_v47  ;;  %11503 = vmatmul.msk.bf16.gmra.mxu0 %vm1747_vm9, %v16226_v61 }
 0x1eb   : > { %11556 = vmatmul.msk.bf16.gmra.mxu3 %vm1747_vm9, %v16246_v50  ;;  %11521 = vmatmul.msk.bf16.gmra.mxu1 %vm1747_vm9, %v16244_v44 }
 0x1ee   : > { %v1879_v3 = vpop.f32.mrf.mxu0  ;;  %v2552_v29 = vpop.f32.mrf.mxu3 }
 0x1ef   : > { %v2100_v31 = vadd.f32 %v2099_v12, %v1879_v3  ;;  %v16638_v52 = vadd.f32 %v2552_v29, %v2459_v34  ;;  %v15093_v29 = vld [vmem:[#allocation2 + $0x6c] sm:$0xff] }
 0x1f0   : > { %v2420_v38 = vpop.f32.mrf.mxu2  ;;  %v2104_v41 = vpop.f32.mrf.mxu1 }
 0x1f1   : > { %v2460_v55 = vadd.f32 %v2420_v38, %v2100_v31 }
 0x1f5   : > { %11541 = vmatmul.msk.bf16.gmra.mxu2 %vm1747_vm9, %v15092_v40 }
 0x1f6   : > { %v1882_v33 = vpop.f32.mrf.mxu0  ;;  %v2554_v37 = vpop.f32.mrf.mxu3 }
 0x1f7   : > { %v2103_v61 = vadd.f32 %v2102_v36, %v1882_v33  ;;  %v16641_v47 = vadd.f32 %v2554_v37, %v2460_v55 }
 0x1f8   : > { %v2423_v39 = vpop.f32.mrf.mxu2  ;;  %v2107_v12 = vpop.f32.mrf.mxu1 }
 0x1f9   : > { %v2461_v32 = vadd.f32 %v2423_v39, %v2103_v61  ;;  %11504 = vmatmul.msk.bf16.gmra.mxu0 %vm1747_vm9, %v16246_v50 }
 0x1fb   : > { %11557 = vmatmul.msk.bf16.gmra.mxu3 %vm1747_vm9, %v16287_v22  ;;  %11522 = vmatmul.msk.bf16.gmra.mxu1 %vm1747_vm9, %v16277_v51 }
 0x1fe   : > { %v1884_v34 = vpop.f32.mrf.mxu0  ;;  %v2557_v3 = vpop.f32.mrf.mxu3 }
 0x1ff   : > { %v2105_v45 = vadd.f32 %v2104_v41, %v1884_v34  ;;  %v16649_v31 = vadd.f32 %v2557_v3, %v2461_v32 }
 0x200   : > { %v2425_v20 = vpop.f32.mrf.mxu2  ;;  %v2109_v38 = vpop.f32.mrf.mxu1 }
 0x201   : > { %v2462_v36 = vadd.f32 %v2425_v20, %v2105_v45 }
 0x205   : > { %11542 = vmatmul.msk.bf16.gmra.mxu2 %vm1747_vm9, %v15093_v29 }
 0x206   : > { %v1887_v55 = vpop.f32.mrf.mxu0  ;;  %v2559_v33 = vpop.f32.mrf.mxu3 }
 0x207   : > { %v2108_v50 = vadd.f32 %v2107_v12, %v1887_v55  ;;  %v16652_v39 = vadd.f32 %v2559_v33, %v2462_v36  ;;  %v15094_v36 = vld [vmem:[#allocation2 + $0x78] sm:$0xff] }
 0x208   : > { %v2428_v40 = vpop.f32.mrf.mxu2  ;;  %v2783_v41 = vpop.f32.mrf.mxu1 }
 0x209   : > { %v2463_v61 = vadd.f32 %v2428_v40, %v2108_v50  ;;  %11505 = vmatmul.msk.bf16.gmra.mxu0 %vm1747_vm9, %v16287_v22  ;;  %v2035_v22 = vadd.f32 %v16279_v62, %v16305_v56  ;;  %v18565_v62 = vld [vmem:[#allocation46_spill] sm:$0xff] }
 0x20b   : > { %11558 = vmatmul.msk.bf16.gmra.mxu3 %vm1747_vm9, %v16321_v48  ;;  %11523 = vmatmul.msk.bf16.gmra.mxu1 %vm1747_vm9, %v16318_v23 }
 0x20e   : > { %v1889_v37 = vpop.f32.mrf.mxu0  ;;  %v2562_v45 = vpop.f32.mrf.mxu3 }
 0x20f   : > { %v2110_v32 = vadd.f32 %v2109_v38, %v1889_v37  ;;  %v16660_v20 = vadd.f32 %v2562_v45, %v2463_v61  ;;  %v2434_v38 = vadd.f32 %v16313_v63, %v2035_v22 }
 0x210   : > { %v2430_v34 = vpop.f32.mrf.mxu2  ;;  %v2785_v3 = vpop.f32.mrf.mxu1 }
 0x211   : > { %v2464_v12 = vadd.f32 %v2430_v34, %v2110_v32  ;;  %v2568_v32 = vadd.f32 %v16331_v5, %v2434_v38  ;;  %v18564_v34 = vld [vmem:[#allocation48_spill] sm:$0xff]  ;;  %v18567_v5 = vld [vmem:[#allocation47_spill] sm:$0xff] }
 0x215   : > { %11543 = vmatmul.msk.bf16.gmra.mxu2 %vm1747_vm9, %v15094_v36 }
 0x216   : > { %v2643_v29 = vpop.f32.mrf.mxu0  ;;  %v2564_v50 = vpop.f32.mrf.mxu3 }
 0x217   : > { %v2723_v55 = vadd.f32 %v2643_v29, %v16316_v7  ;;  %v16666_v23 = vadd.f32 %v2564_v50, %v2464_v12  ;;  %v18566_v29 = vld [vmem:[#allocation50_spill] sm:$0xff] }
 0x218   : > { %v2917_v40 = vpop.f32.mrf.mxu2  ;;  %v2788_v37 = vpop.f32.mrf.mxu1 }
 0x219   : > { %v2863_v33 = vadd.f32 %v2783_v41, %v2723_v55  ;;  %11506 = vmatmul.msk.bf16.gmra.mxu0 %vm1747_vm9, %v16321_v48 }
 0x21b   : > { %v2997_v61 = vadd.f32 %v2917_v40, %v2863_v33  ;;  %11559 = vmatmul.msk.bf16.gmra.mxu3 %vm1747_vm9, %v18564_v34  ;;  %11524 = vmatmul.msk.bf16.gmra.mxu1 %vm1747_vm9, %v18565_v62 }
 0x21e   : > { %v2645_v56 = vpop.f32.mrf.mxu0  ;;  %v3073_v41 = vpop.f32.mrf.mxu3 }
 0x21f   : > { %v2724_v7 = vadd.f32 %v2645_v56, %v2568_v32  ;;  %v16676_v36 = vadd.f32 %v3073_v41, %v2997_v61  ;;  %v18570_v61 = vld [vmem:[#allocation51_spill] sm:$0xff] }
 0x220   : > { %v2919_v45 = vpop.f32.mrf.mxu2  ;;  %v2790_v63 = vpop.f32.mrf.mxu1 }
 0x221   : > { %v2864_v12 = vadd.f32 %v2785_v3, %v2724_v7  ;;  %v18569_v3 = vld [vmem:[#allocation53_spill] sm:$0xff] }
 0x222   : > { %v18571_v7 = vld [vmem:[#allocation49_spill] sm:$0xff] }
 0x223   : > { %v2998_v48 = vadd.f32 %v2919_v45, %v2864_v12 }
 0x225   : > { %11544 = vmatmul.msk.bf16.gmra.mxu2 %vm1747_vm9, %v18566_v29 }
 0x226   : > { %v2648_v22 = vpop.f32.mrf.mxu0  ;;  %v3075_v50 = vpop.f32.mrf.mxu3 }
 0x227   : > { %v2725_v55 = vadd.f32 %v2648_v22, %v18567_v5  ;;  %v16683_v38 = vadd.f32 %v3075_v50, %v2998_v48 }
 0x228   : > { %v2922_v40 = vpop.f32.mrf.mxu2  ;;  %v2793_v45 = vpop.f32.mrf.mxu1 }
 0x229   : > { %v2865_v33 = vadd.f32 %v2788_v37, %v2725_v55  ;;  %11507 = vmatmul.msk.bf16.gmra.mxu0 %vm1747_vm9, %v18564_v34  ;;  %18568 = vst [vmem:[#allocation48_spill] sm:$0xff] %v16683_v38  ;;  %v18572_v34 = vld [vmem:[#allocation55_spill] sm:$0xff]  ;;  %v18573_v55 = vld [vmem:[#allocation52_spill] sm:$0xff] }
 0x22b   : > { %v2999_v32 = vadd.f32 %v2922_v40, %v2865_v33  ;;  %11560 = vmatmul.msk.bf16.gmra.mxu3 %vm1747_vm9, %v18569_v3  ;;  %11525 = vmatmul.msk.bf16.gmra.mxu1 %vm1747_vm9, %v18570_v61 }
 0x22e   : > { %v2650_v56 = vpop.f32.mrf.mxu0  ;;  %v3078_v12 = vpop.f32.mrf.mxu3 }
 0x22f   : > { %v2726_v41 = vadd.f32 %v2650_v56, %v18571_v7  ;;  %v16690_v37 = vadd.f32 %v3078_v12, %v2999_v32 }
 0x230   : > { %v2924_v29 = vpop.f32.mrf.mxu2  ;;  %v2795_v7 = vpop.f32.mrf.mxu1 }
 0x231   : > { %v2866_v22 = vadd.f32 %v2790_v63, %v2726_v41  ;;  %v18575_v63 = vld [vmem:[#allocation57_spill] sm:$0xff]  ;;  %v18576_v41 = vld [vmem:[#allocation54_spill] sm:$0xff] }
 0x233   : > { %v3000_v5 = vadd.f32 %v2924_v29, %v2866_v22 }
 0x235   : > { %11545 = vmatmul.msk.bf16.gmra.mxu2 %vm1747_vm9, %v18572_v34 }
 0x236   : > { %v2653_v48 = vpop.f32.mrf.mxu0  ;;  %v3080_v40 = vpop.f32.mrf.mxu3 }
 0x237   : > { %v2727_v50 = vadd.f32 %v2653_v48, %v18573_v55  ;;  %v16697_v56 = vadd.f32 %v3080_v40, %v3000_v5  ;;  %v18577_v5 = vld [vmem:[#allocation58_spill] sm:$0xff]  ;;  %v1088_v55 = vrot.slane %v16493_v14, 4 }
 0x238   : > { %v2927_v33 = vpop.f32.mrf.mxu2 }
 0x239   : > { %v2867_v38 = vadd.f32 %v2793_v45, %v2727_v50  ;;  %11508 = vmatmul.msk.bf16.gmra.mxu0 %vm1747_vm9, %v18569_v3  ;;  %18574 = vst [vmem:[#allocation46_spill] sm:$0xff] %v16697_v56  ;;  %v2798_v3 = vpop.f32.mrf.mxu1  ;;  %v18578_v50 = vld [vmem:[#allocation56_spill] sm:$0xff] }
 0x23b   : > { %v3001_v61 = vadd.f32 %v2927_v33, %v2867_v38  ;;  %11561 = vmatmul.msk.bf16.gmra.mxu3 %vm1747_vm9, %v16453_v6  ;;  %11526 = vmatmul.msk.bf16.gmra.mxu1 %vm1747_vm9, %v18575_v63 }
 0x23e   : > { %v2655_v32 = vpop.f32.mrf.mxu0  ;;  %v3083_v29 = vpop.f32.mrf.mxu3 }
 0x23f   : > { %v2728_v12 = vadd.f32 %v2655_v32, %v18576_v41  ;;  %v16704_v45 = vadd.f32 %v3083_v29, %v3001_v61  ;;  %v1252_v61 = vld [vmem:[#allocation2 + $0xc8] sm:$0x1] }
 0x240   : > { %v2929_v22 = vpop.f32.mrf.mxu2 }
 0x241   : > { %v2868_v34 = vadd.f32 %v2795_v7, %v2728_v12  ;;  %v1253_v12 = vsel %vm15998_vm4, %v1088_v55, %v1252_v61  ;;  %v2800_v29 = vpop.f32.mrf.mxu1  ;;  %v1304_v61 = vld [vmem:[#allocation2 + $0xc4] sm:$0xf]  ;;  %vm16974_vm4 = vmand %vm4003_vm2, %vm814_vm12 }
 0x242   : > { %1254 = vst [vmem:[#allocation2 + $0xc8] sm:$0x1] %v1253_v12  ;;  %v2609_v41 = vshll.u32 %v1304_v61, 16  ;;  %v2613_v12 = vshrl.u32 %v1304_v61, 16 }
 0x243   : > { %v3002_v48 = vadd.f32 %v2929_v22, %v2868_v34  ;;  %v18580_v22 = vld [vmem:[#allocation59_spill] sm:$0xff] }
 0x245   : > { %11546 = vmatmul.msk.bf16.gmra.mxu2 %vm1747_vm9, %v18577_v5 }
 0x246   : > { %v2658_v38 = vpop.f32.mrf.mxu0  ;;  %v3085_v33 = vpop.f32.mrf.mxu3 }
 0x247   : > { %v2729_v40 = vadd.f32 %v2658_v38, %v18578_v50  ;;  %v16712_v32 = vadd.f32 %v3085_v33, %v3002_v48  ;;  %v1303_v33 = vld [vmem:[#allocation2 + $0xc0] sm:$0xf] }
 0x248   : > { %v2932_v63 = vpop.f32.mrf.mxu2 }
 0x249   : > { %v2869_v56 = vadd.f32 %v2798_v3, %v2729_v40  ;;  %11509 = vmatmul.msk.bf16.gmra.mxu0 %vm1747_vm9, %v16453_v6 }
 0x24b   : > { %v3003_v7 = vadd.f32 %v2932_v63, %v2869_v56  ;;  %11562 = vmatmul.msk.bf16.gmra.mxu3 %vm1747_vm9, %v16495_v54  ;;  %11527 = vmatmul.msk.bf16.gmra.mxu1 %vm1747_vm9, %v16489_v19 }
 0x24e   : > { %v2660_v14 = vpop.f32.mrf.mxu0  ;;  %v3088_v3 = vpop.f32.mrf.mxu3 }
 0x24f   : > { %v2730_v34 = vadd.f32 %v2660_v14, %v18580_v22  ;;  %v16721_v5 = vadd.f32 %v3088_v3, %v3003_v7  ;;  %v2603_v7 = vshll.u32 %v1303_v33, 16  ;;  %v2615_v22 = vrot.slane %v2613_v12, 4  ;;  %v1305_v3 = vld [vmem:[#allocation2 + $0xc8] sm:$0x1]  ;;  %v16750_v12 = vld [vmem:[#allocation2 + $0xcc] sm:$0xf] }
 0x250   : > { %v2934_v6 = vpop.f32.mrf.mxu2  ;;  %18581 = vst [vmem:[#allocation50_spill] sm:$0xff] %v16750_v12 }
 0x251   : > { %v2870_v48 = vadd.f32 %v2800_v29, %v2730_v34  ;;  %v2605_v14 = vrot.slane %v2603_v7, 5  ;;  %v2611_v29 = vrot.slane %v2609_v41, 5  ;;  %v11514_v7 = vrot.slane %v1303_v33, 9 }
 0x252   : > { %v2761_v41 = vrot.slane %v1305_v3, 5 }
 0x253   : > { %v3004_v56 = vadd.f32 %v2934_v6, %v2870_v48  ;;  %v2616_v48 = vor.u32 %v2615_v22, %v2611_v29  ;;  %v3030_v22 = vshrl.u32 %v16750_v12, 16 }
 0x255   : > { %11547 = vmatmul.msk.bf16.gmra.mxu2 %vm1747_vm9, %v16514_v49 }
 0x256   : > { %v2663_v63 = vpop.f32.mrf.mxu0  ;;  %v3090_v55 = vpop.f32.mrf.mxu3 }
 0x257   : > { %v16726_v38 = vadd.f32 %v2663_v63, %v16491_v58  ;;  %v16730_v50 = vadd.f32 %v3090_v55, %v3004_v56  ;;  %v2600_v58 = vshrl.u32 %v1303_v33, 16  ;;  %v2619_v56 = vshll.u32 %v1305_v3, 16 }
 0x258   : > { %v2758_v63 = vrot.slane %v1304_v61, 5  ;;  %v2617_v55 = vrot.slane %v2616_v48, 4 }
 0x259   : > { %11510 = vmatmul.msk.bf16.gmra.mxu0 %vm1747_vm9, %v16495_v54  ;;  %v2602_v54 = vrot.slane %v2600_v58, 4 }
 0x25a   : > { %v2759_v33 = vsel %vm15904_vm8, %v11514_v7, %v2758_v63  ;;  %v16774_v7 = vld [vmem:[#allocation2 + $0xd4] sm:$0x1] }
 0x25b   : > { %11563 = vmatmul.msk.bf16.gmra.mxu3 %vm1747_vm9, %v16531_v26  ;;  %11528 = vmatmul.msk.bf16.gmra.mxu1 %vm1747_vm9, %v16524_v25 }
 0x25e   : > { %v2665_v40 = vpop.f32.mrf.mxu0 }
 0x25f   : > { %v16737_v49 = vadd.f32 %v2665_v40, %v16512_v11  ;;  %v2606_v11 = vor.u32 %v2605_v14, %v2602_v54  ;;  %v2621_v40 = vrot.slane %v2619_v56, 5  ;;  %v16755_v54 = vld [vmem:[#allocation2 + $0xd0] sm:$0xf]  ;;  %v2765_v56 = vunpack.c.l.b16 %v2759_v33 }
 0x261   : > { %v2622_v14 = vsel %vm15934_vm10, %v2617_v55, %v2621_v40  ;;  %v3032_v40 = vrot.slane %v3030_v22, 4 }
 0x262   : > { %v2626_v48 = vunpack.c.l.b16 %v2622_v14  ;;  %v3049_v14 = vshll.u32 %v16774_v7, 16 }
 0x264   : > { %v3051_v33 = vrot.slane %v3049_v14, 5 }
 0x265   : > { %11548 = vmatmul.msk.bf16.gmra.mxu2 %vm1747_vm9, %v16539_v59  ;;  %v2607_v59 = vrot.slane %v2606_v11, 4  ;;  %v3043_v11 = vshrl.u32 %v16755_v54, 16 }
 0x266   : > { %v2668_v34 = vpop.f32.mrf.mxu0 }
 0x267   : > { %v16742_v6 = vadd.f32 %v2668_v34, %v16526_v0  ;;  %v2760_v0 = vrot.slane %v2758_v63, 4  ;;  %v2612_v61 = vsel %vm15934_vm10, %v2607_v59, %v2611_v29  ;;  %v3033_v34 = vshll.u32 %v16750_v12, 16 }
 0x268   : > { %v2625_v29 = vunpack.c.l.b16 %v2612_v61 }
 0x269   : > { %11511 = vmatmul.msk.bf16.gmra.mxu0 %vm1747_vm9, %v16531_v26  ;;  %v2762_v3 = vsel %vm15904_vm8, %v2760_v0, %v2761_v41 }
 0x26a   : > { %v2766_v59 = vunpack.c.l.b16 %v2762_v3  ;;  %v2627_v0 = vpack.c.b16 %v2626_v48, %v2625_v29 }
 0x26b   : > { %11564 = vmatmul.msk.bf16.gmra.mxu3 %vm1747_vm9, %v16559_v60  ;;  %11529 = vmatmul.msk.bf16.gmra.mxu1 %vm1747_vm9, %v16553_v53  ;;  %v3045_v53 = vrot.slane %v3043_v11, 4 }
 0x26c   : > { %v16778_v41 = vpack.c.b16 %v2766_v59, %v2765_v56 }
 0x26e   : > { %v2670_v58 = vpop.f32.mrf.mxu0  ;;  %18582 = vst [vmem:[#allocation47_spill] sm:$0xff] %v16778_v41 }
 0x26f   : > { %v16753_v26 = vadd.f32 %v2670_v58, %v16537_v4  ;;  %v3039_v4 = vshll.u32 %v16755_v54, 16  ;;  %v3035_v58 = vrot.slane %v3033_v34, 5 }
 0x271   : > { %v3041_v12 = vrot.slane %v3039_v4, 5 }
 0x273   : > { %v3046_v61 = vor.u32 %v3045_v53, %v3041_v12 }
 0x275   : > { %11549 = vmatmul.msk.bf16.gmra.mxu2 %vm1747_vm9, %v16565_v27  ;;  %v3036_v27 = vor.u32 %v3035_v58, %v3032_v40  ;;  %v3047_v34 = vrot.slane %v3046_v61, 4 }
 0x276   : > { %v2673_v55 = vpop.f32.mrf.mxu0 }
 0x277   : > { %v16772_v63 = vadd.f32 %v2673_v55, %v16555_v8  ;;  %v3037_v8 = vrot.slane %v3036_v27, 4  ;;  %v3052_v53 = vsel %vm15934_vm10, %v3047_v34, %v3051_v33 }
 0x278   : > { %v3056_v29 = vunpack.c.l.b16 %v3052_v53  ;;  %v16848_v53 = vpop.f32.mrf.mxu2 }
 0x279   : > { %11512 = vmatmul.msk.bf16.gmra.mxu0 %vm1747_vm9, %v16559_v60  ;;  %v14274_v60 = vld [vmem:[#allocation2 + $0xcc] sm:$0xff]  ;;  %v3042_v4 = vsel %vm15934_vm10, %v3037_v8, %v3041_v12 }
 0x27a   : > { %v3055_v11 = vunpack.c.l.b16 %v3042_v4 }
 0x27b   : > { %11565 = vmatmul.msk.bf16.gmra.mxu3 %vm1747_vm9, %v2627_v0  ;;  %11530 = vmatmul.msk.bf16.gmra.mxu1 %vm1747_vm9, %v16778_v41 }
 0x27c   : > { %v3057_v59 = vpack.c.b16 %v3056_v29, %v3055_v11  ;;  %v16853_v29 = vpop.f32.mrf.mxu1 }
 0x27e   : > { %v2675_v22 = vpop.f32.mrf.mxu0 }
 0x27f   : > { %v16785_v3 = vadd.f32 %v2675_v22, %v16563_v1 }
 0x285   : > { %11550 = vmatmul.msk.bf16.gmra.mxu2 %vm1747_vm9, %v14274_v60 }
 0x286   : > { %v2678_v48 = vpop.f32.mrf.mxu0 }
 0x287   : > { %v16793_v56 = vadd.f32 %v2678_v48, %v16571_v28  ;;  %v16862_v48 = vpop.f32.mrf.mxu2 }
 0x289   : > { %11513 = vmatmul.msk.bf16.gmra.mxu0 %vm1747_vm9, %v2627_v0 }
 0x28b   : > { %11566 = vmatmul.msk.bf16.gmra.mxu3 %vm1747_vm9, %v3057_v59 }
 0x28e   : > { %v2680_v1 = vpop.f32.mrf.mxu0 }
 0x28f   : > { %v16798_v55 = vadd.f32 %v2680_v1, %v16574_v2 }
 0x291   : > { %18583 = vst [vmem:[#allocation53_spill] sm:$0xff] %v16798_v55 }
 0x296   : > { %v2683_v12 = vpop.f32.mrf.mxu0 }
 0x297   : > { %v16801_v40 = vadd.f32 %v2683_v12, %v16582_v9  ;;  %v18601_v12 = vld [vmem:[#allocation45_spill] sm:$0xff] }
 0x299   : > { %18584 = vst [vmem:[#allocation49_spill] sm:$0xff] %v16801_v40  ;;  %11568 = vmatmul.msk.bf16.vlgmr.msra.gmra.mxu0 %vm1747_vm9, %v16063_v57 }
 0x29e   : > { %v2685_v58 = vpop.f32.mrf.mxu0 }
 0x29f   : > { %v16806_v28 = vadd.f32 %v2685_v58, %v16585_v21 }
 0x2a1   : > { %18585 = vst [vmem:[#allocation55_spill] sm:$0xff] %v16806_v28 }
 0x2a6   : > { %v2688_v27 = vpop.f32.mrf.mxu0 }
 0x2a7   : > { %v16809_v0 = vadd.f32 %v2688_v27, %v16593_v24 }
 0x2a9   : > { %18586 = vst [vmem:[#allocation52_spill] sm:$0xff] %v16809_v0  ;;  %11569 = vmatmul.msk.bf16.gmra.mxu0 %vm1747_vm9, %v16110_v13  ;;  %v14275_v0 = vld [vmem:[#allocation11] sm:$0xff] }
 0x2ae   : > { %v2690_v2 = vpop.f32.mrf.mxu0 }
 0x2af   : > { %v16814_v61 = vadd.f32 %v2690_v2, %v16596_v15  ;;  %v18591_v15 = vld [vmem:[#allocation61_spill] sm:$0xff] }
 0x2b1   : > { %18587 = vst [vmem:[#allocation54_spill] sm:$0xff] %v16814_v61 }
 0x2b6   : > { %v2693_v9 = vpop.f32.mrf.mxu0 }
 0x2b7   : > { %v16817_v14 = vadd.f32 %v2693_v9, %v16604_v43 }
 0x2b9   : > { %18588 = vst [vmem:[#allocation58_spill] sm:$0xff] %v16817_v14  ;;  %11570 = vmatmul.msk.bf16.gmra.mxu0 %vm1747_vm9, %v16142_v18  ;;  %v18594_v18 = vld [vmem:[#allocation44_spill] sm:$0xff] }
 0x2be   : > { %v2695_v57 = vpop.f32.mrf.mxu0 }
 0x2bf   : > { %v16822_v21 = vadd.f32 %v2695_v57, %v16607_v42 }
 0x2c1   : > { %18589 = vst [vmem:[#allocation56_spill] sm:$0xff] %v16822_v21 }
 0x2c6   : > { %v2698_v24 = vpop.f32.mrf.mxu0 }
 0x2c7   : > { %v16825_v22 = vadd.f32 %v2698_v24, %v16615_v30 }
 0x2c9   : > { %18590 = vst [vmem:[#allocation43_spill] sm:$0xff] %v16825_v22  ;;  %11571 = vmatmul.msk.bf16.gmra.mxu0 %vm1747_vm9, %v16179_v17 }
 0x2ce   : > { %v2700_v13 = vpop.f32.mrf.mxu0 }
 0x2cf   : > { %v16830_v8 = vadd.f32 %v2700_v13, %v18591_v15  ;;  %v18603_v13 = vmov 0  }
 0x2d0   : > { %4006 = vst.msk [vmem:[#allocation3 + $0xc] sm:$0x1] %vm4003_vm2, %v18603_v13 }
 0x2d1   : > { %18592 = vst [vmem:[#allocation59_spill] sm:$0xff] %v16830_v8  ;;  %v18607_v8 = vld [vmem:[#allocation46_spill] sm:$0xff] }
 0x2d2   : > { %4004 = vst.msk [vmem:[#allocation3 + $0x4] sm:$0x1] %vm4003_vm2, %v18603_v13 }
 0x2d3   : > { %4005 = vst.msk [vmem:[#allocation3 + $0x8] sm:$0xf] %vm4001_vm3, %v18603_v13 }
 0x2d4   : > { %4002 = vst.msk [vmem:[#allocation3] sm:$0xf] %vm4001_vm3, %v18603_v13 }
 0x2d5   : > { %4007 = vst.msk [vmem:[#allocation3 + $0x10] sm:$0xf] %vm4001_vm3, %v18603_v13 }
 0x2d6   : > { %v2703_v43 = vpop.f32.mrf.mxu0  ;;  %4008 = vst.msk [vmem:[#allocation3 + $0x14] sm:$0x1] %vm4003_vm2, %v18603_v13 }
 0x2d7   : > { %v16833_v34 = vadd.f32 %v2703_v43, %v16627_v46  ;;  %4009 = vst.msk [vmem:[#allocation3 + $0x18] sm:$0xf] %vm4001_vm3, %v18603_v13 }
 0x2d8   : > { %4010 = vst.msk [vmem:[#allocation3 + $0x1c] sm:$0x1] %vm4003_vm2, %v18603_v13 }
 0x2d9   : > { %18593 = vst [vmem:[#allocation61_spill] sm:$0xff] %v16833_v34  ;;  %11572 = vmatmul.msk.bf16.gmra.mxu0 %vm1747_vm9, %v18594_v18  ;;  %v16903_v18 = vld [vmem:[#allocation9] ss:$0 sm:$0xff] }
 0x2da   : > { %4011 = vst.msk [vmem:[#allocation3 + $0x20] sm:$0xf] %vm4001_vm3, %v18603_v13 }
 0x2db   : > { %4012 = vst.msk [vmem:[#allocation3 + $0x24] sm:$0x1] %vm4003_vm2, %v18603_v13 }
 0x2dc   : > { %4013 = vst.msk [vmem:[#allocation3 + $0x28] sm:$0xf] %vm4001_vm3, %v18603_v13 }
 0x2dd   : > { %4014 = vst.msk [vmem:[#allocation3 + $0x2c] sm:$0x1] %vm4003_vm2, %v18603_v13 }
 0x2de   : > { %v2705_v42 = vpop.f32.mrf.mxu0  ;;  %4015 = vst.msk [vmem:[#allocation3 + $0x30] sm:$0xf] %vm4001_vm3, %v18603_v13 }
 0x2df   : > { %v16838_v33 = vadd.f32 %v2705_v42, %v16630_v10  ;;  %v16857_v10 = vpop.f32.mrf.mxu3  ;;  %4016 = vst.msk [vmem:[#allocation3 + $0x34] sm:$0x1] %vm4003_vm2, %v18603_v13 }
 0x2e0   : > { %4017 = vst.msk [vmem:[#allocation3 + $0x38] sm:$0xf] %vm4001_vm3, %v18603_v13 }
 0x2e1   : > { %18595 = vst [vmem:[#allocation44_spill] sm:$0xff] %v16838_v33 }
 0x2e2   : > { %4018 = vst.msk [vmem:[#allocation3 + $0x3c] sm:$0x1] %vm4003_vm2, %v18603_v13 }
 0x2e3   : > { %4019 = vst.msk [vmem:[#allocation3 + $0x40] sm:$0xf] %vm4001_vm3, %v18603_v13 }
 0x2e4   : > { %4020 = vst.msk [vmem:[#allocation3 + $0x44] sm:$0x1] %vm4003_vm2, %v18603_v13 }
 0x2e5   : > { %4021 = vst.msk [vmem:[#allocation3 + $0x48] sm:$0xf] %vm4001_vm3, %v18603_v13 }
 0x2e6   : > { %v2708_v30 = vpop.f32.mrf.mxu0  ;;  %4022 = vst.msk [vmem:[#allocation3 + $0x4c] sm:$0x1] %vm4003_vm2, %v18603_v13  ;;  %v14279_v13 = vld [vmem:[#allocation11 + $0x20] sm:$0xff]  ;;  %vm16991_vm2 = vmand %vm4001_vm3, %vm1139_vm11  ;;  %vm4575_vm11 = vcmask 261120   ;;  %vm5567_vm3 = vsmask.f32 5392 }
 0x2e7   : > { %v16841_v60 = vadd.f32 %v2708_v30, %v16638_v52  ;;  %v16866_v59 = vpop.f32.mrf.mxu3 }
 0x2e9   : > { %18596 = vst [vmem:[#allocation62_spill] sm:$0xff] %v16841_v60  ;;  %11573 = vmatmul.msk.bf16.gmra.mxu0 %vm1747_vm9, %v16244_v44 }
 0x2ee   : > { %v2710_v17 = vpop.f32.mrf.mxu0 }
 0x2ef   : > { %v16846_v4 = vadd.f32 %v2710_v17, %v16641_v47  ;;  %v16864_v47 = vpop.f32.mrf.mxu1  ;;  %v16877_v27 = vpop.f32.mrf.mxu3 }
 0x2f1   : > { %18597 = vst [vmem:[#allocation63_spill] sm:$0xff] %v16846_v4 }
 0x2f6   : > { %v2713_v46 = vpop.f32.mrf.mxu0 }
 0x2f7   : > { %v16851_v11 = vadd.f32 %v2713_v46, %v16649_v31  ;;  %v16875_v58 = vpop.f32.mrf.mxu1 }
 0x2f9   : > { %18598 = vst [vmem:[#allocation64_spill] sm:$0xff] %v16851_v11  ;;  %11574 = vmatmul.msk.bf16.gmra.mxu0 %vm1747_vm9, %v16277_v51  ;;  %v16873_v51 = vpop.f32.mrf.mxu2 }
 0x2fe   : > { %v2715_v52 = vpop.f32.mrf.mxu0 }
 0x2ff   : > { %v16860_v44 = vadd.f32 %v2715_v52, %v16652_v39  ;;  %v16884_v57 = vpop.f32.mrf.mxu1  ;;  %v18604_v52 = vld [vmem:[#allocation48_spill] sm:$0xff] }
 0x301   : > { %18599 = vst [vmem:[#allocation65_spill] sm:$0xff] %v16860_v44  ;;  %v16882_v9 = vpop.f32.mrf.mxu2 }
 0x306   : > { %v2718_v1 = vpop.f32.mrf.mxu0 }
 0x307   : > { %v16869_v31 = vadd.f32 %v2718_v1, %v16660_v20  ;;  %v16886_v20 = vpop.f32.mrf.mxu3  ;;  %v16900_v43 = vpop.f32.mrf.mxu1 }
 0x309   : > { %18600 = vst [vmem:[#allocation66_spill] sm:$0xff] %v16869_v31  ;;  %11575 = vmatmul.msk.bf16.gmra.mxu0 %vm1747_vm9, %v18601_v12  ;;  %v16896_v15 = vpop.f32.mrf.mxu2 }
 0x30e   : > { %v2720_v39 = vpop.f32.mrf.mxu0 }
 0x30f   : > { %v16880_v2 = vadd.f32 %v2720_v39, %v16666_v23  ;;  %v16909_v42 = vpop.f32.mrf.mxu3 }
 0x311   : > { %18602 = vst [vmem:[#allocation45_spill] sm:$0xff] %v16880_v2  ;;  %v16928_v12 = vpop.f32.mrf.mxu2 }
 0x316   : > { %v3213_v24 = vpop.f32.mrf.mxu0 }
 0x319   : > { %11576 = vmatmul.msk.bf16.gmra.mxu0 %vm1747_vm9, %v18565_v62  ;;  %v3293_v62 = vadd.f32 %v3213_v24, %v16676_v36  ;;  %v18605_v24 = vld [vmem:[#allocation51_spill] sm:$0xff] }
 0x31b   : > { %v3329_v30 = vadd.f32 %v16903_v18, %v3293_v62 }
 0x31d   : > { %v3361_v46 = vmax.f32 %v3329_v30, 0.0 }
 0x31e   : > { %v3215_v23 = vpop.f32.mrf.mxu0 }
 0x31f   : > { %v3294_v1 = vadd.f32 %v3215_v23, %v18604_v52  ;;  %v16941_v23 = vpop.f32.mrf.mxu3  ;;  %v3425_v30 = vrot.slane %v3361_v46, 2 }
 0x320   : > { %18606 = vst [vmem:[#allocation48_spill] sm:$0xff] %v16941_v23 }
 0x321   : > { %v3330_v52 = vadd.f32 %v16903_v18, %v3294_v1 }
 0x323   : > { %v3362_v1 = vmax.f32 %v3330_v52, 0.0 }
 0x326   : > { %v3218_v36 = vpop.f32.mrf.mxu0 }
 0x327   : > { %v3295_v17 = vadd.f32 %v3218_v36, %v16690_v37  ;;  %v16935_v37 = vpop.f32.mrf.mxu1  ;;  %v3426_v36 = vrot.slane %v3361_v46, 4 }
 0x329   : > { %v3331_v39 = vadd.f32 %v16903_v18, %v3295_v17  ;;  %11577 = vmatmul.msk.bf16.gmra.mxu0 %vm1747_vm9, %v18605_v24  ;;  %v3427_v17 = vrot.slane %v3361_v46, 6 }
 0x32b   : > { %v3363_v62 = vmax.f32 %v3331_v39, 0.0  ;;  %v14276_v39 = vld [vmem:[#allocation11 + $0x8] sm:$0xff] }
 0x32c   : > { %4667 = vmatpush.bf16.msra.mxu2 %v14276_v39 }
 0x32d   : > { %v3431_v24 = vrot.slane %v3363_v62, 2  ;;  %v3432_v2 = vrot.slane %v3363_v62, 4  ;;  %v3433_v31 = vrot.slane %v3363_v62, 6  ;;  %v3617_v44 = vmax.f32 %v3361_v46, %v3363_v62  ;;  %v14280_v46 = vld [vmem:[#allocation11 + $0x28] sm:$0xff] }
 0x32e   : > { %v3220_v11 = vpop.f32.mrf.mxu0  ;;  %4777 = vmatpush.bf16.msra.mxu3 %v14280_v46 }
 0x32f   : > { %v3618_v4 = vmax.f32 %v3425_v30, %v3431_v24  ;;  %v3619_v60 = vmax.f32 %v3426_v36, %v3432_v2  ;;  %v3620_v33 = vmax.f32 %v3427_v17, %v3433_v31  ;;  %v11584_v34 = vrot.slane %v3617_v44, 9  ;;  %v16954_v2 = vpop.f32.mrf.mxu2  ;;  %v16956_v52 = vpop.f32.mrf.mxu1 }
 0x330   : > { %v3296_v22 = vadd.f32 %v3220_v11, %v18607_v8  ;;  %18608 = vst [vmem:[#allocation51_spill] sm:$0xff] %v16954_v2  ;;  %4668 = vmatpush.bf16.msra.mxu2 %v14275_v0  ;;  %v3428_v8 = vrot.slane %v3362_v1, 2  ;;  %v3429_v11 = vrot.slane %v3362_v1, 4  ;;  %v3430_v24 = vrot.slane %v3362_v1, 6 }
 0x331   : > { %v11585_v62 = vrot.slane %v3618_v4, 9  ;;  %v11586_v21 = vrot.slane %v3619_v60, 9  ;;  %v11587_v14 = vrot.slane %v3620_v33, 9  ;;  %v3937_v61 = vmax.f32 %v3617_v44, %v11584_v34 }
 0x332   : > { %v3332_v28 = vadd.f32 %v16903_v18, %v3296_v22  ;;  %v16958_v22 = vpop.f32.mrf.mxu3  ;;  %4778 = vmatpush.bf16.msra.mxu3 %v14279_v13 }
 0x333   : > { %v3938_v31 = vmax.f32 %v3618_v4, %v11585_v62  ;;  %v3939_v30 = vmax.f32 %v3619_v60, %v11586_v21  ;;  %v3940_v36 = vmax.f32 %v3620_v33, %v11587_v14  ;;  %v4023_v17 = vpack.c.bf16 %v3937_v61, %v3937_v61  ;;  %18609 = vst [vmem:[#allocation46_spill] sm:$0xff] %v16958_v22  ;;  %v14278_v61 = vld [vmem:[#allocation11 + $0x18] sm:$0xff] }
 0x334   : > { %v3364_v39 = vmax.f32 %v3332_v28, 0.0  ;;  %4594 = vmatpush.bf16.msra.mxu1 %v14278_v61  ;;  %v18610_v22 = vld [vmem:[#allocation57_spill] sm:$0xff] }
 0x335   : > { %v4024_v34 = vpack.c.bf16 %v3938_v31, %v3938_v31  ;;  %v4025_v44 = vpack.c.bf16 %v3939_v30, %v3939_v30  ;;  %v4026_v40 = vpack.c.bf16 %v3940_v36, %v3940_v36  ;;  %v4151_v55 = vunpack.c.l.b16 %v4023_v17 }
 0x336   : > { %v3434_v46 = vrot.slane %v3364_v39, 2  ;;  %v3435_v2 = vrot.slane %v3364_v39, 4  ;;  %v3436_v4 = vrot.slane %v3364_v39, 6  ;;  %v3621_v21 = vmax.f32 %v3362_v1, %v3364_v39  ;;  %v3223_v14 = vpop.f32.mrf.mxu0 }
 0x337   : > { %v4152_v0 = vunpack.c.l.b16 %v4024_v34  ;;  %v4153_v33 = vunpack.c.l.b16 %v4025_v44  ;;  %v4154_v60 = vunpack.c.l.b16 %v4026_v40  ;;  %v4215_v30 = vrot.slane %v4151_v55, 7 }
 0x338   : > { %v3622_v62 = vmax.f32 %v3428_v8, %v3434_v46  ;;  %v3623_v28 = vmax.f32 %v3429_v11, %v3435_v2  ;;  %v3624_v23 = vmax.f32 %v3430_v24, %v3436_v4  ;;  %v11588_v31 = vrot.slane %v3621_v21, 9  ;;  %v16964_v24 = vpop.f32.mrf.mxu2  ;;  %v16967_v4 = vpop.f32.mrf.mxu1 }
 0x339   : > { %v4216_v36 = vrot.slane %v4152_v0, 6  ;;  %v4219_v17 = vrot.slane %v4153_v33, 5  ;;  %11578 = vmatmul.msk.bf16.gmra.mxu0 %vm1747_vm9, %v18610_v22  ;;  %v4222_v44 = vrot.slane %v4154_v60, 4  ;;  %18611 = vst [vmem:[#allocation57_spill] sm:$0xff] %v16964_v24 }
 0x33a   : > { %v11589_v1 = vrot.slane %v3622_v62, 9  ;;  %v11590_v39 = vrot.slane %v3623_v28, 9  ;;  %v11591_v41 = vrot.slane %v3624_v23, 9  ;;  %v3941_v13 = vmax.f32 %v3621_v21, %v11588_v31  ;;  %18612 = vst [vmem:[#allocation67_spill] sm:$0xff] %v16967_v4  ;;  %v16969_v31 = vpop.f32.mrf.mxu3 }
 0x33b   : > { %v4218_v34 = vsel %vm4217_vm5, %v4216_v36, %v4215_v30  ;;  %18613 = vst [vmem:[#allocation68_spill] sm:$0xff] %v16969_v31 }
 0x33c   : > { %v4221_v40 = vsel %vm4220_vm6, %v4219_v17, %v4218_v34  ;;  %v3942_v2 = vmax.f32 %v3622_v62, %v11589_v1  ;;  %v3943_v8 = vmax.f32 %v3623_v28, %v11590_v39  ;;  %v3944_v11 = vmax.f32 %v3624_v23, %v11591_v41  ;;  %v14277_v23 = vld [vmem:[#allocation11 + $0x10] sm:$0xff]  ;;  %v4365_v17 = vld [vmem:[#allocation3 + $0xc] sm:$0x1] }
 0x33d   : > { %v4224_v55 = vsel %vm4223_vm7, %v4222_v44, %v4221_v40  ;;  %v4027_v46 = vpack.c.bf16 %v3941_v13, %v3941_v13  ;;  %v3297_v41 = vadd.f32 %v3223_v14, %v16704_v45  ;;  %4595 = vmatpush.bf16.msra.mxu1 %v14277_v23  ;;  %v16979_v44 = vld [vmem:[#allocation3] sm:$0xf] }
 0x33e   : > { %v4028_v22 = vpack.c.bf16 %v3942_v2, %v3942_v2  ;;  %v4029_v61 = vpack.c.bf16 %v3943_v8, %v3943_v8  ;;  %v4030_v0 = vpack.c.bf16 %v3944_v11, %v3944_v11  ;;  %v3225_v33 = vpop.f32.mrf.mxu0  ;;  %v4411_v8 = vld [vmem:[#allocation3 + $0x4] sm:$0x1]  ;;  %v2871_v11 = vadd.f32 %v16853_v29, %v16726_v38 }
 0x33f   : > { %v4155_v21 = vunpack.c.l.b16 %v4027_v46  ;;  %v3333_v40 = vadd.f32 %v16903_v18, %v3297_v41  ;;  %v3298_v2 = vadd.f32 %v3225_v33, %v16712_v32  ;;  %v4438_v32 = vshll.u32 %v16979_v44, 16 }
 0x340   : > { %v4156_v60 = vunpack.c.l.b16 %v4028_v22  ;;  %v4157_v30 = vunpack.c.l.b16 %v4029_v61  ;;  %v4158_v62 = vunpack.c.l.b16 %v4030_v0  ;;  %v4360_v22 = vld [vmem:[#allocation3 + $0x8] sm:$0xf]  ;;  %v16997_v33 = vpop.f32.mrf.mxu2  ;;  %v11672_v29 = vrot.slane %v16979_v44, 9 }
 0x341   : > { %v4225_v28 = vrot.slane %v4155_v21, 3  ;;  %v4435_v21 = vshrl.u32 %v16979_v44, 16  ;;  %18618 = vst [vmem:[#allocation69_spill] sm:$0xff] %v16997_v33  ;;  %v3365_v41 = vmax.f32 %v3333_v40, 0.0  ;;  %v3334_v23 = vadd.f32 %v16903_v18, %v3298_v2 }
 0x342   : > { %v4228_v1 = vrot.slane %v4156_v60, 2  ;;  %v4231_v39 = vrot.slane %v4157_v30, 1  ;;  %v4326_v13 = vpack.c.b16 %v4158_v62, %v4158_v62  ;;  %v4700_v60 = vrot.slane %v4411_v8, 5  ;;  %v17001_v30 = vpop.f32.mrf.mxu1 }
 0x343   : > { %v4227_v34 = vsel %vm4226_vm14, %v4225_v28, %v4224_v55  ;;  %18619 = vst [vmem:[#allocation70_spill] sm:$0xff] %v17001_v30  ;;  %v3005_v28 = vadd.f32 %v16848_v53, %v2871_v11  ;;  %v4625_v53 = vunpack.c.l.b16 %v16979_v44  ;;  %v3438_v2 = vrot.slane %v3365_v41, 4 }
 0x344   : > { %v4230_v45 = vsel %vm4229_vm15, %v4228_v1, %v4227_v34  ;;  %v4366_v14 = vsel %vm16974_vm4, %v4326_v13, %v4365_v17  ;;  %v17014_v1 = vpop.f32.mrf.mxu3  ;;  %v4440_v13 = vrot.slane %v4438_v32, 5  ;;  %v4444_v34 = vshll.u32 %v4411_v8, 16 }
 0x345   : > { %v4233_v46 = vsel %vm4232_vm13, %v4231_v39, %v4230_v45  ;;  %4367 = vst [vmem:[#allocation3 + $0xc] sm:$0x1] %v4366_v14  ;;  %v4437_v39 = vrot.slane %v4435_v21, 4  ;;  %v17017_v45 = vadd.f32 %v16857_v10, %v3005_v28  ;;  %v17022_v40 = vsel %vm15904_vm8, %v11672_v29, %v4700_v60 }
 0x346   : > { %v4325_v61 = vpack.c.b16 %v4233_v46, %v4233_v46  ;;  %v3228_v0 = vpop.f32.mrf.mxu0  ;;  %18620 = vst [vmem:[#allocation71_spill] sm:$0xff] %v17014_v1  ;;  %v3439_v11 = vrot.slane %v3365_v41, 6  ;;  %v17025_v21 = vrot.slane %v4444_v34, 5 }
 0x347   : > { %v3299_v38 = vadd.f32 %v3228_v0, %v16721_v5  ;;  %v17012_v5 = vadd.f32 %v16864_v47, %v16737_v49  ;;  %v3366_v49 = vmax.f32 %v3334_v23, 0.0  ;;  %v4441_v8 = vor.u32 %v4440_v13, %v4437_v39 }
 0x348   : > { %v4361_v62 = vsel %vm16991_vm2, %v4325_v61, %v4360_v22  ;;  %v17030_v1 = vpop.f32.mrf.mxu2 }
 0x349   : > { %4362 = vst [vmem:[#allocation3 + $0x8] sm:$0xf] %v4361_v62  ;;  %v3335_v17 = vadd.f32 %v16903_v18, %v3299_v38  ;;  %11579 = vmatmul.msk.bf16.gmra.mxu0 %vm1747_vm9, %v16489_v19  ;;  %v3437_v19 = vrot.slane %v3365_v41, 2  ;;  %v3440_v60 = vrot.slane %v3366_v49, 2  ;;  %v3441_v62 = vrot.slane %v3366_v49, 4 }
 0x34a   : > { %v3442_v28 = vrot.slane %v3366_v49, 6  ;;  %18621 = vst [vmem:[#allocation72_spill] sm:$0xff] %v17030_v1  ;;  %v17034_v13 = vpop.f32.mrf.mxu1 }
 0x34b   : > { %v3367_v14 = vmax.f32 %v3335_v17, 0.0  ;;  %18622 = vst [vmem:[#allocation73_spill] sm:$0xff] %v17034_v13 }
 0x34c   : > { %v17032_v39 = vld [vmem:[#allocation3 + $0xc] sm:$0x1] }
 0x34d   : > { %v3443_v47 = vrot.slane %v3367_v14, 2  ;;  %v3444_v46 = vrot.slane %v3367_v14, 4  ;;  %v3445_v22 = vrot.slane %v3367_v14, 6  ;;  %v3625_v61 = vmax.f32 %v3365_v41, %v3367_v14 }
 0x34e   : > { %v3230_v0 = vpop.f32.mrf.mxu0 }
 0x34f   : > { %v3626_v44 = vmax.f32 %v3437_v19, %v3443_v47  ;;  %v3627_v32 = vmax.f32 %v3438_v2, %v3444_v46  ;;  %v3628_v38 = vmax.f32 %v3439_v11, %v3445_v22  ;;  %v11592_v29 = vrot.slane %v3625_v61, 9 }
 0x350   : > { %v3300_v23 = vadd.f32 %v3230_v0, %v16730_v50  ;;  %v17028_v17 = vld [vmem:[#allocation3 + $0x8] sm:$0xf]  ;;  %v17039_v11 = vrot.slane %v4441_v8, 4  ;;  %v17041_v0 = vpop.f32.mrf.mxu3 }
 0x351   : > { %v11593_v41 = vrot.slane %v3626_v44, 9  ;;  %v11594_v14 = vrot.slane %v3627_v32, 9  ;;  %v11595_v33 = vrot.slane %v3628_v38, 9  ;;  %v3945_v10 = vmax.f32 %v3625_v61, %v11592_v29 }
 0x352   : > { %v3336_v34 = vadd.f32 %v16903_v18, %v3300_v23  ;;  %v18504_v19 = vunpack.c.l.b16 %v17028_v17  ;;  %v11673_v2 = vrot.slane %v17028_v17, 9  ;;  %v4704_v29 = vrot.slane %v17032_v39, 5 }
 0x353   : > { %v3946_v50 = vmax.f32 %v3626_v44, %v11593_v41  ;;  %v3947_v47 = vmax.f32 %v3627_v32, %v11594_v14  ;;  %v3948_v46 = vmax.f32 %v3628_v38, %v11595_v33  ;;  %v4031_v22 = vpack.c.bf16 %v3945_v10, %v3945_v10 }
 0x354   : > { %v3368_v1 = vmax.f32 %v3336_v34, 0.0  ;;  %v4633_v61 = vpack.c.b16 %v18504_v19, %v4625_v53  ;;  %v4449_v23 = vshrl.u32 %v17028_v17, 16  ;;  %v17050_v53 = vsel %vm15904_vm8, %v11673_v2, %v4704_v29 }
 0x355   : > { %v4032_v13 = vpack.c.bf16 %v3946_v50, %v3946_v50  ;;  %v4033_v31 = vpack.c.bf16 %v3947_v47, %v3947_v47  ;;  %v4034_v24 = vpack.c.bf16 %v3948_v46, %v3948_v46  ;;  %v4159_v30 = vunpack.c.l.b16 %v4031_v22 }
 0x356   : > { %v3446_v8 = vrot.slane %v3368_v1, 2  ;;  %v3447_v4 = vrot.slane %v3368_v1, 4  ;;  %v3448_v44 = vrot.slane %v3368_v1, 6  ;;  %v3629_v32 = vmax.f32 %v3366_v49, %v3368_v1  ;;  %11668 = vmatmul.msk.bf16.vlgmr.msra.gmra.mxu2 %vm4575_vm11, %v4633_v61  ;;  %v3233_v33 = vpop.f32.mrf.mxu0 }
 0x357   : > { %v4160_v10 = vunpack.c.l.b16 %v4032_v13  ;;  %v4161_v38 = vunpack.c.l.b16 %v4033_v31  ;;  %v4162_v41 = vunpack.c.l.b16 %v4034_v24  ;;  %v4234_v46 = vrot.slane %v4159_v30, 7  ;;  %v17054_v24 = vpop.f32.mrf.mxu2  ;;  %v17059_v30 = vpop.f32.mrf.mxu1 }
 0x358   : > { %v3630_v14 = vmax.f32 %v3440_v60, %v3446_v8  ;;  %v3631_v34 = vmax.f32 %v3441_v62, %v3447_v4  ;;  %v3632_v50 = vmax.f32 %v3442_v28, %v3448_v44  ;;  %v11596_v47 = vrot.slane %v3629_v32, 9  ;;  %18623 = vst [vmem:[#allocation74_spill] sm:$0xff] %v17054_v24 }
 0x359   : > { %v4235_v22 = vrot.slane %v4160_v10, 6  ;;  %v4237_v19 = vrot.slane %v4161_v38, 5  ;;  %11580 = vmatmul.msk.bf16.gmra.mxu0 %vm1747_vm9, %v16524_v25  ;;  %v4451_v1 = vrot.slane %v4449_v23, 4  ;;  %v4239_v29 = vrot.slane %v4162_v41, 4  ;;  %v17068_v41 = vpop.f32.mrf.mxu3 }
 0x35a   : > { %v11597_v49 = vrot.slane %v3630_v14, 9  ;;  %v11598_v61 = vrot.slane %v3631_v34, 9  ;;  %v11599_v13 = vrot.slane %v3632_v50, 9  ;;  %v3949_v31 = vmax.f32 %v3629_v32, %v11596_v47 }
 0x35b   : > { %v4236_v2 = vsel %vm4217_vm5, %v4235_v22, %v4234_v46  ;;  %v4736_v4 = vunpack.c.l.b16 %v17050_v53  ;;  %v4452_v60 = vshll.u32 %v17028_v17, 16  ;;  %v18624_v32 = vunpack.c.l.b16 %v17022_v40 }
 0x35c   : > { %v4238_v62 = vsel %vm4220_vm6, %v4237_v19, %v4236_v2  ;;  %v3950_v28 = vmax.f32 %v3630_v14, %v11597_v49  ;;  %v3951_v25 = vmax.f32 %v3631_v34, %v11598_v61  ;;  %v3952_v23 = vmax.f32 %v3632_v50, %v11599_v13 }
 0x35d   : > { %v4240_v8 = vsel %vm4223_vm7, %v4239_v29, %v4238_v62  ;;  %v4035_v44 = vpack.c.bf16 %v3949_v31, %v3949_v31  ;;  %v4743_v10 = vpack.c.b16 %v4736_v4, %v18624_v32  ;;  %v4458_v38 = vshll.u32 %v17032_v39, 16  ;;  %v4371_v29 = vld [vmem:[#allocation3 + $0x14] sm:$0x1] }
 0x35e   : > { %v4036_v47 = vpack.c.bf16 %v3950_v28, %v3950_v28  ;;  %v4037_v46 = vpack.c.bf16 %v3951_v25, %v3951_v25  ;;  %v4038_v22 = vpack.c.bf16 %v3952_v23, %v3952_v23  ;;  %v4454_v24 = vrot.slane %v4452_v60, 5  ;;  %v3235_v19 = vpop.f32.mrf.mxu0 }
 0x35f   : > { %v3006_v14 = vadd.f32 %v16862_v48, %v17012_v5  ;;  %v2873_v34 = vadd.f32 %v16875_v58, %v16742_v6  ;;  %v4163_v50 = vunpack.c.l.b16 %v4035_v44  ;;  %11688 = vmatmul.msk.bf16.vlgmr.msra.gmra.mxu3 %vm4575_vm11, %v4743_v10  ;;  %v4447_v40 = vsel %vm15934_vm10, %v17039_v11, %v17025_v21 }
 0x360   : > { %v4164_v39 = vunpack.c.l.b16 %v4036_v47  ;;  %v4165_v49 = vunpack.c.l.b16 %v4037_v46  ;;  %v4166_v61 = vunpack.c.l.b16 %v4038_v22  ;;  %v4455_v13 = vor.u32 %v4454_v24, %v4451_v1  ;;  %v4368_v24 = vld [vmem:[#allocation3 + $0x10] sm:$0xf] }
 0x361   : > { %v3162_v31 = vadd.f32 %v16866_v59, %v3006_v14  ;;  %v4241_v2 = vrot.slane %v4163_v50, 3  ;;  %v3301_v48 = vadd.f32 %v3233_v33, %v17017_v45  ;;  %v4460_v5 = vrot.slane %v4458_v38, 5  ;;  %v17088_v45 = vpop.f32.mrf.mxu2  ;;  %v17099_v38 = vpop.f32.mrf.mxu1 }
 0x362   : > { %v4243_v6 = vrot.slane %v4164_v39, 2  ;;  %v4245_v58 = vrot.slane %v4165_v49, 1  ;;  %v4328_v60 = vpack.c.b16 %v4166_v61, %v4166_v61  ;;  %v4456_v62 = vrot.slane %v4455_v13, 4 }
 0x363   : > { %v4242_v28 = vsel %vm4226_vm14, %v4241_v2, %v4240_v8  ;;  %v4551_v25 = vunpack.c.l.b16 %v4447_v40  ;;  %v3302_v23 = vadd.f32 %v3235_v19, %v3162_v31  ;;  %v3007_v21 = vadd.f32 %v16873_v51, %v2873_v34  ;;  %v17105_v34 = vpop.f32.mrf.mxu3 }
 0x364   : > { %v4244_v11 = vsel %vm4229_vm15, %v4243_v6, %v4242_v28  ;;  %v4372_v59 = vsel %vm16974_vm4, %v4328_v60, %v4371_v29  ;;  %v4461_v1 = vsel %vm15934_vm10, %v4456_v62, %v4460_v5  ;;  %v3337_v8 = vadd.f32 %v16903_v18, %v3301_v48 }
 0x365   : > { %v4246_v33 = vsel %vm4232_vm13, %v4245_v58, %v4244_v11  ;;  %4373 = vst [vmem:[#allocation3 + $0x14] sm:$0x1] %v4372_v59  ;;  %v17092_v44 = vunpack.c.l.b16 %v4461_v1  ;;  %v2874_v51 = vadd.f32 %v16884_v57, %v16753_v26  ;;  %v3163_v32 = vadd.f32 %v16877_v27, %v3007_v21 }
 0x366   : > { %v2875_v10 = vadd.f32 %v16900_v43, %v16772_v63  ;;  %v4327_v47 = vpack.c.b16 %v4246_v33, %v4246_v33  ;;  %v3238_v46 = vpop.f32.mrf.mxu0  ;;  %v3338_v19 = vadd.f32 %v16903_v18, %v3302_v23  ;;  %v2876_v14 = vadd.f32 %v16935_v37, %v16785_v3  ;;  %v18626_v63 = vld [vmem:[#allocation60_spill] sm:$0xff] }
 0x367   : > { %18625 = vst [vmem:[#allocation75_spill] sm:$0xff] %v17092_v44  ;;  %v4559_v22 = vpack.c.b16 %v17092_v44, %v4551_v25  ;;  %v3303_v27 = vadd.f32 %v3238_v46, %v3163_v32  ;;  %v3369_v57 = vmax.f32 %v3337_v8, 0.0  ;;  %v3008_v43 = vadd.f32 %v16882_v9, %v2874_v51 }
 0x368   : > { %v4369_v26 = vsel %vm16991_vm2, %v4327_v47, %v4368_v24  ;;  %v3009_v50 = vadd.f32 %v16896_v15, %v2875_v10  ;;  %v3370_v3 = vmax.f32 %v3338_v19, 0.0  ;;  %v17120_v49 = vadd.f32 %v16928_v12, %v2876_v14  ;;  %v18627_v47 = vld [vmem:[#allocation50_spill] sm:$0xff] }
 0x369   : > { %4370 = vst [vmem:[#allocation3 + $0x10] sm:$0xf] %v4369_v26  ;;  %11656 = vmatmul.msk.bf16.vlgmr.msra.gmra.mxu1 %vm4575_vm11, %v4559_v22  ;;  %11581 = vmatmul.msk.bf16.gmra.mxu0 %vm1747_vm9, %v18626_v63  ;;  %v3339_v40 = vadd.f32 %v16903_v18, %v3303_v27  ;;  %v3164_v37 = vadd.f32 %v16886_v20, %v3008_v43  ;;  %v3449_v31 = vrot.slane %v3369_v57, 2  ;;  %v3450_v9 = vrot.slane %v3369_v57, 4  ;;  %v17131_v28 = vpop.f32.mrf.mxu1 }
 0x36a   : > { %v17117_v39 = vadd.f32 %v16909_v42, %v3009_v50  ;;  %v17124_v13 = vadd.f32 %v16956_v52, %v16793_v56  ;;  %v3451_v2 = vrot.slane %v3369_v57, 6  ;;  %v17128_v42 = vpop.f32.mrf.mxu2  ;;  %v3452_v58 = vrot.slane %v3370_v3, 2 }
 0x36b   : > { %v3371_v61 = vmax.f32 %v3339_v40, 0.0  ;;  %v3453_v12 = vrot.slane %v3370_v3, 4  ;;  %v3188_v62 = vrot.slane %v16755_v54, 5  ;;  %v3454_v11 = vrot.slane %v3370_v3, 6  ;;  %v17138_v24 = vpop.f32.mrf.mxu3 }
 0x36c   : > { %v17126_v20 = vld [vmem:[#allocation3 + $0x14] sm:$0x1]  ;;  %v11567_v46 = vrot.slane %v18627_v47, 9  ;;  %v18628_v19 = vunpack.c.l.b16 %v17028_v17 }
 0x36d   : > { %v3455_v15 = vrot.slane %v3371_v61, 2  ;;  %v3456_v29 = vrot.slane %v3371_v61, 4  ;;  %v3457_v48 = vrot.slane %v3371_v61, 6  ;;  %v3633_v5 = vmax.f32 %v3369_v57, %v3371_v61 }
 0x36e   : > { %v3240_v6 = vpop.f32.mrf.mxu0  ;;  %v4708_v33 = vrot.slane %v17126_v20, 5  ;;  %v3190_v22 = vrot.slane %v3188_v62, 4 }
 0x36f   : > { %v3304_v60 = vadd.f32 %v3240_v6, %v3164_v37  ;;  %v3634_v56 = vmax.f32 %v3449_v31, %v3455_v15  ;;  %v3635_v52 = vmax.f32 %v3450_v9, %v3456_v29  ;;  %v3636_v25 = vmax.f32 %v3451_v2, %v3457_v48 }
 0x370   : > { %v11600_v23 = vrot.slane %v3633_v5, 9  ;;  %v17133_v21 = vld [vmem:[#allocation3 + $0x10] sm:$0xf] }
 0x371   : > { %v3340_v59 = vadd.f32 %v16903_v18, %v3304_v60  ;;  %v4627_v1 = vunpack.c.l.b16 %v17133_v21  ;;  %v11601_v8 = vrot.slane %v3634_v56, 9  ;;  %v11602_v51 = vrot.slane %v3635_v52, 9 }
 0x372   : > { %v11603_v54 = vrot.slane %v3636_v25, 9  ;;  %v3953_v32 = vmax.f32 %v3633_v5, %v11600_v23 }
 0x373   : > { %v3372_v10 = vmax.f32 %v3340_v59, 0.0  ;;  %v17145_v14 = vpack.c.b16 %v4627_v1, %v18628_v19  ;;  %v3954_v26 = vmax.f32 %v3634_v56, %v11601_v8  ;;  %v3955_v27 = vmax.f32 %v3635_v52, %v11602_v51  ;;  %v17148_v52 = vpop.f32.mrf.mxu2  ;;  %v18630_v51 = vld [vmem:[#allocation47_spill] sm:$0xff] }
 0x374   : > { %v3956_v57 = vmax.f32 %v3636_v25, %v11603_v54  ;;  %v4039_v63 = vpack.c.bf16 %v3953_v32, %v3953_v32  ;;  %v3191_v56 = vrot.slane %v16774_v7, 5  ;;  %v17152_v54 = vpop.f32.mrf.mxu1  ;;  %v3189_v32 = vsel %vm15904_vm8, %v11567_v46, %v3188_v62  ;;  %v18631_v62 = vld [vmem:[#allocation48_spill] sm:$0xff] }
 0x375   : > { %18629 = vst [vmem:[#allocation60_spill] sm:$0xff] %v17145_v14  ;;  %v3458_v43 = vrot.slane %v3372_v10, 2  ;;  %v3459_v50 = vrot.slane %v3372_v10, 4  ;;  %v3460_v40 = vrot.slane %v3372_v10, 6  ;;  %v3637_v37 = vmax.f32 %v3370_v3, %v3372_v10 }
 0x376   : > { %v4040_v61 = vpack.c.bf16 %v3954_v26, %v3954_v26  ;;  %v4041_v31 = vpack.c.bf16 %v3955_v27, %v3955_v27  ;;  %v4042_v9 = vpack.c.bf16 %v3956_v57, %v3956_v57  ;;  %v4167_v2 = vunpack.c.l.b16 %v4039_v63  ;;  %v3243_v15 = vpop.f32.mrf.mxu0  ;;  %v17156_v26 = vpop.f32.mrf.mxu3 }
 0x377   : > { %v3638_v29 = vmax.f32 %v3452_v58, %v3458_v43  ;;  %v3639_v48 = vmax.f32 %v3453_v12, %v3459_v50  ;;  %v3640_v17 = vmax.f32 %v3454_v11, %v3460_v40  ;;  %v11604_v5 = vrot.slane %v3637_v37, 9 }
 0x378   : > { %v4168_v6 = vunpack.c.l.b16 %v4040_v61  ;;  %v4169_v60 = vunpack.c.l.b16 %v4041_v31  ;;  %v4170_v23 = vunpack.c.l.b16 %v4042_v9  ;;  %v4247_v58 = vrot.slane %v4167_v2, 7 }
 0x379   : > { %v11605_v25 = vrot.slane %v3638_v29, 9  ;;  %v11606_v59 = vrot.slane %v3639_v48, 9  ;;  %v11607_v8 = vrot.slane %v3640_v17, 9  ;;  %v3957_v3 = vmax.f32 %v3637_v37, %v11604_v5  ;;  %11582 = vmatmul.msk.bf16.gmra.mxu0 %vm1747_vm9, %v18630_v51 }
 0x37a   : > { %v4248_v12 = vrot.slane %v4168_v6, 6  ;;  %v4250_v11 = vrot.slane %v4169_v60, 5  ;;  %v4252_v57 = vrot.slane %v4170_v23, 4  ;;  %v3192_v63 = vsel %vm15904_vm8, %v3190_v22, %v3191_v56  ;;  %v18632_v6 = vld [vmem:[#allocation51_spill] sm:$0xff] }
 0x37b   : > { %v3958_v10 = vmax.f32 %v3638_v29, %v11605_v25  ;;  %v3959_v47 = vmax.f32 %v3639_v48, %v11606_v59  ;;  %v3960_v7 = vmax.f32 %v3640_v17, %v11607_v8  ;;  %v4043_v19 = vpack.c.bf16 %v3957_v3, %v3957_v3 }
 0x37c   : > { %v4249_v27 = vsel %vm4217_vm5, %v4248_v12, %v4247_v58  ;;  %v11674_v43 = vrot.slane %v17133_v21, 9  ;;  %v3166_v46 = vadd.f32 %v18631_v62, %v17120_v49  ;;  %v3305_v2 = vadd.f32 %v3243_v15, %v17117_v39  ;;  %v4377_v49 = vld [vmem:[#allocation3 + $0x1c] sm:$0x1]  ;;  %v17179_v12 = vpop.f32.mrf.mxu2 }
 0x37d   : > { %v4251_v50 = vsel %vm4220_vm6, %v4250_v11, %v4249_v27  ;;  %v4044_v40 = vpack.c.bf16 %v3958_v10, %v3958_v10  ;;  %v4045_v37 = vpack.c.bf16 %v3959_v47, %v3959_v47  ;;  %v4046_v61 = vpack.c.bf16 %v3960_v7, %v3960_v7  ;;  %v17186_v47 = vpop.f32.mrf.mxu1 }
 0x37e   : > { %v4253_v31 = vsel %vm4223_vm7, %v4252_v57, %v4251_v50  ;;  %v4171_v9 = vunpack.c.l.b16 %v4043_v19  ;;  %v3245_v29 = vpop.f32.mrf.mxu0  ;;  %v17171_v22 = vsel %vm15904_vm8, %v11674_v43, %v4708_v33  ;;  %v3011_v60 = vadd.f32 %v18632_v6, %v17124_v13  ;;  %v4374_v19 = vld [vmem:[#allocation3 + $0x18] sm:$0xf]  ;;  %v18635_v50 = vld [vmem:[#allocation67_spill] sm:$0xff] }
 0x37f   : > { %v4172_v48 = vunpack.c.l.b16 %v4044_v40  ;;  %v4173_v17 = vunpack.c.l.b16 %v4045_v37  ;;  %v4174_v5 = vunpack.c.l.b16 %v4046_v61  ;;  %v3195_v56 = vunpack.c.l.b16 %v3189_v32  ;;  %v18634_v43 = vld [vmem:[#allocation53_spill] sm:$0xff]  ;;  %v18636_v37 = vld [vmem:[#allocation46_spill] sm:$0xff] }
 0x380   : > { %v4254_v23 = vrot.slane %v4171_v9, 3  ;;  %v3196_v25 = vunpack.c.l.b16 %v3192_v63  ;;  %v3306_v15 = vadd.f32 %v3245_v29, %v3166_v46  ;;  %v18506_v51 = vunpack.c.l.b16 %v17171_v22  ;;  %v17198_v46 = vpop.f32.mrf.mxu3  ;;  %v18637_v29 = vld [vmem:[#allocation49_spill] sm:$0xff] }
 0x381   : > { %v4256_v59 = vrot.slane %v4172_v48, 2  ;;  %v4258_v8 = vrot.slane %v4173_v17, 1  ;;  %v4330_v39 = vpack.c.b16 %v4174_v5, %v4174_v5  ;;  %v4463_v58 = vshrl.u32 %v17133_v21, 16  ;;  %v18638_v48 = vld [vmem:[#allocation70_spill] sm:$0xff] }
 0x382   : > { %v4255_v3 = vsel %vm4226_vm14, %v4254_v23, %v4253_v31  ;;  %v4466_v33 = vshll.u32 %v17133_v21, 16  ;;  %v3341_v32 = vadd.f32 %v16903_v18, %v3305_v2  ;;  %v4472_v10 = vshll.u32 %v17126_v20, 16 }
 0x383   : > { %v4257_v13 = vsel %vm4229_vm15, %v4256_v59, %v4255_v3  ;;  %v4378_v11 = vsel %vm16974_vm4, %v4330_v39, %v4377_v49  ;;  %v17193_v27 = vpack.c.b16 %v18506_v51, %v4736_v4  ;;  %v4465_v57 = vrot.slane %v4463_v58, 4  ;;  %v18642_v58 = vld [vmem:[#allocation69_spill] sm:$0xff] }
 0x384   : > { %v4259_v7 = vsel %vm4232_vm13, %v4258_v8, %v4257_v13  ;;  %4379 = vst [vmem:[#allocation3 + $0x1c] sm:$0x1] %v4378_v11  ;;  %v4468_v63 = vrot.slane %v4466_v33, 5  ;;  %v2878_v40 = vadd.f32 %v18635_v50, %v18634_v43  ;;  %v3167_v61 = vadd.f32 %v18636_v37, %v3011_v60  ;;  %v18639_v60 = vld [vmem:[#allocation57_spill] sm:$0xff]  ;;  %v18640_v8 = vld [vmem:[#allocation68_spill] sm:$0xff]  ;;  %v18643_v50 = vld [vmem:[#allocation55_spill] sm:$0xff] }
 0x385   : > { %18633 = vst [vmem:[#allocation50_spill] sm:$0xff] %v17193_v27  ;;  %v4329_v20 = vpack.c.b16 %v4259_v7, %v4259_v7  ;;  %v3197_v62 = vpack.c.b16 %v3196_v25, %v3195_v56  ;;  %v3342_v31 = vadd.f32 %v16903_v18, %v3306_v15  ;;  %v2879_v17 = vadd.f32 %v18638_v48, %v18637_v29 }
 0x386   : > { %v3248_v9 = vpop.f32.mrf.mxu0  ;;  %v4469_v2 = vor.u32 %v4468_v63, %v4465_v57  ;;  %v3373_v5 = vmax.f32 %v3341_v32, 0.0  ;;  %v4474_v23 = vrot.slane %v4472_v10, 5  ;;  %v3012_v49 = vadd.f32 %v18639_v60, %v2878_v40  ;;  %v17218_v10 = vpop.f32.mrf.mxu2  ;;  %v18644_v40 = vld [vmem:[#allocation73_spill] sm:$0xff] }
 0x387   : > { %v4375_v53 = vsel %vm16991_vm2, %v4329_v20, %v4374_v19  ;;  %v3307_v4 = vadd.f32 %v3248_v9, %v3167_v61  ;;  %v17208_v25 = vmax.f32 %v3342_v31, 0.0  ;;  %v17216_v33 = vadd.f32 %v18642_v58, %v2879_v17  ;;  %v17226_v61 = vpop.f32.mrf.mxu1 }
 0x388   : > { %4376 = vst [vmem:[#allocation3 + $0x18] sm:$0xf] %v4375_v53  ;;  %v4470_v6 = vrot.slane %v4469_v2, 4  ;;  %v3168_v39 = vadd.f32 %v18640_v8, %v3012_v49  ;;  %v3461_v13 = vrot.slane %v3373_v5, 2  ;;  %v3462_v11 = vrot.slane %v3373_v5, 4  ;;  %v17234_v17 = vpop.f32.mrf.mxu3 }
 0x389   : > { %v3343_v56 = vadd.f32 %v16903_v18, %v3307_v4  ;;  %11583 = vmatmul.msk.bf16.gmra.mxu0 %vm1747_vm9, %v3197_v62  ;;  %v3463_v32 = vrot.slane %v3373_v5, 6  ;;  %v17224_v37 = vadd.f32 %v18644_v40, %v18643_v50  ;;  %v3464_v20 = vrot.slane %v17208_v25, 2 }
 0x38a   : > { %v4475_v59 = vsel %vm15934_vm10, %v4470_v6, %v4474_v23  ;;  %v3465_v62 = vrot.slane %v17208_v25, 4  ;;  %vm5542_vm9 = vcmask 1043458  }
 0x38b   : > { %v3375_v15 = vmax.f32 %v3343_v56, 0.0  ;;  %v17213_v3 = vunpack.c.l.b16 %v4475_v59  ;;  %v17220_v43 = vld [vmem:[#allocation3 + $0x1c] sm:$0x1] }
 0x38c   : > { %v4712_v60 = vrot.slane %v17220_v43, 5 }
 0x38d   : > { %18641 = vst [vmem:[#allocation47_spill] sm:$0xff] %v17213_v3  ;;  %v3467_v7 = vrot.slane %v3375_v15, 2  ;;  %v3468_v19 = vrot.slane %v3375_v15, 4  ;;  %v3469_v57 = vrot.slane %v3375_v15, 6  ;;  %v3641_v63 = vmax.f32 %v3373_v5, %v3375_v15 }
 0x38e   : > { %v3250_v31 = vpop.f32.mrf.mxu0  ;;  %v3466_v15 = vrot.slane %v17208_v25, 6 }
 0x38f   : > { %v3642_v2 = vmax.f32 %v3461_v13, %v3467_v7  ;;  %v3643_v53 = vmax.f32 %v3462_v11, %v3468_v19  ;;  %v3644_v4 = vmax.f32 %v3463_v32, %v3469_v57  ;;  %v11608_v29 = vrot.slane %v3641_v63, 9  ;;  %v17232_v48 = vld [vmem:[#allocation3 + $0x18] sm:$0xf] }
 0x390   : > { %v3308_v5 = vadd.f32 %v3250_v31, %v3168_v39  ;;  %v18505_v6 = vunpack.c.l.b16 %v17232_v48  ;;  %v11675_v23 = vrot.slane %v17232_v48, 9  ;;  %v4477_v21 = vshrl.u32 %v17232_v48, 16 }
 0x391   : > { %v11609_v49 = vrot.slane %v3642_v2, 9  ;;  %v11610_v56 = vrot.slane %v3643_v53, 9  ;;  %v11611_v59 = vrot.slane %v3644_v4, 9  ;;  %v3961_v8 = vmax.f32 %v3641_v63, %v11608_v29 }
 0x392   : > { %v3344_v58 = vadd.f32 %v16903_v18, %v3308_v5  ;;  %v17245_v13 = vpack.c.b16 %v18505_v6, %v4627_v1  ;;  %v17249_v39 = vsel %vm15904_vm8, %v11675_v23, %v4712_v60  ;;  %v4486_v63 = vshll.u32 %v17220_v43, 16  ;;  %v17257_v23 = vpop.f32.mrf.mxu2  ;;  %v17262_v18 = vpop.f32.mrf.mxu3 }
 0x393   : > { %v3962_v11 = vmax.f32 %v3642_v2, %v11609_v49  ;;  %v3963_v32 = vmax.f32 %v3643_v53, %v11610_v56  ;;  %v3964_v7 = vmax.f32 %v3644_v4, %v11611_v59  ;;  %v4047_v19 = vpack.c.bf16 %v3961_v8, %v3961_v8  ;;  %v17260_v8 = vpop.f32.mrf.mxu1 }
 0x394   : > { %18645 = vst [vmem:[#allocation48_spill] sm:$0xff] %v17245_v13  ;;  %v3376_v57 = vmax.f32 %v3344_v58, 0.0  ;;  %11669 = vmatmul.msk.bf16.gmra.mxu2 %vm4575_vm11, %v17245_v13  ;;  %v4480_v59 = vshll.u32 %v17232_v48, 16  ;;  %v4479_v6 = vrot.slane %v4477_v21, 4  ;;  %v18646_v13 = vunpack.c.l.b16 %v17171_v22 }
 0x395   : > { %v4048_v1 = vpack.c.bf16 %v3962_v11, %v3962_v11  ;;  %v4049_v50 = vpack.c.bf16 %v3963_v32, %v3963_v32  ;;  %v4050_v40 = vpack.c.bf16 %v3964_v7, %v3964_v7  ;;  %v4175_v31 = vunpack.c.l.b16 %v4047_v19 }
 0x396   : > { %v3470_v29 = vrot.slane %v3376_v57, 2  ;;  %v3471_v5 = vrot.slane %v3376_v57, 4  ;;  %v3472_v2 = vrot.slane %v3376_v57, 6  ;;  %v3645_v53 = vmax.f32 %v17208_v25, %v3376_v57  ;;  %v3253_v4 = vpop.f32.mrf.mxu0 }
 0x397   : > { %v4176_v60 = vunpack.c.l.b16 %v4048_v1  ;;  %v4177_v49 = vunpack.c.l.b16 %v4049_v50  ;;  %v4178_v56 = vunpack.c.l.b16 %v4050_v40  ;;  %v4260_v7 = vrot.slane %v4175_v31, 7 }
 0x398   : > { %v3646_v43 = vmax.f32 %v3464_v20, %v3470_v29  ;;  %v3647_v58 = vmax.f32 %v3465_v62, %v3471_v5  ;;  %v3648_v11 = vmax.f32 %v3466_v15, %v3472_v2  ;;  %v11612_v32 = vrot.slane %v3645_v53, 9  ;;  %v18649_v2 = vld [vmem:[#allocation71_spill] sm:$0xff] }
 0x399   : > { %v4261_v19 = vrot.slane %v4176_v60, 6  ;;  %v4263_v9 = vrot.slane %v4177_v49, 5  ;;  %v4265_v40 = vrot.slane %v4178_v56, 4  ;;  %v18647_v20 = vunpack.c.l.b16 %v17249_v39  ;;  %v18650_v56 = vld [vmem:[#allocation72_spill] sm:$0xff] }
 0x39a   : > { %v11613_v25 = vrot.slane %v3646_v43, 9  ;;  %v11614_v57 = vrot.slane %v3647_v58, 9  ;;  %v11615_v51 = vrot.slane %v3648_v11, 9  ;;  %v3965_v1 = vmax.f32 %v3645_v53, %v11612_v32 }
 0x39b   : > { %v4262_v50 = vsel %vm4217_vm5, %v4261_v19, %v4260_v7  ;;  %v17269_v62 = vpack.c.b16 %v18647_v20, %v18646_v13  ;;  %v4482_v15 = vrot.slane %v4480_v59, 5  ;;  %v3169_v60 = vadd.f32 %v18649_v2, %v17216_v33  ;;  %v17284_v20 = vpop.f32.mrf.mxu1  ;;  %v17292_v2 = vpop.f32.mrf.mxu3 }
 0x39c   : > { %v4264_v31 = vsel %vm4220_vm6, %v4263_v9, %v4262_v50  ;;  %v3966_v29 = vmax.f32 %v3646_v43, %v11613_v25  ;;  %v3967_v21 = vmax.f32 %v3647_v58, %v11614_v57  ;;  %v3968_v5 = vmax.f32 %v3648_v11, %v11615_v51  ;;  %v18651_v43 = vld [vmem:[#allocation52_spill] sm:$0xff] }
 0x39d   : > { %18648 = vst [vmem:[#allocation51_spill] sm:$0xff] %v17269_v62  ;;  %v4266_v53 = vsel %vm4223_vm7, %v4265_v40, %v4264_v31  ;;  %v4051_v49 = vpack.c.bf16 %v3965_v1, %v3965_v1  ;;  %11689 = vmatmul.msk.bf16.gmra.mxu3 %vm4575_vm11, %v17269_v62  ;;  %v4483_v22 = vor.u32 %v4482_v15, %v4479_v6  ;;  %v4488_v33 = vrot.slane %v4486_v63, 5  ;;  %v17282_v6 = vpop.f32.mrf.mxu2 }
 0x39e   : > { %v3014_v13 = vadd.f32 %v18650_v56, %v17224_v37  ;;  %v4052_v32 = vpack.c.bf16 %v3966_v29, %v3966_v29  ;;  %v4053_v59 = vpack.c.bf16 %v3967_v21, %v3967_v21  ;;  %v4054_v7 = vpack.c.bf16 %v3968_v5, %v3968_v5  ;;  %v3255_v9 = vpop.f32.mrf.mxu0  ;;  %v4383_v37 = vld [vmem:[#allocation3 + $0x24] sm:$0x1] }
 0x39f   : > { %v2881_v51 = vadd.f32 %v17059_v30, %v18651_v43  ;;  %v4179_v58 = vunpack.c.l.b16 %v4051_v49  ;;  %v3309_v11 = vadd.f32 %v3253_v4, %v3169_v60  ;;  %v4484_v1 = vrot.slane %v4483_v22, 4  ;;  %v18652_v4 = vld [vmem:[#allocation74_spill] sm:$0xff] }
 0x3a0   : > { %v4180_v19 = vunpack.c.l.b16 %v4052_v32  ;;  %v4181_v25 = vunpack.c.l.b16 %v4053_v59  ;;  %v4182_v57 = vunpack.c.l.b16 %v4054_v7  ;;  %v3170_v50 = vadd.f32 %v17041_v0, %v3014_v13  ;;  %v17297_v49 = vld [vmem:[#allocation9] ss:$0 sm:$0xff] }
 0x3a1   : > { %v4267_v40 = vrot.slane %v4179_v58, 3  ;;  %v4489_v30 = vsel %vm15934_vm10, %v4484_v1, %v4488_v33  ;;  %v3015_v63 = vadd.f32 %v18652_v4, %v2881_v51  ;;  %v3345_v22 = vadd.f32 %v17297_v49, %v3309_v11  ;;  %v4380_v59 = vld [vmem:[#allocation3 + $0x20] sm:$0xf] }
 0x3a2   : > { %v4269_v15 = vrot.slane %v4180_v19, 2  ;;  %v4271_v31 = vrot.slane %v4181_v25, 1  ;;  %v4332_v29 = vpack.c.b16 %v4182_v57, %v4182_v57  ;;  %v17290_v5 = vunpack.c.l.b16 %v4489_v30  ;;  %v18654_v51 = vld [vmem:[#allocation54_spill] sm:$0xff] }
 0x3a3   : > { %v4268_v21 = vsel %vm4226_vm14, %v4267_v40, %v4266_v53  ;;  %v3310_v56 = vadd.f32 %v3255_v9, %v3170_v50  ;;  %v3171_v13 = vadd.f32 %v17068_v41, %v3015_v63  ;;  %v2882_v58 = vadd.f32 %v17099_v38, %v18654_v51  ;;  %v18655_v25 = vld [vmem:[#allocation58_spill] sm:$0xff]  ;;  %v17319_v40 = vpop.f32.mrf.mxu1 }
 0x3a4   : > { %v4270_v0 = vsel %vm4229_vm15, %v4269_v15, %v4268_v21  ;;  %v4384_v60 = vsel %vm16974_vm4, %v4332_v29, %v4383_v37  ;;  %v17304_v53 = vpack.c.b16 %v17290_v5, %v17213_v3  ;;  %v3377_v9 = vmax.f32 %v3345_v22, 0.0  ;;  %v17327_v22 = vpop.f32.mrf.mxu3 }
 0x3a5   : > { %v4272_v32 = vsel %vm4232_vm13, %v4271_v31, %v4270_v0  ;;  %4385 = vst [vmem:[#allocation3 + $0x24] sm:$0x1] %v4384_v60  ;;  %v3346_v33 = vadd.f32 %v17297_v49, %v3310_v56  ;;  %v2883_v57 = vadd.f32 %v17131_v28, %v18655_v25  ;;  %v3016_v1 = vadd.f32 %v17088_v45, %v2882_v58  ;;  %v17317_v50 = vpop.f32.mrf.mxu2  ;;  %v18656_v28 = vld [vmem:[#allocation56_spill] sm:$0xff] }
 0x3a6   : > { %18653 = vst [vmem:[#allocation53_spill] sm:$0xff] %v17304_v53  ;;  %v4331_v7 = vpack.c.b16 %v4272_v32, %v4272_v32  ;;  %v3258_v43 = vpop.f32.mrf.mxu0  ;;  %11657 = vmatmul.msk.bf16.gmra.mxu1 %vm4575_vm11, %v17304_v53  ;;  %v3473_v37 = vrot.slane %v3377_v9, 2  ;;  %v3474_v15 = vrot.slane %v3377_v9, 4  ;;  %v3475_v31 = vrot.slane %v3377_v9, 6 }
 0x3a7   : > { %v3311_v11 = vadd.f32 %v3258_v43, %v3171_v13  ;;  %v3378_v29 = vmax.f32 %v3346_v33, 0.0  ;;  %v3172_v0 = vadd.f32 %v17105_v34, %v3016_v1  ;;  %v3017_v60 = vadd.f32 %v17128_v42, %v2883_v57 }
 0x3a8   : > { %v4381_v41 = vsel %vm16991_vm2, %v4331_v7, %v4380_v59  ;;  %v17325_v45 = vadd.f32 %v17152_v54, %v18656_v28 }
 0x3a9   : > { %4382 = vst [vmem:[#allocation3 + $0x20] sm:$0xf] %v4381_v41  ;;  %v3347_v19 = vadd.f32 %v17297_v49, %v3311_v11  ;;  %v17332_v51 = vadd.f32 %v17138_v24, %v3017_v60  ;;  %v3476_v58 = vrot.slane %v3378_v29, 2  ;;  %v3477_v34 = vrot.slane %v3378_v29, 4 }
 0x3ab   : > { %v3379_v38 = vmax.f32 %v3347_v19, 0.0  ;;  %v3478_v19 = vrot.slane %v3378_v29, 6 }
 0x3ac   : > { %v17329_v43 = vld [vmem:[#allocation3 + $0x24] sm:$0x1] }
 0x3ad   : > { %v3479_v30 = vrot.slane %v3379_v38, 2  ;;  %v3480_v4 = vrot.slane %v3379_v38, 4  ;;  %v3481_v63 = vrot.slane %v3379_v38, 6  ;;  %v3649_v21 = vmax.f32 %v3377_v9, %v3379_v38 }
 0x3ae   : > { %v3260_v56 = vpop.f32.mrf.mxu0  ;;  %v4716_v1 = vrot.slane %v17329_v43, 5 }
 0x3af   : > { %v3650_v13 = vmax.f32 %v3473_v37, %v3479_v30  ;;  %v3651_v32 = vmax.f32 %v3474_v15, %v3480_v4  ;;  %v3652_v59 = vmax.f32 %v3475_v31, %v3481_v63  ;;  %v11616_v7 = vrot.slane %v3649_v21, 9 }
 0x3b0   : > { %v3312_v11 = vadd.f32 %v3260_v56, %v3172_v0  ;;  %v17334_v42 = vld [vmem:[#allocation3 + $0x20] sm:$0xf]  ;;  %v4500_v63 = vshll.u32 %v17329_v43, 16 }
 0x3b1   : > { %v11617_v41 = vrot.slane %v3650_v13, 9  ;;  %v11618_v54 = vrot.slane %v3651_v32, 9  ;;  %v11619_v9 = vrot.slane %v3652_v59, 9  ;;  %v3969_v33 = vmax.f32 %v3649_v21, %v11616_v7  ;;  %v17345_v21 = vpop.f32.mrf.mxu2  ;;  %v17347_v7 = vpop.f32.mrf.mxu1 }
 0x3b2   : > { %v3348_v25 = vadd.f32 %v17297_v49, %v3312_v11  ;;  %v11676_v57 = vrot.slane %v17334_v42, 9  ;;  %v4491_v4 = vshrl.u32 %v17334_v42, 16 }
 0x3b3   : > { %v3970_v38 = vmax.f32 %v3650_v13, %v11617_v41  ;;  %v3971_v37 = vmax.f32 %v3651_v32, %v11618_v54  ;;  %v3972_v24 = vmax.f32 %v3652_v59, %v11619_v9  ;;  %v4055_v15 = vpack.c.bf16 %v3969_v33, %v3969_v33 }
 0x3b4   : > { %v3380_v31 = vmax.f32 %v3348_v25, 0.0  ;;  %v17341_v30 = vsel %vm15904_vm8, %v11676_v57, %v4716_v1  ;;  %v4494_v25 = vshll.u32 %v17334_v42, 16  ;;  %v17350_v57 = vpop.f32.mrf.mxu3  ;;  %v4493_v53 = vrot.slane %v4491_v4, 4 }
 0x3b5   : > { %v4056_v0 = vpack.c.bf16 %v3970_v38, %v3970_v38  ;;  %v4057_v60 = vpack.c.bf16 %v3971_v37, %v3971_v37  ;;  %v4058_v28 = vpack.c.bf16 %v3972_v24, %v3972_v24  ;;  %v4183_v56 = vunpack.c.l.b16 %v4055_v15 }
 0x3b6   : > { %v3482_v13 = vrot.slane %v3380_v31, 2  ;;  %v3483_v32 = vrot.slane %v3380_v31, 4  ;;  %v3484_v59 = vrot.slane %v3380_v31, 6  ;;  %v3653_v11 = vmax.f32 %v3378_v29, %v3380_v31  ;;  %v3263_v41 = vpop.f32.mrf.mxu0 }
 0x3b7   : > { %v4184_v54 = vunpack.c.l.b16 %v4056_v0  ;;  %v4185_v9 = vunpack.c.l.b16 %v4057_v60  ;;  %v4186_v33 = vunpack.c.l.b16 %v4058_v28  ;;  %v4273_v24 = vrot.slane %v4183_v56, 7 }
 0x3b8   : > { %v3654_v43 = vmax.f32 %v3476_v58, %v3482_v13  ;;  %v3655_v1 = vmax.f32 %v3477_v34, %v3483_v32  ;;  %v3656_v38 = vmax.f32 %v3478_v19, %v3484_v59  ;;  %v11620_v37 = vrot.slane %v3653_v11, 9 }
 0x3b9   : > { %v4274_v15 = vrot.slane %v4184_v54, 6  ;;  %v4276_v62 = vrot.slane %v4185_v9, 5  ;;  %v4278_v0 = vrot.slane %v4186_v33, 4  ;;  %v18513_v60 = vunpack.c.l.b16 %v17341_v30 }
 0x3ba   : > { %v11621_v14 = vrot.slane %v3654_v43, 9  ;;  %v11622_v27 = vrot.slane %v3655_v1, 9  ;;  %v11623_v44 = vrot.slane %v3656_v38, 9  ;;  %v3973_v29 = vmax.f32 %v3653_v11, %v11620_v37 }
 0x3bb   : > { %v4275_v31 = vsel %vm4217_vm5, %v4274_v15, %v4273_v24  ;;  %v4496_v28 = vrot.slane %v4494_v25, 5  ;;  %v4629_v4 = vunpack.c.l.b16 %v17334_v42  ;;  %v18657_v33 = vunpack.c.l.b16 %v17249_v39  ;;  %v4389_v24 = vld [vmem:[#allocation3 + $0x2c] sm:$0x1] }
 0x3bc   : > { %v4277_v3 = vsel %vm4220_vm6, %v4276_v62, %v4275_v31  ;;  %v3974_v58 = vmax.f32 %v3654_v43, %v11621_v14  ;;  %v3975_v34 = vmax.f32 %v3655_v1, %v11622_v27  ;;  %v3976_v19 = vmax.f32 %v3656_v38, %v11623_v44  ;;  %v18658_v62 = vld [vmem:[#allocation43_spill] sm:$0xff]  ;;  %v17365_v44 = vpop.f32.mrf.mxu2  ;;  %v17370_v43 = vpop.f32.mrf.mxu1 }
 0x3bd   : > { %v4279_v56 = vsel %vm4223_vm7, %v4278_v0, %v4277_v3  ;;  %v4059_v13 = vpack.c.bf16 %v3973_v29, %v3973_v29  ;;  %v4497_v32 = vor.u32 %v4496_v28, %v4493_v53  ;;  %v17361_v25 = vpack.c.b16 %v18513_v60, %v18657_v33 }
 0x3be   : > { %v4060_v59 = vpack.c.bf16 %v3974_v58, %v3974_v58  ;;  %v4061_v54 = vpack.c.bf16 %v3975_v34, %v3975_v34  ;;  %v4062_v11 = vpack.c.bf16 %v3976_v19, %v3976_v19  ;;  %v3265_v9 = vpop.f32.mrf.mxu0  ;;  %v2885_v14 = vadd.f32 %v17186_v47, %v18658_v62 }
 0x3bf   : > { %v4187_v27 = vunpack.c.l.b16 %v4059_v13  ;;  %v3313_v3 = vadd.f32 %v3263_v41, %v17332_v51  ;;  %v3018_v53 = vadd.f32 %v17148_v52, %v17325_v45  ;;  %v4498_v15 = vrot.slane %v4497_v32, 4  ;;  %v17379_v41 = vpop.f32.mrf.mxu3 }
 0x3c0   : > { %v4188_v1 = vunpack.c.l.b16 %v4060_v59  ;;  %v4189_v38 = vunpack.c.l.b16 %v4061_v54  ;;  %v4190_v39 = vunpack.c.l.b16 %v4062_v11  ;;  %v4502_v29 = vrot.slane %v4500_v63, 5  ;;  %v18660_v11 = vld [vmem:[#allocation59_spill] sm:$0xff] }
 0x3c1   : > { %v4280_v37 = vrot.slane %v4187_v27, 3  ;;  %v18659_v31 = vunpack.c.l.b16 %v17232_v48  ;;  %v3174_v51 = vadd.f32 %v17156_v26, %v3018_v53  ;;  %v3019_v28 = vadd.f32 %v17179_v12, %v2885_v14  ;;  %v4386_v12 = vld [vmem:[#allocation3 + $0x28] sm:$0xf] }
 0x3c2   : > { %v4282_v52 = vrot.slane %v4188_v1, 2  ;;  %v4284_v45 = vrot.slane %v4189_v38, 1  ;;  %v4334_v0 = vpack.c.b16 %v4190_v39, %v4190_v39  ;;  %v3349_v34 = vadd.f32 %v17297_v49, %v3313_v3 }
 0x3c3   : > { %v17376_v47 = vpack.c.b16 %v4629_v4, %v18659_v31  ;;  %v4281_v58 = vsel %vm4226_vm14, %v4280_v37, %v4279_v56  ;;  %v4503_v48 = vsel %vm15934_vm10, %v4498_v15, %v4502_v29  ;;  %v3314_v26 = vadd.f32 %v3265_v9, %v3174_v51 }
 0x3c4   : > { %v4283_v63 = vsel %vm4229_vm15, %v4282_v52, %v4281_v58  ;;  %v4390_v19 = vsel %vm16974_vm4, %v4334_v0, %v4389_v24  ;;  %v17389_v13 = vunpack.c.l.b16 %v4503_v48  ;;  %v3175_v32 = vadd.f32 %v17198_v46, %v3019_v28  ;;  %v17400_v46 = vpop.f32.mrf.mxu2  ;;  %v17403_v1 = vpop.f32.mrf.mxu1 }
 0x3c5   : > { %v4285_v59 = vsel %vm4232_vm13, %v4284_v45, %v4283_v63  ;;  %4391 = vst [vmem:[#allocation3 + $0x2c] sm:$0x1] %v4390_v19  ;;  %v2886_v33 = vadd.f32 %v17226_v61, %v18660_v11  ;;  %v3381_v27 = vmax.f32 %v3349_v34, 0.0  ;;  %v3350_v3 = vadd.f32 %v17297_v49, %v3314_v26  ;;  %v18661_v61 = vld [vmem:[#allocation61_spill] sm:$0xff] }
 0x3c6   : > { %v4333_v56 = vpack.c.b16 %v4285_v59, %v4285_v59  ;;  %v3268_v54 = vpop.f32.mrf.mxu0  ;;  %v2887_v39 = vadd.f32 %v17260_v8, %v18661_v61 }
 0x3c7   : > { %v3315_v62 = vadd.f32 %v3268_v54, %v3175_v32  ;;  %v3020_v38 = vadd.f32 %v17218_v10, %v2886_v33  ;;  %v17408_v24 = vpop.f32.mrf.mxu3  ;;  %v3485_v15 = vrot.slane %v3381_v27, 2  ;;  %v3486_v29 = vrot.slane %v3381_v27, 4 }
 0x3c8   : > { %v4387_v9 = vsel %vm16991_vm2, %v4333_v56, %v4386_v12  ;;  %v3487_v31 = vrot.slane %v3381_v27, 6  ;;  %v3382_v51 = vmax.f32 %v3350_v3, 0.0  ;;  %v17412_v8 = vadd.f32 %v17257_v23, %v2887_v39 }
 0x3c9   : > { %4388 = vst [vmem:[#allocation3 + $0x28] sm:$0xf] %v4387_v9  ;;  %v3351_v53 = vadd.f32 %v17297_v49, %v3315_v62  ;;  %v3176_v58 = vadd.f32 %v17234_v17, %v3020_v38 }
 0x3ca   : > { %v3488_v26 = vrot.slane %v3382_v51, 2  ;;  %v3489_v32 = vrot.slane %v3382_v51, 4  ;;  %v3490_v17 = vrot.slane %v3382_v51, 6 }
 0x3cb   : > { %v3383_v37 = vmax.f32 %v3351_v53, 0.0 }
 0x3cc   : > { %v17416_v62 = vld [vmem:[#allocation3 + $0x2c] sm:$0x1]  ;;  %v17421_v23 = vpop.f32.mrf.mxu2 }
 0x3cd   : > { %v3491_v52 = vrot.slane %v3383_v37, 2  ;;  %v3492_v45 = vrot.slane %v3383_v37, 4  ;;  %v3493_v0 = vrot.slane %v3383_v37, 6  ;;  %v3657_v28 = vmax.f32 %v3381_v27, %v3383_v37  ;;  %v17423_v37 = vpop.f32.mrf.mxu1 }
 0x3ce   : > { %v3270_v34 = vpop.f32.mrf.mxu0 }
 0x3cf   : > { %v3658_v48 = vmax.f32 %v3485_v15, %v3491_v52  ;;  %v3659_v63 = vmax.f32 %v3486_v29, %v3492_v45  ;;  %v3660_v10 = vmax.f32 %v3487_v31, %v3493_v0  ;;  %v11624_v19 = vrot.slane %v3657_v28, 9 }
 0x3d0   : > { %v3316_v59 = vadd.f32 %v3270_v34, %v3176_v58  ;;  %v17414_v12 = vld [vmem:[#allocation3 + $0x28] sm:$0xf]  ;;  %v4720_v31 = vrot.slane %v17416_v62, 5  ;;  %v17433_v34 = vpop.f32.mrf.mxu3 }
 0x3d1   : > { %v11625_v56 = vrot.slane %v3658_v48, 9  ;;  %v11626_v54 = vrot.slane %v3659_v63, 9  ;;  %v11627_v11 = vrot.slane %v3660_v10, 9  ;;  %v3977_v33 = vmax.f32 %v3657_v28, %v11624_v19 }
 0x3d2   : > { %v3352_v9 = vadd.f32 %v17297_v49, %v3316_v59  ;;  %v18512_v27 = vunpack.c.l.b16 %v17414_v12  ;;  %v11677_v3 = vrot.slane %v17414_v12, 9  ;;  %v4505_v52 = vshrl.u32 %v17414_v12, 16 }
 0x3d3   : > { %v3978_v53 = vmax.f32 %v3658_v48, %v11625_v56  ;;  %v3979_v38 = vmax.f32 %v3659_v63, %v11626_v54  ;;  %v3980_v61 = vmax.f32 %v3660_v10, %v11627_v11  ;;  %v4063_v39 = vpack.c.bf16 %v3977_v33, %v3977_v33 }
 0x3d4   : > { %v3384_v15 = vmax.f32 %v3352_v9, 0.0  ;;  %v17429_v29 = vpack.c.b16 %v18512_v27, %v4629_v4  ;;  %v17439_v54 = vsel %vm15904_vm8, %v11677_v3, %v4720_v31  ;;  %v4507_v14 = vrot.slane %v4505_v52, 4 }
 0x3d5   : > { %v4064_v45 = vpack.c.bf16 %v3978_v53, %v3978_v53  ;;  %v4065_v0 = vpack.c.bf16 %v3979_v38, %v3979_v38  ;;  %v4066_v28 = vpack.c.bf16 %v3980_v61, %v3980_v61  ;;  %v4191_v58 = vunpack.c.l.b16 %v4063_v39 }
 0x3d6   : > { %v3494_v48 = vrot.slane %v3384_v15, 2  ;;  %v3495_v63 = vrot.slane %v3384_v15, 4  ;;  %v3496_v10 = vrot.slane %v3384_v15, 6  ;;  %v3661_v19 = vmax.f32 %v3382_v51, %v3384_v15  ;;  %11670 = vmatmul.msk.bf16.gmra.mxu2 %vm4575_vm11, %v17429_v29  ;;  %v3273_v42 = vpop.f32.mrf.mxu0 }
 0x3d7   : > { %v4192_v4 = vunpack.c.l.b16 %v4064_v45  ;;  %v4193_v59 = vunpack.c.l.b16 %v4065_v0  ;;  %v4194_v56 = vunpack.c.l.b16 %v4066_v28  ;;  %v4286_v38 = vrot.slane %v4191_v58, 7  ;;  %v17445_v58 = vpop.f32.mrf.mxu2 }
 0x3d8   : > { %v3662_v11 = vmax.f32 %v3488_v26, %v3494_v48  ;;  %v3663_v33 = vmax.f32 %v3489_v32, %v3495_v63  ;;  %v3664_v9 = vmax.f32 %v3490_v17, %v3496_v10  ;;  %v11628_v53 = vrot.slane %v3661_v19, 9 }
 0x3d9   : > { %v4287_v61 = vrot.slane %v4192_v4, 6  ;;  %v4289_v39 = vrot.slane %v4193_v59, 5  ;;  %v4291_v0 = vrot.slane %v4194_v56, 4  ;;  %v4740_v28 = vunpack.c.l.b16 %v17439_v54  ;;  %v17455_v4 = vpop.f32.mrf.mxu1  ;;  %v14291_v54 = vld [vmem:[#allocation11 + $0x80] sm:$0xff] }
 0x3da   : > { %v11629_v51 = vrot.slane %v3662_v11, 9  ;;  %v11630_v15 = vrot.slane %v3663_v33, 9  ;;  %v11631_v27 = vrot.slane %v3664_v9, 9  ;;  %v3981_v60 = vmax.f32 %v3661_v19, %v11628_v53 }
 0x3db   : > { %v4288_v45 = vsel %vm4217_vm5, %v4287_v61, %v4286_v38  ;;  %v4508_v3 = vshll.u32 %v17414_v12, 16  ;;  %v18662_v63 = vunpack.c.l.b16 %v17341_v30  ;;  %v4514_v19 = vshll.u32 %v17416_v62, 16  ;;  %v18664_v30 = vld [vmem:[#allocation62_spill] sm:$0xff]  ;;  %v17465_v62 = vpop.f32.mrf.mxu3 }
 0x3dc   : > { %v4290_v26 = vsel %vm4220_vm6, %v4289_v39, %v4288_v45  ;;  %v3982_v32 = vmax.f32 %v3662_v11, %v11629_v51  ;;  %v3983_v17 = vmax.f32 %v3663_v33, %v11630_v15  ;;  %v3984_v31 = vmax.f32 %v3664_v9, %v11631_v27  ;;  %v18663_v9 = vld [vmem:[#allocation44_spill] sm:$0xff] }
 0x3dd   : > { %v4292_v52 = vsel %vm4223_vm7, %v4291_v0, %v4290_v26  ;;  %v4067_v48 = vpack.c.bf16 %v3981_v60, %v3981_v60  ;;  %v17452_v10 = vpack.c.b16 %v4740_v28, %v18662_v63  ;;  %v4510_v33 = vrot.slane %v4508_v3, 5  ;;  %v4395_v3 = vld [vmem:[#allocation3 + $0x34] sm:$0x1] }
 0x3de   : > { %v4068_v59 = vpack.c.bf16 %v3982_v32, %v3982_v32  ;;  %v4069_v56 = vpack.c.bf16 %v3983_v17, %v3983_v17  ;;  %v4070_v11 = vpack.c.bf16 %v3984_v31, %v3984_v31  ;;  %v3275_v27 = vpop.f32.mrf.mxu0  ;;  %v2888_v53 = vadd.f32 %v17284_v20, %v18663_v9 }
 0x3df   : > { %v3177_v60 = vadd.f32 %v17262_v18, %v17412_v8  ;;  %v2889_v38 = vadd.f32 %v17319_v40, %v18664_v30  ;;  %v4195_v61 = vunpack.c.l.b16 %v4067_v48  ;;  %11690 = vmatmul.msk.bf16.gmra.mxu3 %vm4575_vm11, %v17452_v10  ;;  %v4511_v45 = vor.u32 %v4510_v33, %v4507_v14 }
 0x3e0   : > { %v4196_v39 = vunpack.c.l.b16 %v4068_v59  ;;  %v4197_v51 = vunpack.c.l.b16 %v4069_v56  ;;  %v4198_v15 = vunpack.c.l.b16 %v4070_v11  ;;  %v4516_v20 = vrot.slane %v4514_v19, 5  ;;  %v4392_v56 = vld [vmem:[#allocation3 + $0x30] sm:$0xf]  ;;  %v4670_v11 = vpop.f32.mrf.mxu2 }
 0x3e1   : > { %v4293_v0 = vrot.slane %v4195_v61, 3  ;;  %v3317_v26 = vadd.f32 %v3273_v42, %v3177_v60  ;;  %v4512_v8 = vrot.slane %v4511_v45, 4  ;;  %v3022_v40 = vadd.f32 %v17282_v6, %v2888_v53  ;;  %v18665_v60 = vld [vmem:[#allocation63_spill] sm:$0xff] }
 0x3e2   : > { %v4295_v32 = vrot.slane %v4196_v39, 2  ;;  %v4297_v17 = vrot.slane %v4197_v51, 1  ;;  %v4336_v18 = vpack.c.b16 %v4198_v15, %v4198_v15  ;;  %v3023_v48 = vadd.f32 %v17317_v50, %v2889_v38 }
 0x3e3   : > { %v4294_v31 = vsel %vm4226_vm14, %v4293_v0, %v4292_v52  ;;  %v4517_v14 = vsel %vm15934_vm10, %v4512_v8, %v4516_v20  ;;  %v3178_v42 = vadd.f32 %v17292_v2, %v3022_v40  ;;  %v3353_v6 = vadd.f32 %v17297_v49, %v3317_v26  ;;  %v4780_v51 = vpop.f32.mrf.mxu3 }
 0x3e4   : > { %v4296_v63 = vsel %vm4229_vm15, %v4295_v32, %v4294_v31  ;;  %v4396_v59 = vsel %vm16974_vm4, %v4336_v18, %v4395_v3  ;;  %v17478_v52 = vunpack.c.l.b16 %v4517_v14  ;;  %v3179_v50 = vadd.f32 %v17327_v22, %v3023_v48 }
 0x3e5   : > { %v4298_v19 = vsel %vm4232_vm13, %v4297_v17, %v4296_v63  ;;  %4397 = vst [vmem:[#allocation3 + $0x34] sm:$0x1] %v4396_v59  ;;  %v2890_v30 = vadd.f32 %v17347_v7, %v18665_v60  ;;  %v3318_v61 = vadd.f32 %v3275_v27, %v3178_v42  ;;  %v3385_v45 = vmax.f32 %v3353_v6, 0.0 }
 0x3e6   : > { %v4335_v33 = vpack.c.b16 %v4298_v19, %v4298_v19  ;;  %v4597_v9 = vpop.f32.mrf.mxu1  ;;  %v3278_v53 = vpop.f32.mrf.mxu0  ;;  %v17485_v2 = vpack.c.b16 %v17478_v52, %v17389_v13 }
 0x3e7   : > { %v4671_v38 = vadd.f32 %v4670_v11, %v4597_v9  ;;  %v3319_v15 = vadd.f32 %v3278_v53, %v3179_v50  ;;  %v3024_v0 = vadd.f32 %v17345_v21, %v2890_v30  ;;  %v3354_v3 = vadd.f32 %v17297_v49, %v3318_v61  ;;  %v18666_v21 = vld [vmem:[#allocation64_spill] sm:$0xff] }
 0x3e8   : > { %v4393_v39 = vsel %vm16991_vm2, %v4335_v33, %v4392_v56  ;;  %11658 = vmatmul.msk.bf16.gmra.mxu1 %vm4575_vm11, %v17485_v2  ;;  %v3497_v20 = vrot.slane %v3385_v45, 2  ;;  %v3498_v32 = vrot.slane %v3385_v45, 4  ;;  %v3499_v17 = vrot.slane %v3385_v45, 6 }
 0x3e9   : > { %4394 = vst [vmem:[#allocation3 + $0x30] sm:$0xf] %v4393_v39  ;;  %v17489_v22 = vadd.f32 %v4780_v51, %v4671_v38  ;;  %v3355_v7 = vadd.f32 %v17297_v49, %v3319_v15  ;;  %v3180_v27 = vadd.f32 %v17350_v57, %v3024_v0  ;;  %v3386_v63 = vmax.f32 %v3354_v3, 0.0 }
 0x3ea   : > { %v2891_v6 = vadd.f32 %v17370_v43, %v18666_v21 }
 0x3eb   : > { %v3387_v26 = vmax.f32 %v3355_v7, 0.0  ;;  %v3500_v53 = vrot.slane %v3386_v63, 2  ;;  %v3501_v60 = vrot.slane %v3386_v63, 4  ;;  %v3502_v30 = vrot.slane %v3386_v63, 6 }
 0x3ed   : > { %v3503_v18 = vrot.slane %v3387_v26, 2  ;;  %v3504_v8 = vrot.slane %v3387_v26, 4  ;;  %v3505_v40 = vrot.slane %v3387_v26, 6  ;;  %v3665_v31 = vmax.f32 %v3385_v45, %v3387_v26 }
 0x3ee   : > { %v3280_v48 = vpop.f32.mrf.mxu0 }
 0x3ef   : > { %v3320_v59 = vadd.f32 %v3280_v48, %v3180_v27  ;;  %v3666_v14 = vmax.f32 %v3497_v20, %v3503_v18  ;;  %v3667_v42 = vmax.f32 %v3498_v32, %v3504_v8  ;;  %v3668_v19 = vmax.f32 %v3499_v17, %v3505_v40 }
 0x3f0   : > { %v11632_v56 = vrot.slane %v3665_v31, 9 }
 0x3f1   : > { %v3356_v11 = vadd.f32 %v17297_v49, %v3320_v59  ;;  %v11633_v57 = vrot.slane %v3666_v14, 9  ;;  %v11634_v50 = vrot.slane %v3667_v42, 9  ;;  %v11635_v33 = vrot.slane %v3668_v19, 9 }
 0x3f2   : > { %v3985_v9 = vmax.f32 %v3665_v31, %v11632_v56  ;;  %v3025_v31 = vadd.f32 %v17365_v44, %v2891_v6 }
 0x3f3   : > { %v3388_v38 = vmax.f32 %v3356_v11, 0.0  ;;  %v3986_v61 = vmax.f32 %v3666_v14, %v11633_v57  ;;  %v3987_v39 = vmax.f32 %v3667_v42, %v11634_v50  ;;  %v3988_v51 = vmax.f32 %v3668_v19, %v11635_v33  ;;  %v18667_v11 = vld [vmem:[#allocation65_spill] sm:$0xff] }
 0x3f4   : > { %v4071_v15 = vpack.c.bf16 %v3985_v9, %v3985_v9  ;;  %v3181_v44 = vadd.f32 %v17379_v41, %v3025_v31 }
 0x3f5   : > { %v3506_v45 = vrot.slane %v3388_v38, 2  ;;  %v3507_v7 = vrot.slane %v3388_v38, 4  ;;  %v3508_v0 = vrot.slane %v3388_v38, 6  ;;  %v3669_v3 = vmax.f32 %v3386_v63, %v3388_v38  ;;  %v17503_v38 = vld [vmem:[#allocation3 + $0x30] sm:$0xf] }
 0x3f6   : > { %v4072_v26 = vpack.c.bf16 %v3986_v61, %v3986_v61  ;;  %v4073_v43 = vpack.c.bf16 %v3987_v39, %v3987_v39  ;;  %v4074_v27 = vpack.c.bf16 %v3988_v51, %v3988_v51  ;;  %v4199_v20 = vunpack.c.l.b16 %v4071_v15  ;;  %v3283_v32 = vpop.f32.mrf.mxu0 }
 0x3f7   : > { %v3670_v17 = vmax.f32 %v3500_v53, %v3506_v45  ;;  %v3671_v18 = vmax.f32 %v3501_v60, %v3507_v7  ;;  %v3672_v8 = vmax.f32 %v3502_v30, %v3508_v0  ;;  %v11636_v40 = vrot.slane %v3669_v3, 9 }
 0x3f8   : > { %v4200_v48 = vunpack.c.l.b16 %v4072_v26  ;;  %v4201_v59 = vunpack.c.l.b16 %v4073_v43  ;;  %v4202_v14 = vunpack.c.l.b16 %v4074_v27  ;;  %v2892_v63 = vadd.f32 %v17403_v1, %v18667_v11  ;;  %v18668_v43 = vld [vmem:[#allocation66_spill] sm:$0xff] }
 0x3f9   : > { %v11637_v42 = vrot.slane %v3670_v17, 9  ;;  %v11638_v19 = vrot.slane %v3671_v18, 9  ;;  %v11639_v56 = vrot.slane %v3672_v8, 9  ;;  %v3989_v21 = vmax.f32 %v3669_v3, %v11636_v40  ;;  %v4401_v40 = vld [vmem:[#allocation3 + $0x3c] sm:$0x1] }
 0x3fa   : > { %v4299_v57 = vrot.slane %v4199_v20, 7  ;;  %v4300_v50 = vrot.slane %v4200_v48, 6  ;;  %v4302_v33 = vrot.slane %v4201_v59, 5  ;;  %v4304_v61 = vrot.slane %v4202_v14, 4 }
 0x3fb   : > { %v3990_v9 = vmax.f32 %v3670_v17, %v11637_v42  ;;  %v3991_v53 = vmax.f32 %v3671_v18, %v11638_v19  ;;  %v3992_v60 = vmax.f32 %v3672_v8, %v11639_v56  ;;  %v4075_v30 = vpack.c.bf16 %v3989_v21, %v3989_v21 }
 0x3fc   : > { %v4301_v6 = vsel %vm4217_vm5, %v4300_v50, %v4299_v57  ;;  %v3026_v1 = vadd.f32 %v17400_v46, %v2892_v63  ;;  %v4631_v26 = vunpack.c.l.b16 %v17503_v38  ;;  %v2893_v27 = vadd.f32 %v17423_v37, %v18668_v43  ;;  %v4398_v57 = vld [vmem:[#allocation3 + $0x38] sm:$0xf] }
 0x3fd   : > { %v4303_v39 = vsel %vm4220_vm6, %v4302_v33, %v4301_v6  ;;  %v4076_v51 = vpack.c.bf16 %v3990_v9, %v3990_v9  ;;  %v4077_v15 = vpack.c.bf16 %v3991_v53, %v3991_v53  ;;  %v4078_v45 = vpack.c.bf16 %v3992_v60, %v3992_v60  ;;  %v18670_v33 = vld [vmem:[#allocation45_spill] sm:$0xff]  ;;  %v4423_v60 = vld [vmem:[#allocation3 + $0x34] sm:$0x1] }
 0x3fe   : > { %v4305_v7 = vsel %vm4223_vm7, %v4304_v61, %v4303_v39  ;;  %v4203_v0 = vunpack.c.l.b16 %v4075_v30  ;;  %v3285_v3 = vpop.f32.mrf.mxu0  ;;  %v3182_v18 = vadd.f32 %v17408_v24, %v3026_v1  ;;  %v3321_v31 = vadd.f32 %v3283_v32, %v3181_v44 }
 0x3ff   : > { %v4204_v41 = vunpack.c.l.b16 %v4076_v51  ;;  %v4205_v20 = vunpack.c.l.b16 %v4077_v15  ;;  %v4206_v17 = vunpack.c.l.b16 %v4078_v45  ;;  %v4519_v14 = vshrl.u32 %v17503_v38, 16 }
 0x400   : > { %v4306_v8 = vrot.slane %v4203_v0, 3  ;;  %v3322_v19 = vadd.f32 %v3285_v3, %v3182_v18  ;;  %v4522_v56 = vshll.u32 %v17503_v38, 16  ;;  %v18669_v37 = vunpack.c.l.b16 %v17414_v12  ;;  %v14286_v0 = vld [vmem:[#allocation11 + $0x58] sm:$0xff] }
 0x401   : > { %v4308_v48 = vrot.slane %v4204_v41, 2  ;;  %v4310_v59 = vrot.slane %v4205_v20, 1  ;;  %v4338_v46 = vpack.c.b16 %v4206_v17, %v4206_v17  ;;  %v3027_v24 = vadd.f32 %v17421_v23, %v2893_v27  ;;  %5010 = vmatpush.bf16.msrb.mxu3 %v14286_v0 }
 0x402   : > { %v4307_v42 = vsel %vm4226_vm14, %v4306_v8, %v4305_v7  ;;  %v17521_v21 = vpack.c.b16 %v4631_v26, %v18669_v37  ;;  %v3357_v50 = vadd.f32 %v17297_v49, %v3321_v31  ;;  %v2894_v12 = vadd.f32 %v17455_v4, %v18670_v33  ;;  %v14284_v7 = vld [vmem:[#allocation11 + $0x48] sm:$0xff]  ;;  %v14282_v33 = vld [vmem:[#allocation11 + $0x38] sm:$0xff] }
 0x403   : > { %v4309_v32 = vsel %vm4229_vm15, %v4308_v48, %v4307_v42  ;;  %v4402_v11 = vsel %vm16974_vm4, %v4338_v46, %v4401_v40  ;;  %v3183_v9 = vadd.f32 %v17433_v34, %v3027_v24  ;;  %v3358_v23 = vadd.f32 %v17297_v49, %v3322_v19  ;;  %4934 = vmatpush.bf16.msrb.mxu2 %v14284_v7 }
 0x404   : > { %v4311_v63 = vsel %vm4232_vm13, %v4310_v59, %v4309_v32  ;;  %4403 = vst [vmem:[#allocation3 + $0x3c] sm:$0x1] %v4402_v11  ;;  %v4521_v44 = vrot.slane %v4519_v14, 4  ;;  %v4524_v6 = vrot.slane %v4522_v56, 5  ;;  %v11678_v51 = vrot.slane %v17503_v38, 9  ;;  %4849 = vmatpush.bf16.msrb.mxu1 %v14282_v33 }
 0x405   : > { %v4337_v53 = vpack.c.b16 %v4311_v63, %v4311_v63  ;;  %v3389_v15 = vmax.f32 %v3357_v50, 0.0  ;;  %v4528_v45 = vshll.u32 %v4423_v60, 16  ;;  %v3028_v4 = vadd.f32 %v17445_v58, %v2894_v12  ;;  %v14283_v58 = vld [vmem:[#allocation11 + $0x40] sm:$0xff]  ;;  %v14285_v50 = vld [vmem:[#allocation11 + $0x50] sm:$0xff] }
 0x406   : > { %v3288_v30 = vpop.f32.mrf.mxu0  ;;  %v4724_v1 = vrot.slane %v4423_v60, 5  ;;  %v17538_v3 = vmax.f32 %v3358_v23, 0.0  ;;  %v4525_v43 = vor.u32 %v4524_v6, %v4521_v44  ;;  %5011 = vmatpush.bf16.msrb.mxu3 %v14285_v50 }
 0x407   : > { %v4399_v61 = vsel %vm16991_vm2, %v4337_v53, %v4398_v57  ;;  %v3323_v39 = vadd.f32 %v3288_v30, %v3183_v9  ;;  %v3184_v27 = vadd.f32 %v17465_v62, %v3028_v4  ;;  %v3509_v18 = vrot.slane %v3389_v15, 2  ;;  %4935 = vmatpush.bf16.msrb.mxu2 %v14283_v58 }
 0x408   : > { %4400 = vst [vmem:[#allocation3 + $0x38] sm:$0xf] %v4399_v61  ;;  %v17545_v17 = vsel %vm15904_vm8, %v11678_v51, %v4724_v1  ;;  %v3510_v8 = vrot.slane %v3389_v15, 4  ;;  %v3511_v40 = vrot.slane %v3389_v15, 6  ;;  %v17547_v31 = vrot.slane %v4528_v45, 5  ;;  %v14281_v61 = vld [vmem:[#allocation11 + $0x30] sm:$0xff] }
 0x409   : > { %v3359_v34 = vadd.f32 %v17297_v49, %v3323_v39  ;;  %v3512_v62 = vrot.slane %v17538_v3, 2  ;;  %v4741_v56 = vunpack.c.l.b16 %v17545_v17  ;;  %v17552_v37 = vrot.slane %v4525_v43, 4  ;;  %4850 = vmatpush.bf16.msrb.mxu1 %v14281_v61  ;;  %v17587_v61 = vpop.f32.mrf.mxu2 }
 0x40a   : > { %v3513_v39 = vrot.slane %v17538_v3, 4  ;;  %v3514_v0 = vrot.slane %v17538_v3, 6 }
 0x40b   : > { %v3391_v41 = vmax.f32 %v3359_v34, 0.0  ;;  %v17541_v20 = vld [vmem:[#allocation3 + $0x3c] sm:$0x1] }
 0x40c   : > { %v4728_v19 = vrot.slane %v17541_v20, 5 }
 0x40d   : > { %v3515_v48 = vrot.slane %v3391_v41, 2  ;;  %v3516_v59 = vrot.slane %v3391_v41, 4  ;;  %v3517_v46 = vrot.slane %v3391_v41, 6  ;;  %v3673_v14 = vmax.f32 %v3389_v15, %v3391_v41 }
 0x40e   : > { %v3290_v42 = vpop.f32.mrf.mxu0 }
 0x40f   : > { %v3674_v24 = vmax.f32 %v3509_v18, %v3515_v48  ;;  %v3675_v32 = vmax.f32 %v3510_v8, %v3516_v59  ;;  %v3676_v11 = vmax.f32 %v3511_v40, %v3517_v46  ;;  %v11640_v63 = vrot.slane %v3673_v14, 9  ;;  %v17554_v57 = vld [vmem:[#allocation3 + $0x38] sm:$0xf] }
 0x410   : > { %v3324_v12 = vadd.f32 %v3290_v42, %v3184_v27  ;;  %v4632_v9 = vunpack.c.l.b16 %v17554_v57  ;;  %v11679_v53 = vrot.slane %v17554_v57, 9  ;;  %v4533_v60 = vshrl.u32 %v17554_v57, 16 }
 0x411   : > { %v11641_v23 = vrot.slane %v3674_v24, 9  ;;  %v11642_v30 = vrot.slane %v3675_v32, 9  ;;  %v11643_v44 = vrot.slane %v3676_v11, 9  ;;  %v3993_v6 = vmax.f32 %v3673_v14, %v11640_v63 }
 0x412   : > { %v3360_v51 = vadd.f32 %v17297_v49, %v3324_v12  ;;  %v17565_v15 = vpack.c.b16 %v4632_v9, %v4631_v26  ;;  %v17569_v45 = vsel %vm15904_vm8, %v11679_v53, %v4728_v19  ;;  %v4535_v38 = vrot.slane %v4533_v60, 4 }
 0x413   : > { %v3994_v4 = vmax.f32 %v3674_v24, %v11641_v23  ;;  %v3995_v34 = vmax.f32 %v3675_v32, %v11642_v30  ;;  %v3996_v1 = vmax.f32 %v3676_v11, %v11643_v44  ;;  %v4079_v7 = vpack.c.bf16 %v3993_v6, %v3993_v6 }
 0x414   : > { %v3392_v43 = vmax.f32 %v3360_v51, 0.0  ;;  %11671 = vmatmul.msk.bf16.gmra.mxu2 %vm4575_vm11, %v17565_v15  ;;  %v4742_v49 = vunpack.c.l.b16 %v17569_v45  ;;  %v4536_v42 = vshll.u32 %v17554_v57, 16  ;;  %v4542_v6 = vshll.u32 %v17541_v20, 16  ;;  %v4428_v57 = vld [vmem:[#allocation3 + $0x48] sm:$0xf] }
 0x415   : > { %v4080_v27 = vpack.c.bf16 %v3994_v4, %v3994_v4  ;;  %v4081_v26 = vpack.c.bf16 %v3995_v34, %v3995_v34  ;;  %v4082_v41 = vpack.c.bf16 %v3996_v1, %v3996_v1  ;;  %v4207_v58 = vunpack.c.l.b16 %v4079_v7 }
 0x416   : > { %v3518_v18 = vrot.slane %v3392_v43, 2  ;;  %v3519_v8 = vrot.slane %v3392_v43, 4  ;;  %v3520_v40 = vrot.slane %v3392_v43, 6  ;;  %v3677_v48 = vmax.f32 %v17538_v3, %v3392_v43 }
 0x417   : > { %v4208_v59 = vunpack.c.l.b16 %v4080_v27  ;;  %v4209_v46 = vunpack.c.l.b16 %v4081_v26  ;;  %v4210_v14 = vunpack.c.l.b16 %v4082_v41  ;;  %v4312_v63 = vrot.slane %v4207_v58, 7  ;;  %v17593_v27 = vpop.f32.mrf.mxu3 }
 0x418   : > { %v3678_v19 = vmax.f32 %v3512_v62, %v3518_v18  ;;  %v3679_v24 = vmax.f32 %v3513_v39, %v3519_v8  ;;  %v3680_v32 = vmax.f32 %v3514_v0, %v3520_v40  ;;  %v11644_v11 = vrot.slane %v3677_v48, 9  ;;  %v17589_v39 = vpop.f32.mrf.mxu1 }
 0x419   : > { %v4313_v50 = vrot.slane %v4208_v59, 6  ;;  %v4315_v33 = vrot.slane %v4209_v46, 5  ;;  %v17581_v12 = vpack.c.b16 %v4742_v49, %v4741_v56  ;;  %v4317_v44 = vrot.slane %v4210_v14, 4 }
 0x41a   : > { %v11645_v53 = vrot.slane %v3678_v19, 9  ;;  %v11646_v3 = vrot.slane %v3679_v24, 9  ;;  %v11647_v60 = vrot.slane %v3680_v32, 9  ;;  %v3997_v23 = vmax.f32 %v3677_v48, %v11644_v11 }
 0x41b   : > { %v4314_v30 = vsel %vm4217_vm5, %v4313_v50, %v4312_v63  ;;  %11691 = vmatmul.msk.bf16.gmra.mxu3 %vm4575_vm11, %v17581_v12  ;;  %v4538_v62 = vrot.slane %v4536_v42, 5  ;;  %v4531_v20 = vsel %vm15934_vm10, %v17552_v37, %v17547_v31  ;;  %v4544_v40 = vrot.slane %v4542_v6, 5  ;;  %v4407_v42 = vld [vmem:[#allocation3 + $0x44] sm:$0x1] }
 0x41c   : > { %v4316_v51 = vsel %vm4220_vm6, %v4315_v33, %v4314_v30  ;;  %v3998_v4 = vmax.f32 %v3678_v19, %v11645_v53  ;;  %v3999_v34 = vmax.f32 %v3679_v24, %v11646_v3  ;;  %v4000_v1 = vmax.f32 %v3680_v32, %v11647_v60  ;;  %v4675_v33 = vpop.f32.mrf.mxu2  ;;  %v18671_v60 = vld [vmem:[#allocation47_spill] sm:$0xff] }
 0x41d   : > { %v4318_v7 = vsel %vm4223_vm7, %v4317_v44, %v4316_v51  ;;  %v4083_v0 = vpack.c.bf16 %v3997_v23, %v3997_v23  ;;  %v4539_v43 = vor.u32 %v4538_v62, %v4535_v38  ;;  %v4557_v19 = vunpack.c.l.b16 %v4531_v20  ;;  %v18672_v23 = vld [vmem:[#allocation75_spill] sm:$0xff]  ;;  %v4404_v62 = vld [vmem:[#allocation3 + $0x40] sm:$0xf] }
 0x41e   : > { %v4084_v26 = vpack.c.bf16 %v3998_v4, %v3998_v4  ;;  %v4085_v41 = vpack.c.bf16 %v3999_v34, %v3999_v34  ;;  %v4086_v58 = vpack.c.bf16 %v4000_v1, %v4000_v1  ;;  %v18673_v30 = vpack.c.b16 %v18671_v60, %v18672_v23  ;;  %v18674_v1 = vld [vmem:[#allocation50_spill] sm:$0xff]  ;;  %v18678_v60 = vld [vmem:[#allocation51_spill] sm:$0xff]  ;;  %v18679_v23 = vld [vmem:[#allocation48_spill] sm:$0xff] }
 0x41f   : > { %v4211_v18 = vunpack.c.l.b16 %v4083_v0  ;;  %v4540_v8 = vrot.slane %v4539_v43, 4  ;;  %v18676_v0 = vld [vmem:[#allocation60_spill] sm:$0xff]  ;;  %v4902_v20 = vpack.c.b16 %v4557_v19, %v17478_v52 }
 0x420   : > { %v4212_v48 = vunpack.c.l.b16 %v4084_v26  ;;  %v4213_v59 = vunpack.c.l.b16 %v4085_v41  ;;  %v4214_v46 = vunpack.c.l.b16 %v4086_v58  ;;  %v4785_v4 = vpop.f32.mrf.mxu3 }
 0x421   : > { %v4319_v14 = vrot.slane %v4211_v18, 3  ;;  %v4545_v38 = vsel %vm15934_vm10, %v4540_v8, %v4544_v40 }
 0x422   : > { %v4321_v24 = vrot.slane %v4212_v48, 2  ;;  %v4323_v32 = vrot.slane %v4213_v59, 1  ;;  %v4340_v11 = vpack.c.b16 %v4214_v46, %v4214_v46  ;;  %v4558_v63 = vunpack.c.l.b16 %v4545_v38  ;;  %v14290_v48 = vld [vmem:[#allocation11 + $0x78] sm:$0xff]  ;;  %v14292_v59 = vld [vmem:[#allocation11 + $0x88] sm:$0xff]  ;;  %v14289_v46 = vld [vmem:[#allocation11 + $0x70] sm:$0xff] }
 0x423   : > { %v4320_v50 = vsel %vm4226_vm14, %v4319_v14, %v4318_v7  ;;  %v4602_v53 = vpop.f32.mrf.mxu1  ;;  %v18675_v7 = vpack.c.b16 %v17389_v13, %v17290_v5  ;;  %5143 = vmatpush.bf16.msra.mxu2 %v14290_v48  ;;  %5207 = vmatpush.bf16.msra.mxu3 %v14292_v59  ;;  %v14288_v38 = vld [vmem:[#allocation11 + $0x68] sm:$0xff] }
 0x424   : > { %v4322_v31 = vsel %vm4229_vm15, %v4321_v24, %v4320_v50  ;;  %v4408_v37 = vsel %vm16974_vm4, %v4340_v11, %v4407_v42  ;;  %v17605_v3 = vpack.c.b16 %v4558_v63, %v4557_v19  ;;  %11712 = vmatmul.msk.bf16.vlgmr.msrb.gmra.mxu2 %vm4575_vm11, %v18673_v30  ;;  %v4676_v6 = vadd.f32 %v4675_v33, %v4602_v53  ;;  %vm17765_vm4 = vmor %vm1796_vm0, %vm4217_vm5 }
 0x425   : > { %v4324_v44 = vsel %vm4232_vm13, %v4323_v32, %v4322_v31  ;;  %4409 = vst [vmem:[#allocation3 + $0x44] sm:$0x1] %v4408_v37  ;;  %5070 = vmatpush.bf16.msra.mxu1 %v14288_v38  ;;  %v17652_v32 = vpop.f32.mrf.mxu2  ;;  %v18677_v37 = vld [vmem:[#allocation53_spill] sm:$0xff]  ;;  %v5105_v30 = vshll.u32 %v4428_v57, 16  ;;  %vm5565_vm13 = vsmask.f32 3336 }
 0x426   : > { %v4339_v51 = vpack.c.b16 %v4324_v44, %v4324_v44  ;;  %11659 = vmatmul.msk.bf16.gmra.mxu1 %vm4575_vm11, %v17605_v3  ;;  %v17614_v36 = vadd.f32 %v4785_v4, %v4676_v6  ;;  %v4429_v6 = vld [vmem:[#allocation3 + $0x4c] sm:$0x1] }
 0x427   : > { %5144 = vmatpush.bf16.msra.mxu2 %v14289_v46  ;;  %5208 = vmatpush.bf16.msra.mxu3 %v14291_v54  ;;  %v5111_v4 = vshll.u32 %v4429_v6, 16 }
 0x428   : > { %v4405_v34 = vsel %vm16991_vm2, %v4339_v51, %v4404_v62  ;;  %v5107_v62 = vrot.slane %v5105_v30, 5 }
 0x429   : > { %4406 = vst [vmem:[#allocation3 + $0x40] sm:$0xf] %v4405_v34  ;;  %v5113_v34 = vrot.slane %v5111_v4, 5 }
 0x42b   : > { %11725 = vmatmul.msk.bf16.vlgmr.msrb.gmra.mxu3 %vm4575_vm11, %v18674_v1  ;;  %v17654_v11 = vpop.f32.mrf.mxu1 }
 0x42c   : > { %v4427_v18 = vld [vmem:[#allocation3 + $0x44] sm:$0x1] }
 0x42d   : > { %v4890_v13 = vshll.u32 %v4427_v18, 16  ;;  %v4968_v42 = vrot.slane %v4427_v18, 5  ;;  %v5047_v18 = vunpack.c.l.b16 %v4428_v57 }
 0x42f   : > { %v4892_v40 = vrot.slane %v4890_v13, 5 }
 0x430   : > { %v17626_v43 = vld [vmem:[#allocation3 + $0x40] sm:$0xf] }
 0x431   : > { %v4881_v55 = vshrl.u32 %v17626_v43, 16  ;;  %v4884_v26 = vshll.u32 %v17626_v43, 16  ;;  %v4814_v50 = vunpack.c.l.b16 %v17626_v43 }
 0x433   : > { %v4883_v41 = vrot.slane %v4881_v55, 4  ;;  %v4886_v58 = vrot.slane %v4884_v26, 5  ;;  %v4818_v31 = vpack.c.b16 %v4814_v50, %v4632_v9  ;;  %v5102_v9 = vshrl.u32 %v4428_v57, 16 }
 0x434   : > { %11713 = vmatmul.msk.bf16.gmra.mxu2 %vm4575_vm11, %v18675_v7  ;;  %v11753_v7 = vrot.slane %v4428_v57, 9  ;;  %v5048_v13 = vpack.c.b16 %v5047_v18, %v4814_v50 }
 0x435   : > { %v4887_v5 = vor.u32 %v4886_v58, %v4883_v41  ;;  %v5104_v44 = vrot.slane %v5102_v9, 4 }
 0x436   : > { %11700 = vmatmul.msk.bf16.vlgmr.msrb.gmra.mxu1 %vm4575_vm11, %v18676_v0  ;;  %v5177_v0 = vrot.slane %v4429_v6, 5 }
 0x437   : > { %v4888_v8 = vrot.slane %v4887_v5, 4  ;;  %v5108_v51 = vor.u32 %v5107_v62, %v5104_v44 }
 0x439   : > { %v4893_v52 = vsel %vm15934_vm10, %v4888_v8, %v4892_v40 }
 0x43a   : > { %v4899_v14 = vunpack.c.l.b16 %v4893_v52 }
 0x43b   : > { %11726 = vmatmul.msk.bf16.gmra.mxu3 %vm4575_vm11, %v17361_v25  ;;  %v4978_v25 = vpack.c.b16 %v4741_v56, %v4740_v28  ;;  %v14287_v56 = vld [vmem:[#allocation11 + $0x60] sm:$0xff] }
 0x43c   : > { %v4903_v17 = vpack.c.b16 %v4899_v14, %v4558_v63  ;;  %5071 = vmatpush.bf16.msra.mxu1 %v14287_v56  ;;  %v17656_v63 = vpop.f32.mrf.mxu3 }
 0x444   : > { %11714 = vmatmul.msk.bf16.gmra.mxu2 %vm4575_vm11, %v4902_v20 }
 0x446   : > { %11701 = vmatmul.msk.bf16.gmra.mxu1 %vm4575_vm11, %v17376_v47  ;;  %v11716_v47 = vrot.slane %v17626_v43, 9 }
 0x448   : > { %v4969_v28 = vsel %vm15904_vm8, %v11716_v47, %v4968_v42 }
 0x449   : > { %v4975_v19 = vunpack.c.l.b16 %v4969_v28 }
 0x44b   : > { %11727 = vmatmul.msk.bf16.gmra.mxu3 %vm4575_vm11, %v4978_v25  ;;  %v4979_v24 = vpack.c.b16 %v4975_v19, %v4742_v49 }
 0x454   : > { %11715 = vmatmul.msk.bf16.gmra.mxu2 %vm4575_vm11, %v4903_v17 }
 0x456   : > { %11702 = vmatmul.msk.bf16.gmra.mxu1 %vm4575_vm11, %v17521_v21 }
 0x459   : > { %v4680_v21 = vpop.f32.mrf.mxu2 }
 0x45b   : > { %11728 = vmatmul.msk.bf16.gmra.mxu3 %vm4575_vm11, %v4979_v24 }
 0x461   : > { %v17682_v43 = vpop.f32.mrf.mxu2 }
 0x462   : > { %v4790_v49 = vpop.f32.mrf.mxu3 }
 0x464   : > { %11749 = vmatmul.msk.bf16.vlgmr.msra.gmra.mxu2 %vm4575_vm11, %v18677_v37 }
 0x465   : > { %v4607_v33 = vpop.f32.mrf.mxu1 }
 0x466   : > { %11703 = vmatmul.msk.bf16.gmra.mxu1 %vm4575_vm11, %v4818_v31  ;;  %v4681_v45 = vadd.f32 %v4680_v21, %v4607_v33 }
 0x468   : > { %v17664_v53 = vadd.f32 %v4790_v49, %v4681_v45 }
 0x46a   : > { %v17687_v26 = vpop.f32.mrf.mxu3 }
 0x46b   : > { %11762 = vmatmul.msk.bf16.vlgmr.msra.gmra.mxu3 %vm4575_vm11, %v18678_v60 }
 0x46d   : > { %v17691_v41 = vpop.f32.mrf.mxu1 }
 0x474   : > { %11750 = vmatmul.msk.bf16.gmra.mxu2 %vm4575_vm11, %v17485_v2  ;;  %v5109_v2 = vrot.slane %v5108_v51, 4 }
 0x476   : > { %11737 = vmatmul.msk.bf16.vlgmr.msra.gmra.mxu1 %vm4575_vm11, %v18679_v23 }
 0x47b   : > { %11763 = vmatmul.msk.bf16.gmra.mxu3 %vm4575_vm11, %v17452_v10  ;;  %v5114_v10 = vsel %vm15934_vm10, %v5109_v2, %v5113_v34  ;;  %vm5564_vm10 = vsmask.f32 1280 }
 0x47c   : > { %v5120_v1 = vunpack.c.l.b16 %v5114_v10  ;;  %v4673_v10 = vadd.f32 %v17587_v61, %v17589_v39  ;;  %vm5566_vm14 = vmor %vm5564_vm10, %vm5565_vm13 }
 0x47d   : > { %vm17770_vm2 = vmor %vm5566_vm14, %vm5567_vm3 }
 0x47e   : > { %v5121_v55 = vpack.c.b16 %v5120_v1, %v4899_v14  ;;  %v18680_v1 = vmov 0   ;;  %vm5741_vm10 = vmor %vm17765_vm4, %vm4223_vm7  ;;  %vm6426_vm4 = vsmask.f32 2312 }
 0x47f   : > { %vm17790_vm3 = vmor %vm5741_vm10, %vm4229_vm15  ;;  %vm5503_vm15 = vsmask.f32 2306  ;;  %vm6405_vm10 = vcmask 1041409  }
 0x484   : > { %11751 = vmatmul.msk.bf16.gmra.mxu2 %vm4575_vm11, %v17605_v3  ;;  %v5178_v3 = vsel %vm15904_vm8, %v11753_v7, %v5177_v0  ;;  %vm5410_vm8 = vcmask 518144   ;;  %v4801_v0 = vadd.f32 %v17593_v27, %v4673_v10 }
 0x485   : > { %5411 = vst.msk [vmem:[#allocation4] sm:$0x7] %vm5410_vm8, %v18680_v1  ;;  %vm17808_vm14 = vmand %vm5410_vm8, %vm5503_vm15 }
 0x486   : > { %11738 = vmatmul.msk.bf16.gmra.mxu1 %vm4575_vm11, %v17429_v29  ;;  %v5184_v29 = vunpack.c.l.b16 %v5178_v3  ;;  %5412 = vst.msk [vmem:[#allocation4 + $0x4] sm:$0x7] %vm5410_vm8, %v18680_v1 }
 0x487   : > { %5416 = vst.msk [vmem:[#allocation4 + $0x14] sm:$0x7] %vm5410_vm8, %v18680_v1 }
 0x488   : > { %v5185_v35 = vpack.c.b16 %v5184_v29, %v4975_v19  ;;  %5413 = vst.msk [vmem:[#allocation4 + $0x8] sm:$0x7] %vm5410_vm8, %v18680_v1 }
 0x489   : > { %5414 = vst.msk [vmem:[#allocation4 + $0xc] sm:$0x7] %vm5410_vm8, %v18680_v1 }
 0x48a   : > { %5415 = vst.msk [vmem:[#allocation4 + $0x10] sm:$0x7] %vm5410_vm8, %v18680_v1  ;;  %vm6424_vm8 = vsmask.f32 1284 }
 0x48b   : > { %11764 = vmatmul.msk.bf16.gmra.mxu3 %vm4575_vm11, %v17581_v12 }
 0x494   : > { %11752 = vmatmul.msk.bf16.gmra.mxu2 %vm4575_vm11, %v5121_v55 }
 0x496   : > { %11739 = vmatmul.msk.bf16.gmra.mxu1 %vm4575_vm11, %v17565_v15 }
 0x497   : > { %v4685_v12 = vpop.f32.mrf.mxu2 }
 0x49b   : > { %11765 = vmatmul.msk.bf16.gmra.mxu3 %vm4575_vm11, %v5185_v35 }
 0x49e   : > { %v4795_v58 = vpop.f32.mrf.mxu3 }
 0x49f   : > { %v17694_v20 = vpop.f32.mrf.mxu2 }
 0x4a3   : > { %v4612_v16 = vpop.f32.mrf.mxu1 }
 0x4a4   : > { %v4686_v5 = vadd.f32 %v4685_v12, %v4612_v16 }
 0x4a6   : > { %v4806_v8 = vadd.f32 %v4795_v58, %v4686_v5  ;;  %11740 = vmatmul.msk.bf16.gmra.mxu1 %vm4575_vm11, %v5048_v13  ;;  %v17697_v25 = vpop.f32.mrf.mxu3  ;;  %v17741_v58 = vld [vmem:[#allocation12] ss:$0 sm:$0xff]  ;;  %vm5569_vm11 = vsmask.f32 7448 }
 0x4a7   : > { %v4937_v40 = vpop.f32.mrf.mxu2  ;;  %vm17782_vm13 = vmor %vm17770_vm2, %vm5569_vm11  ;;  %vm6428_vm2 = vsmask.f32 3340 }
 0x4a8   : > { %vm17988_vm11 = vmor %vm814_vm12, %vm6424_vm8  ;;  %vm6408_vm12 = vcmask 1042433   ;;  %vm18697_vm8 = vsmask.f32 4368 }
 0x4ab   : > { %v17699_v15 = vpop.f32.mrf.mxu1 }
 0x4ae   : > { %v5013_v48 = vpop.f32.mrf.mxu3 }
 0x4af   : > { %v4939_v59 = vpop.f32.mrf.mxu2 }
 0x4b3   : > { %v4852_v52 = vpop.f32.mrf.mxu1 }
 0x4b4   : > { %v4872_v46 = vadd.f32 %v4852_v52, %v17489_v22  ;;  %v17746_v52 = vld [vmem:[#allocation4] sm:$0x7] }
 0x4b6   : > { %v4957_v14 = vadd.f32 %v4937_v40, %v4872_v46  ;;  %v5015_v47 = vpop.f32.mrf.mxu3 }
 0x4b7   : > { %v4942_v42 = vpop.f32.mrf.mxu2 }
 0x4b8   : > { %v5033_v54 = vadd.f32 %v5013_v48, %v4957_v14 }
 0x4bb   : > { %v4854_v38 = vpop.f32.mrf.mxu1 }
 0x4bc   : > { %v4873_v61 = vadd.f32 %v4854_v38, %v4801_v0 }
 0x4be   : > { %v5018_v17 = vpop.f32.mrf.mxu3  ;;  %v4958_v29 = vadd.f32 %v4939_v59, %v4873_v61 }
 0x4bf   : > { %v17702_v28 = vpop.f32.mrf.mxu2 }
 0x4c0   : > { %v5034_v27 = vadd.f32 %v5015_v47, %v4958_v29 }
 0x4c3   : > { %v4857_v56 = vpop.f32.mrf.mxu1 }
 0x4c4   : > { %v4874_v19 = vadd.f32 %v4857_v56, %v17614_v36 }
 0x4c6   : > { %v4959_v24 = vadd.f32 %v4942_v42, %v4874_v19  ;;  %v17705_v50 = vpop.f32.mrf.mxu3 }
 0x4c7   : > { %v4947_v31 = vpop.f32.mrf.mxu2 }
 0x4c8   : > { %v17707_v37 = vadd.f32 %v5018_v17, %v4959_v24 }
 0x4cb   : > { %v4859_v21 = vpop.f32.mrf.mxu1 }
 0x4ce   : > { %v5023_v33 = vpop.f32.mrf.mxu3 }
 0x4cf   : > { %v17709_v22 = vpop.f32.mrf.mxu2 }
 0x4d3   : > { %v4862_v45 = vpop.f32.mrf.mxu1 }
 0x4d4   : > { %v4876_v49 = vadd.f32 %v4862_v45, %v17664_v53 }
 0x4d6   : > { %v4961_v60 = vadd.f32 %v4947_v31, %v4876_v49  ;;  %v17712_v23 = vpop.f32.mrf.mxu3 }
 0x4d7   : > { %v4952_v57 = vpop.f32.mrf.mxu2 }
 0x4d8   : > { %v17714_v9 = vadd.f32 %v5023_v33, %v4961_v60 }
 0x4db   : > { %v17716_v36 = vpop.f32.mrf.mxu1 }
 0x4de   : > { %v5028_v30 = vpop.f32.mrf.mxu3 }
 0x4df   : > { %v17718_v44 = vpop.f32.mrf.mxu2 }
 0x4e3   : > { %v4867_v62 = vpop.f32.mrf.mxu1 }
 0x4e4   : > { %v4878_v6 = vadd.f32 %v4867_v62, %v4806_v8  ;;  %v4678_v8 = vadd.f32 %v17652_v32, %v17654_v11 }
 0x4e6   : > { %v4963_v51 = vadd.f32 %v4952_v57, %v4878_v6  ;;  %v17720_v4 = vpop.f32.mrf.mxu3  ;;  %v4803_v42 = vadd.f32 %v17656_v63, %v4678_v8 }
 0x4e7   : > { %v5146_v34 = vpop.f32.mrf.mxu2 }
 0x4e8   : > { %v17722_v2 = vadd.f32 %v5028_v30, %v4963_v51  ;;  %v4875_v38 = vadd.f32 %v4859_v21, %v4803_v42 }
 0x4eb   : > { %v17724_v53 = vpop.f32.mrf.mxu1 }
 0x4ee   : > { %v5210_v7 = vpop.f32.mrf.mxu3 }
 0x4ef   : > { %v5148_v55 = vpop.f32.mrf.mxu2 }
 0x4f3   : > { %v5073_v39 = vpop.f32.mrf.mxu1 }
 0x4f4   : > { %v5093_v3 = vadd.f32 %v5073_v39, %v5033_v54  ;;  %v5535_v54 = vrot.slane %v17746_v52, 2 }
 0x4f6   : > { %v5166_v12 = vadd.f32 %v5146_v34, %v5093_v3  ;;  %v5212_v35 = vpop.f32.mrf.mxu3  ;;  %v5543_v32 = vsel %vm5542_vm9, %v17746_v52, %v5535_v54  ;;  %v5541_v24 = vsel %vm1797_vm1, %v17746_v52, %v5535_v54 }
 0x4f7   : > { %v5151_v40 = vpop.f32.mrf.mxu2  ;;  %v5545_v31 = vrot.slane %v5543_v32, 2  ;;  %v5571_v57 = vshrl.u32 %v5541_v24, 16  ;;  %v5574_v30 = vshll.u32 %v5541_v24, 16  ;;  %v11816_v32 = vrot.slane %v5541_v24, 9 }
 0x4f8   : > { %v5230_v18 = vadd.f32 %v5210_v7, %v5166_v12  ;;  %v4683_v7 = vadd.f32 %v17682_v43, %v17691_v41 }
 0x4f9   : > { %v5580_v62 = vshll.u32 %v5545_v31, 16  ;;  %v5573_v0 = vrot.slane %v5571_v57, 6  ;;  %v5576_v61 = vrot.slane %v5574_v30, 7 }
 0x4fa   : > { %v5242_v16 = vadd.f32 %v17741_v58, %v5230_v18 }
 0x4fb   : > { %v5075_v5 = vpop.f32.mrf.mxu1  ;;  %v5577_v43 = vor.u32 %v5576_v61, %v5573_v0  ;;  %v5582_v41 = vrot.slane %v5580_v62, 7 }
 0x4fc   : > { %v5094_v13 = vadd.f32 %v5075_v5, %v5034_v27  ;;  %v5250_v46 = vmax.f32 %v5242_v16, 0.0 }
 0x4fe   : > { %v5167_v48 = vadd.f32 %v5148_v55, %v5094_v13  ;;  %v17748_v14 = vpop.f32.mrf.mxu3  ;;  %v5266_v17 = vrot.slane %v5250_v46, 2  ;;  %v5267_v56 = vrot.slane %v5250_v46, 4  ;;  %v5268_v33 = vrot.slane %v5250_v46, 6 }
 0x4ff   : > { %v5153_v6 = vpop.f32.mrf.mxu2 }
 0x500   : > { %v5231_v59 = vadd.f32 %v5212_v35, %v5167_v48  ;;  %v4805_v48 = vadd.f32 %v17687_v26, %v4683_v7 }
 0x502   : > { %v5243_v47 = vadd.f32 %v17741_v58, %v5231_v59  ;;  %v5578_v59 = vrot.slane %v5577_v43, 2  ;;  %v4877_v24 = vadd.f32 %v17716_v36, %v4805_v48 }
 0x503   : > { %v5078_v11 = vpop.f32.mrf.mxu1 }
 0x504   : > { %v5251_v19 = vmax.f32 %v5243_v47, 0.0  ;;  %v5095_v63 = vadd.f32 %v5078_v11, %v17707_v37  ;;  %v4960_v37 = vadd.f32 %v17702_v28, %v4875_v38  ;;  %v5746_v11 = vrot.slane %v5545_v31, 7 }
 0x505   : > { %v4962_v36 = vadd.f32 %v17709_v22, %v4877_v24 }
 0x506   : > { %v5269_v45 = vrot.slane %v5251_v19, 2  ;;  %v5270_v49 = vrot.slane %v5251_v19, 4  ;;  %v5271_v60 = vrot.slane %v5251_v19, 6  ;;  %v5314_v21 = vmax.f32 %v5250_v46, %v5251_v19  ;;  %v5217_v39 = vpop.f32.mrf.mxu3 }
 0x507   : > { %v5168_v28 = vadd.f32 %v5151_v40, %v5095_v63  ;;  %v5036_v46 = vadd.f32 %v17705_v50, %v4960_v37  ;;  %v5038_v22 = vadd.f32 %v17712_v23, %v4962_v36 }
 0x508   : > { %v5315_v51 = vmax.f32 %v5266_v17, %v5269_v45  ;;  %v5316_v34 = vmax.f32 %v5267_v56, %v5270_v49  ;;  %v5317_v10 = vmax.f32 %v5268_v33, %v5271_v60  ;;  %v11766_v1 = vrot.slane %v5314_v21, 9  ;;  %v5156_v49 = vpop.f32.mrf.mxu2 }
 0x509   : > { %v5583_v17 = vsel %vm17782_vm13, %v5578_v59, %v5582_v41  ;;  %v5232_v26 = vadd.f32 %v17748_v14, %v5168_v28  ;;  %v17796_v45 = vsel %vm17790_vm3, %v11816_v32, %v5746_v11 }
 0x50a   : > { %v11767_v3 = vrot.slane %v5315_v51, 9  ;;  %v11768_v29 = vrot.slane %v5316_v34, 9  ;;  %v11769_v12 = vrot.slane %v5317_v10, 9  ;;  %v5394_v35 = vmax.f32 %v5314_v21, %v11766_v1  ;;  %5633 = vst [vmem:[#allocation1] ss:$4 sm:$0xff] %v5583_v17 }
 0x50b   : > { %v5080_v27 = vpop.f32.mrf.mxu1  ;;  %v4688_v21 = vadd.f32 %v17694_v20, %v17699_v15  ;;  %v5244_v57 = vadd.f32 %v17741_v58, %v5232_v26  ;;  %v5505_v15 = vld [vmem:[#allocation4 + $0x4] sm:$0x7]  ;;  %v14302_v20 = vld [vmem:[#allocation14 + $0x48] sm:$0xff] }
 0x50c   : > { %v5395_v16 = vmax.f32 %v5315_v51, %v11767_v3  ;;  %v5396_v5 = vmax.f32 %v5316_v34, %v11768_v29  ;;  %v5397_v13 = vmax.f32 %v5317_v10, %v11769_v12  ;;  %v5417_v8 = vpack.c.bf16 %v5394_v35, %v5394_v35 }
 0x50d   : > { %v5096_v63 = vadd.f32 %v5080_v27, %v5036_v46  ;;  %v5252_v55 = vmax.f32 %v5244_v57, 0.0 }
 0x50e   : > { %v5418_v42 = vpack.c.bf16 %v5395_v16, %v5395_v16  ;;  %v5419_v54 = vpack.c.bf16 %v5396_v5, %v5396_v5  ;;  %v5420_v47 = vpack.c.bf16 %v5397_v13, %v5397_v13  ;;  %v5449_v38 = vunpack.c.l.b16 %v5417_v8  ;;  %v5220_v62 = vpop.f32.mrf.mxu3 }
 0x50f   : > { %v5169_v10 = vadd.f32 %v5153_v6, %v5096_v63  ;;  %v4807_v6 = vadd.f32 %v17697_v25, %v4688_v21  ;;  %v5272_v18 = vrot.slane %v5252_v55, 2  ;;  %v5273_v43 = vrot.slane %v5252_v55, 4 }
 0x510   : > { %v5450_v56 = vunpack.c.l.b16 %v5418_v42  ;;  %v5451_v19 = vunpack.c.l.b16 %v5419_v54  ;;  %v5452_v33 = vunpack.c.l.b16 %v5420_v47  ;;  %v5465_v31 = vrot.slane %v5449_v38, 7  ;;  %v5158_v28 = vpop.f32.mrf.mxu2 }
 0x511   : > { %v5233_v0 = vadd.f32 %v5217_v39, %v5169_v10  ;;  %v4879_v12 = vadd.f32 %v17724_v53, %v4807_v6  ;;  %v5274_v41 = vrot.slane %v5252_v55, 6 }
 0x512   : > { %v5466_v60 = vrot.slane %v5450_v56, 6  ;;  %v5468_v14 = vrot.slane %v5451_v19, 5  ;;  %v5470_v34 = vrot.slane %v5452_v33, 4 }
 0x513   : > { %v5083_v30 = vpop.f32.mrf.mxu1  ;;  %v4964_v53 = vadd.f32 %v17718_v44, %v4879_v12 }
 0x514   : > { %v5467_v51 = vsel %vm4217_vm5, %v5466_v60, %v5465_v31  ;;  %v5097_v1 = vadd.f32 %v5083_v30, %v17714_v9  ;;  %v5245_v9 = vadd.f32 %v17741_v58, %v5233_v0 }
 0x515   : > { %v5469_v7 = vsel %vm4220_vm6, %v5468_v14, %v5467_v51  ;;  %v5040_v24 = vadd.f32 %v17720_v4, %v4964_v53 }
 0x516   : > { %v5471_v37 = vsel %vm4223_vm7, %v5470_v34, %v5469_v7  ;;  %v5170_v3 = vadd.f32 %v5156_v49, %v5097_v1  ;;  %v5253_v35 = vmax.f32 %v5245_v9, 0.0  ;;  %v5222_v48 = vpop.f32.mrf.mxu3 }
 0x517   : > { %v5493_v61 = vpack.c.b16 %v5471_v37, %v5471_v37 }
 0x518   : > { %v5234_v39 = vadd.f32 %v5220_v62, %v5170_v3  ;;  %v5275_v16 = vrot.slane %v5253_v35, 2  ;;  %v5276_v5 = vrot.slane %v5253_v35, 4  ;;  %v5277_v25 = vrot.slane %v5253_v35, 6  ;;  %v5161_v10 = vpop.f32.mrf.mxu2 }
 0x519   : > { %v5506_v29 = vsel %vm17808_vm14, %v5493_v61, %v5505_v15  ;;  %v5318_v13 = vmax.f32 %v5252_v55, %v5253_v35 }
 0x51a   : > { %5507 = vst [vmem:[#allocation4 + $0x4] sm:$0x7] %v5506_v29  ;;  %v5319_v46 = vmax.f32 %v5272_v18, %v5275_v16  ;;  %v5320_v59 = vmax.f32 %v5273_v43, %v5276_v5  ;;  %v5321_v42 = vmax.f32 %v5274_v41, %v5277_v25  ;;  %v5246_v54 = vadd.f32 %v17741_v58, %v5234_v39 }
 0x51b   : > { %v5085_v27 = vpop.f32.mrf.mxu1  ;;  %v11770_v23 = vrot.slane %v5318_v13, 9 }
 0x51c   : > { %v5098_v8 = vadd.f32 %v5085_v27, %v5038_v22  ;;  %v11771_v38 = vrot.slane %v5319_v46, 9  ;;  %v11772_v17 = vrot.slane %v5320_v59, 9  ;;  %v11773_v32 = vrot.slane %v5321_v42, 9 }
 0x51d   : > { %v5398_v11 = vmax.f32 %v5318_v13, %v11770_v23  ;;  %v5254_v60 = vmax.f32 %v5246_v54, 0.0 }
 0x51e   : > { %v5171_v47 = vadd.f32 %v5158_v28, %v5098_v8  ;;  %v5399_v33 = vmax.f32 %v5319_v46, %v11771_v38  ;;  %v5400_v63 = vmax.f32 %v5320_v59, %v11772_v17  ;;  %v5401_v49 = vmax.f32 %v5321_v42, %v11773_v32  ;;  %v5225_v3 = vpop.f32.mrf.mxu3  ;;  %v5508_v46 = vld [vmem:[#allocation4 + $0x8] sm:$0x7] }
 0x51f   : > { %v5421_v31 = vpack.c.bf16 %v5398_v11, %v5398_v11  ;;  %v5278_v55 = vrot.slane %v5254_v60, 2  ;;  %v5279_v35 = vrot.slane %v5254_v60, 4  ;;  %v5280_v18 = vrot.slane %v5254_v60, 6 }
 0x520   : > { %v5235_v56 = vadd.f32 %v5222_v48, %v5171_v47  ;;  %v5422_v57 = vpack.c.bf16 %v5399_v33, %v5399_v33  ;;  %v5423_v30 = vpack.c.bf16 %v5400_v63, %v5400_v63  ;;  %v5424_v1 = vpack.c.bf16 %v5401_v49, %v5401_v49  ;;  %v5163_v63 = vpop.f32.mrf.mxu2 }
 0x521   : > { %v17820_v26 = vld [vmem:[#allocation4 + $0x4] sm:$0x7]  ;;  %v5453_v7 = vunpack.c.l.b16 %v5421_v31 }
 0x522   : > { %v5536_v19 = vrot.slane %v17820_v26, 2  ;;  %v5247_v4 = vadd.f32 %v17741_v58, %v5235_v56  ;;  %v5454_v36 = vunpack.c.l.b16 %v5422_v57  ;;  %v5455_v37 = vunpack.c.l.b16 %v5423_v30 }
 0x523   : > { %v5088_v44 = vpop.f32.mrf.mxu1  ;;  %v5456_v6 = vunpack.c.l.b16 %v5424_v1  ;;  %v5472_v9 = vrot.slane %v5453_v7, 7 }
 0x524   : > { %v17826_v14 = vsel %vm1797_vm1, %v17820_v26, %v5536_v19  ;;  %v17830_v21 = vsel %vm5542_vm9, %v17820_v26, %v5536_v19  ;;  %v5473_v29 = vrot.slane %v5454_v36, 6  ;;  %v5475_v22 = vrot.slane %v5455_v37, 5 }
 0x525   : > { %v5551_v62 = vrot.slane %v17830_v21, 2  ;;  %v5584_v51 = vshrl.u32 %v17826_v14, 16  ;;  %v5587_v34 = vshll.u32 %v17826_v14, 16  ;;  %v5255_v43 = vmax.f32 %v5247_v4, 0.0 }
 0x526   : > { %v5474_v39 = vsel %vm4217_vm5, %v5473_v29, %v5472_v9  ;;  %v5477_v28 = vrot.slane %v5456_v6, 4  ;;  %v5099_v27 = vadd.f32 %v5088_v44, %v17722_v2 }
 0x527   : > { %v5586_v15 = vrot.slane %v5584_v51, 6  ;;  %v5589_v0 = vrot.slane %v5587_v34, 7  ;;  %v5593_v61 = vshll.u32 %v5551_v62, 16  ;;  %v5476_v5 = vsel %vm4220_vm6, %v5475_v22, %v5474_v39  ;;  %v5227_v51 = vpop.f32.mrf.mxu3 }
 0x528   : > { %v5281_v25 = vrot.slane %v5255_v43, 2  ;;  %v5282_v13 = vrot.slane %v5255_v43, 4  ;;  %v5478_v48 = vsel %vm4223_vm7, %v5477_v28, %v5476_v5  ;;  %v5283_v59 = vrot.slane %v5255_v43, 6 }
 0x529   : > { %v5590_v12 = vor.u32 %v5589_v0, %v5586_v15  ;;  %v5595_v41 = vrot.slane %v5593_v61, 7  ;;  %v5322_v42 = vmax.f32 %v5254_v60, %v5255_v43  ;;  %v5172_v23 = vadd.f32 %v5161_v10, %v5099_v27 }
 0x52a   : > { %v5494_v54 = vpack.c.b16 %v5478_v48, %v5478_v48  ;;  %v5323_v47 = vmax.f32 %v5278_v55, %v5281_v25  ;;  %v5324_v38 = vmax.f32 %v5279_v35, %v5282_v13  ;;  %v5325_v2 = vmax.f32 %v5280_v18, %v5283_v59 }
 0x52b   : > { %v5591_v16 = vrot.slane %v5590_v12, 2  ;;  %v5090_v8 = vpop.f32.mrf.mxu1  ;;  %v11774_v17 = vrot.slane %v5322_v42, 9  ;;  %v5236_v32 = vadd.f32 %v5225_v3, %v5172_v23 }
 0x52c   : > { %v5100_v11 = vadd.f32 %v5090_v8, %v5040_v24  ;;  %v5509_v56 = vsel %vm17808_vm14, %v5494_v54, %v5508_v46  ;;  %v11775_v19 = vrot.slane %v5323_v47, 9  ;;  %v11776_v33 = vrot.slane %v5324_v38, 9 }
 0x52d   : > { %v17844_v53 = vsel %vm17782_vm13, %v5591_v16, %v5595_v41  ;;  %5510 = vst [vmem:[#allocation4 + $0x8] sm:$0x7] %v5509_v56  ;;  %v11777_v49 = vrot.slane %v5325_v2, 9  ;;  %v5402_v31 = vmax.f32 %v5322_v42, %v11774_v17  ;;  %v5248_v60 = vadd.f32 %v17741_v58, %v5236_v32  ;;  %v5511_v17 = vld [vmem:[#allocation4 + $0xc] sm:$0x7] }
 0x52e   : > { %5636 = vst [vmem:[#allocation1 + $0x1] ss:$4 sm:$0xff] %v17844_v53  ;;  %v5173_v44 = vadd.f32 %v5163_v63, %v5100_v11  ;;  %v5403_v57 = vmax.f32 %v5323_v47, %v11775_v19  ;;  %v5404_v30 = vmax.f32 %v5324_v38, %v11776_v33  ;;  %v14300_v33 = vld [vmem:[#allocation14 + $0x38] sm:$0xff] }
 0x52f   : > { %v5405_v34 = vmax.f32 %v5325_v2, %v11777_v49  ;;  %v5425_v4 = vpack.c.bf16 %v5402_v31, %v5402_v31  ;;  %v5256_v10 = vmax.f32 %v5248_v60, 0.0  ;;  %5675 = vmatpush.bf16.msrb.mxu1 %v14300_v33  ;;  %v14303_v33 = vld [vmem:[#allocation14 + $0x50] sm:$0xff] }
 0x530   : > { %v5237_v1 = vadd.f32 %v5227_v51, %v5173_v44  ;;  %v5426_v24 = vpack.c.bf16 %v5403_v57, %v5403_v57  ;;  %v5427_v7 = vpack.c.bf16 %v5404_v30, %v5404_v30 }
 0x531   : > { %v5428_v36 = vpack.c.bf16 %v5405_v34, %v5405_v34  ;;  %v5457_v37 = vunpack.c.l.b16 %v5425_v4  ;;  %v5284_v3 = vrot.slane %v5256_v10, 2  ;;  %v5285_v43 = vrot.slane %v5256_v10, 4 }
 0x532   : > { %v5458_v15 = vunpack.c.l.b16 %v5426_v24  ;;  %v5459_v0 = vunpack.c.l.b16 %v5427_v7  ;;  %v5249_v61 = vadd.f32 %v17741_v58, %v5237_v1  ;;  %v5286_v41 = vrot.slane %v5256_v10, 6  ;;  %v14299_v24 = vld [vmem:[#allocation14 + $0x30] sm:$0xff] }
 0x533   : > { %v5460_v55 = vunpack.c.l.b16 %v5428_v36  ;;  %v5479_v9 = vrot.slane %v5457_v37, 7  ;;  %5676 = vmatpush.bf16.msrb.mxu1 %v14299_v24 }
 0x534   : > { %v17851_v6 = vld [vmem:[#allocation4 + $0x8] sm:$0x7]  ;;  %v5480_v29 = vrot.slane %v5458_v15, 6  ;;  %v5482_v22 = vrot.slane %v5459_v0, 5  ;;  %v5257_v12 = vmax.f32 %v5249_v61, 0.0 }
 0x535   : > { %v5537_v35 = vrot.slane %v17851_v6, 2  ;;  %v5484_v18 = vrot.slane %v5460_v55, 4 }
 0x536   : > { %v5481_v39 = vsel %vm4217_vm5, %v5480_v29, %v5479_v9  ;;  %v5287_v28 = vrot.slane %v5257_v12, 2  ;;  %v5288_v27 = vrot.slane %v5257_v12, 4  ;;  %v5289_v16 = vrot.slane %v5257_v12, 6  ;;  %v14298_v29 = vld [vmem:[#allocation14 + $0x28] sm:$0xff] }
 0x537   : > { %v17857_v58 = vsel %vm1797_vm1, %v17851_v6, %v5537_v35  ;;  %v17861_v5 = vsel %vm5542_vm9, %v17851_v6, %v5537_v35  ;;  %v5483_v25 = vsel %vm4220_vm6, %v5482_v22, %v5481_v39  ;;  %v5326_v13 = vmax.f32 %v5256_v10, %v5257_v12  ;;  %v14296_v22 = vld [vmem:[#allocation14 + $0x18] sm:$0xff]  ;;  %5677 = vmatpush.bf16.msrb.mxu1 %v14298_v29 }
 0x538   : > { %v5557_v8 = vrot.slane %v17861_v5, 2  ;;  %v5597_v48 = vshrl.u32 %v17857_v58, 16  ;;  %v5600_v46 = vshll.u32 %v17857_v58, 16  ;;  %v5485_v59 = vsel %vm4223_vm7, %v5484_v18, %v5483_v25  ;;  %5723 = vmatpush.bf16.msrb.mxu2 %v14296_v22  ;;  %v14309_v5 = vld [vmem:[#allocation14 + $0x80] sm:$0xff] }
 0x539   : > { %v5327_v42 = vmax.f32 %v5284_v3, %v5287_v28  ;;  %v5328_v23 = vmax.f32 %v5285_v43, %v5288_v27  ;;  %v5329_v54 = vmax.f32 %v5286_v41, %v5289_v16  ;;  %v5495_v32 = vpack.c.b16 %v5485_v59, %v5485_v59  ;;  %v5514_v28 = vld [vmem:[#allocation4 + $0x10] sm:$0x7]  ;;  %v14297_v27 = vld [vmem:[#allocation14 + $0x20] sm:$0xff]  ;;  %v14295_v16 = vld [vmem:[#allocation14 + $0x10] sm:$0xff] }
 0x53a   : > { %v5599_v47 = vrot.slane %v5597_v48, 6  ;;  %v5602_v38 = vrot.slane %v5600_v46, 7  ;;  %v5606_v2 = vshll.u32 %v5557_v8, 16  ;;  %v11778_v11 = vrot.slane %v5326_v13, 9 }
 0x53b   : > { %v11779_v56 = vrot.slane %v5327_v42, 9  ;;  %v11780_v19 = vrot.slane %v5328_v23, 9  ;;  %v11781_v49 = vrot.slane %v5329_v54, 9  ;;  %v5512_v31 = vsel %vm17808_vm14, %v5495_v32, %v5511_v17  ;;  %5678 = vmatpush.bf16.msrb.mxu1 %v14297_v27  ;;  %v14304_v17 = vld [vmem:[#allocation14 + $0x58] sm:$0xff]  ;;  %v14318_v27 = vld [vmem:[#allocation14 + $0xc8] sm:$0xff] }
 0x53c   : > { %v5603_v63 = vor.u32 %v5602_v38, %v5599_v47  ;;  %v5406_v60 = vmax.f32 %v5326_v13, %v11778_v11  ;;  %v5608_v51 = vrot.slane %v5606_v2, 7  ;;  %5513 = vst [vmem:[#allocation4 + $0xc] sm:$0x7] %v5512_v31  ;;  %5724 = vmatpush.bf16.msrb.mxu2 %v14295_v16  ;;  %v14294_v2 = vld [vmem:[#allocation14 + $0x8] sm:$0xff]  ;;  %5811 = vmatpush.bf16.msrb.mxu3 %v14304_v17  ;;  %v14301_v31 = vld [vmem:[#allocation14 + $0x40] sm:$0xff]  ;;  %v14324_v16 = vld [vmem:[#allocation14 + $0xf8] sm:$0xff] }
 0x53d   : > { %v5407_v44 = vmax.f32 %v5327_v42, %v11779_v56  ;;  %v5408_v57 = vmax.f32 %v5328_v23, %v11780_v19  ;;  %v5409_v34 = vmax.f32 %v5329_v54, %v11781_v49  ;;  %v14293_v19 = vld [vmem:[#allocation14] sm:$0xff]  ;;  %v14308_v49 = vld [vmem:[#allocation14 + $0x78] sm:$0xff]  ;;  %v5522_v17 = vld [vmem:[#allocation4 + $0x14] sm:$0x7] }
 0x53e   : > { %v5604_v30 = vrot.slane %v5603_v63, 2  ;;  %v5429_v4 = vpack.c.bf16 %v5406_v60, %v5406_v60  ;;  %v14307_v60 = vld [vmem:[#allocation14 + $0x70] sm:$0xff] }
 0x53f   : > { %v5430_v10 = vpack.c.bf16 %v5407_v44, %v5407_v44  ;;  %v5431_v1 = vpack.c.bf16 %v5408_v57, %v5408_v57  ;;  %v5432_v36 = vpack.c.bf16 %v5409_v34, %v5409_v34  ;;  %5871 = vmatpush.bf16.msra.mxu1 %v14308_v49  ;;  %v14306_v57 = vld [vmem:[#allocation14 + $0x68] sm:$0xff]  ;;  %v14311_v34 = vld [vmem:[#allocation14 + $0x90] sm:$0xff]  ;;  %v14325_v49 = vld [vmem:[#allocation14 + $0x100] sm:$0xff] }
 0x540   : > { %v17874_v7 = vsel %vm17782_vm13, %v5604_v30, %v5608_v51  ;;  %v5461_v37 = vunpack.c.l.b16 %v5429_v4  ;;  %5725 = vmatpush.bf16.msrb.mxu2 %v14294_v2  ;;  %5812 = vmatpush.bf16.msrb.mxu3 %v14303_v33  ;;  %v14312_v30 = vld [vmem:[#allocation14 + $0x98] sm:$0xff]  ;;  %v14305_v51 = vld [vmem:[#allocation14 + $0x60] sm:$0xff]  ;;  %v5750_v4 = vrot.slane %v5551_v62, 7  ;;  %v14327_v2 = vld [vmem:[#allocation14 + $0x110] sm:$0xff] }
 0x541   : > { %5639 = vst [vmem:[#allocation1 + $0x2] ss:$4 sm:$0xff] %v17874_v7  ;;  %v5462_v15 = vunpack.c.l.b16 %v5430_v10  ;;  %v5463_v0 = vunpack.c.l.b16 %v5431_v1  ;;  %v5464_v61 = vunpack.c.l.b16 %v5432_v36  ;;  %v11817_v10 = vrot.slane %v17826_v14, 9  ;;  %v14310_v36 = vld [vmem:[#allocation14 + $0x88] sm:$0xff] }
 0x542   : > { %v5486_v55 = vrot.slane %v5461_v37, 7  ;;  %v14316_v37 = vld [vmem:[#allocation14 + $0xb8] sm:$0xff]  ;;  %v14326_v33 = vld [vmem:[#allocation14 + $0x108] sm:$0xff] }
 0x543   : > { %v5487_v3 = vrot.slane %v5462_v15, 6  ;;  %v5489_v9 = vrot.slane %v5463_v0, 5  ;;  %v17877_v12 = vld [vmem:[#allocation4 + $0xc] sm:$0x7]  ;;  %v5491_v18 = vrot.slane %v5464_v61, 4  ;;  %5872 = vmatpush.bf16.msra.mxu1 %v14307_v60  ;;  %v11818_v15 = vrot.slane %v17857_v58, 9 }
 0x544   : > { %v5538_v43 = vrot.slane %v17877_v12, 2  ;;  %5726 = vmatpush.bf16.msrb.mxu2 %v14293_v19  ;;  %5813 = vmatpush.bf16.msrb.mxu3 %v14302_v20  ;;  %v17913_v61 = vsel %vm17790_vm3, %v11817_v10, %v5750_v4  ;;  %v12061_v4 = vld [vmem:[#allocation17 + $0x1e0] sm:$0xf] }
 0x545   : > { %v5488_v35 = vsel %vm4217_vm5, %v5487_v3, %v5486_v55  ;;  %v14314_v55 = vld [vmem:[#allocation14 + $0xa8] sm:$0xff]  ;;  %v14320_v3 = vld [vmem:[#allocation14 + $0xd8] sm:$0xff] }
 0x546   : > { %v5490_v41 = vsel %vm4220_vm6, %v5489_v9, %v5488_v35  ;;  %v17885_v25 = vsel %vm1797_vm1, %v17877_v12, %v5538_v43  ;;  %v5561_v13 = vsel %vm5542_vm9, %v17877_v12, %v5538_v43  ;;  %v14313_v35 = vld [vmem:[#allocation14 + $0xa0] sm:$0xff] }
 0x547   : > { %v5492_v39 = vsel %vm4223_vm7, %v5491_v18, %v5490_v41  ;;  %v5563_v46 = vrot.slane %v5561_v13, 2  ;;  %v5610_v59 = vshrl.u32 %v17885_v25, 16  ;;  %v5613_v42 = vshll.u32 %v17885_v25, 16  ;;  %5873 = vmatpush.bf16.msra.mxu1 %v14306_v57  ;;  %v14319_v18 = vld [vmem:[#allocation14 + $0xd0] sm:$0xff]  ;;  %v14317_v13 = vld [vmem:[#allocation14 + $0xc0] sm:$0xff] }
 0x548   : > { %v5496_v48 = vpack.c.b16 %v5492_v39, %v5492_v39  ;;  %vm5668_vm7 = vcmask 523264   ;;  %5814 = vmatpush.bf16.msrb.mxu3 %v14301_v31  ;;  %5951 = vmatpush.bf16.msra.mxu2 %v14312_v30  ;;  %v11819_v21 = vrot.slane %v17885_v25, 9 }
 0x549   : > { %v5612_v54 = vrot.slane %v5610_v59, 6  ;;  %v5615_v47 = vrot.slane %v5613_v42, 7  ;;  %v5619_v38 = vshll.u32 %v5563_v46, 16  ;;  %v5758_v1 = vrot.slane %v5563_v46, 7 }
 0x54a   : > { %v5515_v23 = vsel %vm17808_vm14, %v5496_v48, %v5514_v28  ;;  %v14323_v48 = vld [vmem:[#allocation14 + $0xf0] sm:$0xff]  ;;  %vm6433_vm14 = vsmask.f32 6424 }
 0x54b   : > { %5516 = vst [vmem:[#allocation4 + $0x10] sm:$0x7] %v5515_v23  ;;  %v5616_v32 = vor.u32 %v5615_v47, %v5612_v54  ;;  %v5621_v56 = vrot.slane %v5619_v38, 7  ;;  %5874 = vmatpush.bf16.msra.mxu1 %v14305_v51  ;;  %v17926_v58 = vsel %vm17790_vm3, %v11819_v21, %v5758_v1  ;;  %v14322_v54 = vld [vmem:[#allocation14 + $0xe8] sm:$0xff]  ;;  %v14328_v47 = vld [vmem:[#allocation14 + $0x118] sm:$0xff]  ;;  %v14321_v38 = vld [vmem:[#allocation14 + $0xe0] sm:$0xff] }
 0x54c   : > { %5952 = vmatpush.bf16.msra.mxu2 %v14311_v34  ;;  %6016 = vmatpush.bf16.msra.mxu3 %v14316_v37 }
 0x54d   : > { %v5617_v11 = vrot.slane %v5616_v32, 2  ;;  %v6089_v32 = vrot.slane %v5522_v17, 2 }
 0x54f   : > { %v17895_v63 = vsel %vm17782_vm13, %v5617_v11, %v5621_v56  ;;  %v6091_v20 = vsel %vm1797_vm1, %v5522_v17, %v6089_v32 }
 0x550   : > { %5642 = vst [vmem:[#allocation1 + $0x3] ss:$4 sm:$0xff] %v17895_v63  ;;  %5953 = vmatpush.bf16.msra.mxu2 %v14310_v36  ;;  %v6095_v31 = vshrl.u32 %v6091_v20, 16  ;;  %v6098_v60 = vshll.u32 %v6091_v20, 16 }
 0x552   : > { %v17908_v24 = vld [vmem:[#allocation4 + $0x10] sm:$0x7]  ;;  %v6097_v51 = vrot.slane %v6095_v31, 6  ;;  %v6100_v34 = vrot.slane %v6098_v60, 7  ;;  %v12013_v60 = vld [vmem:[#allocation17 + $0x180] sm:$0xf] }
 0x553   : > { %v5884_v62 = vrot.slane %v17908_v24, 2 }
 0x554   : > { %5954 = vmatpush.bf16.msra.mxu2 %v14309_v5  ;;  %v6101_v1 = vor.u32 %v6100_v34, %v6097_v51  ;;  %v12029_v5 = vld [vmem:[#allocation17 + $0x1a0] sm:$0xf] }
 0x555   : > { %v5887_v43 = vsel %vm5542_vm9, %v17908_v24, %v5884_v62 }
 0x556   : > { %v5889_v28 = vrot.slane %v5887_v43, 2  ;;  %v6102_v37 = vrot.slane %v6101_v1, 2  ;;  %v14392_v43 = vld [vmem:[#allocation17 + $0x1f4] sm:$0xf0] }
 0x557   : > { %v5643_v44 = vld.sshfl [vmem:[#allocation1] sm:$0xff pattern:$0x73625140] }
 0x558   : > { %5685 = vst [vmem:[#allocation1] ss:$4 sm:$0xff] %v17746_v52  ;;  %11798 = vmatmul.msk.bf16.vlgmr.msrb.gmra.mxu1 %vm5668_vm7, %v5643_v44  ;;  %v5754_v52 = vrot.slane %v5557_v8, 7  ;;  %v5886_v8 = vsel %vm1797_vm1, %v17908_v24, %v5884_v62  ;;  %v5899_v46 = vshll.u32 %v5889_v28, 16  ;;  %v6092_v44 = vsel %vm5542_vm9, %v5522_v17, %v6089_v32  ;;  %v14384_v32 = vld [vmem:[#allocation17 + $0x1b4] sm:$0xf0] }
 0x559   : > { %5687 = vst [vmem:[#allocation1 + $0x1] ss:$4 sm:$0xff] %v17820_v26  ;;  %v5890_v9 = vshrl.u32 %v5886_v8, 16  ;;  %v5893_v29 = vshll.u32 %v5886_v8, 16  ;;  %6076 = vmatpush.bf16.msrb.mxu1 %v14320_v3  ;;  %v11871_v56 = vrot.slane %v5886_v8, 9  ;;  %v6094_v57 = vrot.slane %v6092_v44, 2 }
 0x55a   : > { %5689 = vst [vmem:[#allocation1 + $0x2] ss:$4 sm:$0xff] %v17851_v6  ;;  %v17920_v14 = vsel %vm17790_vm3, %v11818_v15, %v5754_v52  ;;  %v5901_v42 = vrot.slane %v5899_v46, 7  ;;  %v14391_v52 = vld [vmem:[#allocation17 + $0x1ec] sm:$0xf0] }
 0x55b   : > { %5691 = vst [vmem:[#allocation1 + $0x3] ss:$4 sm:$0xff] %v17877_v12  ;;  %v5892_v41 = vrot.slane %v5890_v9, 6  ;;  %v5895_v39 = vrot.slane %v5893_v29, 7  ;;  %v12062_v10 = vor.u32 %v14391_v52, %v12061_v4  ;;  %v6104_v36 = vshll.u32 %v6094_v57, 16 }
 0x55c   : > { %v12063_v29 = vld [vmem:[#allocation17 + $0x1f0] sm:$0xf0]  ;;  %v12053_v46 = vld [vmem:[#allocation17 + $0x1c8] sm:$0xf]  ;;  %v14379_v44 = vld [vmem:[#allocation17 + $0x18c] sm:$0xf0] }
 0x55d   : > { %6077 = vmatpush.bf16.msrb.mxu1 %v14319_v18  ;;  %v5896_v25 = vor.u32 %v5895_v39, %v5892_v41  ;;  %6653 = vmatpush.bf16.msrb.mxu0 %v12062_v10  ;;  %v6106_v15 = vrot.slane %v6104_v36, 7  ;;  %v14390_v41 = vld [vmem:[#allocation17 + $0x1ec] sm:$0xf]  ;;  %v12071_v39 = vld [vmem:[#allocation17 + $0x1f8] sm:$0xf0]  ;;  %v12014_v34 = vor.u32 %v14379_v44, %v12013_v60 }
 0x55e   : > { %v12015_v4 = vld [vmem:[#allocation17 + $0x190] sm:$0xf0]  ;;  %v12021_v52 = vld [vmem:[#allocation17 + $0x188] sm:$0xf]  ;;  %v14380_v10 = vld [vmem:[#allocation17 + $0x194] sm:$0xf0] }
 0x55f   : > { %v5897_v59 = vrot.slane %v5896_v25, 2  ;;  %v12022_v36 = vor.u32 %v14380_v10, %v12021_v52  ;;  %v11951_v10 = vld [vmem:[#allocation17 + $0x110] sm:$0xf0] }
 0x561   : > { %6078 = vmatpush.bf16.msrb.mxu1 %v14318_v27  ;;  %v5902_v23 = vsel %vm17782_vm13, %v5897_v59, %v5901_v42  ;;  %v14386_v42 = vld [vmem:[#allocation17 + $0x1cc] sm:$0xf] }
 0x562   : > { %v5692_v0 = vld.sshfl [vmem:[#allocation1] sm:$0xff pattern:$0x73625140] }
 0x563   : > { %5770 = vst [vmem:[#allocation1] ss:$4 sm:$0xff] %v17796_v45  ;;  %11815 = vmatmul.msk.bf16.vlgmr.msrb.gmra.mxu2 %vm5668_vm7, %v5692_v0  ;;  %v14315_v45 = vld [vmem:[#allocation14 + $0xb0] sm:$0xff] }
 0x564   : > { %5773 = vst [vmem:[#allocation1 + $0x1] ss:$4 sm:$0xff] %v17913_v61  ;;  %6017 = vmatpush.bf16.msra.mxu3 %v14315_v45  ;;  %6156 = vmatpush.bf16.msrb.mxu2 %v14324_v16  ;;  %v14383_v45 = vld [vmem:[#allocation17 + $0x1ac] sm:$0xf0]  ;;  %v12074_v16 = vor.u32 %v14390_v41, %v12071_v39 }
 0x565   : > { %5776 = vst [vmem:[#allocation1 + $0x2] ss:$4 sm:$0xff] %v17920_v14  ;;  %6079 = vmatpush.bf16.msrb.mxu1 %v14317_v13  ;;  %v12030_v8 = vor.u32 %v14383_v45, %v12029_v5  ;;  %v14385_v13 = vld [vmem:[#allocation17 + $0x1c4] sm:$0xf] }
 0x566   : > { %5779 = vst [vmem:[#allocation1 + $0x3] ss:$4 sm:$0xff] %v17926_v58 }
 0x568   : > { %6018 = vmatpush.bf16.msra.mxu3 %v14314_v55  ;;  %6157 = vmatpush.bf16.msrb.mxu2 %v14323_v48  ;;  %v12047_v48 = vld [vmem:[#allocation17 + $0x1d0] sm:$0xf0] }
 0x569   : > { %v12050_v59 = vor.u32 %v14385_v13, %v12047_v48  ;;  %v14370_v48 = vld [vmem:[#allocation17 + $0x14c] sm:$0xf] }
 0x56c   : > { %6019 = vmatpush.bf16.msra.mxu3 %v14313_v35  ;;  %6158 = vmatpush.bf16.msrb.mxu2 %v14322_v54 }
 0x56d   : > { %v5780_v22 = vld.sshfl [vmem:[#allocation1] sm:$0xff pattern:$0x73625140] }
 0x56e   : > { %5836 = vst [vmem:[#allocation1 + $0x2] ss:$4 sm:$0xff] %v17877_v12  ;;  %11836 = vmatmul.msk.bf16.vlgmr.msrb.gmra.mxu3 %vm5668_vm7, %v5780_v22  ;;  %v12069_v22 = vld [vmem:[#allocation17 + $0x1e8] sm:$0xf] }
 0x56f   : > { %5832 = vst [vmem:[#allocation1] ss:$4 sm:$0xff] %v17820_v26  ;;  %v12070_v27 = vor.u32 %v14392_v43, %v12069_v22  ;;  %v14369_v43 = vld [vmem:[#allocation17 + $0x144] sm:$0xf] }
 0x570   : > { %5834 = vst [vmem:[#allocation1 + $0x1] ss:$4 sm:$0xff] %v17851_v6  ;;  %6221 = vmatpush.bf16.msrb.mxu3 %v14328_v47  ;;  %6159 = vmatpush.bf16.msrb.mxu2 %v14321_v38  ;;  %v14381_v38 = vld [vmem:[#allocation17 + $0x1a4] sm:$0xf] }
 0x571   : > { %5839 = vst [vmem:[#allocation1 + $0x3] ss:$4 sm:$0xff] %v17908_v24 }
 0x574   : > { %6222 = vmatpush.bf16.msrb.mxu3 %v14327_v2  ;;  %v12031_v2 = vld [vmem:[#allocation17 + $0x1b0] sm:$0xf0] }
 0x578   : > { %v5840_v26 = vld.sshfl [vmem:[#allocation1] sm:$0xff pattern:$0x73625140]  ;;  %6223 = vmatpush.bf16.msrb.mxu3 %v14326_v33 }
 0x579   : > { %5912 = vst [vmem:[#allocation1] ss:$4 sm:$0xff] %v17844_v53  ;;  %11853 = vmatmul.msk.bf16.vlgmr.msra.gmra.mxu1 %vm5668_vm7, %v5840_v26  ;;  %v5966_v53 = vrot.slane %v5889_v28, 7  ;;  %v14388_v26 = vld [vmem:[#allocation17 + $0x1d4] sm:$0xf0] }
 0x57a   : > { %5914 = vst [vmem:[#allocation1 + $0x1] ss:$4 sm:$0xff] %v17874_v7  ;;  %v12054_v54 = vor.u32 %v14388_v26, %v12053_v46  ;;  %v11991_v46 = vld [vmem:[#allocation17 + $0x158] sm:$0xf0]  ;;  %v11965_v26 = vld [vmem:[#allocation17 + $0x120] sm:$0xf] }
 0x57b   : > { %5916 = vst [vmem:[#allocation1 + $0x2] ss:$4 sm:$0xff] %v17895_v63  ;;  %v5967_v19 = vsel %vm17790_vm3, %v11871_v56, %v5966_v53  ;;  %v12034_v53 = vor.u32 %v14381_v38, %v12031_v2  ;;  %v12039_v56 = vld [vmem:[#allocation17 + $0x1b8] sm:$0xf0]  ;;  %v11967_v38 = vld [vmem:[#allocation17 + $0x130] sm:$0xf0] }
 0x57c   : > { %5919 = vst [vmem:[#allocation1 + $0x3] ss:$4 sm:$0xff] %v5902_v23  ;;  %6224 = vmatpush.bf16.msrb.mxu3 %v14325_v49  ;;  %v11973_v2 = vld [vmem:[#allocation17 + $0x128] sm:$0xf] }
 0x583   : > { %v5920_v11 = vld.sshfl [vmem:[#allocation1] sm:$0xff pattern:$0x73625140] }
 0x584   : > { %5977 = vst [vmem:[#allocation1] ss:$4 sm:$0xff] %v17913_v61  ;;  %11870 = vmatmul.msk.bf16.vlgmr.msra.gmra.mxu2 %vm5668_vm7, %v5920_v11  ;;  %v14382_v11 = vld [vmem:[#allocation17 + $0x1ac] sm:$0xf] }
 0x585   : > { %5979 = vst [vmem:[#allocation1 + $0x1] ss:$4 sm:$0xff] %v17920_v14  ;;  %6679 = vmatpush.bf16.msra.mxu2 %v12070_v27  ;;  %v11989_v27 = vld [vmem:[#allocation17 + $0x148] sm:$0xf] }
 0x586   : > { %5981 = vst [vmem:[#allocation1 + $0x2] ss:$4 sm:$0xff] %v17926_v58 }
 0x587   : > { %5984 = vst [vmem:[#allocation1 + $0x3] ss:$4 sm:$0xff] %v5967_v19 }
 0x589   : > { %6680 = vmatpush.bf16.msra.mxu2 %v12054_v54 }
 0x58e   : > { %v5985_v30 = vld.sshfl [vmem:[#allocation1] sm:$0xff pattern:$0x73625140] }
 0x58f   : > { %6041 = vst [vmem:[#allocation1 + $0x2] ss:$4 sm:$0xff] %v17908_v24  ;;  %11888 = vmatmul.msk.bf16.vlgmr.msra.gmra.mxu3 %vm5668_vm7, %v5985_v30  ;;  %v6107_v24 = vsel %vm17782_vm13, %v6102_v37, %v6106_v15  ;;  %v14378_v37 = vld [vmem:[#allocation17 + $0x18c] sm:$0xf]  ;;  %v12023_v15 = vld [vmem:[#allocation17 + $0x198] sm:$0xf0]  ;;  %vm17997_vm13 = vmor %vm17988_vm11, %vm6426_vm4 }
 0x590   : > { %6037 = vst [vmem:[#allocation1] ss:$4 sm:$0xff] %v17851_v6  ;;  %v11923_v6 = vrot.slane %v6091_v20, 9  ;;  %6692 = vmatpush.bf16.msra.mxu3 %v12074_v16  ;;  %v12042_v20 = vor.u32 %v14382_v11, %v12039_v56  ;;  %v14372_v16 = vld [vmem:[#allocation17 + $0x154] sm:$0xf0]  ;;  %vm18005_vm15 = vmor %vm17997_vm13, %vm6428_vm2 }
 0x591   : > { %6039 = vst [vmem:[#allocation1 + $0x1] ss:$4 sm:$0xff] %v17877_v12  ;;  %v6171_v12 = vrot.slane %v6094_v57, 7  ;;  %v14377_v57 = vld [vmem:[#allocation17 + $0x184] sm:$0xf]  ;;  %vm18021_vm4 = vmor %vm18005_vm15, %vm18697_vm8 }
 0x592   : > { %6044 = vst [vmem:[#allocation1 + $0x3] ss:$4 sm:$0xff] %v5522_v17  ;;  %v12037_v17 = vld [vmem:[#allocation17 + $0x1a8] sm:$0xf]  ;;  %v12018_v1 = vor.u32 %v14377_v57, %v12015_v4  ;;  %v14366_v56 = vld [vmem:[#allocation17 + $0x12c] sm:$0xf] }
 0x593   : > { %v6172_v21 = vsel %vm17790_vm3, %v11923_v6, %v6171_v12  ;;  %v12038_v33 = vor.u32 %v14384_v32, %v12037_v17  ;;  %v14375_v6 = vld [vmem:[#allocation17 + $0x16c] sm:$0xf0]  ;;  %v14373_v12 = vld [vmem:[#allocation17 + $0x164] sm:$0xf]  ;;  %v14368_v17 = vld [vmem:[#allocation17 + $0x134] sm:$0xf0] }
 0x594   : > { %v11974_v11 = vor.u32 %v14368_v17, %v11973_v2  ;;  %v11949_v57 = vld [vmem:[#allocation17 + $0x100] sm:$0xf]  ;;  %v14351_v17 = vld [vmem:[#allocation17 + $0xac] sm:$0xf0]  ;;  %vm6431_vm3 = vsmask.f32 5396 }
 0x595   : > { %6681 = vmatpush.bf16.msra.mxu2 %v12038_v33  ;;  %v12157_v2 = vld [vmem:[#allocation17 + $0xa0] sm:$0xf]  ;;  %vm18036_vm2 = vmor %vm18021_vm4, %vm6431_vm3  ;;  %vm6346_vm3 = vsmask.f32 1282 }
 0x596   : > { %vm18045_vm11 = vmor %vm18036_vm2, %vm6433_vm14 }
 0x597   : > { %vm18061_vm15 = vmand %vm1797_vm1, %vm6346_vm3 }
 0x599   : > { %v6045_v0 = vld.sshfl [vmem:[#allocation1] sm:$0xff pattern:$0x73625140]  ;;  %6682 = vmatpush.bf16.msra.mxu2 %v12022_v36  ;;  %v14364_v36 = vld [vmem:[#allocation17 + $0x114] sm:$0xf0] }
 0x59a   : > { %11905 = vmatmul.msk.bf16.vlgmr.msrb.gmra.mxu1 %vm5668_vm7, %v6045_v0  ;;  %6117 = vst [vmem:[#allocation1] ss:$4 sm:$0xff] %v17874_v7  ;;  %v12045_v7 = vld [vmem:[#allocation17 + $0x1c0] sm:$0xf]  ;;  %v12026_v0 = vor.u32 %v14378_v37, %v12023_v15 }
 0x59b   : > { %6119 = vst [vmem:[#allocation1 + $0x1] ss:$4 sm:$0xff] %v17895_v63  ;;  %v14387_v63 = vld [vmem:[#allocation17 + $0x1cc] sm:$0xf0] }
 0x59c   : > { %6121 = vst [vmem:[#allocation1 + $0x2] ss:$4 sm:$0xff] %v5902_v23  ;;  %v12046_v62 = vor.u32 %v14387_v63, %v12045_v7  ;;  %v12055_v23 = vld [vmem:[#allocation17 + $0x1d8] sm:$0xf0]  ;;  %v12005_v7 = vld [vmem:[#allocation17 + $0x168] sm:$0xf] }
 0x59d   : > { %6124 = vst [vmem:[#allocation1 + $0x3] ss:$4 sm:$0xff] %v6107_v24  ;;  %v12058_v47 = vor.u32 %v14386_v42, %v12055_v23  ;;  %v11997_v24 = vld [vmem:[#allocation17 + $0x160] sm:$0xf]  ;;  %v14376_v63 = vld [vmem:[#allocation17 + $0x174] sm:$0xf0] }
 0x59e   : > { %6654 = vmatpush.bf16.msrb.mxu0 %v12046_v62  ;;  %v12006_v45 = vor.u32 %v14376_v63, %v12005_v7  ;;  %v14367_v42 = vld [vmem:[#allocation17 + $0x12c] sm:$0xf0]  ;;  %v14365_v23 = vld [vmem:[#allocation17 + $0x124] sm:$0xf]  ;;  %v12191_v63 = vld [vmem:[#allocation17 + $0xf0] sm:$0xf0] }
 0x59f   : > { %6693 = vmatpush.bf16.msra.mxu3 %v12058_v47  ;;  %v11966_v47 = vor.u32 %v14367_v42, %v11965_v26  ;;  %v11970_v32 = vor.u32 %v14365_v23, %v11967_v38  ;;  %v14357_v7 = vld [vmem:[#allocation17 + $0xe4] sm:$0xf]  ;;  %v14354_v26 = vld [vmem:[#allocation17 + $0xcc] sm:$0xf]  ;;  %v12183_v42 = vld [vmem:[#allocation17 + $0xd8] sm:$0xf0] }
 0x5a0   : > { %6683 = vmatpush.bf16.msra.mxu2 %v12006_v45  ;;  %v12194_v45 = vor.u32 %v14357_v7, %v12191_v63  ;;  %v12151_v7 = vld [vmem:[#allocation17 + $0x98] sm:$0xf0] }
 0x5a2   : > { %6655 = vmatpush.bf16.msrb.mxu0 %v12030_v8  ;;  %v14374_v8 = vld [vmem:[#allocation17 + $0x16c] sm:$0xf] }
 0x5a3   : > { %6694 = vmatpush.bf16.msra.mxu3 %v12042_v20  ;;  %v17980_v20 = vld [vmem:[#allocation15] ss:$0 sm:$0xff] }
 0x5a4   : > { %v6125_v61 = vld.sshfl [vmem:[#allocation1] sm:$0xff pattern:$0x73625140] }
 0x5a5   : > { %11922 = vmatmul.msk.bf16.vlgmr.msrb.gmra.mxu2 %vm5668_vm7, %v6125_v61  ;;  %6182 = vst [vmem:[#allocation1] ss:$4 sm:$0xff] %v17920_v14 }
 0x5a6   : > { %6184 = vst [vmem:[#allocation1 + $0x1] ss:$4 sm:$0xff] %v17926_v58  ;;  %v14389_v58 = vld [vmem:[#allocation17 + $0x1e4] sm:$0xf]  ;;  %6656 = vmatpush.bf16.msrb.mxu0 %v12014_v34 }
 0x5a7   : > { %6186 = vst [vmem:[#allocation1 + $0x2] ss:$4 sm:$0xff] %v5967_v19  ;;  %v12066_v18 = vor.u32 %v14389_v58, %v12063_v29  ;;  %6695 = vmatpush.bf16.msra.mxu3 %v12026_v0  ;;  %v14361_v34 = vld [vmem:[#allocation17 + $0x104] sm:$0xf]  ;;  %v14362_v0 = vld [vmem:[#allocation17 + $0x10c] sm:$0xf] }
 0x5a8   : > { %6189 = vst [vmem:[#allocation1 + $0x3] ss:$4 sm:$0xff] %v6172_v21  ;;  %v11998_v21 = vor.u32 %v14375_v6, %v11997_v24  ;;  %v11954_v37 = vor.u32 %v14361_v34, %v11951_v10  ;;  %v11959_v24 = vld [vmem:[#allocation17 + $0x118] sm:$0xf0]  ;;  %v12189_v6 = vld [vmem:[#allocation17 + $0xe0] sm:$0xf] }
 0x5a9   : > { %6666 = vmatpush.bf16.msra.mxu1 %v12066_v18  ;;  %v14371_v18 = vld [vmem:[#allocation17 + $0x14c] sm:$0xf0]  ;;  %v12167_v34 = vld [vmem:[#allocation17 + $0xb8] sm:$0xf0] }
 0x5aa   : > { %6657 = vmatpush.bf16.msrb.mxu0 %v11998_v21  ;;  %v11962_v21 = vor.u32 %v14362_v0, %v11959_v24  ;;  %v14347_v10 = vld [vmem:[#allocation17 + $0x8c] sm:$0xf0]  ;;  %v12143_v24 = vld [vmem:[#allocation17 + $0x90] sm:$0xf0] }
 0x5ad   : > { %6667 = vmatpush.bf16.msra.mxu1 %v12050_v59  ;;  %v11994_v59 = vor.u32 %v14370_v48, %v11991_v46  ;;  %v12181_v48 = vld [vmem:[#allocation17 + $0xc8] sm:$0xf] }
 0x5af   : > { %v6190_v40 = vld.sshfl [vmem:[#allocation1] sm:$0xff pattern:$0x73625140] }
 0x5b0   : > { %11940 = vmatmul.msk.bf16.vlgmr.msrb.gmra.mxu3 %vm5668_vm7, %v6190_v40  ;;  %v11999_v40 = vld [vmem:[#allocation17 + $0x170] sm:$0xf0]  ;;  %vm6435_vm7 = vsmask.f32 7452 }
 0x5b1   : > { %6668 = vmatpush.bf16.msra.mxu1 %v12034_v53  ;;  %v12002_v5 = vor.u32 %v14373_v12, %v11999_v40  ;;  %v14359_v40 = vld [vmem:[#allocation17 + $0xec] sm:$0xf0]  ;;  %vm18053_vm13 = vmor %vm18045_vm11, %vm6435_vm7 }
 0x5b5   : > { %6669 = vmatpush.bf16.msra.mxu1 %v12018_v1  ;;  %v11957_v1 = vld [vmem:[#allocation17 + $0x108] sm:$0xf] }
 0x5b6   : > { %v11958_v15 = vor.u32 %v14364_v36, %v11957_v1  ;;  %v14345_v1 = vld [vmem:[#allocation17 + $0x84] sm:$0xf] }
 0x5b9   : > { %6670 = vmatpush.bf16.msra.mxu1 %v12002_v5  ;;  %v12190_v5 = vor.u32 %v14359_v40, %v12189_v6  ;;  %v12149_v6 = vld [vmem:[#allocation17 + $0x88] sm:$0xf]  ;;  %v14346_v40 = vld [vmem:[#allocation17 + $0x8c] sm:$0xf] }
 0x5d5   : > { %v5680_v55 = vpop.f32.mrf.mxu1 }
 0x5dd   : > { %v17968_v50 = vpop.f32.mrf.mxu1 }
 0x5e6   : > { %v5728_v14 = vpop.f32.mrf.mxu2 }
 0x5e7   : > { %v5729_v49 = vadd.f32 %v5728_v14, %v5680_v55  ;;  %v12007_v55 = vld [vmem:[#allocation17 + $0x178] sm:$0xf0] }
 0x5e8   : > { %v12010_v58 = vor.u32 %v14374_v8, %v12007_v55  ;;  %v12197_v8 = vld [vmem:[#allocation17 + $0xe8] sm:$0xf]  ;;  %v14360_v55 = vld [vmem:[#allocation17 + $0xf4] sm:$0xf0] }
 0x5ea   : > { %6696 = vmatpush.bf16.msra.mxu3 %v12010_v58 }
 0x5ee   : > { %v17970_v9 = vpop.f32.mrf.mxu2  ;;  %6697 = vmatpush.bf16.msra.mxu3 %v11994_v59 }
 0x5ef   : > { %v5731_v62 = vadd.f32 %v17970_v9, %v17968_v50  ;;  %v11983_v9 = vld [vmem:[#allocation17 + $0x150] sm:$0xf0] }
 0x5f0   : > { %v11986_v13 = vor.u32 %v14369_v43, %v11983_v9  ;;  %v12133_v9 = vld [vmem:[#allocation17 + $0x68] sm:$0xf] }
 0x5f1   : > { %v5816_v3 = vpop.f32.mrf.mxu3 }
 0x5f2   : > { %v5821_v30 = vadd.f32 %v5816_v3, %v5729_v49  ;;  %6671 = vmatpush.bf16.msra.mxu1 %v11986_v13 }
 0x5f6   : > { %v5876_v35 = vpop.f32.mrf.mxu1  ;;  %6672 = vmatpush.bf16.msra.mxu1 %v11970_v32  ;;  %v12186_v32 = vor.u32 %v14354_v26, %v12183_v42 }
 0x5f7   : > { %v5881_v61 = vadd.f32 %v5876_v35, %v5821_v30  ;;  %v11981_v35 = vld [vmem:[#allocation17 + $0x140] sm:$0xf]  ;;  %v14363_v30 = vld [vmem:[#allocation17 + $0x10c] sm:$0xf0] }
 0x5f8   : > { %v11982_v50 = vor.u32 %v14371_v18, %v11981_v35  ;;  %v11950_v52 = vor.u32 %v14363_v30, %v11949_v57  ;;  %v12173_v35 = vld [vmem:[#allocation17 + $0xc0] sm:$0xf]  ;;  %v14350_v30 = vld [vmem:[#allocation17 + $0xac] sm:$0xf] }
 0x5f9   : > { %v17972_v28 = vpop.f32.mrf.mxu3 }
 0x5fa   : > { %v5822_v29 = vadd.f32 %v17972_v28, %v5731_v62  ;;  %6658 = vmatpush.bf16.msrb.mxu0 %v11982_v50  ;;  %6673 = vmatpush.bf16.msra.mxu1 %v11954_v37  ;;  %v12175_v50 = vld [vmem:[#allocation17 + $0xd0] sm:$0xf0] }
 0x5fb   : > { %v12095_v37 = vld [vmem:[#allocation17 + $0x30] sm:$0xf0] }
 0x5fe   : > { %v5878_v31 = vpop.f32.mrf.mxu1  ;;  %6659 = vmatpush.bf16.msrb.mxu0 %v11966_v47  ;;  %6883 = vmatpush.bf16.msrb.mxu1 %v12194_v45 }
 0x5ff   : > { %v5882_v28 = vadd.f32 %v5878_v31, %v5822_v29  ;;  %v17982_v31 = vld [vmem:[#allocation5] sm:$0x3]  ;;  %v12198_v29 = vor.u32 %v14360_v55, %v12197_v8  ;;  %v12125_v8 = vld [vmem:[#allocation17 + $0x60] sm:$0xf] }
 0x600   : > { %v6393_v36 = vrot.slane %v17982_v31, 2  ;;  %v14343_v55 = vld [vmem:[#allocation17 + $0x6c] sm:$0xf0] }
 0x602   : > { %6660 = vmatpush.bf16.msrb.mxu0 %v11950_v52  ;;  %v12141_v52 = vld [vmem:[#allocation17 + $0x80] sm:$0xf] }
 0x606   : > { %6870 = vmatpush.bf16.msra.mxu0 %v12190_v5 }
 0x607   : > { %v5956_v25 = vpop.f32.mrf.mxu2 }
 0x608   : > { %v5961_v14 = vadd.f32 %v5956_v25, %v5881_v61  ;;  %v11990_v25 = vor.u32 %v14372_v16, %v11989_v27 }
 0x60a   : > { %6684 = vmatpush.bf16.msra.mxu2 %v11990_v25 }
 0x60e   : > { %6685 = vmatpush.bf16.msra.mxu2 %v11974_v11  ;;  %v12158_v11 = vor.u32 %v14351_v17, %v12157_v2 }
 0x60f   : > { %v17974_v51 = vpop.f32.mrf.mxu2 }
 0x610   : > { %v5962_v53 = vadd.f32 %v17974_v51, %v5882_v28  ;;  %v14356_v28 = vld [vmem:[#allocation17 + $0xd4] sm:$0xf0] }
 0x611   : > { %v12182_v38 = vor.u32 %v14356_v28, %v12181_v48  ;;  %v14342_v48 = vld [vmem:[#allocation17 + $0x6c] sm:$0xf] }
 0x612   : > { %v6021_v19 = vpop.f32.mrf.mxu3  ;;  %6686 = vmatpush.bf16.msra.mxu2 %v11958_v15 }
 0x613   : > { %v6026_v41 = vadd.f32 %v6021_v19, %v5961_v14  ;;  %v11975_v19 = vld [vmem:[#allocation17 + $0x138] sm:$0xf0]  ;;  %v14358_v14 = vld [vmem:[#allocation17 + $0xec] sm:$0xf] }
 0x614   : > { %v11978_v49 = vor.u32 %v14366_v56, %v11975_v19  ;;  %v12159_v56 = vld [vmem:[#allocation17 + $0xb0] sm:$0xf0]  ;;  %v12165_v19 = vld [vmem:[#allocation17 + $0xa8] sm:$0xf] }
 0x616   : > { %6698 = vmatpush.bf16.msra.mxu3 %v11978_v49  ;;  %6896 = vmatpush.bf16.msrb.mxu2 %v12198_v29 }
 0x617   : > { %v6081_v3 = vpop.f32.mrf.mxu1 }
 0x618   : > { %v6086_v54 = vadd.f32 %v6081_v3, %v6026_v41  ;;  %v6392_v3 = vrot.slane %v17982_v31, 1  ;;  %v14355_v41 = vld [vmem:[#allocation17 + $0xcc] sm:$0xf0] }
 0x619   : > { %v12174_v25 = vor.u32 %v14355_v41, %v12173_v35  ;;  %v14341_v35 = vld [vmem:[#allocation17 + $0x64] sm:$0xf] }
 0x61a   : > { %v6023_v22 = vpop.f32.mrf.mxu3  ;;  %6699 = vmatpush.bf16.msra.mxu3 %v11962_v21  ;;  %6897 = vmatpush.bf16.msrb.mxu2 %v12182_v38  ;;  %v14348_v21 = vld [vmem:[#allocation17 + $0x94] sm:$0xf0]  ;;  %v6406_v38 = vsel %vm6405_vm10, %v17982_v31, %v6392_v3 }
 0x61b   : > { %v6027_v60 = vadd.f32 %v6023_v22, %v5962_v53  ;;  %v12199_v22 = vld [vmem:[#allocation17 + $0xf8] sm:$0xf0]  ;;  %v14349_v53 = vld [vmem:[#allocation17 + $0xa4] sm:$0xf]  ;;  %6871 = vmatpush.bf16.msra.mxu0 %v12174_v25  ;;  %v12150_v29 = vor.u32 %v14348_v21, %v12149_v6  ;;  %v12101_v6 = vld [vmem:[#allocation17 + $0x28] sm:$0xf] }
 0x61c   : > { %v12202_v43 = vor.u32 %v14358_v14, %v12199_v22  ;;  %v12162_v57 = vor.u32 %v14349_v53, %v12159_v56  ;;  %v6394_v14 = vrot.slane %v17982_v31, 3  ;;  %v12154_v22 = vor.u32 %v14346_v40, %v12151_v7  ;;  %v12103_v7 = vld [vmem:[#allocation17 + $0x38] sm:$0xf0] }
 0x61e   : > { %6909 = vmatpush.bf16.msrb.mxu3 %v12202_v43  ;;  %v6407_v2 = vsel %vm4220_vm6, %v6393_v36, %v6394_v14 }
 0x61f   : > { %v6083_v51 = vpop.f32.mrf.mxu1  ;;  %6872 = vmatpush.bf16.msra.mxu0 %v12158_v11 }
 0x620   : > { %v6087_v62 = vadd.f32 %v6083_v51, %v6027_v60 }
 0x622   : > { %6910 = vmatpush.bf16.msrb.mxu3 %v12186_v32  ;;  %v12111_v32 = vld [vmem:[#allocation17 + $0x50] sm:$0xf0] }
 0x628   : > { %v6161_v39 = vpop.f32.mrf.mxu2 }
 0x629   : > { %v6166_v33 = vadd.f32 %v6161_v39, %v6086_v54  ;;  %v14353_v39 = vld [vmem:[#allocation17 + $0xc4] sm:$0xf] }
 0x62a   : > { %v12178_v59 = vor.u32 %v14353_v39, %v12175_v50 }
 0x62c   : > { %6884 = vmatpush.bf16.msrb.mxu1 %v12178_v59  ;;  %v12109_v59 = vld [vmem:[#allocation17 + $0x40] sm:$0xf] }
 0x630   : > { %v6163_v12 = vpop.f32.mrf.mxu2  ;;  %6885 = vmatpush.bf16.msrb.mxu1 %v12162_v57  ;;  %v14338_v57 = vld [vmem:[#allocation17 + $0x4c] sm:$0xf] }
 0x631   : > { %v6167_v18 = vadd.f32 %v6163_v12, %v6087_v62  ;;  %v12142_v12 = vor.u32 %v14347_v10, %v12141_v52  ;;  %v14335_v10 = vld [vmem:[#allocation17 + $0x2c] sm:$0xf0] }
 0x633   : > { %v6226_v44 = vpop.f32.mrf.mxu3  ;;  %6873 = vmatpush.bf16.msra.mxu0 %v12142_v12  ;;  %v14336_v12 = vld [vmem:[#allocation17 + $0x34] sm:$0xf0] }
 0x634   : > { %v6231_v4 = vadd.f32 %v6226_v44, %v6166_v33  ;;  %v14352_v33 = vld [vmem:[#allocation17 + $0xb4] sm:$0xf0] }
 0x635   : > { %v12166_v51 = vor.u32 %v14352_v33, %v12165_v19  ;;  %v12117_v19 = vld [vmem:[#allocation17 + $0x48] sm:$0xf]  ;;  %v14340_v33 = vld [vmem:[#allocation17 + $0x54] sm:$0xf0] }
 0x636   : > { %v6237_v61 = vadd.f32 %v17980_v20, %v6231_v4  ;;  %v12170_v4 = vor.u32 %v14350_v30, %v12167_v34  ;;  %v12119_v30 = vld [vmem:[#allocation17 + $0x58] sm:$0xf0]  ;;  %v12093_v34 = vld [vmem:[#allocation17 + $0x20] sm:$0xf]  ;;  %v12118_v52 = vor.u32 %v14340_v33, %v12117_v19  ;;  %v6348_v33 = vld [vmem:[#allocation5 + $0x2] sm:$0x3] }
 0x637   : > { %6898 = vmatpush.bf16.msrb.mxu2 %v12166_v51  ;;  %v6409_v51 = vsel %vm6408_vm12, %v6406_v38, %v6407_v2  ;;  %v14411_v19 = vld [vmem:[#allocation17 + $0x28c] sm:$0xf0] }
 0x638   : > { %v6239_v58 = vmax.f32 %v6237_v61, 0.0  ;;  %v12146_v61 = vor.u32 %v14345_v1, %v12143_v24  ;;  %6911 = vmatpush.bf16.msrb.mxu3 %v12170_v4  ;;  %v14333_v1 = vld [vmem:[#allocation17 + $0x24] sm:$0xf]  ;;  %v12122_v24 = vor.u32 %v14338_v57, %v12119_v30 }
 0x63a   : > { %v6243_v27 = vrot.slane %v6239_v58, 2  ;;  %v6244_v16 = vrot.slane %v6239_v58, 4  ;;  %v6245_v13 = vrot.slane %v6239_v58, 6  ;;  %6886 = vmatpush.bf16.msrb.mxu1 %v12146_v61  ;;  %v14334_v61 = vld [vmem:[#allocation17 + $0x2c] sm:$0xf] }
 0x63b   : > { %v6228_v46 = vpop.f32.mrf.mxu3  ;;  %6899 = vmatpush.bf16.msrb.mxu2 %v12150_v29  ;;  %v12102_v29 = vor.u32 %v14336_v12, %v12101_v6 }
 0x63c   : > { %v6255_v23 = vmax.f32 %v6239_v58, %v6244_v16  ;;  %v6256_v54 = vmax.f32 %v6243_v27, %v6245_v13  ;;  %v6232_v47 = vadd.f32 %v6228_v46, %v6167_v18  ;;  %v12127_v18 = vld [vmem:[#allocation17 + $0x70] sm:$0xf0]  ;;  %v14344_v27 = vld [vmem:[#allocation17 + $0x74] sm:$0xf0]  ;;  %v12126_v13 = vor.u32 %v14343_v55, %v12125_v8  ;;  %v12135_v46 = vld [vmem:[#allocation17 + $0x78] sm:$0xf0]  ;;  %6912 = vmatpush.bf16.msrb.mxu3 %v12154_v22 }
 0x63d   : > { %v12130_v25 = vor.u32 %v14341_v35, %v12127_v18  ;;  %v12138_v53 = vor.u32 %v14342_v48, %v12135_v46  ;;  %v14329_v8 = vld [vmem:[#allocation17 + $0x4] sm:$0xf]  ;;  %v12079_v22 = vld [vmem:[#allocation17 + $0x10] sm:$0xf0] }
 0x63e   : > { %v11941_v49 = vrot.slane %v6255_v23, 9  ;;  %v11942_v60 = vrot.slane %v6256_v54, 9  ;;  %v6238_v44 = vadd.f32 %v17980_v20, %v6232_v47  ;;  %v14337_v47 = vld [vmem:[#allocation17 + $0x44] sm:$0xf]  ;;  %6874 = vmatpush.bf16.msra.mxu0 %v12126_v13  ;;  %v12082_v48 = vor.u32 %v14329_v8, %v12079_v22  ;;  %v12325_v8 = vld [vmem:[#allocation17 + $0x2e8] sm:$0xf] }
 0x63f   : > { %6887 = vmatpush.bf16.msrb.mxu1 %v12130_v25 }
 0x640   : > { %v6275_v20 = vmax.f32 %v6255_v23, %v11941_v49  ;;  %v6276_v15 = vmax.f32 %v6256_v54, %v11942_v60  ;;  %v6240_v0 = vmax.f32 %v6238_v44, 0.0  ;;  %v12134_v23 = vor.u32 %v14344_v27, %v12133_v9  ;;  %v14339_v54 = vld [vmem:[#allocation17 + $0x4c] sm:$0xf0]  ;;  %6913 = vmatpush.bf16.msrb.mxu3 %v12138_v53  ;;  %v14330_v9 = vld [vmem:[#allocation17 + $0xc] sm:$0xf] }
 0x641   : > { %v12110_v60 = vor.u32 %v14339_v54, %v12109_v59  ;;  %v12114_v44 = vor.u32 %v14337_v47, %v12111_v32  ;;  %v12087_v27 = vld [vmem:[#allocation17 + $0x18] sm:$0xf0]  ;;  %v12462_v59 = vld [vmem:[#allocation17 + $0x400] sm:$0xf] }
 0x642   : > { %v6283_v63 = vpack.c.bf16 %v6275_v20, %v6275_v20  ;;  %v6284_v62 = vpack.c.bf16 %v6276_v15, %v6276_v15  ;;  %v6246_v5 = vrot.slane %v6240_v0, 2  ;;  %v6247_v45 = vrot.slane %v6240_v0, 4  ;;  %6900 = vmatpush.bf16.msrb.mxu2 %v12134_v23 }
 0x643   : > { %v6248_v58 = vrot.slane %v6240_v0, 6  ;;  %v6400_v20 = vsel %vm1796_vm0, %v17982_v31, %v6392_v3  ;;  %v6403_v15 = vsel %vm4217_vm5, %v6393_v36, %v6394_v14  ;;  %v12077_v3 = vld [vmem:[#allocation17] sm:$0xf]  ;;  %6875 = vmatpush.bf16.msra.mxu0 %v12110_v60  ;;  %6888 = vmatpush.bf16.msrb.mxu1 %v12114_v44  ;;  %v12094_v36 = vor.u32 %v14335_v10, %v12093_v34 }
 0x644   : > { %v6291_v41 = vrot.slane %v6283_v63, 2  ;;  %v6292_v39 = vrot.slane %v6284_v62, 2  ;;  %v6257_v50 = vmax.f32 %v6240_v0, %v6247_v45  ;;  %v14331_v45 = vld [vmem:[#allocation17 + $0xc] sm:$0xf0]  ;;  %v6404_v55 = vsel %vm1797_vm1, %v6400_v20, %v6403_v15  ;;  %6914 = vmatpush.bf16.msrb.mxu3 %v12122_v24 }
 0x645   : > { %v6258_v16 = vmax.f32 %v6246_v5, %v6248_v58  ;;  %v12098_v5 = vor.u32 %v14333_v1, %v12095_v37  ;;  %v12078_v25 = vor.u32 %v14331_v45, %v12077_v3  ;;  %v12090_v23 = vor.u32 %v14330_v9, %v12087_v27  ;;  %v12319_v45 = vld [vmem:[#allocation17 + $0x2f0] sm:$0xf0]  ;;  %v12309_v27 = vld [vmem:[#allocation17 + $0x2c8] sm:$0xf] }
 0x646   : > { %v6297_v28 = vsel %vm1797_vm1, %v6283_v63, %v6291_v41  ;;  %v6300_v26 = vsel %vm1797_vm1, %v6284_v62, %v6292_v39  ;;  %v11943_v42 = vrot.slane %v6257_v50, 9  ;;  %v6411_v63 = vrot.slane %v6409_v51, 1  ;;  %6901 = vmatpush.bf16.msrb.mxu2 %v12118_v52  ;;  %v12085_v39 = vld [vmem:[#allocation17 + $0x8] sm:$0xf] }
 0x647   : > { %6311 = vst [vmem:[#allocation1 + $0x10] ss:$2 sm:$0xff] %v6300_v26  ;;  %v11944_v17 = vrot.slane %v6258_v16, 9  ;;  %v12106_v41 = vor.u32 %v14334_v61, %v12103_v7  ;;  %6876 = vmatpush.bf16.msra.mxu0 %v12094_v36  ;;  %6889 = vmatpush.bf16.msrb.mxu1 %v12098_v5  ;;  %v14423_v36 = vld [vmem:[#allocation17 + $0x2ec] sm:$0xf0] }
 0x648   : > { %6307 = vst [vmem:[#allocation1] ss:$2 sm:$0xff] %v6297_v28  ;;  %v6277_v56 = vmax.f32 %v6257_v50, %v11943_v42  ;;  %v14332_v50 = vld [vmem:[#allocation17 + $0x14] sm:$0xf0]  ;;  %v6442_v13 = vshll.u32 %v6411_v63, 16 }
 0x649   : > { %v6278_v49 = vmax.f32 %v6258_v16, %v11944_v17  ;;  %v6437_v16 = vshrl.u32 %v6404_v55, 16  ;;  %v12086_v26 = vor.u32 %v14332_v50, %v12085_v39  ;;  %6915 = vmatpush.bf16.msrb.mxu3 %v12106_v41  ;;  %v14421_v5 = vld [vmem:[#allocation17 + $0x2e4] sm:$0xf]  ;;  %v14424_v55 = vld [vmem:[#allocation17 + $0x2f4] sm:$0xf0] }
 0x64a   : > { %v6285_v4 = vpack.c.bf16 %v6277_v56, %v6277_v56  ;;  %6902 = vmatpush.bf16.msrb.mxu2 %v12102_v29  ;;  %v12301_v29 = vld [vmem:[#allocation17 + $0x2c0] sm:$0xf]  ;;  %v12322_v35 = vor.u32 %v14421_v5, %v12319_v45  ;;  %v12303_v41 = vld [vmem:[#allocation17 + $0x2d0] sm:$0xf0]  ;;  %v12326_v50 = vor.u32 %v14424_v55, %v12325_v8 }
 0x64b   : > { %v6286_v0 = vpack.c.bf16 %v6278_v49, %v6278_v49  ;;  %v6444_v47 = vsel %vm18053_vm13, %v6437_v16, %v6442_v13  ;;  %6877 = vmatpush.bf16.msra.mxu0 %v12078_v25  ;;  %6890 = vmatpush.bf16.msrb.mxu1 %v12082_v48  ;;  %v14420_v16 = vld [vmem:[#allocation17 + $0x2d4] sm:$0xf0]  ;;  %v14418_v13 = vld [vmem:[#allocation17 + $0x2cc] sm:$0xf]  ;;  %v12311_v25 = vld [vmem:[#allocation17 + $0x2d8] sm:$0xf0] }
 0x64c   : > { %v6293_v40 = vrot.slane %v6285_v4, 2  ;;  %v12239_v5 = vld [vmem:[#allocation17 + $0x250] sm:$0xf0] }
 0x64d   : > { %v6294_v62 = vrot.slane %v6286_v0, 2  ;;  %6916 = vmatpush.bf16.msrb.mxu3 %v12090_v23  ;;  %v12314_v23 = vor.u32 %v14418_v13, %v12311_v25 }
 0x64e   : > { %v6312_v14 = vld.sshfl [vmem:[#allocation1 + $0x10] sm:$0xff pattern:$0x75643120]  ;;  %v6303_v58 = vsel %vm1797_vm1, %v6285_v4, %v6293_v40  ;;  %6903 = vmatpush.bf16.msrb.mxu2 %v12086_v26  ;;  %v6351_v4 = vld [vmem:[#allocation5 + $0x4] sm:$0x3] }
 0x64f   : > { %v6323_v18 = vunpack.c.l.b16 %v6312_v14  ;;  %v6306_v43 = vsel %vm1797_vm1, %v6286_v0, %v6294_v62  ;;  %6315 = vst [vmem:[#allocation1 + $0x20] ss:$2 sm:$0xff] %v6303_v58  ;;  %v6308_v46 = vld.sshfl [vmem:[#allocation1] sm:$0xff pattern:$0x75643120] }
 0x650   : > { %6319 = vst [vmem:[#allocation1 + $0x30] ss:$2 sm:$0xff] %v6306_v43  ;;  %v6322_v42 = vunpack.c.l.b16 %v6308_v46  ;;  %v12317_v62 = vld [vmem:[#allocation17 + $0x2e0] sm:$0xf]  ;;  %v14422_v14 = vld [vmem:[#allocation17 + $0x2ec] sm:$0xf] }
 0x651   : > { %v6327_v28 = vrot.slane %v6323_v18, 6  ;;  %v12327_v58 = vld [vmem:[#allocation17 + $0x2f8] sm:$0xf0]  ;;  %v12318_v22 = vor.u32 %v14423_v36, %v12317_v62  ;;  %v14419_v18 = vld [vmem:[#allocation17 + $0x2cc] sm:$0xf0] }
 0x652   : > { %v6326_v54 = vrot.slane %v6322_v42, 7  ;;  %v14417_v43 = vld [vmem:[#allocation17 + $0x2c4] sm:$0xf]  ;;  %v12330_v9 = vor.u32 %v14422_v14, %v12327_v58  ;;  %v12302_v48 = vor.u32 %v14419_v18, %v12301_v29  ;;  %v14415_v26 = vld [vmem:[#allocation17 + $0x2ac] sm:$0xf0]  ;;  %v12310_v42 = vor.u32 %v14420_v16, %v12309_v27 }
 0x653   : > { %v12306_v46 = vor.u32 %v14417_v43, %v12303_v41  ;;  %v14401_v36 = vld [vmem:[#allocation17 + $0x244] sm:$0xf]  ;;  %v12245_v14 = vld [vmem:[#allocation17 + $0x248] sm:$0xf]  ;;  %v14404_v58 = vld [vmem:[#allocation17 + $0x254] sm:$0xf0] }
 0x654   : > { %v6328_v2 = vsel %vm4217_vm5, %v6327_v28, %v6326_v54  ;;  %v12285_v28 = vld [vmem:[#allocation17 + $0x2a0] sm:$0xf]  ;;  %v14413_v54 = vld [vmem:[#allocation17 + $0x2a4] sm:$0xf]  ;;  %v14402_v29 = vld [vmem:[#allocation17 + $0x24c] sm:$0xf]  ;;  %v12246_v13 = vor.u32 %v14404_v58, %v12245_v14 }
 0x655   : > { %v6332_v53 = vpack.c.b16 %v6328_v2, %v6328_v2  ;;  %v14416_v2 = vld [vmem:[#allocation17 + $0x2b4] sm:$0xf0]  ;;  %v12247_v18 = vld [vmem:[#allocation17 + $0x258] sm:$0xf0]  ;;  %v12221_v27 = vld [vmem:[#allocation17 + $0x220] sm:$0xf] }
 0x656   : > { %v6316_v38 = vld.sshfl [vmem:[#allocation1 + $0x20] sm:$0xff pattern:$0x75643120]  ;;  %v14399_v16 = vld [vmem:[#allocation17 + $0x22c] sm:$0xf0]  ;;  %v12250_v25 = vor.u32 %v14402_v29, %v12247_v18 }
 0x657   : > { %v6320_v17 = vld.sshfl [vmem:[#allocation1 + $0x30] sm:$0xff pattern:$0x75643120]  ;;  %v6324_v32 = vunpack.c.l.b16 %v6316_v38  ;;  %v6334_v56 = vrot.slane %v6332_v53, 2  ;;  %v12293_v38 = vld [vmem:[#allocation17 + $0x2a8] sm:$0xf] }
 0x658   : > { %6487 = vst [vmem:[#allocation1] ss:$9 sm:$0xff] %v6444_v47  ;;  %v6325_v11 = vunpack.c.l.b16 %v6320_v17  ;;  %v12287_v47 = vld [vmem:[#allocation17 + $0x2b0] sm:$0xf0]  ;;  %v14414_v17 = vld [vmem:[#allocation17 + $0x2ac] sm:$0xf] }
 0x659   : > { %v6329_v49 = vrot.slane %v6324_v32, 7  ;;  %v6338_v60 = vsel %vm1797_vm1, %v6332_v53, %v6334_v56  ;;  %v12295_v53 = vld [vmem:[#allocation17 + $0x2b8] sm:$0xf0]  ;;  %v12286_v32 = vor.u32 %v14415_v26, %v12285_v28  ;;  %v12269_v56 = vld [vmem:[#allocation17 + $0x280] sm:$0xf] }
 0x65a   : > { %v6349_v44 = vsel %vm18061_vm15, %v6338_v60, %v6348_v33  ;;  %v6330_v57 = vrot.slane %v6325_v11, 6  ;;  %v12290_v11 = vor.u32 %v14413_v54, %v12287_v47  ;;  %v14409_v33 = vld [vmem:[#allocation17 + $0x284] sm:$0xf]  ;;  %v12298_v60 = vor.u32 %v14414_v17, %v12295_v53  ;;  %v12229_v28 = vld [vmem:[#allocation17 + $0x228] sm:$0xf] }
 0x65b   : > { %6350 = vst [vmem:[#allocation5 + $0x2] sm:$0x3] %v6349_v44  ;;  %v12271_v44 = vld [vmem:[#allocation17 + $0x290] sm:$0xf0]  ;;  %v14400_v26 = vld [vmem:[#allocation17 + $0x234] sm:$0xf0]  ;;  %v12222_v53 = vor.u32 %v14399_v16, %v12221_v27 }
 0x65c   : > { %v6331_v30 = vsel %vm4217_vm5, %v6330_v57, %v6329_v49  ;;  %v12294_v49 = vor.u32 %v14416_v2, %v12293_v38  ;;  %v12277_v57 = vld [vmem:[#allocation17 + $0x288] sm:$0xf]  ;;  %v12205_v54 = vld [vmem:[#allocation17 + $0x200] sm:$0xf]  ;;  %v14395_v47 = vld [vmem:[#allocation17 + $0x20c] sm:$0xf0] }
 0x65d   : > { %v6333_v34 = vpack.c.b16 %v6331_v30, %v6331_v30  ;;  %v14412_v30 = vld [vmem:[#allocation17 + $0x294] sm:$0xf0]  ;;  %v14393_v38 = vld [vmem:[#allocation17 + $0x204] sm:$0xf]  ;;  %v12431_v14 = vld [vmem:[#allocation17 + $0x3d0] sm:$0xf0] }
 0x65e   : > { %v12437_v58 = vld [vmem:[#allocation17 + $0x3c8] sm:$0xf]  ;;  %v14452_v29 = vld [vmem:[#allocation17 + $0x3d4] sm:$0xf0]  ;;  %v14445_v27 = vld [vmem:[#allocation17 + $0x3a4] sm:$0xf] }
 0x65f   : > { %v6335_v51 = vrot.slane %v6333_v34, 2  ;;  %v12438_v16 = vor.u32 %v14452_v29, %v12437_v58  ;;  %v14429_v29 = vld [vmem:[#allocation17 + $0x324] sm:$0xf] }
 0x661   : > { %v6341_v52 = vsel %vm1797_vm1, %v6333_v34, %v6335_v51  ;;  %v14410_v34 = vld [vmem:[#allocation17 + $0x28c] sm:$0xf]  ;;  %v12279_v51 = vld [vmem:[#allocation17 + $0x298] sm:$0xf0] }
 0x662   : > { %v18070_v10 = vld [vmem:[#allocation5 + $0x2] sm:$0x3]  ;;  %v6352_v1 = vsel %vm18061_vm15, %v6341_v52, %v6351_v4  ;;  %v12270_v52 = vor.u32 %v14411_v19, %v12269_v56  ;;  %v12213_v56 = vld [vmem:[#allocation17 + $0x208] sm:$0xf]  ;;  %v14396_v19 = vld [vmem:[#allocation17 + $0x214] sm:$0xf0] }
 0x663   : > { %v6395_v37 = vrot.slane %v18070_v10, 1  ;;  %v6396_v20 = vrot.slane %v18070_v10, 2  ;;  %v6397_v15 = vrot.slane %v18070_v10, 3  ;;  %6353 = vst [vmem:[#allocation5 + $0x4] sm:$0x3] %v6352_v1  ;;  %v12274_v1 = vor.u32 %v14409_v33, %v12271_v44 }
 0x664   : > { %v12230_v33 = vor.u32 %v14400_v26, %v12229_v28  ;;  %v12215_v44 = vld [vmem:[#allocation17 + $0x218] sm:$0xf0]  ;;  %v14446_v28 = vld [vmem:[#allocation17 + $0x3ac] sm:$0xf] }
 0x665   : > { %v6414_v0 = vsel %vm1796_vm0, %v18070_v10, %v6395_v37  ;;  %v6417_v24 = vsel %vm4217_vm5, %v6396_v20, %v6397_v15  ;;  %v6419_v6 = vsel %vm6405_vm10, %v18070_v10, %v6395_v37  ;;  %v6420_v12 = vsel %vm4220_vm6, %v6396_v20, %v6397_v15  ;;  %v12253_v37 = vld [vmem:[#allocation17 + $0x260] sm:$0xf]  ;;  %v14407_v20 = vld [vmem:[#allocation17 + $0x26c] sm:$0xf0]  ;;  %v12423_v26 = vld [vmem:[#allocation17 + $0x3b8] sm:$0xf0] }
 0x666   : > { %v6418_v61 = vsel %vm1797_vm1, %v6414_v0, %v6417_v24  ;;  %v6421_v21 = vsel %vm6408_vm12, %v6419_v6, %v6420_v12  ;;  %v12278_v15 = vor.u32 %v14412_v30, %v12277_v57  ;;  %v12282_v0 = vor.u32 %v14410_v34, %v12279_v51  ;;  %v14405_v24 = vld [vmem:[#allocation17 + $0x264] sm:$0xf]  ;;  %v12255_v6 = vld [vmem:[#allocation17 + $0x270] sm:$0xf0]  ;;  %v12261_v12 = vld [vmem:[#allocation17 + $0x268] sm:$0xf] }
 0x667   : > { %v6423_v40 = vrot.slane %v6421_v21, 1  ;;  %v6445_v7 = vshrl.u32 %v6418_v61, 16  ;;  %v14408_v61 = vld [vmem:[#allocation17 + $0x274] sm:$0xf0]  ;;  %v14406_v21 = vld [vmem:[#allocation17 + $0x26c] sm:$0xf]  ;;  %v12258_v62 = vor.u32 %v14405_v24, %v12255_v6 }
 0x668   : > { %v12262_v8 = vor.u32 %v14408_v61, %v12261_v12  ;;  %v12445_v57 = vld [vmem:[#allocation17 + $0x3e0] sm:$0xf]  ;;  %v14455_v30 = vld [vmem:[#allocation17 + $0x3ec] sm:$0xf0]  ;;  %v14453_v34 = vld [vmem:[#allocation17 + $0x3e4] sm:$0xf]  ;;  %v12214_v61 = vor.u32 %v14396_v19, %v12213_v56 }
 0x669   : > { %v6450_v3 = vshll.u32 %v6423_v40, 16  ;;  %v12263_v40 = vld [vmem:[#allocation17 + $0x278] sm:$0xf0]  ;;  %v12447_v51 = vld [vmem:[#allocation17 + $0x3f0] sm:$0xf0] }
 0x66a   : > { %v18094_v45 = vld [vmem:[#allocation5 + $0x4] sm:$0x3]  ;;  %v12266_v55 = vor.u32 %v14406_v21, %v12263_v40  ;;  %v14454_v6 = vld [vmem:[#allocation17 + $0x3ec] sm:$0xf]  ;;  %v12455_v12 = vld [vmem:[#allocation17 + $0x3f8] sm:$0xf0] }
 0x66b   : > { %v18087_v63 = vsel %vm18053_vm13, %v6445_v7, %v6450_v3  ;;  %v12237_v7 = vld [vmem:[#allocation17 + $0x240] sm:$0xf]  ;;  %v14403_v3 = vld [vmem:[#allocation17 + $0x24c] sm:$0xf0]  ;;  %v7438_v43 = vrot.slane %v18094_v45, 1  ;;  %v7439_v41 = vrot.slane %v18094_v45, 2 }
 0x66c   : > { %6490 = vst [vmem:[#allocation1 + $0x1] ss:$9 sm:$0xff] %v18087_v63  ;;  %v12405_v56 = vld [vmem:[#allocation17 + $0x388] sm:$0xf]  ;;  %v14444_v19 = vld [vmem:[#allocation17 + $0x394] sm:$0xf0] }
 0x66d   : > { %v7447_v2 = vsel %vm6405_vm10, %v18094_v45, %v7438_v43 }
 0x673   : > { %v6491_v39 = vld [vmem:[#allocation1] sm:$0xff] }
 0x674   : > { %6661 = vmatmul.bf16.vlgmr.msrb.gmra.mxu0 %v6491_v39  ;;  %6705 = vst [vmem:[#allocation1] ss:$9 sm:$0xff] %v17982_v31  ;;  %6674 = vmatmul.bf16.vlgmr.msra.gmra.mxu1 %v6491_v39 }
 0x675   : > { %6707 = vst [vmem:[#allocation1 + $0x1] ss:$9 sm:$0xff] %v18070_v10  ;;  %6687 = vmatmul.bf16.vlgmr.msra.gmra.mxu2 %v6491_v39  ;;  %6700 = vmatmul.bf16.vlgmr.msra.gmra.mxu3 %v6491_v39  ;;  %v7440_v39 = vrot.slane %v18094_v45, 3 }
 0x676   : > { %6925 = vst [vmem:[#allocation1 + $0x10] sm:$0xff] %v18070_v10  ;;  %7126 = vmatpush.bf16.msrb.mxu0 %v12318_v22  ;;  %7139 = vmatpush.bf16.msra.mxu1 %v12322_v35 }
 0x677   : > { %7152 = vmatpush.bf16.msra.mxu2 %v12326_v50  ;;  %7165 = vmatpush.bf16.msra.mxu3 %v12330_v9  ;;  %v12238_v50 = vor.u32 %v14403_v3, %v12237_v7  ;;  %v12242_v9 = vor.u32 %v14401_v36, %v12239_v5  ;;  %v7448_v17 = vsel %vm4220_vm6, %v7439_v41, %v7440_v39 }
 0x678   : > { %v12446_v7 = vor.u32 %v14455_v30, %v12445_v57  ;;  %v12450_v3 = vor.u32 %v14453_v34, %v12447_v51  ;;  %v14439_v57 = vld [vmem:[#allocation17 + $0x36c] sm:$0xf0]  ;;  %v12406_v30 = vor.u32 %v14444_v19, %v12405_v56  ;;  %v14437_v51 = vld [vmem:[#allocation17 + $0x364] sm:$0xf]  ;;  %v12582_v56 = vld [vmem:[#allocation17 + $0x4e8] sm:$0xf] }
 0x67a   : > { %7127 = vmatpush.bf16.msrb.mxu0 %v12302_v48  ;;  %7140 = vmatpush.bf16.msra.mxu1 %v12306_v46  ;;  %v14397_v48 = vld [vmem:[#allocation17 + $0x224] sm:$0xf]  ;;  %v12223_v46 = vld [vmem:[#allocation17 + $0x230] sm:$0xf0] }
 0x67b   : > { %7153 = vmatpush.bf16.msra.mxu2 %v12310_v42  ;;  %7166 = vmatpush.bf16.msra.mxu3 %v12314_v23  ;;  %v14398_v42 = vld [vmem:[#allocation17 + $0x22c] sm:$0xf]  ;;  %v12231_v23 = vld [vmem:[#allocation17 + $0x238] sm:$0xf0] }
 0x67c   : > { %v6708_v4 = vld [vmem:[#allocation1] sm:$0xff] }
 0x67d   : > { %6922 = vst [vmem:[#allocation1] sm:$0xff] %v17982_v31  ;;  %v12254_v31 = vor.u32 %v14407_v20, %v12253_v37  ;;  %v6927_v35 = vld [vmem:[#allocation1 + $0x11] ss:$2 sm:$0xff]  ;;  %v7442_v20 = vsel %vm1796_vm0, %v18094_v45, %v7438_v43 }
 0x67e   : > { %7128 = vmatpush.bf16.msrb.mxu0 %v12286_v32  ;;  %7141 = vmatpush.bf16.msra.mxu1 %v12290_v11  ;;  %v12226_v32 = vor.u32 %v14397_v48, %v12223_v46  ;;  %v12207_v11 = vld [vmem:[#allocation17 + $0x210] sm:$0xf0]  ;;  %v12421_v48 = vld [vmem:[#allocation17 + $0x3a8] sm:$0xf]  ;;  %v14448_v46 = vld [vmem:[#allocation17 + $0x3b4] sm:$0xf0] }
 0x67f   : > { %7154 = vmatpush.bf16.msra.mxu2 %v12294_v49  ;;  %7167 = vmatpush.bf16.msra.mxu3 %v12298_v60  ;;  %v12234_v49 = vor.u32 %v14398_v42, %v12231_v23  ;;  %v14394_v60 = vld [vmem:[#allocation17 + $0x20c] sm:$0xf]  ;;  %v12210_v24 = vor.u32 %v14393_v38, %v12207_v11  ;;  %v12397_v23 = vld [vmem:[#allocation17 + $0x380] sm:$0xf]  ;;  %v12399_v11 = vld [vmem:[#allocation17 + $0x390] sm:$0xf0] }
 0x680   : > { %v12218_v21 = vor.u32 %v14394_v60, %v12215_v44  ;;  %v12381_v44 = vld [vmem:[#allocation17 + $0x360] sm:$0xf] }
 0x682   : > { %7129 = vmatpush.bf16.msrb.mxu0 %v12270_v52  ;;  %7142 = vmatpush.bf16.msra.mxu1 %v12274_v1  ;;  %v12453_v52 = vld [vmem:[#allocation17 + $0x3e8] sm:$0xf]  ;;  %v14456_v1 = vld [vmem:[#allocation17 + $0x3f4] sm:$0xf0] }
 0x683   : > { %7155 = vmatpush.bf16.msra.mxu2 %v12278_v15  ;;  %7168 = vmatpush.bf16.msra.mxu3 %v12282_v0  ;;  %v7445_v15 = vsel %vm4217_vm5, %v7439_v41, %v7440_v39  ;;  %v12206_v0 = vor.u32 %v14395_v47, %v12205_v54  ;;  %v12454_v5 = vor.u32 %v14456_v1, %v12453_v52  ;;  %v12389_v52 = vld [vmem:[#allocation17 + $0x368] sm:$0xf]  ;;  %v14440_v1 = vld [vmem:[#allocation17 + $0x374] sm:$0xf0] }
 0x684   : > { %6878 = vmatmul.bf16.vlgmr.msra.gmra.mxu0 %v6708_v4  ;;  %v6924_v22 = vld [vmem:[#allocation1 + $0x1] ss:$2 sm:$0xff]  ;;  %6891 = vmatmul.bf16.vlgmr.msrb.gmra.mxu1 %v6708_v4  ;;  %v7446_v36 = vsel %vm1797_vm1, %v7442_v20, %v7445_v15  ;;  %v12391_v20 = vld [vmem:[#allocation17 + $0x378] sm:$0xf0] }
 0x685   : > { %6961 = vst [vmem:[#allocation1] ss:$9 sm:$0xff] %v6924_v22  ;;  %6904 = vmatmul.bf16.vlgmr.msrb.gmra.mxu2 %v6708_v4  ;;  %6917 = vmatmul.bf16.vlgmr.msrb.gmra.mxu3 %v6708_v4  ;;  %v7449_v4 = vsel %vm6408_vm12, %v7447_v2, %v7448_v17  ;;  %v14450_v22 = vld [vmem:[#allocation17 + $0x3cc] sm:$0xf]  ;;  %v7452_v18 = vshrl.u32 %v7446_v36, 16 }
 0x686   : > { %6963 = vst [vmem:[#allocation1 + $0x1] ss:$9 sm:$0xff] %v6927_v35  ;;  %7130 = vmatpush.bf16.msrb.mxu0 %v12254_v31  ;;  %7143 = vmatpush.bf16.msra.mxu1 %v12258_v62  ;;  %v7451_v40 = vrot.slane %v7449_v4, 1  ;;  %v12429_v31 = vld [vmem:[#allocation17 + $0x3c0] sm:$0xf] }
 0x687   : > { %7156 = vmatpush.bf16.msra.mxu2 %v12262_v8  ;;  %7169 = vmatpush.bf16.msra.mxu3 %v12266_v55  ;;  %v14451_v62 = vld [vmem:[#allocation17 + $0x3cc] sm:$0xf0]  ;;  %v12458_v8 = vor.u32 %v14454_v6, %v12455_v12  ;;  %v14449_v55 = vld [vmem:[#allocation17 + $0x3c4] sm:$0xf]  ;;  %v12439_v35 = vld [vmem:[#allocation17 + $0x3d8] sm:$0xf0] }
 0x688   : > { %v7457_v43 = vshll.u32 %v7451_v40, 16  ;;  %v12430_v41 = vor.u32 %v14451_v62, %v12429_v31  ;;  %v12434_v39 = vor.u32 %v14449_v55, %v12431_v14  ;;  %v14443_v2 = vld [vmem:[#allocation17 + $0x38c] sm:$0xf0]  ;;  %v14441_v17 = vld [vmem:[#allocation17 + $0x384] sm:$0xf] }
 0x689   : > { %v12402_v60 = vor.u32 %v14441_v17, %v12399_v11  ;;  %v12383_v4 = vld [vmem:[#allocation17 + $0x370] sm:$0xf0]  ;;  %v12365_v6 = vld [vmem:[#allocation17 + $0x340] sm:$0xf]  ;;  %v14435_v12 = vld [vmem:[#allocation17 + $0x34c] sm:$0xf0] }
 0x68a   : > { %7131 = vmatpush.bf16.msrb.mxu0 %v12238_v50  ;;  %7144 = vmatpush.bf16.msra.mxu1 %v12242_v9  ;;  %v12413_v50 = vld [vmem:[#allocation17 + $0x3a0] sm:$0xf]  ;;  %v14447_v9 = vld [vmem:[#allocation17 + $0x3ac] sm:$0xf0]  ;;  %v18113_v54 = vsel %vm18053_vm13, %v7452_v18, %v7457_v43  ;;  %v14433_v40 = vld [vmem:[#allocation17 + $0x344] sm:$0xf] }
 0x68b   : > { %7157 = vmatpush.bf16.msra.mxu2 %v12246_v13  ;;  %7170 = vmatpush.bf16.msra.mxu3 %v12250_v25  ;;  %v12442_v13 = vor.u32 %v14450_v22, %v12439_v35  ;;  %v12415_v25 = vld [vmem:[#allocation17 + $0x3b0] sm:$0xf0]  ;;  %v12414_v47 = vor.u32 %v14447_v9, %v12413_v50  ;;  %v14436_v31 = vld [vmem:[#allocation17 + $0x354] sm:$0xf0]  ;;  %v14434_v62 = vld [vmem:[#allocation17 + $0x34c] sm:$0xf] }
 0x68c   : > { %v12418_v38 = vor.u32 %v14445_v27, %v12415_v25  ;;  %v12375_v36 = vld [vmem:[#allocation17 + $0x358] sm:$0xf0]  ;;  %v12349_v55 = vld [vmem:[#allocation17 + $0x320] sm:$0xf]  ;;  %v14431_v14 = vld [vmem:[#allocation17 + $0x32c] sm:$0xf0] }
 0x68d   : > { %v6964_v37 = vld [vmem:[#allocation1] sm:$0xff]  ;;  %v12351_v22 = vld [vmem:[#allocation17 + $0x330] sm:$0xf0]  ;;  %v14432_v18 = vld [vmem:[#allocation17 + $0x334] sm:$0xf0]  ;;  %v12350_v25 = vor.u32 %v14431_v14, %v12349_v55 }
 0x68e   : > { %7132 = vmatpush.bf16.msrb.mxu0 %v12222_v53  ;;  %7145 = vmatpush.bf16.msra.mxu1 %v12226_v32  ;;  %7215 = vst [vmem:[#allocation1] ss:$9 sm:$0xff] %v18070_v10  ;;  %v12422_v53 = vor.u32 %v14448_v46, %v12421_v48  ;;  %v12426_v32 = vor.u32 %v14446_v28, %v12423_v26  ;;  %v12357_v35 = vld [vmem:[#allocation17 + $0x328] sm:$0xf]  ;;  %v14430_v43 = vld [vmem:[#allocation17 + $0x32c] sm:$0xf] }
 0x68f   : > { %7158 = vmatpush.bf16.msra.mxu2 %v12230_v33  ;;  %7171 = vmatpush.bf16.msra.mxu3 %v12234_v49  ;;  %7218 = vst [vmem:[#allocation1 + $0x1] ss:$9 sm:$0xff] %v18094_v45  ;;  %v14442_v33 = vld [vmem:[#allocation17 + $0x38c] sm:$0xf]  ;;  %v12407_v49 = vld [vmem:[#allocation17 + $0x398] sm:$0xf0]  ;;  %v12354_v48 = vor.u32 %v14429_v29, %v12351_v22  ;;  %v12358_v26 = vor.u32 %v14432_v18, %v12357_v35 }
 0x690   : > { %v12410_v34 = vor.u32 %v14442_v33, %v12407_v49  ;;  %v14427_v50 = vld [vmem:[#allocation17 + $0x30c] sm:$0xf0]  ;;  %v14425_v9 = vld [vmem:[#allocation17 + $0x304] sm:$0xf]  ;;  %v12335_v46 = vld [vmem:[#allocation17 + $0x310] sm:$0xf0] }
 0x691   : > { %v12341_v28 = vld [vmem:[#allocation17 + $0x308] sm:$0xf]  ;;  %v12574_v17 = vld [vmem:[#allocation17 + $0x4e0] sm:$0xf]  ;;  %v12576_v11 = vld [vmem:[#allocation17 + $0x4f0] sm:$0xf0]  ;;  %v12338_v33 = vor.u32 %v14425_v9, %v12335_v46 }
 0x692   : > { %7133 = vmatpush.bf16.msrb.mxu0 %v12206_v0  ;;  %7146 = vmatpush.bf16.msra.mxu1 %v12210_v24  ;;  %v12382_v0 = vor.u32 %v14439_v57, %v12381_v44  ;;  %v12386_v24 = vor.u32 %v14437_v51, %v12383_v4  ;;  %v14488_v49 = vld [vmem:[#allocation17 + $0x4f4] sm:$0xf0]  ;;  %v12544_v55 = vld [vmem:[#allocation17 + $0x4b0] sm:$0xf0]  ;;  %v12550_v14 = vld [vmem:[#allocation17 + $0x4a8] sm:$0xf] }
 0x693   : > { %7159 = vmatpush.bf16.msra.mxu2 %v12214_v61  ;;  %7172 = vmatpush.bf16.msra.mxu3 %v12218_v21  ;;  %v12390_v61 = vor.u32 %v14440_v1, %v12389_v52  ;;  %v12558_v1 = vld [vmem:[#allocation17 + $0x4c0] sm:$0xf]  ;;  %v14480_v22 = vld [vmem:[#allocation17 + $0x4b4] sm:$0xf0]  ;;  %v14478_v35 = vld [vmem:[#allocation17 + $0x4ac] sm:$0xf] }
 0x694   : > { %v12552_v18 = vld [vmem:[#allocation17 + $0x4b8] sm:$0xf0]  ;;  %v12534_v46 = vld [vmem:[#allocation17 + $0x488] sm:$0xf] }
 0x695   : > { %7134 = vmatmul.bf16.vlgmr.msrb.gmra.mxu0 %v6964_v37  ;;  %7147 = vmatmul.bf16.vlgmr.msra.gmra.mxu1 %v6964_v37 }
 0x696   : > { %7381 = vmatpush.bf16.msra.mxu0 %v12446_v7  ;;  %7394 = vmatpush.bf16.msrb.mxu1 %v12450_v3  ;;  %v18109_v42 = vld [vmem:[#allocation1] sm:$0xff]  ;;  %v12367_v7 = vld [vmem:[#allocation17 + $0x350] sm:$0xf0] }
 0x697   : > { %7407 = vmatpush.bf16.msrb.mxu2 %v12454_v5  ;;  %7420 = vmatpush.bf16.msrb.mxu3 %v12458_v8  ;;  %7493 = vst [vmem:[#allocation1] ss:$9 sm:$0xff] %v18087_v63  ;;  %v12398_v63 = vor.u32 %v14443_v2, %v12397_v23  ;;  %v12373_v3 = vld [vmem:[#allocation17 + $0x348] sm:$0xf]  ;;  %v12366_v5 = vor.u32 %v14435_v12, %v12365_v6  ;;  %v12343_v2 = vld [vmem:[#allocation17 + $0x318] sm:$0xf0] }
 0x698   : > { %7160 = vmatmul.bf16.vlgmr.msra.gmra.mxu2 %v6964_v37  ;;  %7173 = vmatmul.bf16.vlgmr.msra.gmra.mxu3 %v6964_v37  ;;  %7496 = vst [vmem:[#allocation1 + $0x1] ss:$9 sm:$0xff] %v18113_v54  ;;  %v14438_v37 = vld [vmem:[#allocation17 + $0x36c] sm:$0xf]  ;;  %v12370_v8 = vor.u32 %v14433_v40, %v12367_v7  ;;  %v12374_v58 = vor.u32 %v14436_v31, %v12373_v3  ;;  %v12560_v6 = vld [vmem:[#allocation17 + $0x4d0] sm:$0xf0] }
 0x699   : > { %7718 = vst [vmem:[#allocation1 + $0x10] sm:$0xff] %v18094_v45  ;;  %v12394_v21 = vor.u32 %v14438_v37, %v12391_v20  ;;  %v14483_v37 = vld [vmem:[#allocation17 + $0x4cc] sm:$0xf0]  ;;  %v12583_v20 = vor.u32 %v14488_v49, %v12582_v56  ;;  %v12566_v12 = vld [vmem:[#allocation17 + $0x4c8] sm:$0xf] }
 0x69a   : > { %7382 = vmatpush.bf16.msra.mxu0 %v12430_v41  ;;  %7395 = vmatpush.bf16.msrb.mxu1 %v12434_v39  ;;  %v12359_v41 = vld [vmem:[#allocation17 + $0x338] sm:$0xf0]  ;;  %v12333_v39 = vld [vmem:[#allocation17 + $0x300] sm:$0xf]  ;;  %v12559_v7 = vor.u32 %v14483_v37, %v12558_v1  ;;  %v12512_v49 = vld [vmem:[#allocation17 + $0x470] sm:$0xf0] }
 0x69b   : > { %7408 = vmatpush.bf16.msrb.mxu2 %v12438_v16  ;;  %7421 = vmatpush.bf16.msrb.mxu3 %v12442_v13  ;;  %v18121_v13 = vld [vmem:[#allocation5 + $0x6] sm:$0x3]  ;;  %v12362_v23 = vor.u32 %v14430_v43, %v12359_v41  ;;  %v12334_v19 = vor.u32 %v14427_v50, %v12333_v39  ;;  %v12568_v40 = vld [vmem:[#allocation17 + $0x4d8] sm:$0xf0]  ;;  %v12542_v31 = vld [vmem:[#allocation17 + $0x4a0] sm:$0xf] }
 0x69c   : > { %v8231_v44 = vrot.slane %v18121_v13, 1  ;;  %v8233_v51 = vrot.slane %v18121_v13, 3  ;;  %v12526_v39 = vld [vmem:[#allocation17 + $0x480] sm:$0xf]  ;;  %v14475_v50 = vld [vmem:[#allocation17 + $0x48c] sm:$0xf0] }
 0x69d   : > { %v14467_v1 = vld [vmem:[#allocation17 + $0x44c] sm:$0xf0] }
 0x69e   : > { %7383 = vmatpush.bf16.msra.mxu0 %v12414_v47  ;;  %7396 = vmatpush.bf16.msrb.mxu1 %v12418_v38  ;;  %v14428_v47 = vld [vmem:[#allocation17 + $0x314] sm:$0xf0]  ;;  %v14426_v38 = vld [vmem:[#allocation17 + $0x30c] sm:$0xf] }
 0x69f   : > { %7409 = vmatpush.bf16.msrb.mxu2 %v12422_v53  ;;  %7422 = vmatpush.bf16.msrb.mxu3 %v12426_v32  ;;  %v18118_v15 = vld [vmem:[#allocation1] sm:$0xff]  ;;  %v14487_v53 = vld [vmem:[#allocation17 + $0x4ec] sm:$0xf0]  ;;  %v14485_v32 = vld [vmem:[#allocation17 + $0x4e4] sm:$0xf]  ;;  %v12342_v57 = vor.u32 %v14428_v47, %v12341_v28 }
 0x6a0   : > { %7715 = vst [vmem:[#allocation1] sm:$0xff] %v18070_v10  ;;  %v12378_v10 = vor.u32 %v14434_v62, %v12375_v36  ;;  %v7720_v27 = vld [vmem:[#allocation1 + $0x11] ss:$2 sm:$0xff]  ;;  %v12575_v4 = vor.u32 %v14487_v53, %v12574_v17  ;;  %v12579_v52 = vor.u32 %v14485_v32, %v12576_v11  ;;  %v14479_v62 = vld [vmem:[#allocation17 + $0x4ac] sm:$0xf0] }
 0x6a1   : > { %v14477_v36 = vld [vmem:[#allocation17 + $0x4a4] sm:$0xf]  ;;  %v12543_v43 = vor.u32 %v14479_v62, %v12542_v31  ;;  %v12536_v47 = vld [vmem:[#allocation17 + $0x498] sm:$0xf0]  ;;  %v12510_v53 = vld [vmem:[#allocation17 + $0x460] sm:$0xf] }
 0x6a2   : > { %7384 = vmatpush.bf16.msra.mxu0 %v12398_v63  ;;  %7397 = vmatpush.bf16.msrb.mxu1 %v12402_v60  ;;  %v14486_v63 = vld [vmem:[#allocation17 + $0x4ec] sm:$0xf]  ;;  %v12584_v60 = vld [vmem:[#allocation17 + $0x4f8] sm:$0xf0]  ;;  %v12547_v41 = vor.u32 %v14477_v36, %v12544_v55  ;;  %v14471_v32 = vld [vmem:[#allocation17 + $0x46c] sm:$0xf0] }
 0x6a3   : > { %7410 = vmatpush.bf16.msrb.mxu2 %v12406_v30  ;;  %7423 = vmatpush.bf16.msrb.mxu3 %v12410_v34  ;;  %v12346_v30 = vor.u32 %v14426_v38, %v12343_v2  ;;  %v8232_v34 = vrot.slane %v18121_v13, 2  ;;  %v12527_v2 = vor.u32 %v14475_v50, %v12526_v39  ;;  %v12478_v62 = vld [vmem:[#allocation17 + $0x420] sm:$0xf]  ;;  %v14463_v36 = vld [vmem:[#allocation17 + $0x42c] sm:$0xf0] }
 0x6a4   : > { %v14461_v55 = vld [vmem:[#allocation17 + $0x424] sm:$0xf]  ;;  %v12464_v50 = vld [vmem:[#allocation17 + $0x410] sm:$0xf0] }
 0x6a5   : > { %v8241_v29 = vsel %vm4220_vm6, %v8232_v34, %v8233_v51  ;;  %v8238_v28 = vsel %vm4217_vm5, %v8232_v34, %v8233_v51  ;;  %v12511_v51 = vor.u32 %v14471_v32, %v12510_v53  ;;  %v14457_v39 = vld [vmem:[#allocation17 + $0x404] sm:$0xf]  ;;  %vm8799_vm5 = vcmask 1045504  }
 0x6a6   : > { %7385 = vmatpush.bf16.msra.mxu0 %v12382_v0  ;;  %7398 = vmatpush.bf16.msrb.mxu1 %v12386_v24  ;;  %v12587_v0 = vor.u32 %v14486_v63, %v12584_v60  ;;  %v14481_v24 = vld [vmem:[#allocation17 + $0x4c4] sm:$0xf]  ;;  %v12518_v63 = vld [vmem:[#allocation17 + $0x468] sm:$0xf]  ;;  %v14472_v60 = vld [vmem:[#allocation17 + $0x474] sm:$0xf0] }
 0x6a7   : > { %7411 = vmatpush.bf16.msrb.mxu2 %v12390_v61  ;;  %7424 = vmatpush.bf16.msrb.mxu3 %v12394_v21  ;;  %v7717_v16 = vld [vmem:[#allocation1 + $0x1] ss:$2 sm:$0xff]  ;;  %v14484_v61 = vld [vmem:[#allocation17 + $0x4d4] sm:$0xf0]  ;;  %v12563_v3 = vor.u32 %v14481_v24, %v12560_v6  ;;  %v12519_v37 = vor.u32 %v14472_v60, %v12518_v63  ;;  %v14513_v60 = vld [vmem:[#allocation17 + $0x5c4] sm:$0xf] }
 0x6a8   : > { %7754 = vst [vmem:[#allocation1] ss:$9 sm:$0xff] %v7717_v16  ;;  %v14482_v21 = vld [vmem:[#allocation17 + $0x4cc] sm:$0xf]  ;;  %v12555_v16 = vor.u32 %v14478_v35, %v12552_v18  ;;  %v12496_v24 = vld [vmem:[#allocation17 + $0x450] sm:$0xf0] }
 0x6a9   : > { %7756 = vst [vmem:[#allocation1 + $0x1] ss:$9 sm:$0xff] %v7720_v27  ;;  %v12551_v27 = vor.u32 %v14480_v22, %v12550_v14  ;;  %v12502_v6 = vld [vmem:[#allocation17 + $0x448] sm:$0xf]  ;;  %v12480_v14 = vld [vmem:[#allocation17 + $0x430] sm:$0xf0] }
 0x6aa   : > { %7386 = vmatpush.bf16.msra.mxu0 %v12366_v5  ;;  %7399 = vmatpush.bf16.msrb.mxu1 %v12370_v8  ;;  %v12567_v5 = vor.u32 %v14484_v61, %v12566_v12  ;;  %v12571_v8 = vor.u32 %v14482_v21, %v12568_v40  ;;  %v14468_v12 = vld [vmem:[#allocation17 + $0x454] sm:$0xf0]  ;;  %v14466_v61 = vld [vmem:[#allocation17 + $0x44c] sm:$0xf]  ;;  %v12504_v21 = vld [vmem:[#allocation17 + $0x458] sm:$0xf0] }
 0x6ab   : > { %7412 = vmatpush.bf16.msrb.mxu2 %v12374_v58  ;;  %7425 = vmatpush.bf16.msrb.mxu3 %v12378_v10  ;;  %v8240_v10 = vsel %vm6405_vm10, %v18121_v13, %v8231_v44  ;;  %v14462_v22 = vld [vmem:[#allocation17 + $0x42c] sm:$0xf]  ;;  %v12488_v35 = vld [vmem:[#allocation17 + $0x438] sm:$0xf0]  ;;  %v14459_v18 = vld [vmem:[#allocation17 + $0x40c] sm:$0xf0] }
 0x6ac   : > { %v8242_v9 = vsel %vm6408_vm12, %v8240_v10, %v8241_v29  ;;  %v12486_v10 = vld [vmem:[#allocation17 + $0x428] sm:$0xf]  ;;  %v14464_v29 = vld [vmem:[#allocation17 + $0x434] sm:$0xf0]  ;;  %vm8801_vm6 = vcmask 1045506  }
 0x6ad   : > { %v8244_v38 = vrot.slane %v8242_v9, 1  ;;  %v12491_v9 = vor.u32 %v14462_v22, %v12488_v35  ;;  %v14506_v22 = vld [vmem:[#allocation17 + $0x58c] sm:$0xf]  ;;  %v12664_v35 = vld [vmem:[#allocation17 + $0x598] sm:$0xf0] }
 0x6ae   : > { %7387 = vmatpush.bf16.msra.mxu0 %v12350_v25  ;;  %7400 = vmatpush.bf16.msrb.mxu1 %v12354_v48  ;;  %v14473_v25 = vld [vmem:[#allocation17 + $0x484] sm:$0xf]  ;;  %v12528_v48 = vld [vmem:[#allocation17 + $0x490] sm:$0xf0] }
 0x6af   : > { %7413 = vmatpush.bf16.msrb.mxu2 %v12358_v26  ;;  %7426 = vmatpush.bf16.msrb.mxu3 %v12362_v23  ;;  %v14476_v26 = vld [vmem:[#allocation17 + $0x494] sm:$0xf0]  ;;  %v14474_v23 = vld [vmem:[#allocation17 + $0x48c] sm:$0xf]  ;;  %v12531_v17 = vor.u32 %v14473_v25, %v12528_v48  ;;  %v8250_v34 = vshll.u32 %v8244_v38, 16  ;;  %v12467_v38 = vor.u32 %v14457_v39, %v12464_v50 }
 0x6b0   : > { %v18126_v58 = vld [vmem:[#allocation1] sm:$0xff]  ;;  %v12535_v56 = vor.u32 %v14476_v26, %v12534_v46  ;;  %v12472_v48 = vld [vmem:[#allocation17 + $0x418] sm:$0xf0]  ;;  %v12702_v46 = vld [vmem:[#allocation17 + $0x5e0] sm:$0xf] }
 0x6b1   : > { %8008 = vst [vmem:[#allocation1] ss:$9 sm:$0xff] %v18094_v45  ;;  %v14458_v25 = vld [vmem:[#allocation17 + $0x40c] sm:$0xf]  ;;  %v12704_v26 = vld [vmem:[#allocation17 + $0x5f0] sm:$0xf0] }
 0x6b2   : > { %7388 = vmatpush.bf16.msra.mxu0 %v12334_v19  ;;  %7401 = vmatpush.bf16.msrb.mxu1 %v12338_v33  ;;  %8011 = vst [vmem:[#allocation1 + $0x1] ss:$9 sm:$0xff] %v18121_v13  ;;  %v12539_v19 = vor.u32 %v14474_v23, %v12536_v47  ;;  %v14469_v33 = vld [vmem:[#allocation17 + $0x464] sm:$0xf]  ;;  %v12710_v23 = vld [vmem:[#allocation17 + $0x5e8] sm:$0xf]  ;;  %v12463_v47 = vor.u32 %v14459_v18, %v12462_v59 }
 0x6b3   : > { %7414 = vmatpush.bf16.msrb.mxu2 %v12342_v57  ;;  %7427 = vmatpush.bf16.msrb.mxu3 %v12346_v30  ;;  %v12520_v57 = vld [vmem:[#allocation17 + $0x478] sm:$0xf0]  ;;  %v12475_v32 = vor.u32 %v14458_v25, %v12472_v48  ;;  %v12638_v59 = vld [vmem:[#allocation17 + $0x560] sm:$0xf]  ;;  %v14503_v18 = vld [vmem:[#allocation17 + $0x56c] sm:$0xf0] }
 0x6b4   : > { %v14504_v25 = vld [vmem:[#allocation17 + $0x574] sm:$0xf0]  ;;  %v14502_v48 = vld [vmem:[#allocation17 + $0x56c] sm:$0xf] }
 0x6b5   : > { %7389 = vmatmul.bf16.vlgmr.msra.gmra.mxu0 %v18109_v42  ;;  %7402 = vmatmul.bf16.vlgmr.msrb.gmra.mxu1 %v18109_v42 }
 0x6b6   : > { %7659 = vmatpush.bf16.msrb.mxu0 %v12575_v4  ;;  %7672 = vmatpush.bf16.msra.mxu1 %v12579_v52  ;;  %v12515_v4 = vor.u32 %v14469_v33, %v12512_v49  ;;  %v12494_v52 = vld [vmem:[#allocation17 + $0x440] sm:$0xf]  ;;  %v14515_v33 = vld [vmem:[#allocation17 + $0x5cc] sm:$0xf0] }
 0x6b7   : > { %7685 = vmatpush.bf16.msra.mxu2 %v12583_v20  ;;  %7698 = vmatpush.bf16.msra.mxu3 %v12587_v0  ;;  %v14465_v0 = vld [vmem:[#allocation17 + $0x444] sm:$0xf] }
 0x6b8   : > { %7415 = vmatmul.bf16.vlgmr.msrb.gmra.mxu2 %v18109_v42  ;;  %7428 = vmatmul.bf16.vlgmr.msrb.gmra.mxu3 %v18109_v42  ;;  %v8235_v42 = vsel %vm1796_vm0, %v18121_v13, %v8231_v44  ;;  %v14470_v44 = vld [vmem:[#allocation17 + $0x46c] sm:$0xf]  ;;  %v12499_v31 = vor.u32 %v14465_v0, %v12496_v24  ;;  %vm8794_vm0 = vcmask 1045508  }
 0x6b9   : > { %v8239_v11 = vsel %vm1797_vm1, %v8235_v42, %v8238_v28  ;;  %v12523_v20 = vor.u32 %v14470_v44, %v12520_v57  ;;  %v18142_v40 = vld [vmem:[#allocation1] sm:$0xff]  ;;  %v14519_v42 = vld [vmem:[#allocation17 + $0x5ec] sm:$0xf0]  ;;  %v14517_v28 = vld [vmem:[#allocation17 + $0x5e4] sm:$0xf] }
 0x6ba   : > { %7660 = vmatpush.bf16.msrb.mxu0 %v12559_v7  ;;  %7673 = vmatpush.bf16.msra.mxu1 %v12563_v3  ;;  %v8245_v30 = vshrl.u32 %v8239_v11, 16  ;;  %v12495_v3 = vor.u32 %v14467_v1, %v12494_v52  ;;  %8286 = vst [vmem:[#allocation1] ss:$9 sm:$0xff] %v18113_v54  ;;  %v12487_v54 = vor.u32 %v14464_v29, %v12486_v10  ;;  %v12688_v44 = vld [vmem:[#allocation17 + $0x5d0] sm:$0xf0] }
 0x6bb   : > { %7686 = vmatpush.bf16.msra.mxu2 %v12567_v5  ;;  %7699 = vmatpush.bf16.msra.mxu3 %v12571_v8  ;;  %v12503_v5 = vor.u32 %v14468_v12, %v12502_v6  ;;  %v12507_v8 = vor.u32 %v14466_v61, %v12504_v21  ;;  %v12703_v11 = vor.u32 %v14519_v42, %v12702_v46  ;;  %v12694_v57 = vld [vmem:[#allocation17 + $0x5c8] sm:$0xf]  ;;  %v14509_v6 = vld [vmem:[#allocation17 + $0x5a4] sm:$0xf]  ;;  %v12672_v12 = vld [vmem:[#allocation17 + $0x5b0] sm:$0xf0] }
 0x6bc   : > { %v8252_v7 = vsel %vm18053_vm13, %v8245_v30, %v8250_v34  ;;  %v14516_v30 = vld [vmem:[#allocation17 + $0x5d4] sm:$0xf0]  ;;  %v14514_v34 = vld [vmem:[#allocation17 + $0x5cc] sm:$0xf]  ;;  %v12691_v1 = vor.u32 %v14513_v60, %v12688_v44  ;;  %v12678_v61 = vld [vmem:[#allocation17 + $0x5a8] sm:$0xf]  ;;  %v12639_v42 = vor.u32 %v14503_v18, %v12638_v59 }
 0x6bd   : > { %8289 = vst [vmem:[#allocation1 + $0x1] ss:$9 sm:$0xff] %v8252_v7  ;;  %v12695_v0 = vor.u32 %v14516_v30, %v12694_v57  ;;  %v14512_v21 = vld [vmem:[#allocation17 + $0x5b4] sm:$0xf0]  ;;  %v14510_v7 = vld [vmem:[#allocation17 + $0x5ac] sm:$0xf] }
 0x6be   : > { %7661 = vmatpush.bf16.msrb.mxu0 %v12543_v43  ;;  %7674 = vmatpush.bf16.msra.mxu1 %v12547_v41  ;;  %v12479_v43 = vor.u32 %v14463_v36, %v12478_v62  ;;  %v12483_v41 = vor.u32 %v14461_v55, %v12480_v14  ;;  %8511 = vst [vmem:[#allocation1 + $0x10] sm:$0xff] %v18121_v13  ;;  %v12712_v13 = vld [vmem:[#allocation17 + $0x5f8] sm:$0xf0]  ;;  %v12654_v62 = vld [vmem:[#allocation17 + $0x580] sm:$0xf] }
 0x6bf   : > { %7687 = vmatpush.bf16.msra.mxu2 %v12551_v27  ;;  %7700 = vmatpush.bf16.msra.mxu3 %v12555_v16  ;;  %v12470_v27 = vld [vmem:[#allocation17 + $0x408] sm:$0xf]  ;;  %v14460_v16 = vld [vmem:[#allocation17 + $0x414] sm:$0xf0]  ;;  %v14507_v36 = vld [vmem:[#allocation17 + $0x58c] sm:$0xf0] }
 0x6c0   : > { %v12471_v53 = vor.u32 %v14460_v16, %v12470_v27  ;;  %v14505_v55 = vld [vmem:[#allocation17 + $0x584] sm:$0xf]  ;;  %v12656_v14 = vld [vmem:[#allocation17 + $0x590] sm:$0xf0]  ;;  %v12662_v10 = vld [vmem:[#allocation17 + $0x588] sm:$0xf] }
 0x6c1   : > { %v14508_v29 = vld [vmem:[#allocation17 + $0x594] sm:$0xf0]  ;;  %v12640_v27 = vld [vmem:[#allocation17 + $0x570] sm:$0xf0]  ;;  %v12646_v16 = vld [vmem:[#allocation17 + $0x568] sm:$0xf] }
 0x6c2   : > { %7662 = vmatpush.bf16.msrb.mxu0 %v12527_v2  ;;  %7675 = vmatpush.bf16.msra.mxu1 %v12531_v17  ;;  %v14520_v2 = vld [vmem:[#allocation17 + $0x5f4] sm:$0xf0]  ;;  %v14518_v17 = vld [vmem:[#allocation17 + $0x5ec] sm:$0xf]  ;;  %v12648_v46 = vld [vmem:[#allocation17 + $0x578] sm:$0xf0] }
 0x6c3   : > { %7688 = vmatpush.bf16.msra.mxu2 %v12535_v56  ;;  %7701 = vmatpush.bf16.msra.mxu3 %v12539_v19  ;;  %v12707_v56 = vor.u32 %v14517_v28, %v12704_v26  ;;  %v12686_v19 = vld [vmem:[#allocation17 + $0x5c0] sm:$0xf]  ;;  %v12711_v49 = vor.u32 %v14520_v2, %v12710_v23  ;;  %v12715_v63 = vor.u32 %v14518_v17, %v12712_v13  ;;  %v14499_v23 = vld [vmem:[#allocation17 + $0x54c] sm:$0xf0]  ;;  %v14497_v2 = vld [vmem:[#allocation17 + $0x544] sm:$0xf] }
 0x6c4   : > { %v12687_v52 = vor.u32 %v14515_v33, %v12686_v19  ;;  %v12622_v26 = vld [vmem:[#allocation17 + $0x540] sm:$0xf]  ;;  %v12624_v17 = vld [vmem:[#allocation17 + $0x550] sm:$0xf0]  ;;  %v12630_v13 = vld [vmem:[#allocation17 + $0x548] sm:$0xf] }
 0x6c5   : > { %v8513_v50 = vld [vmem:[#allocation1 + $0x11] ss:$2 sm:$0xff]  ;;  %v12627_v19 = vor.u32 %v14497_v2, %v12624_v17  ;;  %v12608_v57 = vld [vmem:[#allocation17 + $0x530] sm:$0xf0]  ;;  %v12614_v30 = vld [vmem:[#allocation17 + $0x528] sm:$0xf] }
 0x6c6   : > { %7663 = vmatpush.bf16.msrb.mxu0 %v12511_v51  ;;  %7676 = vmatpush.bf16.msra.mxu1 %v12515_v4  ;;  %v12696_v51 = vld [vmem:[#allocation17 + $0x5d8] sm:$0xf0]  ;;  %v18148_v4 = vld [vmem:[#allocation1] sm:$0xff]  ;;  %v12606_v33 = vld [vmem:[#allocation17 + $0x520] sm:$0xf] }
 0x6c7   : > { %7689 = vmatpush.bf16.msra.mxu2 %v12519_v37  ;;  %7702 = vmatpush.bf16.msra.mxu3 %v12523_v20  ;;  %v12670_v37 = vld [vmem:[#allocation17 + $0x5a0] sm:$0xf]  ;;  %v14511_v20 = vld [vmem:[#allocation17 + $0x5ac] sm:$0xf0]  ;;  %8508 = vst [vmem:[#allocation1] sm:$0xff] %v18094_v45  ;;  %v12699_v24 = vor.u32 %v14514_v34, %v12696_v51 }
 0x6c8   : > { %v12671_v45 = vor.u32 %v14511_v20, %v12670_v37  ;;  %v14493_v44 = vld [vmem:[#allocation17 + $0x524] sm:$0xf]  ;;  %v14496_v34 = vld [vmem:[#allocation17 + $0x534] sm:$0xf0]  ;;  %v14494_v51 = vld [vmem:[#allocation17 + $0x52c] sm:$0xf] }
 0x6c9   : > { %v12611_v20 = vor.u32 %v14493_v44, %v12608_v57  ;;  %v12800_v2 = vld [vmem:[#allocation17 + $0x6b0] sm:$0xf0]  ;;  %v12806_v17 = vld [vmem:[#allocation17 + $0x6a8] sm:$0xf]  ;;  %v14537_v57 = vld [vmem:[#allocation17 + $0x684] sm:$0xf] }
 0x6ca   : > { %7664 = vmatpush.bf16.msrb.mxu0 %v12495_v3  ;;  %7677 = vmatpush.bf16.msra.mxu1 %v12499_v31  ;;  %v12680_v3 = vld [vmem:[#allocation17 + $0x5b8] sm:$0xf0]  ;;  %v12675_v31 = vor.u32 %v14509_v6, %v12672_v12  ;;  %v12592_v6 = vld [vmem:[#allocation17 + $0x510] sm:$0xf0]  ;;  %v12615_v12 = vor.u32 %v14496_v34, %v12614_v30  ;;  %v12790_v34 = vld [vmem:[#allocation17 + $0x688] sm:$0xf] }
 0x6cb   : > { %7690 = vmatpush.bf16.msra.mxu2 %v12503_v5  ;;  %7703 = vmatpush.bf16.msra.mxu3 %v12507_v8  ;;  %v12679_v5 = vor.u32 %v14512_v21, %v12678_v61  ;;  %v12683_v8 = vor.u32 %v14510_v7, %v12680_v3  ;;  %v12598_v21 = vld [vmem:[#allocation17 + $0x508] sm:$0xf]  ;;  %v14492_v7 = vld [vmem:[#allocation17 + $0x514] sm:$0xf0]  ;;  %v14490_v3 = vld [vmem:[#allocation17 + $0x50c] sm:$0xf] }
 0x6cc   : > { %v12784_v30 = vld [vmem:[#allocation17 + $0x690] sm:$0xf0] }
 0x6ce   : > { %7665 = vmatpush.bf16.msrb.mxu0 %v12479_v43  ;;  %7678 = vmatpush.bf16.msra.mxu1 %v12483_v41  ;;  %v12659_v43 = vor.u32 %v14505_v55, %v12656_v14  ;;  %v14501_v41 = vld [vmem:[#allocation17 + $0x564] sm:$0xf]  ;;  %v8510_v39 = vld [vmem:[#allocation1 + $0x1] ss:$2 sm:$0xff] }
 0x6cf   : > { %7691 = vmatpush.bf16.msra.mxu2 %v12487_v54  ;;  %7704 = vmatpush.bf16.msra.mxu3 %v12491_v9  ;;  %v12663_v54 = vor.u32 %v14508_v29, %v12662_v10  ;;  %v12667_v9 = vor.u32 %v14506_v22, %v12664_v35  ;;  %8547 = vst [vmem:[#allocation1] ss:$9 sm:$0xff] %v8510_v39  ;;  %v14552_v10 = vld [vmem:[#allocation17 + $0x6f4] sm:$0xf0]  ;;  %v14550_v29 = vld [vmem:[#allocation17 + $0x6ec] sm:$0xf] }
 0x6d0   : > { %v12643_v28 = vor.u32 %v14501_v41, %v12640_v27  ;;  %8549 = vst [vmem:[#allocation1 + $0x1] ss:$9 sm:$0xff] %v8513_v50  ;;  %v12840_v22 = vld [vmem:[#allocation17 + $0x6f8] sm:$0xf0]  ;;  %v12599_v35 = vor.u32 %v14492_v7, %v12598_v21  ;;  %v14547_v41 = vld [vmem:[#allocation17 + $0x6cc] sm:$0xf0] }
 0x6d1   : > { %v12843_v50 = vor.u32 %v14550_v29, %v12840_v22  ;;  %v12822_v27 = vld [vmem:[#allocation17 + $0x6c8] sm:$0xf] }
 0x6d2   : > { %7666 = vmatpush.bf16.msrb.mxu0 %v12463_v47  ;;  %7679 = vmatpush.bf16.msra.mxu1 %v12467_v38  ;;  %v12647_v47 = vor.u32 %v14504_v25, %v12646_v16  ;;  %v12651_v38 = vor.u32 %v14502_v48, %v12648_v46  ;;  %v14548_v16 = vld [vmem:[#allocation17 + $0x6d4] sm:$0xf0]  ;;  %v14546_v25 = vld [vmem:[#allocation17 + $0x6cc] sm:$0xf]  ;;  %v12824_v48 = vld [vmem:[#allocation17 + $0x6d8] sm:$0xf0] }
 0x6d3   : > { %7692 = vmatpush.bf16.msra.mxu2 %v12471_v53  ;;  %7705 = vmatpush.bf16.msra.mxu3 %v12475_v32  ;;  %v14500_v53 = vld [vmem:[#allocation17 + $0x554] sm:$0xf0]  ;;  %v14498_v32 = vld [vmem:[#allocation17 + $0x54c] sm:$0xf]  ;;  %v12774_v21 = vld [vmem:[#allocation17 + $0x668] sm:$0xf] }
 0x6d5   : > { %7667 = vmatmul.bf16.vlgmr.msrb.gmra.mxu0 %v18118_v15  ;;  %7680 = vmatmul.bf16.vlgmr.msra.gmra.mxu1 %v18118_v15 }
 0x6d6   : > { %7919 = vmatpush.bf16.msra.mxu0 %v12703_v11  ;;  %7932 = vmatpush.bf16.msrb.mxu1 %v12707_v56  ;;  %v12632_v11 = vld [vmem:[#allocation17 + $0x558] sm:$0xf0]  ;;  %v12623_v56 = vor.u32 %v14499_v23, %v12622_v26  ;;  %v14543_v26 = vld [vmem:[#allocation17 + $0x6ac] sm:$0xf0]  ;;  %v12823_v23 = vor.u32 %v14548_v16, %v12822_v27 }
 0x6d7   : > { %7945 = vmatpush.bf16.msrb.mxu2 %v12711_v49  ;;  %7958 = vmatpush.bf16.msrb.mxu3 %v12715_v63  ;;  %v14495_v49 = vld [vmem:[#allocation17 + $0x52c] sm:$0xf0]  ;;  %v12631_v63 = vor.u32 %v14500_v53, %v12630_v13  ;;  %v12635_v60 = vor.u32 %v14498_v32, %v12632_v11  ;;  %v14544_v13 = vld [vmem:[#allocation17 + $0x6b4] sm:$0xf0]  ;;  %v14542_v53 = vld [vmem:[#allocation17 + $0x6ac] sm:$0xf] }
 0x6d8   : > { %7693 = vmatmul.bf16.vlgmr.msra.gmra.mxu2 %v18118_v15  ;;  %7706 = vmatmul.bf16.vlgmr.msra.gmra.mxu3 %v18118_v15  ;;  %v12655_v15 = vor.u32 %v14507_v36, %v12654_v62  ;;  %v12607_v37 = vor.u32 %v14495_v49, %v12606_v33  ;;  %v14551_v62 = vld [vmem:[#allocation17 + $0x6ec] sm:$0xf0]  ;;  %v14549_v36 = vld [vmem:[#allocation17 + $0x6e4] sm:$0xf]  ;;  %v12808_v32 = vld [vmem:[#allocation17 + $0x6b8] sm:$0xf0] }
 0x6d9   : > { %v12782_v49 = vld [vmem:[#allocation17 + $0x680] sm:$0xf]  ;;  %v12811_v44 = vor.u32 %v14542_v53, %v12808_v32 }
 0x6da   : > { %7920 = vmatpush.bf16.msra.mxu0 %v12687_v52  ;;  %7933 = vmatpush.bf16.msrb.mxu1 %v12691_v1  ;;  %v12616_v52 = vld [vmem:[#allocation17 + $0x538] sm:$0xf0]  ;;  %v12590_v1 = vld [vmem:[#allocation17 + $0x500] sm:$0xf] }
 0x6db   : > { %7946 = vmatpush.bf16.msrb.mxu2 %v12695_v0  ;;  %7959 = vmatpush.bf16.msrb.mxu3 %v12699_v24  ;;  %v14491_v0 = vld [vmem:[#allocation17 + $0x50c] sm:$0xf0]  ;;  %v14489_v24 = vld [vmem:[#allocation17 + $0x504] sm:$0xf]  ;;  %v12619_v61 = vor.u32 %v14494_v51, %v12616_v52  ;;  %v14540_v51 = vld [vmem:[#allocation17 + $0x694] sm:$0xf0] }
 0x6dc   : > { %v12591_v55 = vor.u32 %v14491_v0, %v12590_v1  ;;  %v12595_v14 = vor.u32 %v14489_v24, %v12592_v6  ;;  %v14538_v52 = vld [vmem:[#allocation17 + $0x68c] sm:$0xf]  ;;  %v14535_v0 = vld [vmem:[#allocation17 + $0x66c] sm:$0xf0]  ;;  %v12791_v24 = vor.u32 %v14540_v51, %v12790_v34  ;;  %v12728_v51 = vld [vmem:[#allocation17 + $0x618] sm:$0xf0] }
 0x6dd   : > { %v14522_v34 = vld [vmem:[#allocation17 + $0x60c] sm:$0xf] }
 0x6de   : > { %7921 = vmatpush.bf16.msra.mxu0 %v12671_v45  ;;  %7934 = vmatpush.bf16.msrb.mxu1 %v12675_v31  ;;  %v12600_v45 = vld [vmem:[#allocation17 + $0x518] sm:$0xf0]  ;;  %v12830_v31 = vld [vmem:[#allocation17 + $0x6e0] sm:$0xf] }
 0x6df   : > { %7947 = vmatpush.bf16.msrb.mxu2 %v12679_v5  ;;  %7960 = vmatpush.bf16.msrb.mxu3 %v12683_v8  ;;  %v12832_v5 = vld [vmem:[#allocation17 + $0x6f0] sm:$0xf0]  ;;  %v12838_v8 = vld [vmem:[#allocation17 + $0x6e8] sm:$0xf]  ;;  %v12603_v59 = vor.u32 %v14490_v3, %v12600_v45  ;;  %v12831_v18 = vor.u32 %v14551_v62, %v12830_v31  ;;  %v14536_v45 = vld [vmem:[#allocation17 + $0x674] sm:$0xf0] }
 0x6e0   : > { %v12839_v39 = vor.u32 %v14552_v10, %v12838_v8  ;;  %v14534_v31 = vld [vmem:[#allocation17 + $0x66c] sm:$0xf]  ;;  %v12776_v62 = vld [vmem:[#allocation17 + $0x678] sm:$0xf0]  ;;  %v14531_v10 = vld [vmem:[#allocation17 + $0x64c] sm:$0xf0]  ;;  %v12775_v29 = vor.u32 %v14536_v45, %v12774_v21 }
 0x6e1   : > { %v12779_v22 = vor.u32 %v14534_v31, %v12776_v62 }
 0x6e2   : > { %7922 = vmatpush.bf16.msra.mxu0 %v12655_v15  ;;  %7935 = vmatpush.bf16.msrb.mxu1 %v12659_v43  ;;  %v12835_v15 = vor.u32 %v14549_v36, %v12832_v5  ;;  %v12814_v43 = vld [vmem:[#allocation17 + $0x6c0] sm:$0xf] }
 0x6e3   : > { %7948 = vmatpush.bf16.msrb.mxu2 %v12663_v54  ;;  %7961 = vmatpush.bf16.msrb.mxu3 %v12667_v9  ;;  %v14545_v54 = vld [vmem:[#allocation17 + $0x6c4] sm:$0xf]  ;;  %v12816_v9 = vld [vmem:[#allocation17 + $0x6d0] sm:$0xf0]  ;;  %v12815_v46 = vor.u32 %v14547_v41, %v12814_v43  ;;  %v14530_v43 = vld [vmem:[#allocation17 + $0x64c] sm:$0xf] }
 0x6e4   : > { %v12760_v41 = vld [vmem:[#allocation17 + $0x658] sm:$0xf0] }
 0x6e5   : > { %v12763_v16 = vor.u32 %v14530_v43, %v12760_v41  ;;  %v14578_v43 = vld [vmem:[#allocation17 + $0x7cc] sm:$0xf]  ;;  %v12953_v41 = vld [vmem:[#allocation17 + $0x7d8] sm:$0xf0] }
 0x6e6   : > { %7923 = vmatpush.bf16.msra.mxu0 %v12639_v42  ;;  %7936 = vmatpush.bf16.msrb.mxu1 %v12643_v28  ;;  %v12819_v42 = vor.u32 %v14545_v54, %v12816_v9  ;;  %v12798_v28 = vld [vmem:[#allocation17 + $0x6a0] sm:$0xf]  ;;  %v14527_v9 = vld [vmem:[#allocation17 + $0x62c] sm:$0xf0] }
 0x6e7   : > { %7949 = vmatpush.bf16.msrb.mxu2 %v12647_v47  ;;  %7962 = vmatpush.bf16.msrb.mxu3 %v12651_v38  ;;  %v12827_v47 = vor.u32 %v14546_v25, %v12824_v48  ;;  %v14541_v38 = vld [vmem:[#allocation17 + $0x6a4] sm:$0xf]  ;;  %v12734_v54 = vld [vmem:[#allocation17 + $0x620] sm:$0xf]  ;;  %v12736_v48 = vld [vmem:[#allocation17 + $0x630] sm:$0xf0] }
 0x6e8   : > { %v12803_v33 = vor.u32 %v14541_v38, %v12800_v2  ;;  %v14525_v25 = vld [vmem:[#allocation17 + $0x624] sm:$0xf]  ;;  %v12735_v38 = vor.u32 %v14527_v9, %v12734_v54  ;;  %v14575_v54 = vld [vmem:[#allocation17 + $0x7ac] sm:$0xf0]  ;;  %v12956_v9 = vor.u32 %v14578_v43, %v12953_v41 }
 0x6e9   : > { %v12739_v53 = vor.u32 %v14525_v25, %v12736_v48  ;;  %v12935_v25 = vld [vmem:[#allocation17 + $0x7a8] sm:$0xf]  ;;  %v14576_v48 = vld [vmem:[#allocation17 + $0x7b4] sm:$0xf0] }
 0x6ea   : > { %7924 = vmatpush.bf16.msra.mxu0 %v12623_v56  ;;  %7937 = vmatpush.bf16.msrb.mxu1 %v12627_v19  ;;  %v12799_v19 = vor.u32 %v14543_v26, %v12798_v28  ;;  %v14528_v26 = vld [vmem:[#allocation17 + $0x634] sm:$0xf0] }
 0x6eb   : > { %7950 = vmatpush.bf16.msrb.mxu2 %v12631_v63  ;;  %7963 = vmatpush.bf16.msrb.mxu3 %v12635_v60  ;;  %v14539_v63 = vld [vmem:[#allocation17 + $0x68c] sm:$0xf0]  ;;  %v12807_v60 = vor.u32 %v14544_v13, %v12806_v17  ;;  %v12718_v13 = vld [vmem:[#allocation17 + $0x600] sm:$0xf] }
 0x6ec   : > { %v12783_v1 = vor.u32 %v14539_v63, %v12782_v49  ;;  %v14521_v49 = vld [vmem:[#allocation17 + $0x604] sm:$0xf]  ;;  %v12720_v63 = vld [vmem:[#allocation17 + $0x610] sm:$0xf0] }
 0x6ee   : > { %7925 = vmatpush.bf16.msra.mxu0 %v12607_v37  ;;  %7938 = vmatpush.bf16.msrb.mxu1 %v12611_v20  ;;  %v12787_v37 = vor.u32 %v14537_v57, %v12784_v30  ;;  %v12766_v20 = vld [vmem:[#allocation17 + $0x660] sm:$0xf]  ;;  %v12726_v57 = vld [vmem:[#allocation17 + $0x608] sm:$0xf]  ;;  %v14524_v30 = vld [vmem:[#allocation17 + $0x614] sm:$0xf0] }
 0x6ef   : > { %7951 = vmatpush.bf16.msrb.mxu2 %v12615_v12  ;;  %7964 = vmatpush.bf16.msrb.mxu3 %v12619_v61  ;;  %v14533_v12 = vld [vmem:[#allocation17 + $0x664] sm:$0xf]  ;;  %v12768_v61 = vld [vmem:[#allocation17 + $0x670] sm:$0xf0]  ;;  %v12767_v8 = vor.u32 %v14535_v0, %v12766_v20  ;;  %v12723_v20 = vor.u32 %v14521_v49, %v12720_v63  ;;  %v14584_v0 = vld [vmem:[#allocation17 + $0x7f4] sm:$0xf0] }
 0x6f0   : > { %v12919_v49 = vld [vmem:[#allocation17 + $0x788] sm:$0xf]  ;;  %v14572_v63 = vld [vmem:[#allocation17 + $0x794] sm:$0xf0] }
 0x6f1   : > { %v18159_v11 = vpop.f32.mrf.mxu0  ;;  %v18161_v56 = vpop.f32.mrf.mxu1 }
 0x6f2   : > { %7926 = vmatpush.bf16.msra.mxu0 %v12591_v55  ;;  %7939 = vmatpush.bf16.msrb.mxu1 %v12595_v14  ;;  %v12771_v55 = vor.u32 %v14533_v12, %v12768_v61  ;;  %v12750_v14 = vld [vmem:[#allocation17 + $0x640] sm:$0xf]  ;;  %v12727_v12 = vor.u32 %v14524_v30, %v12726_v57  ;;  %v12731_v61 = vor.u32 %v14522_v34, %v12728_v51 }
 0x6f3   : > { %7952 = vmatpush.bf16.msrb.mxu2 %v12599_v35  ;;  %7965 = vmatpush.bf16.msrb.mxu3 %v12603_v59  ;;  %v14529_v35 = vld [vmem:[#allocation17 + $0x644] sm:$0xf]  ;;  %v12752_v59 = vld [vmem:[#allocation17 + $0x650] sm:$0xf0] }
 0x6f5   : > { %7927 = vmatmul.bf16.vlgmr.msra.gmra.mxu0 %v18126_v58  ;;  %7940 = vmatmul.bf16.vlgmr.msrb.gmra.mxu1 %v18126_v58 }
 0x6f6   : > { %8174 = vmatpush.bf16.msrb.mxu0 %v12831_v18  ;;  %8187 = vmatpush.bf16.msra.mxu1 %v12835_v15  ;;  %v12758_v18 = vld [vmem:[#allocation17 + $0x648] sm:$0xf]  ;;  %v14532_v15 = vld [vmem:[#allocation17 + $0x654] sm:$0xf0] }
 0x6f7   : > { %8200 = vmatpush.bf16.msra.mxu2 %v12839_v39  ;;  %8213 = vmatpush.bf16.msra.mxu3 %v12843_v50  ;;  %v12751_v39 = vor.u32 %v14531_v10, %v12750_v14  ;;  %v12755_v50 = vor.u32 %v14529_v35, %v12752_v59  ;;  %v12759_v27 = vor.u32 %v14532_v15, %v12758_v18  ;;  %v14577_v35 = vld [vmem:[#allocation17 + $0x7c4] sm:$0xf]  ;;  %v12945_v59 = vld [vmem:[#allocation17 + $0x7d0] sm:$0xf0]  ;;  %v12951_v18 = vld [vmem:[#allocation17 + $0x7c8] sm:$0xf] }
 0x6f8   : > { %7953 = vmatmul.bf16.vlgmr.msrb.gmra.mxu2 %v18126_v58  ;;  %7966 = vmatmul.bf16.vlgmr.msrb.gmra.mxu3 %v18126_v58  ;;  %v12792_v58 = vld [vmem:[#allocation17 + $0x698] sm:$0xf0]  ;;  %v18163_v7 = vpop.f32.mrf.mxu2  ;;  %v18165_v3 = vpop.f32.mrf.mxu3  ;;  %v14580_v15 = vld [vmem:[#allocation17 + $0x7d4] sm:$0xf0] }
 0x6f9   : > { %v12795_v6 = vor.u32 %v14538_v52, %v12792_v58  ;;  %v6664_v36 = vpop.f32.mrf.mxu0  ;;  %v6677_v5 = vpop.f32.mrf.mxu1  ;;  %v12959_v52 = vld [vmem:[#allocation17 + $0x7e0] sm:$0xf]  ;;  %v14583_v58 = vld [vmem:[#allocation17 + $0x7ec] sm:$0xf0] }
 0x6fa   : > { %8175 = vmatpush.bf16.msrb.mxu0 %v12815_v46  ;;  %8188 = vmatpush.bf16.msra.mxu1 %v12819_v42  ;;  %v12742_v46 = vld [vmem:[#allocation17 + $0x628] sm:$0xf]  ;;  %v12960_v21 = vor.u32 %v14583_v58, %v12959_v52  ;;  %v12943_v36 = vld [vmem:[#allocation17 + $0x7c0] sm:$0xf]  ;;  %v14579_v5 = vld [vmem:[#allocation17 + $0x7cc] sm:$0xf0] }
 0x6fb   : > { %8201 = vmatpush.bf16.msra.mxu2 %v12823_v23  ;;  %8214 = vmatpush.bf16.msra.mxu3 %v12827_v47  ;;  %v14526_v23 = vld [vmem:[#allocation17 + $0x62c] sm:$0xf]  ;;  %v12744_v47 = vld [vmem:[#allocation17 + $0x638] sm:$0xf0]  ;;  %v12895_v58 = vld [vmem:[#allocation17 + $0x760] sm:$0xf] }
 0x6fe   : > { %8176 = vmatpush.bf16.msrb.mxu0 %v12799_v19  ;;  %8189 = vmatpush.bf16.msra.mxu1 %v12803_v33  ;;  %v14523_v33 = vld [vmem:[#allocation17 + $0x60c] sm:$0xf0] }
 0x6ff   : > { %8202 = vmatpush.bf16.msra.mxu2 %v12807_v60  ;;  %8215 = vmatpush.bf16.msra.mxu3 %v12811_v44  ;;  %v12743_v60 = vor.u32 %v14528_v26, %v12742_v46  ;;  %v12747_v44 = vor.u32 %v14526_v23, %v12744_v47  ;;  %v14574_v46 = vld [vmem:[#allocation17 + $0x7ac] sm:$0xf] }
 0x700   : > { %v6690_v42 = vpop.f32.mrf.mxu2  ;;  %v6703_v28 = vpop.f32.mrf.mxu3 }
 0x701   : > { %v6879_v2 = vpop.f32.mrf.mxu0  ;;  %v6892_v17 = vpop.f32.mrf.mxu1  ;;  %v12937_v42 = vld [vmem:[#allocation17 + $0x7b8] sm:$0xf0] }
 0x702   : > { %8177 = vmatpush.bf16.msrb.mxu0 %v12783_v1  ;;  %8190 = vmatpush.bf16.msra.mxu1 %v12787_v37  ;;  %v18168_v32 = vadd.f32 %v6879_v2, %v18159_v11  ;;  %v18171_v19 = vadd.f32 %v6892_v17, %v18161_v56  ;;  %v14581_v1 = vld [vmem:[#allocation17 + $0x7e4] sm:$0xf]  ;;  %v12961_v37 = vld [vmem:[#allocation17 + $0x7f0] sm:$0xf0]  ;;  %v12967_v11 = vld [vmem:[#allocation17 + $0x7e8] sm:$0xf]  ;;  %v12719_v56 = vor.u32 %v14523_v33, %v12718_v13 }
 0x703   : > { %8203 = vmatpush.bf16.msra.mxu2 %v12791_v24  ;;  %8216 = vmatpush.bf16.msra.mxu3 %v12795_v6  ;;  %v14582_v24 = vld [vmem:[#allocation17 + $0x7ec] sm:$0xf]  ;;  %v12969_v6 = vld [vmem:[#allocation17 + $0x7f8] sm:$0xf0]  ;;  %v12964_v45 = vor.u32 %v14581_v1, %v12961_v37  ;;  %v14571_v2 = vld [vmem:[#allocation17 + $0x78c] sm:$0xf0]  ;;  %v12936_v17 = vor.u32 %v14576_v48, %v12935_v25  ;;  %v12940_v13 = vor.u32 %v14574_v46, %v12937_v42 }
 0x704   : > { %v12913_v33 = vld [vmem:[#allocation17 + $0x790] sm:$0xf0]  ;;  %v14567_v1 = vld [vmem:[#allocation17 + $0x76c] sm:$0xf0]  ;;  %v12920_v37 = vor.u32 %v14572_v63, %v12919_v49  ;;  %v14558_v25 = vld [vmem:[#allocation17 + $0x72c] sm:$0xf] }
 0x705   : > { %v12873_v48 = vld [vmem:[#allocation17 + $0x738] sm:$0xf0]  ;;  %v13087_v63 = vld [vmem:[#allocation17 + $0x8e0] sm:$0xf] }
 0x706   : > { %8178 = vmatpush.bf16.msrb.mxu0 %v12767_v8  ;;  %8191 = vmatpush.bf16.msra.mxu1 %v12771_v55  ;;  %v12968_v8 = vor.u32 %v14584_v0, %v12967_v11  ;;  %v12972_v55 = vor.u32 %v14582_v24, %v12969_v6  ;;  %v12903_v0 = vld [vmem:[#allocation17 + $0x768] sm:$0xf]  ;;  %v14568_v24 = vld [vmem:[#allocation17 + $0x774] sm:$0xf0]  ;;  %v14566_v6 = vld [vmem:[#allocation17 + $0x76c] sm:$0xf] }
 0x707   : > { %8204 = vmatpush.bf16.msra.mxu2 %v12775_v29  ;;  %8217 = vmatpush.bf16.msra.mxu3 %v12779_v22  ;;  %v12857_v49 = vld [vmem:[#allocation17 + $0x718] sm:$0xf0] }
 0x708   : > { %v6905_v31 = vpop.f32.mrf.mxu2  ;;  %v6918_v62 = vpop.f32.mrf.mxu3 }
 0x709   : > { %v18174_v14 = vadd.f32 %v6905_v31, %v18163_v7  ;;  %v18177_v10 = vadd.f32 %v6918_v62, %v18165_v3  ;;  %v6881_v29 = vpop.f32.mrf.mxu0  ;;  %v6894_v22 = vpop.f32.mrf.mxu1  ;;  %v12948_v7 = vor.u32 %v14577_v35, %v12945_v59  ;;  %v12952_v3 = vor.u32 %v14580_v15, %v12951_v18  ;;  %v14561_v62 = vld [vmem:[#allocation17 + $0x744] sm:$0xf]  ;;  %v12889_v35 = vld [vmem:[#allocation17 + $0x758] sm:$0xf0] }
 0x70a   : > { %8179 = vmatpush.bf16.msrb.mxu0 %v12751_v39  ;;  %8192 = vmatpush.bf16.msra.mxu1 %v12755_v50  ;;  %v12944_v39 = vor.u32 %v14579_v5, %v12943_v36  ;;  %v12927_v50 = vld [vmem:[#allocation17 + $0x7a0] sm:$0xf]  ;;  %v12881_v36 = vld [vmem:[#allocation17 + $0x750] sm:$0xf0]  ;;  %v12887_v5 = vld [vmem:[#allocation17 + $0x748] sm:$0xf] }
 0x70b   : > { %8205 = vmatpush.bf16.msra.mxu2 %v12759_v27  ;;  %8218 = vmatpush.bf16.msra.mxu3 %v12763_v16  ;;  %v14573_v27 = vld [vmem:[#allocation17 + $0x7a4] sm:$0xf]  ;;  %v12929_v16 = vld [vmem:[#allocation17 + $0x7b0] sm:$0xf0]  ;;  %v12928_v28 = vor.u32 %v14575_v54, %v12927_v50  ;;  %v14564_v29 = vld [vmem:[#allocation17 + $0x754] sm:$0xf0] }
 0x70c   : > { %v12932_v26 = vor.u32 %v14573_v27, %v12929_v16  ;;  %v14562_v22 = vld [vmem:[#allocation17 + $0x74c] sm:$0xf]  ;;  %v14559_v50 = vld [vmem:[#allocation17 + $0x72c] sm:$0xf0]  ;;  %v12888_v54 = vor.u32 %v14564_v29, %v12887_v5  ;;  %v12865_v27 = vld [vmem:[#allocation17 + $0x730] sm:$0xf0] }
 0x70d   : > { %v12871_v16 = vld [vmem:[#allocation17 + $0x728] sm:$0xf] }
 0x70e   : > { %8180 = vmatpush.bf16.msrb.mxu0 %v12735_v38  ;;  %8193 = vmatpush.bf16.msra.mxu1 %v12739_v53  ;;  %v12911_v38 = vld [vmem:[#allocation17 + $0x780] sm:$0xf]  ;;  %v14569_v53 = vld [vmem:[#allocation17 + $0x784] sm:$0xf] }
 0x70f   : > { %8206 = vmatpush.bf16.msra.mxu2 %v12743_v60  ;;  %8219 = vmatpush.bf16.msra.mxu3 %v12747_v44  ;;  %v14570_v60 = vld [vmem:[#allocation17 + $0x78c] sm:$0xf]  ;;  %v12921_v44 = vld [vmem:[#allocation17 + $0x798] sm:$0xf0]  ;;  %v12912_v30 = vor.u32 %v14571_v2, %v12911_v38  ;;  %v12916_v52 = vor.u32 %v14569_v53, %v12913_v33  ;;  %v12876_v38 = vor.u32 %v14558_v25, %v12873_v48  ;;  %v12855_v2 = vld [vmem:[#allocation17 + $0x708] sm:$0xf] }
 0x710   : > { %v6907_v23 = vpop.f32.mrf.mxu2  ;;  %v6920_v47 = vpop.f32.mrf.mxu3  ;;  %v12924_v11 = vor.u32 %v14570_v60, %v12921_v44  ;;  %v14615_v60 = vld [vmem:[#allocation17 + $0x8ec] sm:$0xf0]  ;;  %v14613_v44 = vld [vmem:[#allocation17 + $0x8e4] sm:$0xf]  ;;  %v13041_v25 = vld [vmem:[#allocation17 + $0x890] sm:$0xf0] }
 0x711   : > { %v12849_v23 = vld [vmem:[#allocation17 + $0x710] sm:$0xf0]  ;;  %v13047_v48 = vld [vmem:[#allocation17 + $0x888] sm:$0xf] }
 0x712   : > { %8181 = vmatpush.bf16.msrb.mxu0 %v12719_v56  ;;  %8194 = vmatpush.bf16.msra.mxu1 %v12723_v20  ;;  %v7135_v57 = vpop.f32.mrf.mxu0  ;;  %v14565_v56 = vld [vmem:[#allocation17 + $0x764] sm:$0xf]  ;;  %v12897_v20 = vld [vmem:[#allocation17 + $0x770] sm:$0xf0] }
 0x713   : > { %8207 = vmatpush.bf16.msra.mxu2 %v12727_v12  ;;  %8220 = vmatpush.bf16.msra.mxu3 %v12731_v61  ;;  %v18184_v34 = vadd.f32 %v7135_v57, %v18168_v32  ;;  %v12905_v12 = vld [vmem:[#allocation17 + $0x778] sm:$0xf0]  ;;  %v12896_v32 = vor.u32 %v14567_v1, %v12895_v58  ;;  %v12900_v61 = vor.u32 %v14565_v56, %v12897_v20  ;;  %v13089_v57 = vld [vmem:[#allocation17 + $0x8f0] sm:$0xf0]  ;;  %v14616_v58 = vld [vmem:[#allocation17 + $0x8f4] sm:$0xf0] }
 0x714   : > { %v12908_v31 = vor.u32 %v14566_v6, %v12905_v12  ;;  %v14614_v1 = vld [vmem:[#allocation17 + $0x8ec] sm:$0xf]  ;;  %v13088_v20 = vor.u32 %v14615_v60, %v13087_v63  ;;  %v14611_v6 = vld [vmem:[#allocation17 + $0x8cc] sm:$0xf0]  ;;  %v13031_v63 = vld [vmem:[#allocation17 + $0x868] sm:$0xf] }
 0x715   : > { %8182 = vmatmul.bf16.vlgmr.msrb.gmra.mxu0 %v18142_v40  ;;  %8195 = vmatmul.bf16.vlgmr.msra.gmra.mxu1 %v18142_v40  ;;  %v14600_v60 = vld [vmem:[#allocation17 + $0x874] sm:$0xf0] }
 0x716   : > { %8452 = vmatpush.bf16.msra.mxu0 %v12960_v21  ;;  %8465 = vmatpush.bf16.msrb.mxu1 %v12964_v45  ;;  %v12879_v21 = vld [vmem:[#allocation17 + $0x740] sm:$0xf]  ;;  %v12904_v45 = vor.u32 %v14568_v24, %v12903_v0  ;;  %v13092_v0 = vor.u32 %v14613_v44, %v13089_v57  ;;  %v14598_v44 = vld [vmem:[#allocation17 + $0x86c] sm:$0xf]  ;;  %v13033_v57 = vld [vmem:[#allocation17 + $0x878] sm:$0xf0] }
 0x717   : > { %8478 = vmatpush.bf16.msrb.mxu2 %v12968_v8  ;;  %8491 = vmatpush.bf16.msrb.mxu3 %v12972_v55  ;;  %v13071_v24 = vld [vmem:[#allocation17 + $0x8c0] sm:$0xf] }
 0x718   : > { %8208 = vmatmul.bf16.vlgmr.msra.gmra.mxu2 %v18142_v40  ;;  %8221 = vmatmul.bf16.vlgmr.msra.gmra.mxu3 %v18142_v40  ;;  %v7148_v40 = vpop.f32.mrf.mxu1 }
 0x719   : > { %v18187_v51 = vadd.f32 %v7148_v40, %v18171_v19  ;;  %v14563_v19 = vld [vmem:[#allocation17 + $0x74c] sm:$0xf0]  ;;  %v13095_v40 = vld [vmem:[#allocation17 + $0x8e8] sm:$0xf] }
 0x71a   : > { %8453 = vmatpush.bf16.msra.mxu0 %v12944_v39  ;;  %8466 = vmatpush.bf16.msrb.mxu1 %v12948_v7  ;;  %v7137_v15 = vpop.f32.mrf.mxu0  ;;  %v12880_v41 = vor.u32 %v14563_v19, %v12879_v21  ;;  %v12884_v39 = vor.u32 %v14561_v62, %v12881_v36  ;;  %v12863_v7 = vld [vmem:[#allocation17 + $0x720] sm:$0xf]  ;;  %v13096_v12 = vor.u32 %v14616_v58, %v13095_v40  ;;  %v13073_v21 = vld [vmem:[#allocation17 + $0x8d0] sm:$0xf0]  ;;  %v13079_v19 = vld [vmem:[#allocation17 + $0x8c8] sm:$0xf] }
 0x71b   : > { %8479 = vmatpush.bf16.msrb.mxu2 %v12952_v3  ;;  %8492 = vmatpush.bf16.msrb.mxu3 %v12956_v9  ;;  %v7161_v8 = vpop.f32.mrf.mxu2  ;;  %v7174_v55 = vpop.f32.mrf.mxu3  ;;  %v12892_v3 = vor.u32 %v14562_v22, %v12889_v35  ;;  %v14557_v9 = vld [vmem:[#allocation17 + $0x724] sm:$0xf]  ;;  %v12864_v46 = vor.u32 %v14559_v50, %v12863_v7  ;;  %v13081_v62 = vld [vmem:[#allocation17 + $0x8d8] sm:$0xf0]  ;;  %v13072_v36 = vor.u32 %v14611_v6, %v13071_v24  ;;  %v13057_v15 = vld [vmem:[#allocation17 + $0x8b0] sm:$0xf0] }
 0x71c   : > { %v18190_v59 = vadd.f32 %v7161_v8, %v18174_v14  ;;  %v18193_v18 = vadd.f32 %v7174_v55, %v18177_v10  ;;  %v14560_v14 = vld [vmem:[#allocation17 + $0x734] sm:$0xf0]  ;;  %v12847_v10 = vld [vmem:[#allocation17 + $0x700] sm:$0xf]  ;;  %v12868_v42 = vor.u32 %v14557_v9, %v12865_v27  ;;  %v14607_v55 = vld [vmem:[#allocation17 + $0x8ac] sm:$0xf0]  ;;  %v13036_v58 = vor.u32 %v14598_v44, %v13033_v57 }
 0x71d   : > { %v12872_v47 = vor.u32 %v14560_v14, %v12871_v16  ;;  %v13055_v8 = vld [vmem:[#allocation17 + $0x8a0] sm:$0xf]  ;;  %v14605_v35 = vld [vmem:[#allocation17 + $0x8a4] sm:$0xf]  ;;  %v13065_v7 = vld [vmem:[#allocation17 + $0x8b8] sm:$0xf0] }
 0x71e   : > { %8454 = vmatpush.bf16.msra.mxu0 %v12928_v28  ;;  %8467 = vmatpush.bf16.msrb.mxu1 %v12932_v26  ;;  %v14555_v28 = vld [vmem:[#allocation17 + $0x70c] sm:$0xf0]  ;;  %v14553_v26 = vld [vmem:[#allocation17 + $0x704] sm:$0xf]  ;;  %v13056_v50 = vor.u32 %v14607_v55, %v13055_v8  ;;  %v14594_v24 = vld [vmem:[#allocation17 + $0x84c] sm:$0xf] }
 0x71f   : > { %8480 = vmatpush.bf16.msrb.mxu2 %v12936_v17  ;;  %8493 = vmatpush.bf16.msrb.mxu3 %v12940_v13  ;;  %v14556_v17 = vld [vmem:[#allocation17 + $0x714] sm:$0xf0]  ;;  %v14554_v13 = vld [vmem:[#allocation17 + $0x70c] sm:$0xf]  ;;  %v14603_v9 = vld [vmem:[#allocation17 + $0x88c] sm:$0xf0] }
 0x720   : > { %v7150_v43 = vpop.f32.mrf.mxu1  ;;  %v12860_v56 = vor.u32 %v14554_v13, %v12857_v49  ;;  %v14601_v14 = vld [vmem:[#allocation17 + $0x884] sm:$0xf]  ;;  %v13025_v49 = vld [vmem:[#allocation17 + $0x870] sm:$0xf0]  ;;  %v13017_v6 = vld [vmem:[#allocation17 + $0x858] sm:$0xf0] }
 0x721   : > { %v13063_v43 = vld [vmem:[#allocation17 + $0x8a8] sm:$0xf]  ;;  %v14589_v8 = vld [vmem:[#allocation17 + $0x824] sm:$0xf]  ;;  %v12993_v55 = vld [vmem:[#allocation17 + $0x830] sm:$0xf0] }
 0x722   : > { %8455 = vmatpush.bf16.msra.mxu0 %v12912_v30  ;;  %8468 = vmatpush.bf16.msrb.mxu1 %v12916_v52  ;;  %v12848_v30 = vor.u32 %v14555_v28, %v12847_v10  ;;  %v12852_v52 = vor.u32 %v14553_v26, %v12849_v23  ;;  %v14604_v10 = vld [vmem:[#allocation17 + $0x894] sm:$0xf0] }
 0x723   : > { %8481 = vmatpush.bf16.msrb.mxu2 %v12920_v37  ;;  %8494 = vmatpush.bf16.msrb.mxu3 %v12924_v11  ;;  %v7163_v53 = vpop.f32.mrf.mxu2  ;;  %v7176_v33 = vpop.f32.mrf.mxu3  ;;  %v13097_v37 = vld [vmem:[#allocation17 + $0x8f8] sm:$0xf0]  ;;  %v12856_v11 = vor.u32 %v14556_v17, %v12855_v2  ;;  %v13023_v2 = vld [vmem:[#allocation17 + $0x860] sm:$0xf]  ;;  %v14599_v17 = vld [vmem:[#allocation17 + $0x86c] sm:$0xf0]  ;;  %v13048_v13 = vor.u32 %v14604_v10, %v13047_v48 }
 0x724   : > { %v14597_v33 = vld [vmem:[#allocation17 + $0x864] sm:$0xf] }
 0x725   : > { %v13028_v40 = vor.u32 %v14597_v33, %v13025_v49 }
 0x726   : > { %8456 = vmatpush.bf16.msra.mxu0 %v12896_v32  ;;  %8469 = vmatpush.bf16.msrb.mxu1 %v12900_v61  ;;  %v13100_v32 = vor.u32 %v14614_v1, %v13097_v37  ;;  %v14609_v61 = vld [vmem:[#allocation17 + $0x8c4] sm:$0xf]  ;;  %v13009_v37 = vld [vmem:[#allocation17 + $0x850] sm:$0xf0] }
 0x727   : > { %8482 = vmatpush.bf16.msrb.mxu2 %v12904_v45  ;;  %8495 = vmatpush.bf16.msrb.mxu3 %v12908_v31  ;;  %v14612_v45 = vld [vmem:[#allocation17 + $0x8d4] sm:$0xf0]  ;;  %v14610_v31 = vld [vmem:[#allocation17 + $0x8cc] sm:$0xf]  ;;  %v13076_v5 = vor.u32 %v14609_v61, %v13073_v21  ;;  %v14593_v1 = vld [vmem:[#allocation17 + $0x844] sm:$0xf] }
 0x728   : > { %v13080_v29 = vor.u32 %v14612_v45, %v13079_v19  ;;  %v13084_v22 = vor.u32 %v14610_v31, %v13081_v62  ;;  %v13012_v45 = vor.u32 %v14593_v1, %v13009_v37  ;;  %v12991_v31 = vld [vmem:[#allocation17 + $0x820] sm:$0xf]  ;;  %v14591_v62 = vld [vmem:[#allocation17 + $0x82c] sm:$0xf0] }
 0x72a   : > { %8457 = vmatpush.bf16.msra.mxu0 %v12880_v41  ;;  %8470 = vmatpush.bf16.msrb.mxu1 %v12884_v39  ;;  %v14608_v41 = vld [vmem:[#allocation17 + $0x8b4] sm:$0xf0]  ;;  %v14606_v39 = vld [vmem:[#allocation17 + $0x8ac] sm:$0xf] }
 0x72b   : > { %8483 = vmatpush.bf16.msrb.mxu2 %v12888_v54  ;;  %8496 = vmatpush.bf16.msrb.mxu3 %v12892_v3  ;;  %v13060_v54 = vor.u32 %v14605_v35, %v13057_v15  ;;  %v13039_v3 = vld [vmem:[#allocation17 + $0x880] sm:$0xf]  ;;  %v13064_v27 = vor.u32 %v14608_v41, %v13063_v43  ;;  %v13068_v16 = vor.u32 %v14606_v39, %v13065_v7  ;;  %v14590_v35 = vld [vmem:[#allocation17 + $0x82c] sm:$0xf]  ;;  %v14587_v41 = vld [vmem:[#allocation17 + $0x80c] sm:$0xf0] }
 0x72c   : > { %v13040_v23 = vor.u32 %v14603_v9, %v13039_v3  ;;  %v12996_v15 = vor.u32 %v14589_v8, %v12993_v55  ;;  %v12975_v43 = vld [vmem:[#allocation17 + $0x800] sm:$0xf]  ;;  %v12983_v3 = vld [vmem:[#allocation17 + $0x808] sm:$0xf]  ;;  %v14643_v55 = vld [vmem:[#allocation20 + $0xcc] sm:$0xf0] }
 0x72d   : > { %v12976_v48 = vor.u32 %v14587_v41, %v12975_v43  ;;  %v13584_v43 = vld [vmem:[#allocation20 + $0x3c0] sm:$0xf] }
 0x72e   : > { %8458 = vmatpush.bf16.msra.mxu0 %v12864_v46  ;;  %8471 = vmatpush.bf16.msrb.mxu1 %v12868_v42  ;;  %v14602_v46 = vld [vmem:[#allocation17 + $0x88c] sm:$0xf]  ;;  %v13049_v42 = vld [vmem:[#allocation17 + $0x898] sm:$0xf0] }
 0x72f   : > { %8484 = vmatpush.bf16.msrb.mxu2 %v12872_v47  ;;  %8497 = vmatpush.bf16.msrb.mxu3 %v12876_v38  ;;  %v13044_v38 = vor.u32 %v14601_v14, %v13041_v25  ;;  %v13052_v53 = vor.u32 %v14602_v46, %v13049_v42  ;;  %v14586_v14 = vld [vmem:[#allocation17 + $0x80c] sm:$0xf]  ;;  %v12985_v25 = vld [vmem:[#allocation17 + $0x818] sm:$0xf0] }
 0x730   : > { %v12988_v42 = vor.u32 %v14586_v14, %v12985_v25  ;;  %v14671_v14 = vld [vmem:[#allocation20 + $0x1ac] sm:$0xf0]  ;;  %v13440_v25 = vld [vmem:[#allocation20 + $0x2a0] sm:$0xf] }
 0x732   : > { %8459 = vmatpush.bf16.msra.mxu0 %v12848_v30  ;;  %8472 = vmatpush.bf16.msrb.mxu1 %v12852_v52  ;;  %v7390_v28 = vpop.f32.mrf.mxu0  ;;  %v7403_v26 = vpop.f32.mrf.mxu1  ;;  %v13007_v30 = vld [vmem:[#allocation17 + $0x840] sm:$0xf]  ;;  %v13032_v52 = vor.u32 %v14600_v60, %v13031_v63 }
 0x733   : > { %8485 = vmatpush.bf16.msrb.mxu2 %v12856_v11  ;;  %8498 = vmatpush.bf16.msrb.mxu3 %v12860_v56  ;;  %v18203_v47 = vadd.f32 %v7403_v26, %v18187_v51  ;;  %v14595_v51 = vld [vmem:[#allocation17 + $0x84c] sm:$0xf0]  ;;  %v13015_v11 = vld [vmem:[#allocation17 + $0x848] sm:$0xf] }
 0x734   : > { %v13008_v19 = vor.u32 %v14595_v51, %v13007_v30 }
 0x735   : > { %8460 = vmatmul.bf16.vlgmr.msra.gmra.mxu0 %v18148_v4  ;;  %8473 = vmatmul.bf16.vlgmr.msrb.gmra.mxu1 %v18148_v4 }
 0x736   : > { %8712 = vmatpush.bf16.msrb.mxu0 %v13088_v20  ;;  %8725 = vmatpush.bf16.msra.mxu1 %v13092_v0  ;;  %v14596_v0 = vld [vmem:[#allocation17 + $0x854] sm:$0xf0] }
 0x737   : > { %8738 = vmatpush.bf16.msra.mxu2 %v13096_v12  ;;  %8751 = vmatpush.bf16.msra.mxu3 %v13100_v32 }
 0x738   : > { %8486 = vmatmul.bf16.vlgmr.msrb.gmra.mxu2 %v18148_v4  ;;  %8499 = vmatmul.bf16.vlgmr.msrb.gmra.mxu3 %v18148_v4  ;;  %v18200_v4 = vadd.f32 %v7390_v28, %v18184_v34  ;;  %v13024_v34 = vor.u32 %v14599_v17, %v13023_v2  ;;  %v8550_v28 = vld [vmem:[#allocation1] sm:$0xff] }
 0x73a   : > { %8713 = vmatpush.bf16.msrb.mxu0 %v13072_v36  ;;  %8726 = vmatpush.bf16.msra.mxu1 %v13076_v5  ;;  %v7392_v61 = vpop.f32.mrf.mxu0  ;;  %v7405_v21 = vpop.f32.mrf.mxu1  ;;  %v13016_v36 = vor.u32 %v14596_v0, %v13015_v11  ;;  %v13020_v5 = vor.u32 %v14594_v24, %v13017_v6  ;;  %v13344_v0 = vld [vmem:[#allocation20 + $0x1e0] sm:$0xf] }
 0x73b   : > { %8739 = vmatpush.bf16.msra.mxu2 %v13080_v29  ;;  %8752 = vmatpush.bf16.msra.mxu3 %v13084_v22  ;;  %v7416_v56 = vpop.f32.mrf.mxu2  ;;  %v7429_v20 = vpop.f32.mrf.mxu3  ;;  %v12999_v29 = vld [vmem:[#allocation17 + $0x828] sm:$0xf]  ;;  %v14592_v22 = vld [vmem:[#allocation17 + $0x834] sm:$0xf0]  ;;  %v13472_v61 = vld [vmem:[#allocation20 + $0x2e0] sm:$0xf] }
 0x73c   : > { %v7435_v12 = vadd.f32 %v7416_v56, %v18190_v59  ;;  %v7436_v32 = vadd.f32 %v7429_v20, %v18193_v18  ;;  %v13001_v59 = vld [vmem:[#allocation17 + $0x838] sm:$0xf0]  ;;  %v12992_v18 = vor.u32 %v14591_v62, %v12991_v31  ;;  %v13000_v39 = vor.u32 %v14592_v22, %v12999_v29  ;;  %v13216_v56 = vld [vmem:[#allocation20 + $0xe0] sm:$0xf]  ;;  %v14647_v20 = vld [vmem:[#allocation20 + $0xec] sm:$0xf0] }
 0x73d   : > { %v13004_v7 = vor.u32 %v14590_v35, %v13001_v59  ;;  %v14711_v21 = vld [vmem:[#allocation20 + $0x2ec] sm:$0xf0]  ;;  %v13600_v62 = vld [vmem:[#allocation20 + $0x3e0] sm:$0xf] }
 0x73e   : > { %8714 = vmatpush.bf16.msrb.mxu0 %v13056_v50  ;;  %8727 = vmatpush.bf16.msra.mxu1 %v13060_v54  ;;  %v14585_v50 = vld [vmem:[#allocation17 + $0x804] sm:$0xf]  ;;  %v12977_v54 = vld [vmem:[#allocation17 + $0x810] sm:$0xf0]  ;;  %v13473_v31 = vor.u32 %v14711_v21, %v13472_v61 }
 0x73f   : > { %8740 = vmatpush.bf16.msra.mxu2 %v13064_v27  ;;  %8753 = vmatpush.bf16.msra.mxu3 %v13068_v16  ;;  %v14588_v16 = vld [vmem:[#allocation17 + $0x814] sm:$0xf0]  ;;  %v12980_v10 = vor.u32 %v14585_v50, %v12977_v54  ;;  %v13328_v29 = vld [vmem:[#allocation20 + $0x1c0] sm:$0xf]  ;;  %v14675_v22 = vld [vmem:[#allocation20 + $0x1cc] sm:$0xf0] }
 0x740   : > { %v12984_v46 = vor.u32 %v14588_v16, %v12983_v3  ;;  %v13329_v59 = vor.u32 %v14675_v22, %v13328_v29  ;;  %v13184_v50 = vld [vmem:[#allocation20 + $0xa0] sm:$0xf]  ;;  %v14639_v54 = vld [vmem:[#allocation20 + $0xac] sm:$0xf0] }
 0x741   : > { %v13312_v3 = vld [vmem:[#allocation20 + $0x1a0] sm:$0xf]  ;;  %v13185_v16 = vor.u32 %v14639_v54, %v13184_v50  ;;  %v14727_v61 = vld [vmem:[#allocation20 + $0x36c] sm:$0xf0] }
 0x742   : > { %8715 = vmatpush.bf16.msrb.mxu0 %v13040_v23  ;;  %8728 = vmatpush.bf16.msra.mxu1 %v13044_v38  ;;  %v13136_v21 = vld [vmem:[#allocation20 + $0x40] sm:$0xf]  ;;  %v14723_v22 = vld [vmem:[#allocation20 + $0x34c] sm:$0xf0] }
 0x743   : > { %8741 = vmatpush.bf16.msra.mxu2 %v13048_v13  ;;  %8754 = vmatpush.bf16.msra.mxu3 %v13052_v53  ;;  %v7418_v9 = vpop.f32.mrf.mxu2  ;;  %v7431_v27 = vpop.f32.mrf.mxu3  ;;  %v14687_v50 = vld [vmem:[#allocation20 + $0x22c] sm:$0xf0]  ;;  %v13504_v54 = vld [vmem:[#allocation20 + $0x320] sm:$0xf] }
 0x746   : > { %8716 = vmatpush.bf16.msrb.mxu0 %v13024_v34  ;;  %8729 = vmatpush.bf16.msra.mxu1 %v13028_v40 }
 0x747   : > { %8742 = vmatpush.bf16.msra.mxu2 %v13032_v52  ;;  %8755 = vmatpush.bf16.msra.mxu3 %v13036_v58 }
 0x74a   : > { %8717 = vmatpush.bf16.msrb.mxu0 %v13008_v19  ;;  %8730 = vmatpush.bf16.msra.mxu1 %v13012_v45 }
 0x74b   : > { %8743 = vmatpush.bf16.msra.mxu2 %v13016_v36  ;;  %8756 = vmatpush.bf16.msra.mxu3 %v13020_v5  ;;  %v14743_v36 = vld [vmem:[#allocation20 + $0x3ec] sm:$0xf0]  ;;  %v13200_v5 = vld [vmem:[#allocation20 + $0xc0] sm:$0xf] }
 0x74c   : > { %v13601_v8 = vor.u32 %v14743_v36, %v13600_v62  ;;  %v13201_v35 = vor.u32 %v14643_v55, %v13200_v5  ;;  %v13264_v62 = vld [vmem:[#allocation20 + $0x140] sm:$0xf]  ;;  %v14659_v36 = vld [vmem:[#allocation20 + $0x14c] sm:$0xf0] }
 0x74d   : > { %v13392_v5 = vld [vmem:[#allocation20 + $0x240] sm:$0xf] }
 0x74e   : > { %8718 = vmatpush.bf16.msrb.mxu0 %v12992_v18  ;;  %8731 = vmatpush.bf16.msra.mxu1 %v12996_v15  ;;  %v13456_v18 = vld [vmem:[#allocation20 + $0x2c0] sm:$0xf]  ;;  %v14707_v15 = vld [vmem:[#allocation20 + $0x2cc] sm:$0xf0] }
 0x74f   : > { %8744 = vmatpush.bf16.msra.mxu2 %v13000_v39  ;;  %8757 = vmatpush.bf16.msra.mxu3 %v13004_v7  ;;  %v13457_v41 = vor.u32 %v14707_v15, %v13456_v18  ;;  %v14739_v39 = vld [vmem:[#allocation20 + $0x3cc] sm:$0xf0]  ;;  %v13520_v55 = vld [vmem:[#allocation20 + $0x340] sm:$0xf] }
 0x750   : > { %v13585_v7 = vor.u32 %v14739_v39, %v13584_v43  ;;  %v13120_v18 = vld [vmem:[#allocation20 + $0x20] sm:$0xf]  ;;  %v14623_v15 = vld [vmem:[#allocation20 + $0x2c] sm:$0xf0] }
 0x751   : > { %v13248_v43 = vld [vmem:[#allocation20 + $0x120] sm:$0xf]  ;;  %v14655_v39 = vld [vmem:[#allocation20 + $0x12c] sm:$0xf0] }
 0x752   : > { %8719 = vmatpush.bf16.msrb.mxu0 %v12976_v48  ;;  %8732 = vmatpush.bf16.msra.mxu1 %v12980_v10  ;;  %v7668_v26 = vpop.f32.mrf.mxu0  ;;  %v7681_v23 = vpop.f32.mrf.mxu1  ;;  %v14703_v48 = vld [vmem:[#allocation20 + $0x2ac] sm:$0xf0] }
 0x753   : > { %8745 = vmatpush.bf16.msra.mxu2 %v12984_v46  ;;  %8758 = vmatpush.bf16.msra.mxu3 %v12988_v42  ;;  %v7711_v38 = vadd.f32 %v7668_v26, %v18200_v4  ;;  %v7712_v2 = vadd.f32 %v7681_v23, %v18203_v47  ;;  %v13313_v42 = vor.u32 %v14671_v14, %v13312_v3  ;;  %v13568_v26 = vld [vmem:[#allocation20 + $0x3a0] sm:$0xf]  ;;  %v14735_v23 = vld [vmem:[#allocation20 + $0x3ac] sm:$0xf0] }
 0x754   : > { %v14719_v3 = vld [vmem:[#allocation20 + $0x32c] sm:$0xf0]  ;;  %v13249_v14 = vor.u32 %v14655_v39, %v13248_v43  ;;  %v13186_v39 = vld [vmem:[#allocation20 + $0xb0] sm:$0xf0] }
 0x755   : > { %8720 = vmatmul.bf16.vlgmr.msrb.gmra.mxu0 %v8550_v28  ;;  %8733 = vmatmul.bf16.vlgmr.msra.gmra.mxu1 %v8550_v28 }
 0x756   : > { %8746 = vmatmul.bf16.vlgmr.msra.gmra.mxu2 %v8550_v28  ;;  %8759 = vmatmul.bf16.vlgmr.msra.gmra.mxu3 %v8550_v28  ;;  %v13441_v28 = vor.u32 %v14703_v48, %v13440_v25  ;;  %v13104_v48 = vld [vmem:[#allocation20] sm:$0xf] }
 0x757   : > { %9629 = vmatpush.bf16.msrb.mxu2 %v13473_v31  ;;  %9642 = vmatpush.bf16.msrb.mxu3 %v13601_v8  ;;  %v14627_v31 = vld [vmem:[#allocation20 + $0x4c] sm:$0xf0] }
 0x758   : > { %v14691_v8 = vld [vmem:[#allocation20 + $0x24c] sm:$0xf0]  ;;  %v13137_v29 = vor.u32 %v14627_v31, %v13136_v21  ;;  %v14673_v21 = vld [vmem:[#allocation20 + $0x1c4] sm:$0xf] }
 0x75a   : > { %v7670_v49 = vpop.f32.mrf.mxu0  ;;  %v7683_v63 = vpop.f32.mrf.mxu1 }
 0x75b   : > { %v7694_v17 = vpop.f32.mrf.mxu2  ;;  %v7707_v13 = vpop.f32.mrf.mxu3  ;;  %9630 = vmatpush.bf16.msrb.mxu2 %v13457_v41  ;;  %9643 = vmatpush.bf16.msrb.mxu3 %v13585_v7  ;;  %v13424_v49 = vld [vmem:[#allocation20 + $0x280] sm:$0xf]  ;;  %v14699_v63 = vld [vmem:[#allocation20 + $0x28c] sm:$0xf0]  ;;  %v13521_v41 = vor.u32 %v14723_v22, %v13520_v55 }
 0x75c   : > { %v7713_v53 = vadd.f32 %v7694_v17, %v7435_v12  ;;  %v7714_v33 = vadd.f32 %v7707_v13, %v7436_v32  ;;  %v13217_v12 = vor.u32 %v14647_v20, %v13216_v56  ;;  %v14679_v32 = vld [vmem:[#allocation20 + $0x1ec] sm:$0xf0]  ;;  %v13296_v13 = vld [vmem:[#allocation20 + $0x180] sm:$0xf] }
 0x75d   : > { %v13345_v45 = vor.u32 %v14679_v32, %v13344_v0  ;;  %v14635_v17 = vld [vmem:[#allocation20 + $0x8c] sm:$0xf0]  ;;  %v13536_v32 = vld [vmem:[#allocation20 + $0x360] sm:$0xf] }
 0x75e   : > { %9603 = vmatpush.bf16.msra.mxu0 %v13217_v12  ;;  %v14695_v56 = vld [vmem:[#allocation20 + $0x26c] sm:$0xf0]  ;;  %v13376_v7 = vld [vmem:[#allocation20 + $0x220] sm:$0xf] }
 0x75f   : > { %9616 = vmatpush.bf16.msrb.mxu1 %v13345_v45  ;;  %9631 = vmatpush.bf16.msrb.mxu2 %v13441_v28  ;;  %v13537_v45 = vor.u32 %v14727_v61, %v13536_v32  ;;  %v13377_v25 = vor.u32 %v14687_v50, %v13376_v7  ;;  %v14651_v28 = vld [vmem:[#allocation20 + $0x10c] sm:$0xf0]  ;;  %v13202_v61 = vld [vmem:[#allocation20 + $0xd0] sm:$0xf0]  ;;  %v14669_v7 = vld [vmem:[#allocation20 + $0x1a4] sm:$0xf] }
 0x762   : > { %9604 = vmatpush.bf16.msra.mxu0 %v13201_v35  ;;  %v13265_v35 = vor.u32 %v14659_v36, %v13264_v62  ;;  %v14705_v36 = vld [vmem:[#allocation20 + $0x2c4] sm:$0xf] }
 0x763   : > { %v7696_v60 = vpop.f32.mrf.mxu2  ;;  %v7709_v44 = vpop.f32.mrf.mxu3  ;;  %9617 = vmatpush.bf16.msrb.mxu1 %v13329_v59  ;;  %v13393_v59 = vor.u32 %v14691_v8, %v13392_v5  ;;  %v13458_v5 = vld [vmem:[#allocation20 + $0x2d0] sm:$0xf0]  ;;  %v14737_v8 = vld [vmem:[#allocation20 + $0x3c4] sm:$0xf] }
 0x764   : > { %v13552_v60 = vld [vmem:[#allocation20 + $0x380] sm:$0xf]  ;;  %v13461_v55 = vor.u32 %v14705_v36, %v13458_v5  ;;  %v13394_v36 = vld [vmem:[#allocation20 + $0x250] sm:$0xf0] }
 0x766   : > { %9605 = vmatpush.bf16.msra.mxu0 %v13185_v16  ;;  %v13121_v16 = vor.u32 %v14623_v15, %v13120_v18  ;;  %v18231_v18 = vld [vmem:[#allocation18] sm:$0xf] }
 0x767   : > { %9618 = vmatpush.bf16.msrb.mxu1 %v13313_v42  ;;  %v13505_v42 = vor.u32 %v14719_v3, %v13504_v54  ;;  %v8770_v15 = vperm.slane %v18231_v18, 0  ;;  %v8771_v43 = vperm.slane %v18231_v18, 1  ;;  %v13314_v54 = vld [vmem:[#allocation20 + $0x1b0] sm:$0xf0]  ;;  %v14701_v3 = vld [vmem:[#allocation20 + $0x2a4] sm:$0xf] }
 0x772   : > { %v7928_v57 = vpop.f32.mrf.mxu0  ;;  %v7941_v34 = vpop.f32.mrf.mxu1 }
 0x773   : > { %v7971_v40 = vadd.f32 %v7928_v57, %v7711_v38  ;;  %v18209_v30 = vadd.f32 %v7941_v34, %v7712_v2  ;;  %v13168_v38 = vld [vmem:[#allocation20 + $0x80] sm:$0xf]  ;;  %v13569_v2 = vor.u32 %v14735_v23, %v13568_v26  ;;  %v13425_v57 = vor.u32 %v14699_v63, %v13424_v49  ;;  %v14731_v34 = vld [vmem:[#allocation20 + $0x38c] sm:$0xf0] }
 0x774   : > { %v13360_v26 = vld [vmem:[#allocation20 + $0x200] sm:$0xf]  ;;  %v14683_v23 = vld [vmem:[#allocation20 + $0x20c] sm:$0xf0] }
 0x775   : > { %9644 = vmatpush.bf16.msrb.mxu3 %v13569_v2  ;;  %9632 = vmatpush.bf16.msrb.mxu2 %v13425_v57  ;;  %v14715_v2 = vld [vmem:[#allocation20 + $0x30c] sm:$0xf0]  ;;  %v14677_v57 = vld [vmem:[#allocation20 + $0x1e4] sm:$0xf] }
 0x77a   : > { %v7930_v47 = vpop.f32.mrf.mxu0  ;;  %v7943_v1 = vpop.f32.mrf.mxu1 }
 0x77b   : > { %v7954_v51 = vpop.f32.mrf.mxu2  ;;  %v7967_v52 = vpop.f32.mrf.mxu3  ;;  %v13280_v47 = vld [vmem:[#allocation20 + $0x160] sm:$0xf] }
 0x77c   : > { %v18211_v58 = vadd.f32 %v7954_v51, %v7713_v53  ;;  %v18213_v4 = vadd.f32 %v7967_v52, %v7714_v33  ;;  %v14667_v53 = vld [vmem:[#allocation20 + $0x18c] sm:$0xf0]  ;;  %v13169_v33 = vor.u32 %v14635_v17, %v13168_v38  ;;  %v13152_v51 = vld [vmem:[#allocation20 + $0x60] sm:$0xf] }
 0x77d   : > { %v13297_v44 = vor.u32 %v14667_v53, %v13296_v13  ;;  %v14631_v52 = vld [vmem:[#allocation20 + $0x6c] sm:$0xf0]  ;;  %v13488_v38 = vld [vmem:[#allocation20 + $0x300] sm:$0xf]  ;;  %v13361_v53 = vor.u32 %v14683_v23, %v13360_v26  ;;  %v14665_v26 = vld [vmem:[#allocation20 + $0x184] sm:$0xf] }
 0x77e   : > { %9606 = vmatpush.bf16.msra.mxu0 %v13169_v33  ;;  %v13153_v1 = vor.u32 %v14631_v52, %v13152_v51  ;;  %v13489_v33 = vor.u32 %v14715_v2, %v13488_v38  ;;  %v13346_v52 = vld [vmem:[#allocation20 + $0x1f0] sm:$0xf0] }
 0x77f   : > { %9619 = vmatpush.bf16.msrb.mxu1 %v13297_v44  ;;  %v13218_v44 = vld [vmem:[#allocation20 + $0xf0] sm:$0xf0] }
 0x780   : > { %v13298_v23 = vld [vmem:[#allocation20 + $0x190] sm:$0xf0] }
 0x781   : > { %v13301_v2 = vor.u32 %v14665_v26, %v13298_v23 }
 0x782   : > { %9607 = vmatpush.bf16.msra.mxu0 %v13153_v1  ;;  %v13474_v1 = vld [vmem:[#allocation20 + $0x2f0] sm:$0xf0] }
 0x783   : > { %v7956_v37 = vpop.f32.mrf.mxu2  ;;  %v7969_v11 = vpop.f32.mrf.mxu3 }
 0x784   : > { %v14663_v37 = vld [vmem:[#allocation20 + $0x16c] sm:$0xf0]  ;;  %v13408_v11 = vld [vmem:[#allocation20 + $0x260] sm:$0xf] }
 0x785   : > { %v13409_v12 = vor.u32 %v14695_v56, %v13408_v11  ;;  %v13349_v56 = vor.u32 %v14677_v57, %v13346_v52  ;;  %v13154_v57 = vld [vmem:[#allocation20 + $0x70] sm:$0xf0]  ;;  %v14661_v52 = vld [vmem:[#allocation20 + $0x164] sm:$0xf] }
 0x786   : > { %9608 = vmatpush.bf16.msra.mxu0 %v13137_v29  ;;  %v13586_v29 = vld [vmem:[#allocation20 + $0x3d0] sm:$0xf0] }
 0x787   : > { %9633 = vmatpush.bf16.msrb.mxu2 %v13409_v12  ;;  %v14641_v12 = vld [vmem:[#allocation20 + $0xc4] sm:$0xf]  ;;  %v13589_v22 = vor.u32 %v14737_v8, %v13586_v29  ;;  %v13522_v29 = vld [vmem:[#allocation20 + $0x350] sm:$0xf0] }
 0x788   : > { %v13205_v31 = vor.u32 %v14641_v12, %v13202_v61  ;;  %v13138_v61 = vld [vmem:[#allocation20 + $0x50] sm:$0xf0] }
 0x78a   : > { %9609 = vmatpush.bf16.msra.mxu0 %v13121_v16  ;;  %v13442_v16 = vld [vmem:[#allocation20 + $0x2b0] sm:$0xf0] }
 0x78b   : > { %9634 = vmatpush.bf16.msrb.mxu2 %v13393_v59 }
 0x78f   : > { %9635 = vmatpush.bf16.msrb.mxu2 %v13377_v25  ;;  %v13445_v25 = vor.u32 %v14701_v3, %v13442_v16  ;;  %v13250_v16 = vld [vmem:[#allocation20 + $0x130] sm:$0xf0] }
 0x792   : > { %v8183_v24 = vpop.f32.mrf.mxu0  ;;  %v18215_v6 = vpop.f32.mrf.mxu1 }
 0x793   : > { %v18217_v19 = vadd.f32 %v8183_v24, %v7971_v40  ;;  %v13553_v40 = vor.u32 %v14731_v34, %v13552_v60  ;;  %v13281_v24 = vor.u32 %v14663_v37, %v13280_v47  ;;  %9636 = vmatpush.bf16.msrb.mxu2 %v13361_v53  ;;  %v14645_v60 = vld [vmem:[#allocation20 + $0xe4] sm:$0xf] }
 0x794   : > { %v13221_v51 = vor.u32 %v14645_v60, %v13218_v44  ;;  %v14709_v47 = vld [vmem:[#allocation20 + $0x2e4] sm:$0xf]  ;;  %v13554_v60 = vld [vmem:[#allocation20 + $0x390] sm:$0xf0] }
 0x795   : > { %9645 = vmatpush.bf16.msrb.mxu3 %v13553_v40  ;;  %9620 = vmatpush.bf16.msrb.mxu1 %v13281_v24  ;;  %v13602_v24 = vld [vmem:[#allocation20 + $0x3f0] sm:$0xf0]  ;;  %v14729_v53 = vld [vmem:[#allocation20 + $0x384] sm:$0xf] }
 0x796   : > { %v14629_v44 = vld [vmem:[#allocation20 + $0x64] sm:$0xf] }
 0x799   : > { %9646 = vmatpush.bf16.msrb.mxu3 %v13537_v45  ;;  %9621 = vmatpush.bf16.msrb.mxu1 %v13265_v35  ;;  %v13330_v45 = vld [vmem:[#allocation20 + $0x1d0] sm:$0xf0] }
 0x79a   : > { %v8185_v10 = vpop.f32.mrf.mxu0  ;;  %v8198_v46 = vpop.f32.mrf.mxu1  ;;  %v13333_v62 = vor.u32 %v14673_v21, %v13330_v45  ;;  %v14657_v21 = vld [vmem:[#allocation20 + $0x144] sm:$0xf] }
 0x79b   : > { %v18219_v9 = vpop.f32.mrf.mxu2  ;;  %v18221_v27 = vpop.f32.mrf.mxu3  ;;  %v14619_v10 = vld [vmem:[#allocation20 + $0xc] sm:$0xf0]  ;;  %v13232_v46 = vld [vmem:[#allocation20 + $0x100] sm:$0xf] }
 0x79c   : > { %v13105_v17 = vor.u32 %v14619_v10, %v13104_v48  ;;  %v13233_v13 = vor.u32 %v14651_v28, %v13232_v46  ;;  %v14733_v48 = vld [vmem:[#allocation20 + $0x3a4] sm:$0xf]  ;;  %v13570_v10 = vld [vmem:[#allocation20 + $0x3b0] sm:$0xf0] }
 0x79d   : > { %9647 = vmatpush.bf16.msrb.mxu3 %v13521_v41  ;;  %9622 = vmatpush.bf16.msrb.mxu1 %v13249_v14  ;;  %v14637_v41 = vld [vmem:[#allocation20 + $0xa4] sm:$0xf]  ;;  %v13317_v14 = vor.u32 %v14669_v7, %v13314_v54  ;;  %v13170_v28 = vld [vmem:[#allocation20 + $0x90] sm:$0xf0] }
 0x79e   : > { %9610 = vmatpush.bf16.msra.mxu0 %v13105_v17  ;;  %v13189_v50 = vor.u32 %v14637_v41, %v13186_v39  ;;  %v14633_v46 = vld [vmem:[#allocation20 + $0x84] sm:$0xf]  ;;  %v8228_v41 = vadd.f32 %v18219_v9, %v18211_v58  ;;  %v13122_v39 = vld [vmem:[#allocation20 + $0x30] sm:$0xf0]  ;;  %v8229_v58 = vadd.f32 %v18221_v27, %v18213_v4 }
 0x79f   : > { %v13173_v38 = vor.u32 %v14633_v46, %v13170_v28  ;;  %v14697_v17 = vld [vmem:[#allocation20 + $0x284] sm:$0xf]  ;;  %v13234_v27 = vld [vmem:[#allocation20 + $0x110] sm:$0xf0] }
 0x7a0   : > { %v14653_v7 = vld [vmem:[#allocation20 + $0x124] sm:$0xf] }
 0x7a1   : > { %9648 = vmatpush.bf16.msrb.mxu3 %v13505_v42  ;;  %9623 = vmatpush.bf16.msrb.mxu1 %v13233_v13  ;;  %v13573_v42 = vor.u32 %v14733_v48, %v13570_v10  ;;  %v13426_v13 = vld [vmem:[#allocation20 + $0x290] sm:$0xf0]  ;;  %v14717_v48 = vld [vmem:[#allocation20 + $0x324] sm:$0xf]  ;;  %v13253_v23 = vor.u32 %v14653_v7, %v13250_v16  ;;  %v14744_v16 = vld [vmem:[#allocation20 + $0x3f4] sm:$0xf0] }
 0x7a2   : > { %9655 = vmatpush.bf16.msrb.mxu0 %v13221_v51  ;;  %v13557_v51 = vor.u32 %v14729_v53, %v13554_v60  ;;  %v13506_v10 = vld [vmem:[#allocation20 + $0x330] sm:$0xf0]  ;;  %v14649_v4 = vld [vmem:[#allocation20 + $0x104] sm:$0xf] }
 0x7a3   : > { %v8211_v20 = vpop.f32.mrf.mxu2  ;;  %v8224_v0 = vpop.f32.mrf.mxu3  ;;  %v14681_v60 = vld [vmem:[#allocation20 + $0x204] sm:$0xf] }
 0x7a4   : > { %v13477_v20 = vor.u32 %v14709_v47, %v13474_v1  ;;  %v14741_v0 = vld [vmem:[#allocation20 + $0x3e4] sm:$0xf]  ;;  %v13282_v47 = vld [vmem:[#allocation20 + $0x170] sm:$0xf0] }
 0x7a5   : > { %9649 = vmatpush.bf16.msrb.mxu3 %v13489_v33  ;;  %v13605_v32 = vor.u32 %v14741_v0, %v13602_v24  ;;  %9668 = vmatpush.bf16.msra.mxu1 %v13349_v56  ;;  %v13429_v33 = vor.u32 %v14697_v17, %v13426_v13  ;;  %v14693_v1 = vld [vmem:[#allocation20 + $0x264] sm:$0xf]  ;;  %v13410_v56 = vld [vmem:[#allocation20 + $0x270] sm:$0xf0]  ;;  %v13285_v24 = vor.u32 %v14661_v52, %v13282_v47 }
 0x7a6   : > { %9681 = vmatpush.bf16.msra.mxu2 %v13477_v20  ;;  %9656 = vmatpush.bf16.msrb.mxu0 %v13205_v31  ;;  %v14725_v20 = vld [vmem:[#allocation20 + $0x364] sm:$0xf]  ;;  %v13538_v0 = vld [vmem:[#allocation20 + $0x370] sm:$0xf0]  ;;  %v13413_v12 = vor.u32 %v14693_v1, %v13410_v56  ;;  %v13237_v56 = vor.u32 %v14649_v4, %v13234_v27  ;;  %v14740_v4 = vld [vmem:[#allocation20 + $0x3d4] sm:$0xf0] }
 0x7a7   : > { %v13490_v47 = vld [vmem:[#allocation20 + $0x310] sm:$0xf0] }
 0x7a9   : > { %9694 = vmatpush.bf16.msra.mxu3 %v13605_v32  ;;  %9669 = vmatpush.bf16.msra.mxu1 %v13333_v62  ;;  %v14625_v32 = vld [vmem:[#allocation20 + $0x44] sm:$0xf]  ;;  %v13541_v62 = vor.u32 %v14725_v20, %v13538_v0 }
 0x7aa   : > { %9682 = vmatpush.bf16.msra.mxu2 %v13461_v55  ;;  %9657 = vmatpush.bf16.msrb.mxu0 %v13189_v50  ;;  %v14721_v55 = vld [vmem:[#allocation20 + $0x344] sm:$0xf] }
 0x7ab   : > { %v13525_v3 = vor.u32 %v14721_v55, %v13522_v29 }
 0x7ad   : > { %9695 = vmatpush.bf16.msra.mxu3 %v13589_v22  ;;  %9670 = vmatpush.bf16.msra.mxu1 %v13317_v14  ;;  %v14685_v14 = vld [vmem:[#allocation20 + $0x224] sm:$0xf] }
 0x7ae   : > { %9683 = vmatpush.bf16.msra.mxu2 %v13445_v25  ;;  %9658 = vmatpush.bf16.msrb.mxu0 %v13173_v38  ;;  %v13378_v25 = vld [vmem:[#allocation20 + $0x230] sm:$0xf0] }
 0x7af   : > { %v13381_v38 = vor.u32 %v14685_v14, %v13378_v25 }
 0x7b1   : > { %9696 = vmatpush.bf16.msra.mxu3 %v13573_v42  ;;  %9671 = vmatpush.bf16.msra.mxu1 %v13301_v2  ;;  %v8772_v42 = vperm.slane %v18231_v18, 2  ;;  %v13106_v2 = vld [vmem:[#allocation20 + $0x10] sm:$0xf0] }
 0x7b2   : > { %v18223_v49 = vpop.f32.mrf.mxu0  ;;  %v18225_v63 = vpop.f32.mrf.mxu1  ;;  %9684 = vmatpush.bf16.msra.mxu2 %v13429_v33  ;;  %v13509_v33 = vor.u32 %v14717_v48, %v13506_v10 }
 0x7b3   : > { %v8504_v45 = vadd.f32 %v18223_v49, %v18217_v19 }
 0x7b5   : > { %9697 = vmatpush.bf16.msra.mxu3 %v13557_v51  ;;  %9672 = vmatpush.bf16.msra.mxu1 %v13285_v24 }
 0x7b6   : > { %9685 = vmatpush.bf16.msra.mxu2 %v13413_v12 }
 0x7b9   : > { %9698 = vmatpush.bf16.msra.mxu3 %v13541_v62 }
 0x7ba   : > { %v8463_v37 = vpop.f32.mrf.mxu0  ;;  %v8476_v11 = vpop.f32.mrf.mxu1 }
 0x7bb   : > { %v18227_v34 = vpop.f32.mrf.mxu2  ;;  %v18229_v40 = vpop.f32.mrf.mxu3  ;;  %v8227_v37 = vadd.f32 %v18215_v6, %v18209_v30  ;;  %v13157_v11 = vor.u32 %v14629_v44, %v13154_v57  ;;  %v13266_v30 = vld [vmem:[#allocation20 + $0x150] sm:$0xf0]  ;;  %v14689_v6 = vld [vmem:[#allocation20 + $0x244] sm:$0xf] }
 0x7bc   : > { %v13269_v19 = vor.u32 %v14657_v21, %v13266_v30  ;;  %v13397_v49 = vor.u32 %v14689_v6, %v13394_v36  ;;  %v8506_v9 = vadd.f32 %v18227_v34, %v8228_v41  ;;  %v8507_v26 = vadd.f32 %v18229_v40, %v8229_v58  ;;  %v14713_v40 = vld [vmem:[#allocation20 + $0x304] sm:$0xf]  ;;  %v13352_v41 = vld [vmem:[#allocation20 + $0x1e8] sm:$0xf] }
 0x7bd   : > { %v8505_v31 = vadd.f32 %v18225_v63, %v8227_v37  ;;  %9659 = vmatpush.bf16.msrb.mxu0 %v13157_v11  ;;  %v14621_v63 = vld [vmem:[#allocation20 + $0x24] sm:$0xf]  ;;  %9699 = vmatpush.bf16.msra.mxu3 %v13525_v3  ;;  %v13493_v12 = vor.u32 %v14713_v40, %v13490_v47 }
 0x7be   : > { %v13125_v28 = vor.u32 %v14621_v63, %v13122_v39  ;;  %9673 = vmatpush.bf16.msra.mxu1 %v13269_v19  ;;  %9686 = vmatpush.bf16.msra.mxu2 %v13397_v49  ;;  %v14680_v19 = vld [vmem:[#allocation20 + $0x1f4] sm:$0xf0]  ;;  %v13480_v49 = vld [vmem:[#allocation20 + $0x2e8] sm:$0xf] }
 0x7bf   : > { %v14712_v63 = vld [vmem:[#allocation20 + $0x2f4] sm:$0xf0]  ;;  %v13608_v39 = vld [vmem:[#allocation20 + $0x3e8] sm:$0xf]  ;;  %v13353_v25 = vor.u32 %v14680_v19, %v13352_v41 }
 0x7c0   : > { %v13144_v41 = vld [vmem:[#allocation20 + $0x48] sm:$0xf]  ;;  %v14628_v19 = vld [vmem:[#allocation20 + $0x54] sm:$0xf0] }
 0x7c1   : > { %9700 = vmatpush.bf16.msra.mxu3 %v13509_v33 }
 0x7c2   : > { %9674 = vmatpush.bf16.msra.mxu1 %v13253_v23  ;;  %9687 = vmatpush.bf16.msra.mxu2 %v13381_v38  ;;  %v13464_v23 = vld [vmem:[#allocation20 + $0x2c8] sm:$0xf]  ;;  %v14708_v38 = vld [vmem:[#allocation20 + $0x2d4] sm:$0xf0] }
 0x7c3   : > { %v8489_v35 = vpop.f32.mrf.mxu2  ;;  %v8502_v59 = vpop.f32.mrf.mxu3 }
 0x7c4   : > { %v13141_v59 = vor.u32 %v14625_v32, %v13138_v61 }
 0x7c5   : > { %9701 = vmatpush.bf16.msra.mxu3 %v13493_v12  ;;  %v14700_v12 = vld [vmem:[#allocation20 + $0x294] sm:$0xf0] }
 0x7c6   : > { %9660 = vmatpush.bf16.msrb.mxu0 %v13141_v59  ;;  %9675 = vmatpush.bf16.msra.mxu1 %v13237_v56  ;;  %v14648_v59 = vld [vmem:[#allocation20 + $0xf4] sm:$0xf0] }
 0x7ca   : > { %9661 = vmatpush.bf16.msrb.mxu0 %v13125_v28  ;;  %v13609_v28 = vor.u32 %v14744_v16, %v13608_v39  ;;  %v13272_v39 = vld [vmem:[#allocation20 + $0x148] sm:$0xf]  ;;  %v14724_v16 = vld [vmem:[#allocation20 + $0x354] sm:$0xf0] }
 0x7d2   : > { %v8721_v5 = vpop.f32.mrf.mxu0  ;;  %v8734_v8 = vpop.f32.mrf.mxu1 }
 0x7d3   : > { %v8764_v22 = vadd.f32 %v8721_v5, %v8504_v45  ;;  %v8765_v35 = vadd.f32 %v8734_v8, %v8505_v31 }
 0x7d5   : > { %v8778_v50 = vadd.f32 %v8770_v15, %v8764_v22  ;;  %v8779_v54 = vadd.f32 %v8771_v43, %v8765_v35  ;;  %v8773_v15 = vperm.slane %v18231_v18, 3  ;;  %v14617_v43 = vld [vmem:[#allocation20 + $0x4] sm:$0xf]  ;;  %v13362_v18 = vld [vmem:[#allocation20 + $0x210] sm:$0xf0] }
 0x7d6   : > { %v13109_v11 = vor.u32 %v14617_v43, %v13106_v2  ;;  %v13365_v24 = vor.u32 %v14681_v60, %v13362_v18  ;;  %v13224_v22 = vld [vmem:[#allocation20 + $0xe8] sm:$0xf]  ;;  %v14672_v18 = vld [vmem:[#allocation20 + $0x1b4] sm:$0xf0] }
 0x7d7   : > { %v8783_v46 = vmax.f32 %v8779_v54, 0.0  ;;  %v8782_v34 = vmax.f32 %v8778_v50, 0.0  ;;  %v13225_v14 = vor.u32 %v14648_v59, %v13224_v22  ;;  %v13336_v43 = vld [vmem:[#allocation20 + $0x1c8] sm:$0xf]  ;;  %v14728_v22 = vld [vmem:[#allocation20 + $0x374] sm:$0xf0] }
 0x7d8   : > { %9662 = vmatpush.bf16.msrb.mxu0 %v13109_v11  ;;  %9688 = vmatpush.bf16.msra.mxu2 %v13365_v24  ;;  %v13592_v2 = vld [vmem:[#allocation20 + $0x3c8] sm:$0xf] }
 0x7d9   : > { %v8790_v17 = vrot.slane %v8783_v46, 6  ;;  %v8747_v13 = vpop.f32.mrf.mxu2  ;;  %v8760_v53 = vpop.f32.mrf.mxu3  ;;  %v13208_v46 = vld [vmem:[#allocation20 + $0xc8] sm:$0xf]  ;;  %v13593_v33 = vor.u32 %v14740_v4, %v13592_v2  ;;  %v14720_v4 = vld [vmem:[#allocation20 + $0x334] sm:$0xf0] }
 0x7da   : > { %v8766_v44 = vadd.f32 %v8747_v13, %v8506_v9  ;;  %v8767_v57 = vadd.f32 %v8760_v53, %v8507_v26  ;;  %v8723_v51 = vpop.f32.mrf.mxu0  ;;  %v8736_v52 = vpop.f32.mrf.mxu1  ;;  %v14676_v26 = vld [vmem:[#allocation20 + $0x1d4] sm:$0xf0]  ;;  %v13465_v53 = vor.u32 %v14708_v38, %v13464_v23  ;;  %v13320_v60 = vld [vmem:[#allocation20 + $0x1a8] sm:$0xf] }
 0x7db   : > { %v8793_v1 = vsel %vm1797_vm1, %v8782_v34, %v8790_v17  ;;  %v8798_v37 = vsel %vm5542_vm9, %v8782_v34, %v8790_v17  ;;  %vm8796_vm1 = vcmask 1043456   ;;  %v13337_v34 = vor.u32 %v14676_v26, %v13336_v43  ;;  %v13192_v17 = vld [vmem:[#allocation20 + $0xa8] sm:$0xf]  ;;  %v14640_v13 = vld [vmem:[#allocation20 + $0xb4] sm:$0xf0] }
 0x7dc   : > { %v8780_v20 = vadd.f32 %v8772_v42, %v8766_v44  ;;  %v8781_v0 = vadd.f32 %v8773_v15, %v8767_v57  ;;  %v14644_v42 = vld [vmem:[#allocation20 + $0xd4] sm:$0xf0]  ;;  %v13481_v15 = vor.u32 %v14712_v63, %v13480_v49  ;;  %v13448_v44 = vld [vmem:[#allocation20 + $0x2a8] sm:$0xf]  ;;  %v13193_v40 = vor.u32 %v14640_v13, %v13192_v17 }
 0x7dd   : > { %v13209_v27 = vor.u32 %v14644_v42, %v13208_v46  ;;  %v14704_v57 = vld [vmem:[#allocation20 + $0x2b4] sm:$0xf0]  ;;  %v13576_v51 = vld [vmem:[#allocation20 + $0x3a8] sm:$0xf]  ;;  %v13321_v47 = vor.u32 %v14672_v18, %v13320_v60  ;;  %vm11122_vm9 = vcmask 73728  }
 0x7de   : > { %v8784_v32 = vmax.f32 %v8780_v20, 0.0  ;;  %v8785_v61 = vmax.f32 %v8781_v0, 0.0  ;;  %v14736_v52 = vld [vmem:[#allocation20 + $0x3b4] sm:$0xf0]  ;;  %v13449_v11 = vor.u32 %v14704_v57, %v13448_v44  ;;  %v13304_v20 = vld [vmem:[#allocation20 + $0x188] sm:$0xf] }
 0x7df   : > { %v13577_v56 = vor.u32 %v14736_v52, %v13576_v51  ;;  %v14668_v0 = vld [vmem:[#allocation20 + $0x194] sm:$0xf0]  ;;  %v13432_v24 = vld [vmem:[#allocation20 + $0x288] sm:$0xf] }
 0x7e0   : > { %v8791_v21 = vrot.slane %v8784_v32, 4  ;;  %v8792_v45 = vrot.slane %v8785_v61, 2  ;;  %v13560_v32 = vld [vmem:[#allocation20 + $0x388] sm:$0xf]  ;;  %v14732_v61 = vld [vmem:[#allocation20 + $0x394] sm:$0xf0] }
 0x7e1   : > { %v8749_v31 = vpop.f32.mrf.mxu2  ;;  %v8762_v62 = vpop.f32.mrf.mxu3  ;;  %v13128_v46 = vld [vmem:[#allocation20 + $0x28] sm:$0xf]  ;;  %v14624_v42 = vld [vmem:[#allocation20 + $0x34] sm:$0xf0] }
 0x7e2   : > { %v8795_v30 = vsel %vm8794_vm0, %v8791_v21, %v8792_v45  ;;  %v8800_v6 = vsel %vm8799_vm5, %v8792_v45, %v8791_v21  ;;  %v13305_v45 = vor.u32 %v14668_v0, %v13304_v20  ;;  %v13160_v31 = vld [vmem:[#allocation20 + $0x68] sm:$0xf]  ;;  %v14632_v62 = vld [vmem:[#allocation20 + $0x74] sm:$0xf0]  ;;  %v13482_v0 = vld [vmem:[#allocation20 + $0x2f8] sm:$0xf0] }
 0x7e3   : > { %v8797_v36 = vsel %vm8796_vm1, %v8793_v1, %v8795_v30  ;;  %v8802_v5 = vsel %vm8801_vm6, %v8798_v37, %v8800_v6  ;;  %v13176_v1 = vld [vmem:[#allocation20 + $0x88] sm:$0xf]  ;;  %v14636_v37 = vld [vmem:[#allocation20 + $0x94] sm:$0xf0]  ;;  %v13433_v30 = vor.u32 %v14700_v12, %v13432_v24  ;;  %v13561_v6 = vor.u32 %v14732_v61, %v13560_v32  ;;  %v14742_v24 = vld [vmem:[#allocation20 + $0x3ec] sm:$0xf] }
 0x7e4   : > { %v8803_v8 = vrot.slane %v8802_v5, 2  ;;  %v13177_v21 = vor.u32 %v14636_v37, %v13176_v1  ;;  %v14664_v5 = vld [vmem:[#allocation20 + $0x174] sm:$0xf0]  ;;  %v13256_v43 = vld [vmem:[#allocation20 + $0x128] sm:$0xf] }
 0x7e5   : > { %v14656_v26 = vld [vmem:[#allocation20 + $0x134] sm:$0xf0]  ;;  %v13384_v23 = vld [vmem:[#allocation20 + $0x228] sm:$0xf]  ;;  %v14678_v1 = vld [vmem:[#allocation20 + $0x1ec] sm:$0xf] }
 0x7e6   : > { %v8806_v55 = vmax.f32 %v8797_v36, %v8803_v8  ;;  %v13288_v36 = vld [vmem:[#allocation20 + $0x168] sm:$0xf]  ;;  %v14688_v38 = vld [vmem:[#allocation20 + $0x234] sm:$0xf0]  ;;  %v13257_v17 = vor.u32 %v14656_v26, %v13256_v43  ;;  %v13354_v37 = vld [vmem:[#allocation20 + $0x1f8] sm:$0xf0] }
 0x7e7   : > { %v13416_v8 = vld [vmem:[#allocation20 + $0x268] sm:$0xf]  ;;  %v13289_v59 = vor.u32 %v14664_v5, %v13288_v36  ;;  %v14620_v13 = vld [vmem:[#allocation20 + $0x14] sm:$0xf0]  ;;  %v13385_v60 = vor.u32 %v14688_v38, %v13384_v23  ;;  %v13610_v12 = vld [vmem:[#allocation20 + $0x3f8] sm:$0xf0] }
 0x7e8   : > { %v13101_v29 = vrot.slane %v8806_v55, 9  ;;  %v13512_v2 = vld [vmem:[#allocation20 + $0x328] sm:$0xf]  ;;  %v14684_v57 = vld [vmem:[#allocation20 + $0x214] sm:$0xf0] }
 0x7e9   : > { %v13513_v18 = vor.u32 %v14720_v4, %v13512_v2  ;;  %v13368_v44 = vld [vmem:[#allocation20 + $0x208] sm:$0xf]  ;;  %v14716_v52 = vld [vmem:[#allocation20 + $0x314] sm:$0xf0]  ;;  %v14674_v36 = vld [vmem:[#allocation20 + $0x1cc] sm:$0xf] }
 0x7ea   : > { %v8811_v35 = vmax.f32 %v8806_v55, %v13101_v29  ;;  %v14696_v55 = vld [vmem:[#allocation20 + $0x274] sm:$0xf0]  ;;  %v13544_v29 = vld [vmem:[#allocation20 + $0x368] sm:$0xf]  ;;  %v13369_v32 = vor.u32 %v14684_v57, %v13368_v44  ;;  %v13338_v5 = vld [vmem:[#allocation20 + $0x1d8] sm:$0xf0] }
 0x7eb   : > { %v13417_v49 = vor.u32 %v14696_v55, %v13416_v8  ;;  %v13545_v63 = vor.u32 %v14728_v22, %v13544_v29  ;;  %v13496_v51 = vld [vmem:[#allocation20 + $0x308] sm:$0xf]  ;;  %v14706_v8 = vld [vmem:[#allocation20 + $0x2cc] sm:$0xf]  ;;  %v13466_v55 = vld [vmem:[#allocation20 + $0x2d8] sm:$0xf0] }
 0x7ec   : > { %v8813_v7 = vperm.slane %v8811_v35, 0  ;;  %v8814_v50 = vperm.slane %v8811_v35, 2  ;;  %v8815_v54 = vperm.slane %v8811_v35, 4  ;;  %v8816_v3 = vperm.slane %v8811_v35, 6  ;;  %v14738_v29 = vld [vmem:[#allocation20 + $0x3cc] sm:$0xf] }
 0x7ed   : > { %v13161_v35 = vor.u32 %v14632_v62, %v13160_v31  ;;  %v13497_v61 = vor.u32 %v14716_v52, %v13496_v51  ;;  %v14642_v31 = vld [vmem:[#allocation20 + $0xcc] sm:$0xf]  ;;  %v13210_v62 = vld [vmem:[#allocation20 + $0xd8] sm:$0xf0] }
 0x7ee   : > { %v18254_v58 = vpack.c.bf16 %v8813_v7, %v8813_v7  ;;  %v18256_v9 = vpack.c.bf16 %v8814_v50, %v8814_v50  ;;  %v18258_v48 = vpack.c.bf16 %v8815_v54, %v8815_v54  ;;  %v18260_v10 = vpack.c.bf16 %v8816_v3, %v8816_v3  ;;  %v14660_v7 = vld [vmem:[#allocation20 + $0x154] sm:$0xf0]  ;;  %v13400_v50 = vld [vmem:[#allocation20 + $0x248] sm:$0xf]  ;;  %v13594_v22 = vld [vmem:[#allocation20 + $0x3d8] sm:$0xf0] }
 0x7ef   : > { %v14692_v54 = vld [vmem:[#allocation20 + $0x254] sm:$0xf0]  ;;  %v13528_v3 = vld [vmem:[#allocation20 + $0x348] sm:$0xf]  ;;  %v14666_v43 = vld [vmem:[#allocation20 + $0x18c] sm:$0xf] }
 0x7f0   : > { %9611 = vmatmul.bf16.vlgmr.msra.gmra.mxu0 %v18254_v58  ;;  %9624 = vmatmul.bf16.vlgmr.msrb.gmra.mxu1 %v18256_v9  ;;  %v13306_v26 = vld [vmem:[#allocation20 + $0x198] sm:$0xf0]  ;;  %v14698_v23 = vld [vmem:[#allocation20 + $0x28c] sm:$0xf] }
 0x7f1   : > { %9637 = vmatmul.bf16.vlgmr.msrb.gmra.mxu2 %v18258_v48  ;;  %9650 = vmatmul.bf16.vlgmr.msrb.gmra.mxu3 %v18260_v10  ;;  %v13434_v38 = vld [vmem:[#allocation20 + $0x298] sm:$0xf0]  ;;  %v14730_v2 = vld [vmem:[#allocation20 + $0x38c] sm:$0xf] }
 0x7f2   : > { %9707 = vmatpush.bf16.msra.mxu0 %v13225_v14  ;;  %9720 = vmatpush.bf16.msrb.mxu1 %v13353_v25  ;;  %v13145_v14 = vor.u32 %v14628_v19, %v13144_v41  ;;  %v13273_v25 = vor.u32 %v14660_v7, %v13272_v39  ;;  %v14638_v41 = vld [vmem:[#allocation20 + $0xac] sm:$0xf]  ;;  %v13194_v19 = vld [vmem:[#allocation20 + $0xb8] sm:$0xf0] }
 0x7f3   : > { %9733 = vmatpush.bf16.msrb.mxu2 %v13481_v15  ;;  %9746 = vmatpush.bf16.msrb.mxu3 %v13609_v28  ;;  %v13401_v15 = vor.u32 %v14692_v54, %v13400_v50  ;;  %v13529_v28 = vor.u32 %v14724_v16, %v13528_v3  ;;  %v14670_v39 = vld [vmem:[#allocation20 + $0x1ac] sm:$0xf]  ;;  %v13322_v7 = vld [vmem:[#allocation20 + $0x1b8] sm:$0xf0] }
 0x7f4   : > { %v14702_v50 = vld [vmem:[#allocation20 + $0x2ac] sm:$0xf]  ;;  %v13450_v54 = vld [vmem:[#allocation20 + $0x2b8] sm:$0xf0] }
 0x7f5   : > { %v14734_v3 = vld [vmem:[#allocation20 + $0x3ac] sm:$0xf]  ;;  %v13578_v16 = vld [vmem:[#allocation20 + $0x3b8] sm:$0xf0] }
 0x7f6   : > { %9708 = vmatpush.bf16.msra.mxu0 %v13209_v27  ;;  %9721 = vmatpush.bf16.msrb.mxu1 %v13337_v34  ;;  %v13112_v27 = vld [vmem:[#allocation20 + $0x8] sm:$0xf]  ;;  %v13129_v34 = vor.u32 %v14624_v42, %v13128_v46  ;;  %v14634_v46 = vld [vmem:[#allocation20 + $0x8c] sm:$0xf]  ;;  %v13178_v42 = vld [vmem:[#allocation20 + $0x98] sm:$0xf0] }
 0x7f7   : > { %9734 = vmatpush.bf16.msrb.mxu2 %v13465_v53  ;;  %9747 = vmatpush.bf16.msrb.mxu3 %v13593_v33  ;;  %v13240_v53 = vld [vmem:[#allocation20 + $0x108] sm:$0xf]  ;;  %v14652_v33 = vld [vmem:[#allocation20 + $0x114] sm:$0xf0]  ;;  %v13562_v4 = vld [vmem:[#allocation20 + $0x398] sm:$0xf0] }
 0x7f8   : > { %v13241_v20 = vor.u32 %v14652_v33, %v13240_v53  ;;  %v13437_v53 = vor.u32 %v14698_v23, %v13434_v38  ;;  %v13565_v33 = vor.u32 %v14730_v2, %v13562_v4  ;;  %v14694_v44 = vld [vmem:[#allocation20 + $0x26c] sm:$0xf]  ;;  %v13418_v57 = vld [vmem:[#allocation20 + $0x278] sm:$0xf0]  ;;  %v13712_v38 = vld [vmem:[#allocation23 + $0xc0] sm:$0xf] }
 0x7f9   : > { %v14726_v51 = vld [vmem:[#allocation20 + $0x36c] sm:$0xf]  ;;  %v13546_v52 = vld [vmem:[#allocation20 + $0x378] sm:$0xf0]  ;;  %v14771_v4 = vld [vmem:[#allocation23 + $0xcc] sm:$0xf0] }
 0x7fa   : > { %9709 = vmatpush.bf16.msra.mxu0 %v13193_v40  ;;  %9722 = vmatpush.bf16.msrb.mxu1 %v13321_v47  ;;  %v14646_v40 = vld [vmem:[#allocation20 + $0xec] sm:$0xf]  ;;  %v13226_v47 = vld [vmem:[#allocation20 + $0xf8] sm:$0xf0] }
 0x7fb   : > { %9735 = vmatpush.bf16.msrb.mxu2 %v13449_v11  ;;  %9748 = vmatpush.bf16.msrb.mxu3 %v13577_v56  ;;  %v14710_v11 = vld [vmem:[#allocation20 + $0x2ec] sm:$0xf]  ;;  %v13113_v56 = vor.u32 %v14620_v13, %v13112_v27  ;;  %v13181_v27 = vor.u32 %v14634_v46, %v13178_v42  ;;  %v13162_v13 = vld [vmem:[#allocation20 + $0x78] sm:$0xf0]  ;;  %v13856_v46 = vld [vmem:[#allocation23 + $0x1e0] sm:$0xf] }
 0x7fc   : > { %v14807_v42 = vld [vmem:[#allocation23 + $0x1ec] sm:$0xf0] }
 0x7fd   : > { %v13857_v2 = vor.u32 %v14807_v42, %v13856_v46  ;;  %v14761_v42 = vld [vmem:[#allocation23 + $0x84] sm:$0xf] }
 0x7fe   : > { %9710 = vmatpush.bf16.msra.mxu0 %v13177_v21  ;;  %9723 = vmatpush.bf16.msrb.mxu1 %v13305_v45  ;;  %v13229_v21 = vor.u32 %v14646_v40, %v13226_v47  ;;  %v13357_v45 = vor.u32 %v14678_v1, %v13354_v37  ;;  %v14626_v1 = vld [vmem:[#allocation20 + $0x4c] sm:$0xf]  ;;  %v13146_v37 = vld [vmem:[#allocation20 + $0x58] sm:$0xf0] }
 0x7ff   : > { %9736 = vmatpush.bf16.msrb.mxu2 %v13433_v30  ;;  %9749 = vmatpush.bf16.msrb.mxu3 %v13561_v6  ;;  %v13485_v30 = vor.u32 %v14710_v11, %v13482_v0  ;;  %v13613_v6 = vor.u32 %v14742_v24, %v13610_v12  ;;  %v13421_v11 = vor.u32 %v14694_v44, %v13418_v57  ;;  %v13274_v0 = vld [vmem:[#allocation20 + $0x158] sm:$0xf0]  ;;  %v14690_v24 = vld [vmem:[#allocation20 + $0x24c] sm:$0xf]  ;;  %v13824_v57 = vld [vmem:[#allocation23 + $0x1a0] sm:$0xf] }
 0x800   : > { %9663 = vmatmul.bf16.vlgmr.msrb.gmra.mxu0 %v18254_v58  ;;  %9676 = vmatmul.bf16.vlgmr.msra.gmra.mxu1 %v18256_v9  ;;  %v13402_v12 = vld [vmem:[#allocation20 + $0x258] sm:$0xf0] }
 0x801   : > { %9689 = vmatmul.bf16.vlgmr.msra.gmra.mxu2 %v18258_v48  ;;  %9702 = vmatmul.bf16.vlgmr.msra.gmra.mxu3 %v18260_v10 }
 0x802   : > { %9711 = vmatpush.bf16.msra.mxu0 %v13161_v35  ;;  %9724 = vmatpush.bf16.msrb.mxu1 %v13289_v59  ;;  %v13213_v35 = vor.u32 %v14642_v31, %v13210_v62  ;;  %v13341_v59 = vor.u32 %v14674_v36, %v13338_v5  ;;  %v14622_v31 = vld [vmem:[#allocation20 + $0x2c] sm:$0xf]  ;;  %v13130_v62 = vld [vmem:[#allocation20 + $0x38] sm:$0xf0] }
 0x803   : > { %9737 = vmatpush.bf16.msrb.mxu2 %v13417_v49  ;;  %9750 = vmatpush.bf16.msrb.mxu3 %v13545_v63  ;;  %v13469_v49 = vor.u32 %v14706_v8, %v13466_v55  ;;  %v13597_v63 = vor.u32 %v14738_v29, %v13594_v22  ;;  %v14654_v36 = vld [vmem:[#allocation20 + $0x12c] sm:$0xf]  ;;  %v13258_v5 = vld [vmem:[#allocation20 + $0x138] sm:$0xf0] }
 0x804   : > { %v14686_v8 = vld [vmem:[#allocation20 + $0x22c] sm:$0xf]  ;;  %v13386_v55 = vld [vmem:[#allocation20 + $0x238] sm:$0xf0] }
 0x805   : > { %v14718_v29 = vld [vmem:[#allocation20 + $0x32c] sm:$0xf]  ;;  %v13514_v22 = vld [vmem:[#allocation20 + $0x338] sm:$0xf0] }
 0x806   : > { %9712 = vmatpush.bf16.msra.mxu0 %v13145_v14  ;;  %9725 = vmatpush.bf16.msrb.mxu1 %v13273_v25  ;;  %v13197_v14 = vor.u32 %v14638_v41, %v13194_v19  ;;  %v13325_v25 = vor.u32 %v14670_v39, %v13322_v7  ;;  %v14618_v41 = vld [vmem:[#allocation20 + $0xc] sm:$0xf]  ;;  %v13114_v19 = vld [vmem:[#allocation20 + $0x18] sm:$0xf0]  ;;  %v13517_v39 = vor.u32 %v14718_v29, %v13514_v22  ;;  %v14751_v29 = vld [vmem:[#allocation23 + $0x2c] sm:$0xf0] }
 0x807   : > { %9738 = vmatpush.bf16.msrb.mxu2 %v13401_v15  ;;  %9751 = vmatpush.bf16.msrb.mxu3 %v13529_v28  ;;  %v13453_v15 = vor.u32 %v14702_v50, %v13450_v54  ;;  %v13581_v28 = vor.u32 %v14734_v3, %v13578_v16  ;;  %v13242_v7 = vld [vmem:[#allocation20 + $0x118] sm:$0xf0]  ;;  %v14682_v50 = vld [vmem:[#allocation20 + $0x20c] sm:$0xf]  ;;  %v13760_v22 = vld [vmem:[#allocation23 + $0x120] sm:$0xf] }
 0x808   : > { %v13370_v54 = vld [vmem:[#allocation20 + $0x218] sm:$0xf0]  ;;  %v14714_v3 = vld [vmem:[#allocation20 + $0x30c] sm:$0xf] }
 0x809   : > { %v13498_v16 = vld [vmem:[#allocation20 + $0x318] sm:$0xf0] }
 0x80a   : > { %9713 = vmatpush.bf16.msra.mxu0 %v13129_v34  ;;  %9726 = vmatpush.bf16.msrb.mxu1 %v13257_v17  ;;  %v13309_v34 = vor.u32 %v14666_v43, %v13306_v26  ;;  %v14630_v17 = vld [vmem:[#allocation20 + $0x6c] sm:$0xf]  ;;  %v13373_v43 = vor.u32 %v14682_v50, %v13370_v54  ;;  %v13501_v26 = vor.u32 %v14714_v3, %v13498_v16  ;;  %v14769_v54 = vld [vmem:[#allocation23 + $0xc4] sm:$0xf]  ;;  %v13714_v3 = vld [vmem:[#allocation23 + $0xd0] sm:$0xf0] }
 0x80b   : > { %9739 = vmatpush.bf16.msrb.mxu2 %v13385_v60  ;;  %9752 = vmatpush.bf16.msrb.mxu3 %v13513_v18  ;;  %v14662_v60 = vld [vmem:[#allocation20 + $0x16c] sm:$0xf]  ;;  %v13290_v18 = vld [vmem:[#allocation20 + $0x178] sm:$0xf0]  ;;  %v13165_v40 = vor.u32 %v14630_v17, %v13162_v13  ;;  %v13984_v17 = vld [vmem:[#allocation23 + $0x2e0] sm:$0xf]  ;;  %v13717_v16 = vor.u32 %v14769_v54, %v13714_v3 }
 0x80c   : > { %v13293_v47 = vor.u32 %v14662_v60, %v13290_v18  ;;  %v14839_v13 = vld [vmem:[#allocation23 + $0x2ec] sm:$0xf0]  ;;  %v13696_v60 = vld [vmem:[#allocation23 + $0xa0] sm:$0xf]  ;;  %v14785_v3 = vld [vmem:[#allocation23 + $0x144] sm:$0xf] }
 0x80d   : > { %v14767_v18 = vld [vmem:[#allocation23 + $0xac] sm:$0xf0] }
 0x80e   : > { %9714 = vmatpush.bf16.msra.mxu0 %v13113_v56  ;;  %9727 = vmatpush.bf16.msrb.mxu1 %v13241_v20  ;;  %v13549_v56 = vor.u32 %v14726_v51, %v13546_v52  ;;  %v14658_v20 = vld [vmem:[#allocation20 + $0x14c] sm:$0xf]  ;;  %v14799_v51 = vld [vmem:[#allocation23 + $0x1ac] sm:$0xf0]  ;;  %v13968_v52 = vld [vmem:[#allocation23 + $0x2c0] sm:$0xf] }
 0x80f   : > { %9740 = vmatpush.bf16.msrb.mxu2 %v13369_v32  ;;  %9753 = vmatpush.bf16.msrb.mxu3 %v13497_v61  ;;  %v14722_v32 = vld [vmem:[#allocation20 + $0x34c] sm:$0xf]  ;;  %v13530_v61 = vld [vmem:[#allocation20 + $0x358] sm:$0xf0] }
 0x811   : > { %9715 = vmatmul.bf16.vlgmr.msra.gmra.mxu0 %v18254_v58  ;;  %9728 = vmatmul.bf16.vlgmr.msrb.gmra.mxu1 %v18256_v9 }
 0x812   : > { %9759 = vmatpush.bf16.msrb.mxu0 %v13229_v21  ;;  %9772 = vmatpush.bf16.msra.mxu1 %v13357_v45  ;;  %v13149_v21 = vor.u32 %v14626_v1, %v13146_v37  ;;  %v13277_v45 = vor.u32 %v14658_v20, %v13274_v0  ;;  %v13697_v1 = vor.u32 %v14767_v18, %v13696_v60  ;;  %v13680_v37 = vld [vmem:[#allocation23 + $0x80] sm:$0xf]  ;;  %v13666_v60 = vld [vmem:[#allocation23 + $0x70] sm:$0xf0] }
 0x813   : > { %9785 = vmatpush.bf16.msra.mxu2 %v13485_v30  ;;  %9798 = vmatpush.bf16.msra.mxu3 %v13613_v6  ;;  %v13405_v30 = vor.u32 %v14690_v24, %v13402_v12  ;;  %v13533_v6 = vor.u32 %v14722_v32, %v13530_v61  ;;  %v13808_v20 = vld [vmem:[#allocation23 + $0x180] sm:$0xf]  ;;  %v14759_v32 = vld [vmem:[#allocation23 + $0x6c] sm:$0xf0] }
 0x814   : > { %9741 = vmatmul.bf16.vlgmr.msrb.gmra.mxu2 %v18258_v48  ;;  %9754 = vmatmul.bf16.vlgmr.msrb.gmra.mxu3 %v18260_v10  ;;  %v13952_v0 = vld [vmem:[#allocation23 + $0x2a0] sm:$0xf] }
 0x815   : > { %v13792_v61 = vld [vmem:[#allocation23 + $0x160] sm:$0xf] }
 0x816   : > { %9760 = vmatpush.bf16.msrb.mxu0 %v13213_v35  ;;  %9773 = vmatpush.bf16.msra.mxu1 %v13341_v59  ;;  %v13133_v35 = vor.u32 %v14622_v31, %v13130_v62  ;;  %v13261_v59 = vor.u32 %v14654_v36, %v13258_v5  ;;  %v13648_v31 = vld [vmem:[#allocation23 + $0x40] sm:$0xf]  ;;  %v14787_v36 = vld [vmem:[#allocation23 + $0x14c] sm:$0xf0] }
 0x817   : > { %9786 = vmatpush.bf16.msra.mxu2 %v13469_v49  ;;  %9799 = vmatpush.bf16.msra.mxu3 %v13597_v63  ;;  %v14650_v49 = vld [vmem:[#allocation20 + $0x10c] sm:$0xf]  ;;  %v13389_v63 = vor.u32 %v14686_v8, %v13386_v55  ;;  %v13632_v8 = vld [vmem:[#allocation23 + $0x20] sm:$0xf] }
 0x81a   : > { %9761 = vmatpush.bf16.msrb.mxu0 %v13197_v14  ;;  %9774 = vmatpush.bf16.msra.mxu1 %v13325_v25  ;;  %v13728_v14 = vld [vmem:[#allocation23 + $0xe0] sm:$0xf]  ;;  %v14775_v25 = vld [vmem:[#allocation23 + $0xec] sm:$0xf0] }
 0x81b   : > { %9787 = vmatpush.bf16.msra.mxu2 %v13453_v15  ;;  %9800 = vmatpush.bf16.msra.mxu3 %v13581_v28  ;;  %v13117_v15 = vor.u32 %v14618_v41, %v13114_v19  ;;  %v13245_v28 = vor.u32 %v14650_v49, %v13242_v7  ;;  %v13729_v23 = vor.u32 %v14775_v25, %v13728_v14  ;;  %v13616_v19 = vld [vmem:[#allocation23] sm:$0xf]  ;;  %v14747_v49 = vld [vmem:[#allocation23 + $0xc] sm:$0xf0]  ;;  %v14765_v14 = vld [vmem:[#allocation23 + $0xa4] sm:$0xf] }
 0x81c   : > { %v13617_v7 = vor.u32 %v14747_v49, %v13616_v19  ;;  %v13698_v25 = vld [vmem:[#allocation23 + $0xb0] sm:$0xf0]  ;;  %v14096_v19 = vld [vmem:[#allocation23 + $0x3c0] sm:$0xf] }
 0x81d   : > { %v13701_v46 = vor.u32 %v14765_v14, %v13698_v25  ;;  %v14833_v14 = vld [vmem:[#allocation23 + $0x2c4] sm:$0xf] }
 0x81e   : > { %9762 = vmatpush.bf16.msrb.mxu0 %v13181_v27  ;;  %9775 = vmatpush.bf16.msra.mxu1 %v13309_v34  ;;  %v13840_v27 = vld [vmem:[#allocation23 + $0x1c0] sm:$0xf]  ;;  %v14803_v34 = vld [vmem:[#allocation23 + $0x1cc] sm:$0xf0] }
 0x81f   : > { %9788 = vmatpush.bf16.msra.mxu2 %v13437_v53  ;;  %9801 = vmatpush.bf16.msra.mxu3 %v13565_v33  ;;  %v13985_v53 = vor.u32 %v14839_v13, %v13984_v17  ;;  %v13713_v33 = vor.u32 %v14771_v4, %v13712_v38  ;;  %v13841_v44 = vor.u32 %v14803_v34, %v13840_v27  ;;  %v14827_v38 = vld [vmem:[#allocation23 + $0x28c] sm:$0xf0]  ;;  %v14805_v4 = vld [vmem:[#allocation23 + $0x1e4] sm:$0xf]  ;;  %v13858_v27 = vld [vmem:[#allocation23 + $0x1f0] sm:$0xf0] }
 0x820   : > { %v13920_v34 = vld [vmem:[#allocation23 + $0x260] sm:$0xf]  ;;  %v13861_v13 = vor.u32 %v14805_v4, %v13858_v27  ;;  %v14829_v4 = vld [vmem:[#allocation23 + $0x2a4] sm:$0xf]  ;;  %v13954_v27 = vld [vmem:[#allocation23 + $0x2b0] sm:$0xf0] }
 0x822   : > { %9763 = vmatpush.bf16.msrb.mxu0 %v13165_v40  ;;  %9776 = vmatpush.bf16.msra.mxu1 %v13293_v47  ;;  %v14835_v40 = vld [vmem:[#allocation23 + $0x2cc] sm:$0xf0] }
 0x823   : > { %9789 = vmatpush.bf16.msra.mxu2 %v13421_v11  ;;  %9802 = vmatpush.bf16.msra.mxu3 %v13549_v56  ;;  %v13969_v47 = vor.u32 %v14835_v40, %v13968_v52  ;;  %v14763_v11 = vld [vmem:[#allocation23 + $0x8c] sm:$0xf0]  ;;  %v13825_v56 = vor.u32 %v14799_v51, %v13824_v57  ;;  %v14753_v57 = vld [vmem:[#allocation23 + $0x44] sm:$0xf]  ;;  %v13650_v51 = vld [vmem:[#allocation23 + $0x50] sm:$0xf0] }
 0x824   : > { %v13681_v12 = vor.u32 %v14763_v11, %v13680_v37  ;;  %v14801_v52 = vld [vmem:[#allocation23 + $0x1c4] sm:$0xf]  ;;  %v13653_v40 = vor.u32 %v14753_v57, %v13650_v51  ;;  %v14819_v37 = vld [vmem:[#allocation23 + $0x24c] sm:$0xf0]  ;;  %v13938_v51 = vld [vmem:[#allocation23 + $0x290] sm:$0xf0] }
 0x825   : > { %v14825_v57 = vld [vmem:[#allocation23 + $0x284] sm:$0xf] }
 0x826   : > { %9764 = vmatpush.bf16.msrb.mxu0 %v13149_v21  ;;  %9777 = vmatpush.bf16.msra.mxu1 %v13277_v45  ;;  %v14791_v21 = vld [vmem:[#allocation23 + $0x16c] sm:$0xf0] }
 0x827   : > { %9790 = vmatpush.bf16.msra.mxu2 %v13405_v30  ;;  %9803 = vmatpush.bf16.msra.mxu3 %v13533_v6  ;;  %v13793_v62 = vor.u32 %v14791_v21, %v13792_v61  ;;  %v14755_v30 = vld [vmem:[#allocation23 + $0x4c] sm:$0xf0]  ;;  %v13776_v6 = vld [vmem:[#allocation23 + $0x140] sm:$0xf]  ;;  %v13618_v21 = vld [vmem:[#allocation23 + $0x10] sm:$0xf0] }
 0x828   : > { %v13649_v5 = vor.u32 %v14755_v30, %v13648_v31  ;;  %v13777_v55 = vor.u32 %v14787_v36, %v13776_v6  ;;  %v13810_v31 = vld [vmem:[#allocation23 + $0x190] sm:$0xf0]  ;;  %v14811_v30 = vld [vmem:[#allocation23 + $0x20c] sm:$0xf0]  ;;  %v14112_v6 = vld [vmem:[#allocation23 + $0x3e0] sm:$0xf] }
 0x829   : > { %v14871_v36 = vld [vmem:[#allocation23 + $0x3ec] sm:$0xf0] }
 0x82a   : > { %9765 = vmatpush.bf16.msrb.mxu0 %v13133_v35  ;;  %9778 = vmatpush.bf16.msra.mxu1 %v13261_v59  ;;  %v14783_v35 = vld [vmem:[#allocation23 + $0x12c] sm:$0xf0]  ;;  %v13633_v59 = vor.u32 %v14751_v29, %v13632_v8  ;;  %v14837_v29 = vld [vmem:[#allocation23 + $0x2e4] sm:$0xf] }
 0x82b   : > { %9791 = vmatpush.bf16.msra.mxu2 %v13389_v63  ;;  %9804 = vmatpush.bf16.msra.mxu3 %v13517_v39  ;;  %v13761_v41 = vor.u32 %v14783_v35, %v13760_v22  ;;  %v14773_v63 = vld [vmem:[#allocation23 + $0xe4] sm:$0xf]  ;;  %v13730_v39 = vld [vmem:[#allocation23 + $0xf0] sm:$0xf0] }
 0x82c   : > { %v13733_v50 = vor.u32 %v14773_v63, %v13730_v39  ;;  %v13986_v22 = vld [vmem:[#allocation23 + $0x2f0] sm:$0xf0]  ;;  %v14867_v63 = vld [vmem:[#allocation23 + $0x3cc] sm:$0xf0] }
 0x82d   : > { %v13989_v49 = vor.u32 %v14837_v29, %v13986_v22  ;;  %v14097_v39 = vor.u32 %v14867_v63, %v14096_v19  ;;  %v14768_v63 = vld [vmem:[#allocation23 + $0xb4] sm:$0xf0] }
 0x82e   : > { %9766 = vmatpush.bf16.msrb.mxu0 %v13117_v15  ;;  %9779 = vmatpush.bf16.msra.mxu1 %v13245_v28  ;;  %v13682_v15 = vld [vmem:[#allocation23 + $0x90] sm:$0xf0]  ;;  %v13744_v28 = vld [vmem:[#allocation23 + $0x100] sm:$0xf] }
 0x82f   : > { %9792 = vmatpush.bf16.msra.mxu2 %v13373_v43  ;;  %9805 = vmatpush.bf16.msra.mxu3 %v13501_v26  ;;  %v14779_v43 = vld [vmem:[#allocation23 + $0x10c] sm:$0xf0]  ;;  %v13936_v26 = vld [vmem:[#allocation23 + $0x280] sm:$0xf]  ;;  %v13685_v17 = vor.u32 %v14761_v42, %v13682_v15 }
 0x831   : > { %9767 = vmatmul.bf16.vlgmr.msrb.gmra.mxu0 %v18254_v58  ;;  %9780 = vmatmul.bf16.vlgmr.msra.gmra.mxu1 %v18256_v9  ;;  %v14795_v58 = vld [vmem:[#allocation23 + $0x18c] sm:$0xf0] }
 0x832   : > { %10597 = vmatpush.bf16.msra.mxu0 %v13729_v23  ;;  %10610 = vmatpush.bf16.msrb.mxu1 %v13857_v2  ;;  %v14831_v9 = vld [vmem:[#allocation23 + $0x2ac] sm:$0xf0]  ;;  %v13745_v23 = vor.u32 %v14779_v43, %v13744_v28  ;;  %v13937_v2 = vor.u32 %v14827_v38, %v13936_v26  ;;  %v14080_v43 = vld [vmem:[#allocation23 + $0x3a0] sm:$0xf] }
 0x833   : > { %9793 = vmatmul.bf16.vlgmr.msra.gmra.mxu2 %v18258_v48  ;;  %9806 = vmatmul.bf16.vlgmr.msra.gmra.mxu3 %v18260_v10  ;;  %v13953_v24 = vor.u32 %v14831_v9, %v13952_v0  ;;  %v13664_v48 = vld [vmem:[#allocation23 + $0x60] sm:$0xf]  ;;  %v13809_v10 = vor.u32 %v14795_v58, %v13808_v20  ;;  %v14749_v20 = vld [vmem:[#allocation23 + $0x24] sm:$0xf]  ;;  %v13634_v58 = vld [vmem:[#allocation23 + $0x30] sm:$0xf0] }
 0x834   : > { %10623 = vmatpush.bf16.msrb.mxu2 %v13985_v53  ;;  %v13665_v45 = vor.u32 %v14759_v32, %v13664_v48  ;;  %v14823_v53 = vld [vmem:[#allocation23 + $0x26c] sm:$0xf0]  ;;  %v14797_v0 = vld [vmem:[#allocation23 + $0x1a4] sm:$0xf]  ;;  %v13826_v9 = vld [vmem:[#allocation23 + $0x1b0] sm:$0xf0]  ;;  %v13637_v48 = vor.u32 %v14749_v20, %v13634_v58 }
 0x835   : > { %v13921_v18 = vor.u32 %v14823_v53, %v13920_v34  ;;  %v14745_v32 = vld [vmem:[#allocation23 + $0x4] sm:$0xf]  ;;  %v14863_v26 = vld [vmem:[#allocation23 + $0x3ac] sm:$0xf0]  ;;  %v14064_v53 = vld [vmem:[#allocation23 + $0x380] sm:$0xf] }
 0x836   : > { %10598 = vmatpush.bf16.msra.mxu0 %v13713_v33  ;;  %10611 = vmatpush.bf16.msrb.mxu1 %v13841_v44  ;;  %v14757_v33 = vld [vmem:[#allocation23 + $0x64] sm:$0xf]  ;;  %v14081_v38 = vor.u32 %v14863_v26, %v14080_v43  ;;  %v14000_v43 = vld [vmem:[#allocation23 + $0x300] sm:$0xf]  ;;  %v14843_v26 = vld [vmem:[#allocation23 + $0x30c] sm:$0xf0] }
 0x837   : > { %v13669_v44 = vor.u32 %v14757_v33, %v13666_v60  ;;  %v14859_v33 = vld [vmem:[#allocation23 + $0x38c] sm:$0xf0]  ;;  %v14777_v60 = vld [vmem:[#allocation23 + $0x104] sm:$0xf] }
 0x838   : > { %10624 = vmatpush.bf16.msrb.mxu2 %v13969_v47  ;;  %v13842_v47 = vld [vmem:[#allocation23 + $0x1d0] sm:$0xf0]  ;;  %v14821_v58 = vld [vmem:[#allocation23 + $0x264] sm:$0xf] }
 0x839   : > { %v13845_v11 = vor.u32 %v14801_v52, %v13842_v47  ;;  %v13941_v47 = vor.u32 %v14825_v57, %v13938_v51  ;;  %v13672_v51 = vld [vmem:[#allocation23 + $0x68] sm:$0xf] }
 0x83a   : > { %10599 = vmatpush.bf16.msra.mxu0 %v13697_v1  ;;  %10612 = vmatpush.bf16.msrb.mxu1 %v13825_v56  ;;  %v13904_v1 = vld [vmem:[#allocation23 + $0x240] sm:$0xf] }
 0x83b   : > { %v13905_v56 = vor.u32 %v14819_v37, %v13904_v1  ;;  %v14048_v1 = vld [vmem:[#allocation23 + $0x360] sm:$0xf]  ;;  %v14855_v37 = vld [vmem:[#allocation23 + $0x36c] sm:$0xf0] }
 0x83c   : > { %10625 = vmatpush.bf16.msrb.mxu2 %v13953_v24  ;;  %v13888_v24 = vld [vmem:[#allocation23 + $0x220] sm:$0xf]  ;;  %v14049_v20 = vor.u32 %v14855_v37, %v14048_v1  ;;  %v14760_v1 = vld [vmem:[#allocation23 + $0x74] sm:$0xf0]  ;;  %v13864_v37 = vld [vmem:[#allocation23 + $0x1e8] sm:$0xf] }
 0x83e   : > { %10600 = vmatpush.bf16.msra.mxu0 %v13681_v12  ;;  %10613 = vmatpush.bf16.msrb.mxu1 %v13809_v10  ;;  %v14815_v12 = vld [vmem:[#allocation23 + $0x22c] sm:$0xf0]  ;;  %v13829_v10 = vor.u32 %v14797_v0, %v13826_v9  ;;  %v13922_v0 = vld [vmem:[#allocation23 + $0x270] sm:$0xf0] }
 0x83f   : > { %v13889_v61 = vor.u32 %v14815_v12, %v13888_v24 }
 0x840   : > { %10626 = vmatpush.bf16.msrb.mxu2 %v13937_v2  ;;  %v13762_v2 = vld [vmem:[#allocation23 + $0x130] sm:$0xf0] }
 0x842   : > { %10601 = vmatpush.bf16.msra.mxu0 %v13665_v45  ;;  %10614 = vmatpush.bf16.msrb.mxu1 %v13793_v62  ;;  %v14793_v45 = vld [vmem:[#allocation23 + $0x184] sm:$0xf]  ;;  %v13872_v62 = vld [vmem:[#allocation23 + $0x200] sm:$0xf] }
 0x843   : > { %v13813_v8 = vor.u32 %v14793_v45, %v13810_v31  ;;  %v13873_v35 = vor.u32 %v14811_v30, %v13872_v62  ;;  %v13925_v45 = vor.u32 %v14821_v58, %v13922_v0  ;;  %v14861_v58 = vld [vmem:[#allocation23 + $0x3a4] sm:$0xf]  ;;  %v14082_v0 = vld [vmem:[#allocation23 + $0x3b0] sm:$0xf0] }
 0x844   : > { %10627 = vmatpush.bf16.msrb.mxu2 %v13921_v18  ;;  %v13746_v18 = vld [vmem:[#allocation23 + $0x110] sm:$0xf0] }
 0x846   : > { %10602 = vmatpush.bf16.msra.mxu0 %v13649_v5  ;;  %10615 = vmatpush.bf16.msrb.mxu1 %v13777_v55  ;;  %v13621_v5 = vor.u32 %v14745_v32, %v13618_v21  ;;  %v14113_v55 = vor.u32 %v14871_v36, %v14112_v6  ;;  %v14776_v21 = vld [vmem:[#allocation23 + $0xf4] sm:$0xf0] }
 0x848   : > { %10628 = vmatpush.bf16.msrb.mxu2 %v13905_v56  ;;  %10636 = vmatpush.bf16.msrb.mxu3 %v14113_v55 }
 0x84a   : > { %10603 = vmatpush.bf16.msra.mxu0 %v13633_v59  ;;  %10616 = vmatpush.bf16.msrb.mxu1 %v13761_v41  ;;  %v14789_v59 = vld [vmem:[#allocation23 + $0x164] sm:$0xf]  ;;  %v13794_v41 = vld [vmem:[#allocation23 + $0x170] sm:$0xf0] }
 0x84c   : > { %10629 = vmatpush.bf16.msrb.mxu2 %v13889_v61  ;;  %10637 = vmatpush.bf16.msrb.mxu3 %v14097_v39  ;;  %v13736_v61 = vld [vmem:[#allocation23 + $0xe8] sm:$0xf] }
 0x84d   : > { %v13737_v30 = vor.u32 %v14776_v21, %v13736_v61  ;;  %v14804_v61 = vld [vmem:[#allocation23 + $0x1d4] sm:$0xf0]  ;;  %v14085_v21 = vor.u32 %v14861_v58, %v14082_v0  ;;  %v14766_v58 = vld [vmem:[#allocation23 + $0xac] sm:$0xf]  ;;  %v13706_v0 = vld [vmem:[#allocation23 + $0xb8] sm:$0xf0] }
 0x84e   : > { %10604 = vmatpush.bf16.msra.mxu0 %v13617_v7  ;;  %10617 = vmatpush.bf16.msrb.mxu1 %v13745_v23  ;;  %v18278_v7 = vld [vmem:[#allocation21] sm:$0xf]  ;;  %v14781_v23 = vld [vmem:[#allocation23 + $0x124] sm:$0xf] }
 0x84f   : > { %v9595_v54 = vperm.slane %v18278_v7, 0  ;;  %v9596_v36 = vperm.slane %v18278_v7, 1 }
 0x850   : > { %10630 = vmatpush.bf16.msrb.mxu2 %v13873_v35  ;;  %10638 = vmatpush.bf16.msrb.mxu3 %v14081_v38  ;;  %v14001_v38 = vor.u32 %v14843_v26, %v14000_v43 }
 0x852   : > { %10649 = vmatpush.bf16.msrb.mxu0 %v13733_v50  ;;  %10662 = vmatpush.bf16.msra.mxu1 %v13861_v13  ;;  %v13797_v50 = vor.u32 %v14789_v59, %v13794_v41  ;;  %v13957_v13 = vor.u32 %v14829_v4, %v13954_v27  ;;  %v14817_v59 = vld [vmem:[#allocation23 + $0x244] sm:$0xf]  ;;  %v13906_v41 = vld [vmem:[#allocation23 + $0x250] sm:$0xf0] }
 0x853   : > { %v13909_v39 = vor.u32 %v14817_v59, %v13906_v41  ;;  %v13874_v4 = vld [vmem:[#allocation23 + $0x210] sm:$0xf0]  ;;  %v14869_v27 = vld [vmem:[#allocation23 + $0x3e4] sm:$0xf]  ;;  %v13832_v59 = vld [vmem:[#allocation23 + $0x1a8] sm:$0xf] }
 0x854   : > { %10675 = vmatpush.bf16.msra.mxu2 %v13989_v49  ;;  %v13704_v49 = vld [vmem:[#allocation23 + $0xa8] sm:$0xf]  ;;  %v14800_v41 = vld [vmem:[#allocation23 + $0x1b4] sm:$0xf0] }
 0x856   : > { %10650 = vmatpush.bf16.msrb.mxu0 %v13717_v16  ;;  %10663 = vmatpush.bf16.msra.mxu1 %v13845_v11  ;;  %v13778_v16 = vld [vmem:[#allocation23 + $0x150] sm:$0xf0] }
 0x857   : > { %v13781_v25 = vor.u32 %v14785_v3, %v13778_v16  ;;  %v14847_v3 = vld [vmem:[#allocation23 + $0x32c] sm:$0xf0]  ;;  %v14813_v16 = vld [vmem:[#allocation23 + $0x224] sm:$0xf] }
 0x85a   : > { %10651 = vmatpush.bf16.msrb.mxu0 %v13701_v46  ;;  %10664 = vmatpush.bf16.msra.mxu1 %v13829_v10  ;;  %v13970_v46 = vld [vmem:[#allocation23 + $0x2d0] sm:$0xf0]  ;;  %v14851_v10 = vld [vmem:[#allocation23 + $0x34c] sm:$0xf0] }
 0x85b   : > { %v13973_v28 = vor.u32 %v14833_v14, %v13970_v46  ;;  %v13688_v46 = vld [vmem:[#allocation23 + $0x88] sm:$0xf] }
 0x85d   : > { %10676 = vmatpush.bf16.msra.mxu2 %v13973_v28  ;;  %v14764_v28 = vld [vmem:[#allocation23 + $0x94] sm:$0xf0] }
 0x85e   : > { %10652 = vmatpush.bf16.msrb.mxu0 %v13685_v17  ;;  %10665 = vmatpush.bf16.msra.mxu1 %v13813_v8  ;;  %v13765_v17 = vor.u32 %v14781_v23, %v13762_v2  ;;  %v14772_v8 = vld [vmem:[#allocation23 + $0xd4] sm:$0xf0]  ;;  %v14809_v2 = vld [vmem:[#allocation23 + $0x204] sm:$0xf]  ;;  %v13689_v57 = vor.u32 %v14764_v28, %v13688_v46 }
 0x861   : > { %10677 = vmatpush.bf16.msra.mxu2 %v13957_v13  ;;  %v13877_v13 = vor.u32 %v14809_v2, %v13874_v4 }
 0x862   : > { %10653 = vmatpush.bf16.msrb.mxu0 %v13669_v44  ;;  %10666 = vmatpush.bf16.msra.mxu1 %v13797_v50  ;;  %v14065_v44 = vor.u32 %v14859_v33, %v14064_v53  ;;  %v14114_v53 = vld [vmem:[#allocation23 + $0x3f0] sm:$0xf0] }
 0x864   : > { %10639 = vmatpush.bf16.msrb.mxu3 %v14065_v44  ;;  %v14117_v44 = vor.u32 %v14869_v27, %v14114_v53  ;;  %v14770_v53 = vld [vmem:[#allocation23 + $0xcc] sm:$0xf] }
 0x865   : > { %10678 = vmatpush.bf16.msra.mxu2 %v13941_v47 }
 0x866   : > { %10654 = vmatpush.bf16.msrb.mxu0 %v13653_v40  ;;  %10667 = vmatpush.bf16.msra.mxu1 %v13781_v25  ;;  %v13749_v40 = vor.u32 %v14777_v60, %v13746_v18  ;;  %v13890_v25 = vld [vmem:[#allocation23 + $0x230] sm:$0xf0] }
 0x868   : > { %10640 = vmatpush.bf16.msrb.mxu3 %v14049_v20 }
 0x869   : > { %10679 = vmatpush.bf16.msra.mxu2 %v13925_v45 }
 0x86a   : > { %10655 = vmatpush.bf16.msrb.mxu0 %v13637_v48  ;;  %10668 = vmatpush.bf16.msra.mxu1 %v13765_v17  ;;  %v14032_v48 = vld [vmem:[#allocation23 + $0x340] sm:$0xf] }
 0x86b   : > { %v14033_v31 = vor.u32 %v14851_v10, %v14032_v48  ;;  %v14756_v10 = vld [vmem:[#allocation23 + $0x54] sm:$0xf0] }
 0x86d   : > { %v9612_v42 = vpop.f32.mrf.mxu0  ;;  %v9625_v15 = vpop.f32.mrf.mxu1  ;;  %10641 = vmatpush.bf16.msrb.mxu3 %v14033_v31  ;;  %10680 = vmatpush.bf16.msra.mxu2 %v13909_v39 }
 0x86e   : > { %10656 = vmatpush.bf16.msrb.mxu0 %v13621_v5  ;;  %v9613_v34 = vadd.f32 %v9612_v42, %v9595_v54  ;;  %10669 = vmatpush.bf16.msra.mxu1 %v13749_v40  ;;  %v13720_v5 = vld [vmem:[#allocation23 + $0xc8] sm:$0xf]  ;;  %v14016_v54 = vld [vmem:[#allocation23 + $0x320] sm:$0xf]  ;;  %v13893_v42 = vor.u32 %v14813_v16, %v13890_v25  ;;  %v14098_v40 = vld [vmem:[#allocation23 + $0x3d0] sm:$0xf0] }
 0x86f   : > { %v13721_v19 = vor.u32 %v14772_v8, %v13720_v5  ;;  %v14017_v14 = vor.u32 %v14847_v3, %v14016_v54  ;;  %v13833_v54 = vor.u32 %v14800_v41, %v13832_v59  ;;  %v13624_v3 = vld [vmem:[#allocation23 + $0x8] sm:$0xf]  ;;  %v14748_v16 = vld [vmem:[#allocation23 + $0x14] sm:$0xf0] }
 0x870   : > { %v9626_v52 = vadd.f32 %v9625_v15, %v9613_v34  ;;  %v13705_v15 = vor.u32 %v14768_v63, %v13704_v49  ;;  %v14853_v49 = vld [vmem:[#allocation23 + $0x364] sm:$0xf]  ;;  %v14050_v63 = vld [vmem:[#allocation23 + $0x370] sm:$0xf0]  ;;  %v14796_v25 = vld [vmem:[#allocation23 + $0x194] sm:$0xf0] }
 0x871   : > { %10642 = vmatpush.bf16.msrb.mxu3 %v14017_v14  ;;  %10681 = vmatpush.bf16.msra.mxu2 %v13893_v42  ;;  %v13816_v14 = vld [vmem:[#allocation23 + $0x188] sm:$0xf]  ;;  %v14053_v46 = vor.u32 %v14853_v49, %v14050_v63  ;;  %v14774_v42 = vld [vmem:[#allocation23 + $0xec] sm:$0xf]  ;;  %v14780_v63 = vld [vmem:[#allocation23 + $0x114] sm:$0xf0] }
 0x872   : > { %v13752_v49 = vld [vmem:[#allocation23 + $0x108] sm:$0xf] }
 0x874   : > { %v9638_v11 = vpop.f32.mrf.mxu2  ;;  %v9651_v56 = vpop.f32.mrf.mxu3 }
 0x875   : > { %v9639_v9 = vadd.f32 %v9638_v11, %v9626_v52  ;;  %v9614_v24 = vpop.f32.mrf.mxu0  ;;  %v9627_v12 = vpop.f32.mrf.mxu1  ;;  %10643 = vmatpush.bf16.msrb.mxu3 %v14001_v38  ;;  %v14865_v52 = vld [vmem:[#allocation23 + $0x3c4] sm:$0xf]  ;;  %v14808_v11 = vld [vmem:[#allocation23 + $0x1f4] sm:$0xf0]  ;;  %10682 = vmatpush.bf16.msra.mxu2 %v13877_v13  ;;  %v13817_v38 = vor.u32 %v14796_v25, %v13816_v14  ;;  %v13944_v14 = vld [vmem:[#allocation23 + $0x288] sm:$0xf] }
 0x876   : > { %v13865_v24 = vor.u32 %v14808_v11, %v13864_v37  ;;  %v13656_v12 = vld [vmem:[#allocation23 + $0x48] sm:$0xf]  ;;  %v14792_v13 = vld [vmem:[#allocation23 + $0x174] sm:$0xf0] }
 0x877   : > { %v9652_v32 = vadd.f32 %v9651_v56, %v9639_v9  ;;  %v14101_v56 = vor.u32 %v14865_v52, %v14098_v40  ;;  %v13673_v9 = vor.u32 %v14760_v1, %v13672_v51  ;;  %v13657_v5 = vor.u32 %v14756_v10, %v13656_v12  ;;  %v14849_v51 = vld [vmem:[#allocation23 + $0x344] sm:$0xf]  ;;  %v14034_v52 = vld [vmem:[#allocation23 + $0x350] sm:$0xf0]  ;;  %v13784_v1 = vld [vmem:[#allocation23 + $0x148] sm:$0xf] }
 0x878   : > { %v14788_v37 = vld [vmem:[#allocation23 + $0x154] sm:$0xf0]  ;;  %v14037_v11 = vor.u32 %v14849_v51, %v14034_v52  ;;  %v14845_v12 = vld [vmem:[#allocation23 + $0x324] sm:$0xf]  ;;  %v14018_v10 = vld [vmem:[#allocation23 + $0x330] sm:$0xf0] }
 0x879   : > { %v9811_v62 = vmax.f32 %v9652_v32, 0.0  ;;  %10688 = vmatpush.bf16.msra.mxu3 %v14117_v44  ;;  %v13848_v32 = vld [vmem:[#allocation23 + $0x1c8] sm:$0xf]  ;;  %v14840_v44 = vld [vmem:[#allocation23 + $0x2f4] sm:$0xf0] }
 0x87a   : > { %v13849_v8 = vor.u32 %v14804_v61, %v13848_v32  ;;  %v14828_v25 = vld [vmem:[#allocation23 + $0x294] sm:$0xf0]  ;;  %v14798_v51 = vld [vmem:[#allocation23 + $0x1ac] sm:$0xf]  ;;  %v13834_v52 = vld [vmem:[#allocation23 + $0x1b8] sm:$0xf0] }
 0x87b   : > { %v18281_v6 = vpack.c.bf16 %v9811_v62, %v9811_v62  ;;  %v14857_v62 = vld [vmem:[#allocation23 + $0x384] sm:$0xf] }
 0x87c   : > { %v9640_v55 = vpop.f32.mrf.mxu2  ;;  %v9653_v29 = vpop.f32.mrf.mxu3 }
 0x87d   : > { %10605 = vmatmul.bf16.vlgmr.msra.gmra.mxu0 %v18281_v6  ;;  %v9664_v22 = vpop.f32.mrf.mxu0  ;;  %v9677_v35 = vpop.f32.mrf.mxu1  ;;  %10689 = vmatpush.bf16.msra.mxu3 %v14101_v56  ;;  %v13640_v55 = vld [vmem:[#allocation23 + $0x28] sm:$0xf] }
 0x87e   : > { %10701 = vmatpush.bf16.msra.mxu0 %v13737_v30  ;;  %v9665_v50 = vadd.f32 %v9664_v22, %v9596_v36  ;;  %v14066_v30 = vld [vmem:[#allocation23 + $0x390] sm:$0xf0]  ;;  %v9597_v36 = vperm.slane %v18278_v7, 2 }
 0x880   : > { %v9678_v23 = vadd.f32 %v9677_v35, %v9665_v50  ;;  %v14752_v35 = vld [vmem:[#allocation23 + $0x34] sm:$0xf0] }
 0x881   : > { %10690 = vmatpush.bf16.msra.mxu3 %v14085_v21  ;;  %v13641_v50 = vor.u32 %v14752_v35, %v13640_v55  ;;  %v13785_v21 = vor.u32 %v14788_v37, %v13784_v1  ;;  %v13690_v55 = vld [vmem:[#allocation23 + $0x98] sm:$0xf0]  ;;  %v14832_v35 = vld [vmem:[#allocation23 + $0x2b4] sm:$0xf0]  ;;  %v13837_v1 = vor.u32 %v14798_v51, %v13834_v52  ;;  %v13896_v37 = vld [vmem:[#allocation23 + $0x228] sm:$0xf] }
 0x882   : > { %10702 = vmatpush.bf16.msra.mxu0 %v13721_v19  ;;  %v14069_v19 = vor.u32 %v14857_v62, %v14066_v30  ;;  %v13768_v62 = vld [vmem:[#allocation23 + $0x128] sm:$0xf]  ;;  %v14784_v30 = vld [vmem:[#allocation23 + $0x134] sm:$0xf0] }
 0x883   : > { %v13769_v59 = vor.u32 %v14784_v30, %v13768_v62  ;;  %v13880_v30 = vld [vmem:[#allocation23 + $0x208] sm:$0xf] }
 0x884   : > { %v9690_v34 = vpop.f32.mrf.mxu2  ;;  %v9703_v17 = vpop.f32.mrf.mxu3 }
 0x885   : > { %v9691_v33 = vadd.f32 %v9690_v34, %v9678_v23  ;;  %v9666_v60 = vpop.f32.mrf.mxu0  ;;  %v9679_v18 = vpop.f32.mrf.mxu1  ;;  %10691 = vmatpush.bf16.msra.mxu3 %v14069_v19  ;;  %v13625_v23 = vor.u32 %v14748_v16, %v13624_v3  ;;  %v14806_v3 = vld [vmem:[#allocation23 + $0x1ec] sm:$0xf]  ;;  %v13866_v16 = vld [vmem:[#allocation23 + $0x1f8] sm:$0xf0] }
 0x886   : > { %10703 = vmatpush.bf16.msra.mxu0 %v13705_v15  ;;  %v13738_v15 = vld [vmem:[#allocation23 + $0xf8] sm:$0xf0]  ;;  %v13992_v18 = vld [vmem:[#allocation23 + $0x2e8] sm:$0xf] }
 0x887   : > { %v9704_v47 = vadd.f32 %v9703_v17, %v9691_v33  ;;  %v13741_v34 = vor.u32 %v14774_v42, %v13738_v15  ;;  %v13800_v17 = vld [vmem:[#allocation23 + $0x168] sm:$0xf]  ;;  %v13722_v33 = vld [vmem:[#allocation23 + $0xd8] sm:$0xf0]  ;;  %v13993_v56 = vor.u32 %v14840_v44, %v13992_v18  ;;  %v13869_v15 = vor.u32 %v14806_v3, %v13866_v16  ;;  %v14750_v18 = vld [vmem:[#allocation23 + $0x2c] sm:$0xf] }
 0x888   : > { %v13642_v44 = vld [vmem:[#allocation23 + $0x38] sm:$0xf0]  ;;  %v14868_v3 = vld [vmem:[#allocation23 + $0x3d4] sm:$0xf0]  ;;  %v14786_v16 = vld [vmem:[#allocation23 + $0x14c] sm:$0xf] }
 0x889   : > { %v9812_v20 = vmax.f32 %v9704_v47, 0.0  ;;  %10692 = vmatpush.bf16.msra.mxu3 %v14053_v46  ;;  %v13725_v47 = vor.u32 %v14770_v53, %v13722_v33  ;;  %v13753_v46 = vor.u32 %v14780_v63, %v13752_v49 }
 0x88a   : > { %10704 = vmatpush.bf16.msra.mxu0 %v13689_v57  ;;  %v13801_v57 = vor.u32 %v14792_v13, %v13800_v17 }
 0x88b   : > { %v18285_v48 = vpack.c.bf16 %v9812_v20, %v9812_v20  ;;  %v13976_v20 = vld [vmem:[#allocation23 + $0x2c8] sm:$0xf] }
 0x88c   : > { %v9692_v45 = vpop.f32.mrf.mxu2  ;;  %v9705_v31 = vpop.f32.mrf.mxu3 }
 0x88d   : > { %10618 = vmatmul.bf16.vlgmr.msrb.gmra.mxu1 %v18285_v48  ;;  %10657 = vmatmul.bf16.vlgmr.msrb.gmra.mxu0 %v18281_v6  ;;  %v14021_v45 = vor.u32 %v14845_v12, %v14018_v10  ;;  %v13709_v31 = vor.u32 %v14766_v58, %v13706_v0  ;;  %v14794_v58 = vld [vmem:[#allocation23 + $0x18c] sm:$0xf]  ;;  %v13818_v0 = vld [vmem:[#allocation23 + $0x198] sm:$0xf0] }
 0x88e   : > { %10705 = vmatpush.bf16.msra.mxu0 %v13673_v9  ;;  %10714 = vmatpush.bf16.msrb.mxu1 %v13865_v24  ;;  %v9716_v29 = vpop.f32.mrf.mxu0  ;;  %v9729_v22 = vpop.f32.mrf.mxu1  ;;  %v14836_v24 = vld [vmem:[#allocation23 + $0x2d4] sm:$0xf0]  ;;  %v13821_v62 = vor.u32 %v14794_v58, %v13818_v0  ;;  %v14818_v0 = vld [vmem:[#allocation23 + $0x24c] sm:$0xf] }
 0x88f   : > { %v9717_v39 = vadd.f32 %v9716_v29, %v9597_v36  ;;  %10693 = vmatpush.bf16.msra.mxu3 %v14037_v11  ;;  %v14841_v36 = vld [vmem:[#allocation23 + $0x304] sm:$0xf]  ;;  %v14002_v29 = vld [vmem:[#allocation23 + $0x310] sm:$0xf0]  ;;  %v14746_v11 = vld [vmem:[#allocation23 + $0xc] sm:$0xf] }
 0x890   : > { %v14005_v41 = vor.u32 %v14841_v36, %v14002_v29  ;;  %v14812_v36 = vld [vmem:[#allocation23 + $0x214] sm:$0xf0]  ;;  %v14790_v29 = vld [vmem:[#allocation23 + $0x16c] sm:$0xf] }
 0x891   : > { %v9730_v28 = vadd.f32 %v9729_v22, %v9717_v39  ;;  %v13960_v22 = vld [vmem:[#allocation23 + $0x2a8] sm:$0xf]  ;;  %v14758_v39 = vld [vmem:[#allocation23 + $0x6c] sm:$0xf]  ;;  %v14852_v58 = vld [vmem:[#allocation23 + $0x354] sm:$0xf0] }
 0x892   : > { %10706 = vmatpush.bf16.msra.mxu0 %v13657_v5  ;;  %10715 = vmatpush.bf16.msrb.mxu1 %v13849_v8  ;;  %v13977_v5 = vor.u32 %v14836_v24, %v13976_v20  ;;  %v14762_v8 = vld [vmem:[#allocation23 + $0x8c] sm:$0xf]  ;;  %v14816_v20 = vld [vmem:[#allocation23 + $0x234] sm:$0xf0] }
 0x893   : > { %10694 = vmatpush.bf16.msra.mxu3 %v14021_v45  ;;  %v13693_v19 = vor.u32 %v14762_v8, %v13690_v55  ;;  %v14872_v55 = vld [vmem:[#allocation23 + $0x3f4] sm:$0xf0] }
 0x896   : > { %10707 = vmatpush.bf16.msra.mxu0 %v13641_v50  ;;  %10716 = vmatpush.bf16.msrb.mxu1 %v13833_v54  ;;  %v9718_v4 = vpop.f32.mrf.mxu0  ;;  %v9731_v27 = vpop.f32.mrf.mxu1  ;;  %v13961_v50 = vor.u32 %v14832_v35, %v13960_v22  ;;  %v13674_v54 = vld [vmem:[#allocation23 + $0x78] sm:$0xf0]  ;;  %v14838_v35 = vld [vmem:[#allocation23 + $0x2ec] sm:$0xf] }
 0x897   : > { %v9742_v43 = vpop.f32.mrf.mxu2  ;;  %v9755_v26 = vpop.f32.mrf.mxu3  ;;  %10695 = vmatpush.bf16.msra.mxu3 %v14005_v41  ;;  %v13677_v42 = vor.u32 %v14758_v39, %v13674_v54  ;;  %v13850_v4 = vld [vmem:[#allocation23 + $0x1d8] sm:$0xf0]  ;;  %v9598_v27 = vperm.slane %v18278_v7, 3  ;;  %v13645_v7 = vor.u32 %v14750_v18, %v13642_v44  ;;  %v14104_v39 = vld [vmem:[#allocation23 + $0x3c8] sm:$0xf] }
 0x898   : > { %v9743_v2 = vadd.f32 %v9742_v43, %v9730_v28  ;;  %v13945_v28 = vor.u32 %v14828_v25, %v13944_v14  ;;  %v13928_v43 = vld [vmem:[#allocation23 + $0x268] sm:$0xf]  ;;  %v13802_v22 = vld [vmem:[#allocation23 + $0x178] sm:$0xf0]  ;;  %v14826_v44 = vld [vmem:[#allocation23 + $0x28c] sm:$0xf] }
 0x899   : > { %v13805_v63 = vor.u32 %v14790_v29, %v13802_v22  ;;  %v13786_v14 = vld [vmem:[#allocation23 + $0x158] sm:$0xf0] }
 0x89a   : > { %v9756_v60 = vadd.f32 %v9755_v26, %v9743_v2  ;;  %10708 = vmatpush.bf16.msra.mxu0 %v13625_v23  ;;  %10717 = vmatpush.bf16.msrb.mxu1 %v13817_v38  ;;  %v14754_v26 = vld [vmem:[#allocation23 + $0x4c] sm:$0xf]  ;;  %v13658_v23 = vld [vmem:[#allocation23 + $0x58] sm:$0xf0]  ;;  %v14824_v38 = vld [vmem:[#allocation23 + $0x274] sm:$0xf0] }
 0x89b   : > { %v14802_v2 = vld [vmem:[#allocation23 + $0x1cc] sm:$0xf]  ;;  %v13929_v53 = vor.u32 %v14824_v38, %v13928_v43  ;;  %v13789_v43 = vor.u32 %v14786_v16, %v13786_v14  ;;  %v14864_v38 = vld [vmem:[#allocation23 + $0x3b4] sm:$0xf0]  ;;  %v13754_v18 = vld [vmem:[#allocation23 + $0x118] sm:$0xf0] }
 0x89c   : > { %v9813_v40 = vmax.f32 %v9756_v60, 0.0  ;;  %v13853_v33 = vor.u32 %v14802_v2, %v13850_v4  ;;  %v13912_v60 = vld [vmem:[#allocation23 + $0x248] sm:$0xf]  ;;  %v13770_v2 = vld [vmem:[#allocation23 + $0x138] sm:$0xf0] }
 0x89d   : > { %10670 = vmatmul.bf16.vlgmr.msra.gmra.mxu1 %v18285_v48  ;;  %10709 = vmatmul.bf16.vlgmr.msra.gmra.mxu0 %v18281_v6  ;;  %v14830_v4 = vld [vmem:[#allocation23 + $0x2ac] sm:$0xf]  ;;  %v14122_v29 = vld [vmem:[#allocation23 + $0x3f8] sm:$0xf0] }
 0x89e   : > { %10753 = vmatpush.bf16.msrb.mxu0 %v13741_v34  ;;  %v18290_v9 = vpack.c.bf16 %v9813_v40, %v9813_v40  ;;  %10718 = vmatpush.bf16.msrb.mxu1 %v13801_v57  ;;  %v13661_v34 = vor.u32 %v14754_v26, %v13658_v23  ;;  %v14820_v57 = vld [vmem:[#allocation23 + $0x254] sm:$0xf0]  ;;  %v14088_v26 = vld [vmem:[#allocation23 + $0x3a8] sm:$0xf]  ;;  %v14854_v14 = vld [vmem:[#allocation23 + $0x36c] sm:$0xf] }
 0x89f   : > { %v9744_v32 = vpop.f32.mrf.mxu2  ;;  %v9757_v61 = vpop.f32.mrf.mxu3 }
 0x8a0   : > { %10631 = vmatmul.bf16.vlgmr.msrb.gmra.mxu2 %v18290_v9 }
 0x8a1   : > { %10727 = vmatpush.bf16.msrb.mxu2 %v13993_v56  ;;  %v13626_v56 = vld [vmem:[#allocation23 + $0x18] sm:$0xf0] }
 0x8a2   : > { %10754 = vmatpush.bf16.msrb.mxu0 %v13725_v47  ;;  %10719 = vmatpush.bf16.msrb.mxu1 %v13785_v21  ;;  %v13913_v47 = vor.u32 %v14820_v57, %v13912_v60  ;;  %v13629_v32 = vor.u32 %v14746_v11, %v13626_v56  ;;  %v14778_v60 = vld [vmem:[#allocation23 + $0x10c] sm:$0xf]  ;;  %v13946_v57 = vld [vmem:[#allocation23 + $0x298] sm:$0xf0] }
 0x8a3   : > { %v13757_v52 = vor.u32 %v14778_v60, %v13754_v18  ;;  %v14877_v60 = vld [vmem:[%s18470_s13 + $0x20] sm:$0xff]  ;;  %v14888_v18 = vld [vmem:[%s18470_s13 + $0x78] sm:$0xff] }
 0x8a5   : > { %10728 = vmatpush.bf16.msrb.mxu2 %v13977_v5  ;;  %v14120_v5 = vld [vmem:[#allocation23 + $0x3e8] sm:$0xf] }
 0x8a6   : > { %10755 = vmatpush.bf16.msrb.mxu0 %v13709_v31  ;;  %10720 = vmatpush.bf16.msrb.mxu1 %v13769_v59  ;;  %v13897_v31 = vor.u32 %v14816_v20, %v13896_v37  ;;  %v13994_v59 = vld [vmem:[#allocation23 + $0x2f8] sm:$0xf0]  ;;  %v14121_v49 = vor.u32 %v14872_v55, %v14120_v5  ;;  %v14040_v20 = vld [vmem:[#allocation23 + $0x348] sm:$0xf]  ;;  %v14810_v5 = vld [vmem:[#allocation23 + $0x20c] sm:$0xf] }
 0x8a7   : > { %v13997_v54 = vor.u32 %v14838_v35, %v13994_v59  ;;  %v13930_v37 = vld [vmem:[#allocation23 + $0x278] sm:$0xf0]  ;;  %v14870_v55 = vld [vmem:[#allocation23 + $0x3ec] sm:$0xf] }
 0x8a8   : > { %v14125_v35 = vor.u32 %v14870_v55, %v14122_v29  ;;  %v14866_v59 = vld [vmem:[#allocation23 + $0x3cc] sm:$0xf] }
 0x8a9   : > { %10729 = vmatpush.bf16.msrb.mxu2 %v13961_v50 }
 0x8aa   : > { %10756 = vmatpush.bf16.msrb.mxu0 %v13693_v19  ;;  %10721 = vmatpush.bf16.msrb.mxu1 %v13753_v46  ;;  %v13881_v19 = vor.u32 %v14812_v36, %v13880_v30  ;;  %v14008_v30 = vld [vmem:[#allocation23 + $0x308] sm:$0xf]  ;;  %v14844_v36 = vld [vmem:[#allocation23 + $0x314] sm:$0xf0] }
 0x8ad   : > { %10730 = vmatpush.bf16.msrb.mxu2 %v13945_v28  ;;  %10722 = vmatmul.bf16.vlgmr.msrb.gmra.mxu1 %v18285_v48  ;;  %v14105_v28 = vor.u32 %v14868_v3, %v14104_v39  ;;  %v14074_v3 = vld [vmem:[#allocation23 + $0x398] sm:$0xf0] }
 0x8ae   : > { %10757 = vmatpush.bf16.msrb.mxu0 %v13677_v42  ;;  %10766 = vmatpush.bf16.msra.mxu1 %v13869_v15  ;;  %v9768_v17 = vpop.f32.mrf.mxu0  ;;  %v9781_v13 = vpop.f32.mrf.mxu1  ;;  %v14834_v42 = vld [vmem:[#allocation23 + $0x2cc] sm:$0xf]  ;;  %v13978_v15 = vld [vmem:[#allocation23 + $0x2d8] sm:$0xf0] }
 0x8af   : > { %v9769_v40 = vadd.f32 %v9768_v17, %v9598_v27  ;;  %v13981_v23 = vor.u32 %v14834_v42, %v13978_v15  ;;  %v13962_v27 = vld [vmem:[#allocation23 + $0x2b8] sm:$0xf0]  ;;  %v14850_v42 = vld [vmem:[#allocation23 + $0x34c] sm:$0xf] }
 0x8b0   : > { %10683 = vmatmul.bf16.vlgmr.msra.gmra.mxu2 %v18290_v9  ;;  %v14042_v15 = vld [vmem:[#allocation23 + $0x358] sm:$0xf0] }
 0x8b1   : > { %10731 = vmatpush.bf16.msrb.mxu2 %v13929_v53  ;;  %v9782_v24 = vadd.f32 %v9781_v13, %v9769_v40  ;;  %v14072_v13 = vld [vmem:[#allocation23 + $0x388] sm:$0xf]  ;;  %v13965_v53 = vor.u32 %v14830_v4, %v13962_v27  ;;  %v13949_v40 = vor.u32 %v14826_v44, %v13946_v57  ;;  %v14880_v27 = vld [vmem:[%s18470_s13 + $0x38] sm:$0xff] }
 0x8b2   : > { %10758 = vmatpush.bf16.msrb.mxu0 %v13661_v34  ;;  %10767 = vmatpush.bf16.msra.mxu1 %v13853_v33  ;;  %v14089_v34 = vor.u32 %v14864_v38, %v14088_v26  ;;  %v14860_v33 = vld [vmem:[#allocation23 + $0x394] sm:$0xf0]  ;;  %v14026_v26 = vld [vmem:[#allocation23 + $0x338] sm:$0xf0]  ;;  %v14842_v38 = vld [vmem:[#allocation23 + $0x30c] sm:$0xf] }
 0x8b3   : > { %v14073_v51 = vor.u32 %v14860_v33, %v14072_v13  ;;  %v14879_v13 = vld [vmem:[%s18470_s13 + $0x30] sm:$0xff]  ;;  %v14876_v44 = vld [vmem:[%s18470_s13 + $0x18] sm:$0xff] }
 0x8b5   : > { %10732 = vmatpush.bf16.msrb.mxu2 %v13913_v47  ;;  %v14856_v47 = vld [vmem:[#allocation23 + $0x374] sm:$0xf0] }
 0x8b6   : > { %v9794_v12 = vpop.f32.mrf.mxu2  ;;  %v9807_v10 = vpop.f32.mrf.mxu3  ;;  %10759 = vmatpush.bf16.msrb.mxu0 %v13645_v7  ;;  %10768 = vmatpush.bf16.msra.mxu1 %v13837_v1  ;;  %v14056_v7 = vld [vmem:[#allocation23 + $0x368] sm:$0xf]  ;;  %v14822_v1 = vld [vmem:[#allocation23 + $0x26c] sm:$0xf] }
 0x8b7   : > { %v9795_v61 = vadd.f32 %v9794_v12, %v9782_v24  ;;  %v9770_v21 = vpop.f32.mrf.mxu0  ;;  %v9783_v45 = vpop.f32.mrf.mxu1  ;;  %v14057_v11 = vor.u32 %v14856_v47, %v14056_v7  ;;  %v13933_v56 = vor.u32 %v14822_v1, %v13930_v37  ;;  %v13914_v24 = vld [vmem:[#allocation23 + $0x258] sm:$0xf0]  ;;  %v14041_v12 = vor.u32 %v14852_v58, %v14040_v20  ;;  %v14874_v37 = vld [vmem:[%s18470_s13 + $0x8] sm:$0xff]  ;;  %v14885_v20 = vld [vmem:[%s18470_s13 + $0x60] sm:$0xff] }
 0x8b8   : > { %v14814_v21 = vld [vmem:[#allocation23 + $0x22c] sm:$0xf]  ;;  %v13898_v45 = vld [vmem:[#allocation23 + $0x238] sm:$0xf0] }
 0x8b9   : > { %v9808_v8 = vadd.f32 %v9807_v10, %v9795_v61  ;;  %10733 = vmatpush.bf16.msrb.mxu2 %v13897_v31  ;;  %v13917_v10 = vor.u32 %v14818_v0, %v13914_v24  ;;  %v14848_v61 = vld [vmem:[#allocation23 + $0x334] sm:$0xf0] }
 0x8ba   : > { %10760 = vmatpush.bf16.msrb.mxu0 %v13629_v32  ;;  %10769 = vmatpush.bf16.msra.mxu1 %v13821_v62  ;;  %v14024_v32 = vld [vmem:[#allocation23 + $0x328] sm:$0xf]  ;;  %v13901_v62 = vor.u32 %v14814_v21, %v13898_v45  ;;  %v14896_v58 = vld [vmem:[%s18470_s13 + $0xb8] sm:$0xff]  ;;  %v18364_v45 = vld [vmem:[#allocation24] sm:$0xf] }
 0x8bb   : > { %v9814_v41 = vmax.f32 %v9808_v8, 0.0  ;;  %v14025_v31 = vor.u32 %v14848_v61, %v14024_v32  ;;  %v13882_v8 = vld [vmem:[#allocation23 + $0x218] sm:$0xf0]  ;;  %v14883_v32 = vld [vmem:[%s18470_s13 + $0x50] sm:$0xff] }
 0x8bc   : > { %v13885_v22 = vor.u32 %v14810_v5, %v13882_v8  ;;  %v14893_v5 = vld [vmem:[%s18470_s13 + $0xa0] sm:$0xff] }
 0x8bd   : > { %v18298_v50 = vpack.c.bf16 %v9814_v41, %v9814_v41  ;;  %10761 = vmatmul.bf16.vlgmr.msrb.gmra.mxu0 %v18281_v6  ;;  %10734 = vmatpush.bf16.msrb.mxu2 %v13881_v19  ;;  %v14782_v6 = vld [vmem:[#allocation23 + $0x12c] sm:$0xf]  ;;  %v14106_v41 = vld [vmem:[#allocation23 + $0x3d8] sm:$0xf0] }
 0x8be   : > { %v9796_v25 = vpop.f32.mrf.mxu2  ;;  %v9809_v46 = vpop.f32.mrf.mxu3  ;;  %10770 = vmatpush.bf16.msra.mxu1 %v13805_v63  ;;  %v13773_v17 = vor.u32 %v14782_v6, %v13770_v2  ;;  %v14109_v19 = vor.u32 %v14866_v59, %v14106_v41  ;;  %v14090_v63 = vld [vmem:[#allocation23 + $0x3b8] sm:$0xf0]  ;;  %11070 = vmatpush.bf16.msra.mxu0 %v14880_v27  ;;  %v14891_v59 = vld [vmem:[%s18470_s13 + $0x90] sm:$0xff] }
 0x8bf   : > { %10644 = vmatmul.bf16.vlgmr.msrb.gmra.mxu3 %v18298_v50  ;;  %v14058_v25 = vld [vmem:[#allocation23 + $0x378] sm:$0xf0] }
 0x8c0   : > { %10740 = vmatpush.bf16.msrb.mxu3 %v14121_v49  ;;  %10735 = vmatmul.bf16.vlgmr.msrb.gmra.mxu2 %v18290_v9  ;;  %v14862_v49 = vld [vmem:[#allocation23 + $0x3ac] sm:$0xf]  ;;  %v14061_v46 = vor.u32 %v14854_v14, %v14058_v25  ;;  %v10590_v14 = vperm.slane %v18364_v45, 1  ;;  %v14889_v25 = vld [vmem:[%s18470_s13 + $0x80] sm:$0xff] }
 0x8c1   : > { %10779 = vmatpush.bf16.msra.mxu2 %v13997_v54  ;;  %v14093_v39 = vor.u32 %v14862_v49, %v14090_v63  ;;  %v14858_v54 = vld [vmem:[#allocation23 + $0x38c] sm:$0xf] }
 0x8c2   : > { %10771 = vmatpush.bf16.msra.mxu1 %v13789_v43  ;;  %v14077_v16 = vor.u32 %v14858_v54, %v14074_v3  ;;  %v14846_v43 = vld [vmem:[#allocation23 + $0x32c] sm:$0xf]  ;;  %11071 = vmatpush.bf16.msra.mxu0 %v14879_v13  ;;  %v10591_v13 = vperm.slane %v18364_v45, 2 }
 0x8c3   : > { %v14890_v3 = vld [vmem:[%s18470_s13 + $0x88] sm:$0xff] }
 0x8c4   : > { %10741 = vmatpush.bf16.msrb.mxu3 %v14105_v28  ;;  %v14045_v28 = vor.u32 %v14850_v42, %v14042_v15  ;;  %v14903_v42 = vld [vmem:[%s18470_s13 + $0xf0] sm:$0xff] }
 0x8c5   : > { %10780 = vmatpush.bf16.msra.mxu2 %v13981_v23  ;;  %v14029_v23 = vor.u32 %v14846_v43, %v14026_v26  ;;  %v14902_v26 = vld [vmem:[%s18470_s13 + $0xe8] sm:$0xff] }
 0x8c6   : > { %10772 = vmatpush.bf16.msra.mxu1 %v13773_v17 }
 0x8c8   : > { %10742 = vmatpush.bf16.msrb.mxu3 %v14089_v34 }
 0x8c9   : > { %10781 = vmatpush.bf16.msra.mxu2 %v13965_v53  ;;  %v14878_v53 = vld [vmem:[%s18470_s13 + $0x28] sm:$0xff] }
 0x8ca   : > { %10773 = vmatpush.bf16.msra.mxu1 %v13757_v52  ;;  %11072 = vmatpush.bf16.msra.mxu0 %v14878_v53  ;;  %v14875_v52 = vld [vmem:[%s18470_s13 + $0x10] sm:$0xff] }
 0x8cc   : > { %10743 = vmatpush.bf16.msrb.mxu3 %v14073_v51 }
 0x8cd   : > { %10782 = vmatpush.bf16.msra.mxu2 %v13949_v40  ;;  %10774 = vmatmul.bf16.vlgmr.msra.gmra.mxu1 %v18285_v48  ;;  %v14009_v48 = vor.u32 %v14844_v36, %v14008_v30  ;;  %v14887_v40 = vld [vmem:[%s18470_s13 + $0x70] sm:$0xff]  ;;  %v10589_v30 = vperm.slane %v18364_v45, 0  ;;  %v14881_v36 = vld [vmem:[%s18470_s13 + $0x40] sm:$0xff] }
 0x8ce   : > { %11073 = vmatpush.bf16.msra.mxu0 %v14877_v60  ;;  %11083 = vmatpush.bf16.msrb.mxu1 %v14888_v18 }
 0x8cf   : > { %10696 = vmatmul.bf16.vlgmr.msra.gmra.mxu3 %v18298_v50 }
 0x8d0   : > { %10744 = vmatpush.bf16.msrb.mxu3 %v14057_v11  ;;  %v14886_v11 = vld [vmem:[%s18470_s13 + $0x68] sm:$0xff] }
 0x8d1   : > { %10783 = vmatpush.bf16.msra.mxu2 %v13933_v56  ;;  %v14873_v56 = vld [vmem:[%s18470_s13] sm:$0xff] }
 0x8d2   : > { %11074 = vmatpush.bf16.msra.mxu0 %v14876_v44  ;;  %11084 = vmatpush.bf16.msrb.mxu1 %v14887_v40  ;;  %v14898_v40 = vld [vmem:[%s18470_s13 + $0xc8] sm:$0xff] }
 0x8d4   : > { %10745 = vmatpush.bf16.msrb.mxu3 %v14041_v12  ;;  %v14884_v12 = vld [vmem:[%s18470_s13 + $0x58] sm:$0xff] }
 0x8d5   : > { %10784 = vmatpush.bf16.msra.mxu2 %v13917_v10  ;;  %v14895_v10 = vld [vmem:[%s18470_s13 + $0xb0] sm:$0xff] }
 0x8d6   : > { %11075 = vmatpush.bf16.msra.mxu0 %v14875_v52  ;;  %11085 = vmatpush.bf16.msrb.mxu1 %v14886_v11  ;;  %v10592_v11 = vperm.slane %v18364_v45, 3 }
 0x8d8   : > { %10746 = vmatpush.bf16.msrb.mxu3 %v14025_v31  ;;  %v14882_v31 = vld [vmem:[%s18470_s13 + $0x48] sm:$0xff] }
 0x8d9   : > { %10785 = vmatpush.bf16.msra.mxu2 %v13901_v62  ;;  %v14894_v62 = vld [vmem:[%s18470_s13 + $0xa8] sm:$0xff] }
 0x8da   : > { %11076 = vmatpush.bf16.msra.mxu0 %v14874_v37  ;;  %11086 = vmatpush.bf16.msrb.mxu1 %v14885_v20 }
 0x8dc   : > { %10747 = vmatpush.bf16.msrb.mxu3 %v14009_v48  ;;  %v14892_v48 = vld [vmem:[%s18470_s13 + $0x98] sm:$0xff] }
 0x8dd   : > { %10786 = vmatpush.bf16.msra.mxu2 %v13885_v22 }
 0x8de   : > { %11077 = vmatpush.bf16.msra.mxu0 %v14873_v56  ;;  %11087 = vmatpush.bf16.msrb.mxu1 %v14884_v12 }
 0x8df   : > { %10748 = vmatmul.bf16.vlgmr.msrb.gmra.mxu3 %v18298_v50 }
 0x8e0   : > { %10792 = vmatpush.bf16.msra.mxu3 %v14125_v35  ;;  %10787 = vmatmul.bf16.vlgmr.msra.gmra.mxu2 %v18290_v9  ;;  %v14010_v9 = vld [vmem:[#allocation23 + $0x318] sm:$0xf0] }
 0x8e1   : > { %v14013_v6 = vor.u32 %v14842_v38, %v14010_v9  ;;  %11096 = vmatpush.bf16.msrb.mxu2 %v14896_v58 }
 0x8e2   : > { %11088 = vmatpush.bf16.msrb.mxu1 %v14883_v32 }
 0x8e4   : > { %10793 = vmatpush.bf16.msra.mxu3 %v14109_v19 }
 0x8e5   : > { %11097 = vmatpush.bf16.msrb.mxu2 %v14895_v10 }
 0x8e6   : > { %11089 = vmatpush.bf16.msrb.mxu1 %v14882_v31 }
 0x8e8   : > { %10794 = vmatpush.bf16.msra.mxu3 %v14093_v39 }
 0x8e9   : > { %11098 = vmatpush.bf16.msrb.mxu2 %v14894_v62 }
 0x8ea   : > { %11090 = vmatpush.bf16.msrb.mxu1 %v14881_v36 }
 0x8ec   : > { %10795 = vmatpush.bf16.msra.mxu3 %v14077_v16  ;;  %v14904_v16 = vld [vmem:[%s18470_s13 + $0xf8] sm:$0xff] }
 0x8ed   : > { %11099 = vmatpush.bf16.msrb.mxu2 %v14893_v5  ;;  %v10877_v5 = vld [vmem:[#allocation26] sm:$0x1] }
 0x8f0   : > { %10796 = vmatpush.bf16.msra.mxu3 %v14061_v46 }
 0x8f1   : > { %11100 = vmatpush.bf16.msrb.mxu2 %v14892_v48 }
 0x8f4   : > { %10797 = vmatpush.bf16.msra.mxu3 %v14045_v28 }
 0x8f5   : > { %11101 = vmatpush.bf16.msrb.mxu2 %v14891_v59 }
 0x8f8   : > { %10798 = vmatpush.bf16.msra.mxu3 %v14029_v23 }
 0x8f9   : > { %11102 = vmatpush.bf16.msrb.mxu2 %v14890_v3 }
 0x8fa   : > { %v10606_v2 = vpop.f32.mrf.mxu0 }
 0x8fb   : > { %v10607_v55 = vadd.f32 %v10606_v2, %v10589_v30 }
 0x8fc   : > { %10799 = vmatpush.bf16.msra.mxu3 %v14013_v6  ;;  %v14901_v6 = vld [vmem:[%s18470_s13 + $0xe0] sm:$0xff] }
 0x8fd   : > { %11103 = vmatpush.bf16.msrb.mxu2 %v14889_v25 }
 0x8ff   : > { %10800 = vmatmul.bf16.vlgmr.msra.gmra.mxu3 %v18298_v50 }
 0x900   : > { %11109 = vmatpush.bf16.msrb.mxu3 %v14904_v16 }
 0x902   : > { %v10608_v4 = vpop.f32.mrf.mxu0 }
 0x904   : > { %11110 = vmatpush.bf16.msrb.mxu3 %v14903_v42 }
 0x908   : > { %11111 = vmatpush.bf16.msrb.mxu3 %v14902_v26 }
 0x90a   : > { %v10619_v34 = vpop.f32.mrf.mxu1  ;;  %v18311_v17 = vpop.f32.mrf.mxu0 }
 0x90b   : > { %v10620_v22 = vadd.f32 %v10619_v34, %v10607_v55  ;;  %v10659_v28 = vadd.f32 %v18311_v17, %v10590_v14  ;;  %v14900_v34 = vld [vmem:[%s18470_s13 + $0xd8] sm:$0xff] }
 0x90c   : > { %11112 = vmatpush.bf16.msrb.mxu3 %v14901_v6 }
 0x910   : > { %11113 = vmatpush.bf16.msrb.mxu3 %v14900_v34 }
 0x912   : > { %v10621_v50 = vpop.f32.mrf.mxu1  ;;  %v10660_v33 = vpop.f32.mrf.mxu0 }
 0x913   : > { %v14899_v50 = vld [vmem:[%s18470_s13 + $0xd0] sm:$0xff] }
 0x914   : > { %11114 = vmatpush.bf16.msrb.mxu3 %v14899_v50 }
 0x918   : > { %11115 = vmatpush.bf16.msrb.mxu3 %v14898_v40 }
 0x91a   : > { %v18328_v57 = vpop.f32.mrf.mxu1  ;;  %v18330_v51 = vpop.f32.mrf.mxu0 }
 0x91b   : > { %v10672_v23 = vadd.f32 %v18328_v57, %v10659_v28  ;;  %v10711_v33 = vadd.f32 %v18330_v51, %v10591_v13 }
 0x922   : > { %v10673_v47 = vpop.f32.mrf.mxu1  ;;  %v10712_v1 = vpop.f32.mrf.mxu0 }
 0x923   : > { %v10632_v7 = vpop.f32.mrf.mxu2  ;;  %v14897_v47 = vld [vmem:[%s18470_s13 + $0xc0] sm:$0xff] }
 0x924   : > { %v10633_v35 = vadd.f32 %v10632_v7, %v10620_v22  ;;  %11116 = vmatpush.bf16.msrb.mxu3 %v14897_v47 }
 0x92a   : > { %v18353_v24 = vpop.f32.mrf.mxu1 }
 0x92b   : > { %v10634_v0 = vpop.f32.mrf.mxu2  ;;  %v10724_v60 = vadd.f32 %v18353_v24, %v10711_v33 }
 0x932   : > { %v10725_v21 = vpop.f32.mrf.mxu1 }
 0x933   : > { %v10684_v61 = vpop.f32.mrf.mxu2 }
 0x934   : > { %v10685_v38 = vadd.f32 %v10684_v61, %v10672_v23 }
 0x93a   : > { %v18379_v8 = vpop.f32.mrf.mxu0 }
 0x93b   : > { %v10686_v29 = vpop.f32.mrf.mxu2  ;;  %v10763_v56 = vadd.f32 %v18379_v8, %v10592_v11 }
 0x942   : > { %v10645_v41 = vpop.f32.mrf.mxu3  ;;  %v10764_v19 = vpop.f32.mrf.mxu0 }
 0x943   : > { %v10646_v49 = vadd.f32 %v10645_v41, %v10633_v35  ;;  %v10736_v39 = vpop.f32.mrf.mxu2 }
 0x944   : > { %v10737_v18 = vadd.f32 %v10736_v39, %v10724_v60 }
 0x945   : > { %v10805_v63 = vmax.f32 %v10646_v49, 0.0 }
 0x947   : > { %v10809_v54 = vpack.c.bf16 %v10805_v63, %v10805_v63 }
 0x949   : > { %11078 = vmatmul.bf16.vlgmr.msra.gmra.mxu0 %v10809_v54 }
 0x94a   : > { %v10647_v46 = vpop.f32.mrf.mxu3  ;;  %v10775_v15 = vpop.f32.mrf.mxu1 }
 0x94b   : > { %v10738_v43 = vpop.f32.mrf.mxu2  ;;  %v10776_v20 = vadd.f32 %v10775_v15, %v10763_v56 }
 0x952   : > { %v10697_v9 = vpop.f32.mrf.mxu3  ;;  %v10777_v4 = vpop.f32.mrf.mxu1 }
 0x953   : > { %v10698_v2 = vadd.f32 %v10697_v9, %v10685_v38 }
 0x955   : > { %v10806_v27 = vmax.f32 %v10698_v2, 0.0 }
 0x957   : > { %v10810_v17 = vpack.c.bf16 %v10806_v27, %v10806_v27 }
 0x959   : > { %11091 = vmatmul.bf16.vlgmr.msrb.gmra.mxu1 %v10810_v17 }
 0x95a   : > { %v10699_v53 = vpop.f32.mrf.mxu3 }
 0x962   : > { %v10749_v44 = vpop.f32.mrf.mxu3 }
 0x963   : > { %v10750_v57 = vadd.f32 %v10749_v44, %v10737_v18  ;;  %v10788_v52 = vpop.f32.mrf.mxu2 }
 0x964   : > { %v10789_v58 = vadd.f32 %v10788_v52, %v10776_v20 }
 0x965   : > { %v10807_v7 = vmax.f32 %v10750_v57, 0.0 }
 0x967   : > { %v10811_v1 = vpack.c.bf16 %v10807_v7, %v10807_v7 }
 0x969   : > { %11104 = vmatmul.bf16.vlgmr.msrb.gmra.mxu2 %v10811_v1 }
 0x96a   : > { %v10751_v51 = vpop.f32.mrf.mxu3 }
 0x96b   : > { %v10790_v37 = vpop.f32.mrf.mxu2 }
 0x982   : > { %v10801_v0 = vpop.f32.mrf.mxu3 }
 0x983   : > { %v10802_v24 = vadd.f32 %v10801_v0, %v10789_v58 }
 0x985   : > { %v10808_v12 = vmax.f32 %v10802_v24, 0.0 }
 0x987   : > { %v10812_v10 = vpack.c.bf16 %v10808_v12, %v10808_v12 }
 0x989   : > { %11117 = vmatmul.bf16.vlgmr.msrb.gmra.mxu3 %v10812_v10 }
 0x98a   : > { %v10803_v32 = vpop.f32.mrf.mxu3 }
 0x9c6   : > { %v11079_v61 = vpop.f32.mrf.mxu0 }
 0x9c7   : > { %v11080_v45 = vadd.f32 %v11079_v61, %v10877_v5 }
 0x9ce   : > { %v11081_v21 = vpop.f32.mrf.mxu0 }
 0x9d6   : > { %v11092_v31 = vpop.f32.mrf.mxu1 }
 0x9d7   : > { %v11093_v8 = vadd.f32 %v11092_v31, %v11080_v45 }
 0x9de   : > { %v11094_v62 = vpop.f32.mrf.mxu1 }
 0x9ec   : > { %v11105_v30 = vpop.f32.mrf.mxu2 }
 0x9ed   : > { %v11106_v55 = vadd.f32 %v11105_v30, %v11093_v8 }
 0x9f4   : > { %v11107_v36 = vpop.f32.mrf.mxu2 }
 0xa0c   : > { %v11118_v29 = vpop.f32.mrf.mxu3 }
 0xa0d   : > { %v11119_v48 = vadd.f32 %v11118_v29, %v11106_v55 }
 0xa0f   : > { %11123 = vst.msk [vmem:[%s687_s26] sm:$0x1] %vm11122_vm9, %v11119_v48 }
 0xa10   : > { %15513 = shalt.err (!%p15510_p8)
}
 0xa11   : > { %14957 = dma.vmem_to_hbm [thread:$0]  (%p15717_p5), %s11136_s23, 16, %s11138_s2, %s11125_s25  }
 0xa14   : > { %v11120_v22 = vpop.f32.mrf.mxu3 }
 0xa15 PF: > { %s18709_s17 = sld [smem:[#allocation38_spill]] }
 0xa16   : > { %s18710_s24 = sld [smem:[#allocation36_spill]] }
 0xa1b   : > { %p15029_p9 = scmp.ge.s32.totalorder %s18709_s17, 2 }
 0xa1c   : > { %s11149_s18 = sand.u32 1, %s18710_s24  }
 0xa1d   : > { %p15000_p10 = pnand %p15029_p9, %p15721_p6  ;;  %s11150_s21 = scalar_lea.sflag [#allocation8], %s11149_s18 }
 0xa1f   : > { %p15001_p11 = pneg %p15000_p10 }
 0xa21   : > { %15559 = dma.done.wait (%p15001_p11), %s11150_s21, 16  }
 0xa22   : > { %15561 = vsyncadd (%p15001_p11), %s11150_s21, 4294967280  ;;  %s18712_s21 = sld [smem:[#allocation39_spill]]  ;;  %s18715_s18 = smov %s15568_s19 }
 0xa23   : > { %s18713_s20 = sld [smem:[#allocation37_spill]] }
 0xa24   : > { %s18714_s29 = sld [smem:[#allocation40_spill]] }
 0xa28   : > { %p32_p12 = scmp.ge.s32.totalorder %s18712_s21, 4  }
 0xa29   : > { %s18716_s19 = smov %s18713_s20 }
 0xa2a   : > { %s18717_s20 = smov %s18714_s29  ;;  %34 = sbr.rel (!%p32_p12) target bundleno = 16 (0x10), region = 249 }
 0xa2f   :  { %11155 = vsyncpa [#allocation7], 1 }
 0xa30   :  { %11157 = vsyncpa [#allocation7 + $0x1], 1 }
 0xa31   :  { %11158 = vsyncpa [#allocation10], 1 }
 0xa32   :  { %11159 = vsyncpa [#allocation13], 1 }
 0xa33   :  { %11160 = vsyncpa [#allocation16], 1 }
 0xa34   :  { %11161 = vsyncpa [#allocation19], 1 }
 0xa35   :  { %11162 = vsyncpa [#allocation22], 1 }
 0xa36   :  { %11163 = vsyncpa [#allocation25], 1 }
 0xa37   :  { %11164 = vsyncpa [#allocation8], 1 }
 0xa38   :  { %11166 = vsyncpa [#allocation8 + $0x1], 1 }

</bundles_post_ra>
